<compile_context>
chip_gen: v6e
topology: v6e:2x2x1
jax: 0.10.0
libtpu: 0.0.40
codegen_flags: <defaults>
</compile_context>

<pallas_src>
import functools

import jax
import jax.numpy as jnp
from jax.experimental import pallas as pl
from jax.experimental.pallas import tpu as pltpu

# ----------------------------- configuration --------------------------------
L_XYZ = 4                          # xyz positional-encoding frequencies
L_T = 4                            # t positional-encoding frequencies (== L_XYZ)
HIDDEN = 32                        # field MLP width
N_XYZ_COMPS = 1 + 2 * L_XYZ        # 9 components * 3 dims -> 27
N_T_COMPS = 1 + 2 * L_T            # 9 components * 1 dim  -> 9
TILE = 2048                        # points per grid step (lane tile)
FREQS = tuple(float(2 ** i) for i in range(L_XYZ))


# ------------------------------- Pallas kernel -------------------------------
def _first_layer(wx_ref, ws_ref, wc_ref, b_ref, x, x_scaled):
    """First Linear on the positional encoding [x | sin(f*x) | cos(f*x)].

    x: (C, T) f32, x_scaled: (L*C, T) f32.  Weights are bf16, accumulation f32.
    One sin + one cos on the full lane-dense scaled block; 3 fused dots
    instead of 1 + 2L per-component matmuls.
    """
    s = jnp.sin(x_scaled).astype(jnp.bfloat16)
    c = jnp.cos(x_scaled).astype(jnp.bfloat16)
    acc = b_ref[...] + jnp.dot(wx_ref[...], x.astype(jnp.bfloat16),
                               preferred_element_type=jnp.float32)
    acc = acc + jnp.dot(ws_ref[...], s, preferred_element_type=jnp.float32)
    acc = acc + jnp.dot(wc_ref[...], c, preferred_element_type=jnp.float32)
    return acc


def field_kernel(*refs, no_deform):
    if no_deform:
        (pts_ref, xsc_ref,
         wc1x, wc1s, wc1c, bc1, wc2, bc2, wh, bh, out_ref) = refs
    else:
        (pts_ref, xsc_ref, t_ref, tsc_ref,
         wd1x, wd1s, wd1c, wdt0, wdts, wdtc, bd1, wd2, bd2, wd3, bd3,
         wc1x, wc1s, wc1c, bc1, wc2, bc2, wh, bh, out_ref) = refs

    pts = pts_ref[...]          # (3, T) f32
    x_scaled = xsc_ref[...]     # (L*3, T) f32

    if no_deform:
        # Deform offset is gated off at this iteration: skip the deform MLP
        # and the t embedding entirely; reuse the xyz scaled coordinates.
        pts_c, xc_scaled = pts, x_scaled
    else:
        # ---- deform MLP: Linear(PE(xyz) ++ PE(t) -> H) -> relu -> H -> relu -> 3
        h = _first_layer(wd1x, wd1s, wd1c, bd1, pts, x_scaled)
        t = t_ref[...]          # (1, T)
        t_sc = tsc_ref[...]     # (L, T)
        h = h + jnp.dot(wdt0[...], t.astype(jnp.bfloat16),
                        preferred_element_type=jnp.float32)
        h = h + jnp.dot(wdts[...], jnp.sin(t_sc).astype(jnp.bfloat16),
                        preferred_element_type=jnp.float32)
        h = h + jnp.dot(wdtc[...], jnp.cos(t_sc).astype(jnp.bfloat16),
                        preferred_element_type=jnp.float32)
        h = jnp.maximum(h, 0.0)
        h = jnp.maximum(
            jnp.dot(wd2[...], h.astype(jnp.bfloat16),
                    preferred_element_type=jnp.float32) + bd2[...], 0.0)
        dx = jnp.dot(wd3[...], h.astype(jnp.bfloat16),
                     preferred_element_type=jnp.float32) + bd3[...]
        pts_c = pts + dx
        xc_scaled = jnp.concatenate([pts_c * f for f in FREQS], axis=0)

    # ---- canonical MLP: Linear(PE(xyz') -> H) -> relu -> H -> relu -> fused head
    g = jnp.maximum(_first_layer(wc1x, wc1s, wc1c, bc1, pts_c, xc_scaled), 0.0)
    g = jnp.maximum(
        jnp.dot(wc2[...], g.astype(jnp.bfloat16),
                preferred_element_type=jnp.float32) + bc2[...], 0.0)
    head = jnp.dot(wh[...], g.astype(jnp.bfloat16),
                   preferred_element_type=jnp.float32) + bh[...]       # (4, T)

    # row 0: raw density; rows 1..3: sigmoid rgb (EUP exp + approx reciprocal).
    sig = pl.reciprocal(1.0 + jnp.exp(-head), approx=True)
    row = jax.lax.broadcasted_iota(jnp.int32, head.shape, 0)
    out_ref[...] = jnp.where(row == 0, head, sig).astype(out_ref.dtype)


# ------------------------------ kernel wrapper --------------------------------
def run_field(points, tstamp, params, no_deform):
    """points: (N, 3) f32, tstamp: (N, 1) f32 -> (alphas (N,1), colors (N,3))."""
    n = points.shape[0]
    n_pad = pl.cdiv(n, TILE) * TILE
    pts_t = jnp.pad(points.astype(jnp.float32), ((0, n_pad - n), (0, 0))).T    # (3, n_pad)
    x_scaled = jnp.concatenate([f * pts_t for f in FREQS], axis=0)             # (L*3, n_pad)

    if no_deform:
        data = (pts_t, x_scaled)
        weights = params['canonical']
    else:
        t_t = jnp.pad(tstamp.astype(jnp.float32), ((0, n_pad - n), (0, 0))).T  # (1, n_pad)
        t_scaled = jnp.concatenate([f * t_t for f in FREQS], axis=0)           # (L, n_pad)
        data = (pts_t, x_scaled, t_t, t_scaled)
        weights = params['deform'] + params['canonical']

    data_specs = [pl.BlockSpec((a.shape[0], TILE), lambda i: (0, i)) for a in data]
    weight_specs = [pl.BlockSpec(w.shape, lambda i: (0, 0)) for w in weights]

    out = pl.pallas_call(
        functools.partial(field_kernel, no_deform=no_deform),
        out_shape=jax.ShapeDtypeStruct((4, n_pad), jnp.float32),
        grid_spec=pltpu.PrefetchScalarGridSpec(
            num_scalar_prefetch=0,
            grid=(n_pad // TILE,),
            in_specs=data_specs + weight_specs,
            out_specs=pl.BlockSpec((4, TILE), lambda i: (0, i))),
        compiler_params=pltpu.CompilerParams(
            dimension_semantics=("parallel",)),
    )(*data, *weights)

    out = out[:, :n]
    alphas = out[0:1, :].T          # (n, 1) raw density
    colors = out[1:4, :].T          # (n, 3) sigmoid rgb
    return alphas, colors


# --------------------------- plain-JAX glue (render) ---------------------------
def raw2outputs(alphas, colors, z_vals, rays_dir, alpha_noise_std, background):
    del alpha_noise_std  # 0.0 in this configuration
    dists = z_vals[..., 1:] - z_vals[..., :-1]
    dists = jnp.concatenate([dists, jnp.full_like(dists[..., :1], 1e10)], axis=-1)
    dists = dists * jnp.linalg.norm(rays_dir[..., None, :], axis=-1)
    a = 1.0 - jnp.exp(-jax.nn.relu(alphas[..., 0]) * dists)
    trans = jnp.cumprod(
        jnp.concatenate([jnp.ones_like(a[..., :1]), 1.0 - a + 1e-10], axis=-1),
        axis=-1)[..., :-1]
    weights = a * trans
    color_map = jnp.sum(weights[..., None] * colors, axis=-2)
    depth_map = jnp.sum(weights * z_vals, axis=-1)
    acc_map = jnp.sum(weights, axis=-1)
    if background:
        color_map = color_map + (1.0 - acc_map[..., None])
    return dict(color_map=color_map, depth_map=depth_map,
                acc_map=acc_map, weights=weights)


def deform_nerf_forward(rays, params, render_params):
    rays_ori = rays['rays_ori'].reshape(-1, 3).astype(jnp.float32)
    rays_dir = rays['rays_dir'].reshape(-1, 3).astype(jnp.float32)
    rays_color = rays['rays_color'].reshape(-1, 3).astype(jnp.float32)
    B, R = rays['rays_ori'].shape[:2]
    timestamp = jnp.broadcast_to(
        rays['timestamp'][:, None].astype(jnp.float32), (B, R)).reshape(-1, 1)

    n_samples = render_params['n_samples']
    near, far = render_params['near'], render_params['far']
    t_vals = jnp.linspace(0.0, 1.0, n_samples, dtype=jnp.float32)
    near_seq = near * jnp.ones(rays_ori.shape[:-1], jnp.float32)
    far_seq = far * jnp.ones(rays_ori.shape[:-1], jnp.float32)
    z_vals = near_seq[..., None] * (1.0 - t_vals) + far_seq[..., None] * t_vals
    # perturb=False -> no stratified jitter; use_dirs=False -> no directions

    points = rays_ori[..., None, :] + rays_dir[..., None, :] * z_vals[..., :, None]
    shape = points.shape[:-1]                                  # (N_rays, n_samples)
    ts_exp = jnp.broadcast_to(timestamp[:, None, :], shape + (1,)).reshape(-1, 1)
    pts_flat = points.reshape(-1, 3)

    # iter=0 < 0.7 * init_iters  ->  coarse_field.no_deform = True
    alphas, colors = run_field(pts_flat, ts_exp, params, no_deform=True)
    alphas = alphas.reshape(shape + (1,))
    colors = colors.reshape(shape + (3,))

    coarse = raw2outputs(alphas, colors, z_vals, rays_dir,
                         render_params['alpha_noise_std'],
                         render_params['background'])
    outputs = {'fine': None, 'coarse': coarse}   # fine_field=None -> no fine pass

    im_loss = (coarse['color_map'] - rays_color) ** 2
    outputs['coarse_loss'] = im_loss.mean()

    background_mask = (rays['rays_color'].sum(2) == 0).reshape(-1)
    denom = jnp.maximum(background_mask.sum(), 1)
    acc_loss = jnp.where(background_mask, coarse['acc_map'] ** 2, 0.0).sum() / denom
    outputs['acc_loss'] = acc_loss * 0.1
    return outputs


# ------------------------------ parameter init --------------------------------
def init_params(key):
    def lin(k, fan_in, fan_out):
        # stored (out_features, in_features) like nn.Linear, bias (out, 1)
        w = jax.random.normal(k, (fan_out, fan_in), jnp.float32) / jnp.sqrt(float(fan_in))
        b = jnp.zeros((fan_out, 1), jnp.float32)
        return w, b

    ks = jax.random.split(key, 7)
    wd1, bd1 = lin(ks[0], 3 * N_XYZ_COMPS + N_T_COMPS, HIDDEN)   # Linear(36, H)
    wd2, bd2 = lin(ks[1], HIDDEN, HIDDEN)
    wd3, bd3 = lin(ks[2], HIDDEN, 3)
    wm1, bm1 = lin(ks[3], 3 * N_XYZ_COMPS, HIDDEN)               # Linear(27, H)
    wm2, bm2 = lin(ks[4], HIDDEN, HIDDEN)
    wa, ba = lin(ks[5], HIDDEN, 1)
    wc, bc = lin(ks[6], HIDDEN, 3)

    bf = lambda w: w.astype(jnp.bfloat16)   # matmul operands in bf16, f32 acc
    nx = 3 * L_XYZ                          # 12 sin (and 12 cos) columns

    # First layers split by PE block ([x | sin(f*x), freq-major | cos(...)]),
    # alpha/color heads fused into a single (4, H) weight (one dot, one store).
    canonical = (bf(wm1[:, 0:3]), bf(wm1[:, 3:3 + nx]), bf(wm1[:, 3 + nx:3 + 2 * nx]),
                 bm1, bf(wm2), bm2,
                 bf(jnp.concatenate([wa, wc], axis=0)),
                 jnp.concatenate([ba, bc], axis=0))
    xoff = 3 * N_XYZ_COMPS
    deform = (bf(wd1[:, 0:3]), bf(wd1[:, 3:3 + nx]), bf(wd1[:, 3 + nx:xoff]),
              bf(wd1[:, xoff:xoff + 1]), bf(wd1[:, xoff + 1:xoff + 1 + L_T]),
              bf(wd1[:, xoff + 1 + L_T:]),
              bd1, bf(wd2), bd2, bf(wd3), bd3)
    return dict(canonical=canonical, deform=deform)


# ----------------------------------- main -------------------------------------
if __name__ == "__main__":
    key = jax.random.PRNGKey(0)
    kp, k1, k2, k3, k4 = jax.random.split(key, 5)
    params = init_params(kp)

    B, R = 2, 16
    rays = dict(
        rays_ori=jax.random.normal(k1, (B, R, 3), jnp.float32),
        rays_dir=jax.random.normal(k2, (B, R, 3), jnp.float32),
        rays_color=jax.random.uniform(k3, (B, R, 3), jnp.float32),
        timestamp=jax.random.uniform(k4, (B,), jnp.float32),
    )
    render_params = dict(n_samples=8, n_importance=0, perturb=False,
                         alpha_noise_std=0.0, inv_depth=False, use_dirs=False,
                         max_rays_num=4096, near=0.5, far=2.0, background=False)

    # TODO(synk): sample_pdf / fine-field importance sampling is skipped because
    # fine_field=None in this configuration (matches the reference control flow).
    outputs = deform_nerf_forward(rays, params, render_params)
    jax.block_until_ready(outputs['coarse']['color_map'])
    jax.block_until_ready(outputs['coarse_loss'])
    jax.block_until_ready(outputs['acc_loss'])
    print("KERNEL_OK")
</pallas_src>

<mosaic_0001>
module attributes {stable_mosaic.version = 11 : i64} {
  func.func @field_kernel(%arg0: i32, %arg1: memref<3x2048xf32, #tpu.memory_space<vmem>>, %arg2: memref<12x2048xf32, #tpu.memory_space<vmem>>, %arg3: memref<32x3xbf16, #tpu.memory_space<vmem>>, %arg4: memref<32x12xbf16, #tpu.memory_space<vmem>>, %arg5: memref<32x12xbf16, #tpu.memory_space<vmem>>, %arg6: memref<32x1xf32, #tpu.memory_space<vmem>>, %arg7: memref<32x32xbf16, #tpu.memory_space<vmem>>, %arg8: memref<32x1xf32, #tpu.memory_space<vmem>>, %arg9: memref<4x32xbf16, #tpu.memory_space<vmem>>, %arg10: memref<4x1xf32, #tpu.memory_space<vmem>>, %arg11: memref<4x2048xf32, #tpu.memory_space<vmem>>) attributes {dimension_semantics = [#tpu.dimension_semantics<parallel>], iteration_bounds = array<i64: 1>, scalar_prefetch = 0 : i64, scratch_operands = 0 : i64, tpu.core_type = #tpu.core_type<tc>, window_params = [{transform_indices = @transform_0, window_bounds = array<i64: 3, 2048>}, {transform_indices = @transform_1, window_bounds = array<i64: 12, 2048>}, {pipeline_mode = #tpu.pipeline_mode<synchronous>, transform_indices = @transform_2, window_bounds = array<i64: 32, 3>}, {pipeline_mode = #tpu.pipeline_mode<synchronous>, transform_indices = @transform_3, window_bounds = array<i64: 32, 12>}, {pipeline_mode = #tpu.pipeline_mode<synchronous>, transform_indices = @transform_4, window_bounds = array<i64: 32, 12>}, {pipeline_mode = #tpu.pipeline_mode<synchronous>, transform_indices = @transform_5, window_bounds = array<i64: 32, 1>}, {pipeline_mode = #tpu.pipeline_mode<synchronous>, transform_indices = @transform_6, window_bounds = array<i64: 32, 32>}, {pipeline_mode = #tpu.pipeline_mode<synchronous>, transform_indices = @transform_7, window_bounds = array<i64: 32, 1>}, {pipeline_mode = #tpu.pipeline_mode<synchronous>, transform_indices = @transform_8, window_bounds = array<i64: 4, 32>}, {pipeline_mode = #tpu.pipeline_mode<synchronous>, transform_indices = @transform_9, window_bounds = array<i64: 4, 1>}, {transform_indices = @transform_10, window_bounds = array<i64: 4, 2048>}]} {
    %c0 = arith.constant 0 : index
    %c0_0 = arith.constant 0 : index
    %0 = vector.load %arg1[%c0, %c0_0] : memref<3x2048xf32, #tpu.memory_space<vmem>>, vector<3x2048xf32>
    %c0_1 = arith.constant 0 : index
    %c0_2 = arith.constant 0 : index
    %1 = vector.load %arg2[%c0_1, %c0_2] : memref<12x2048xf32, #tpu.memory_space<vmem>>, vector<12x2048xf32>
    %2 = math.sin %1 : vector<12x2048xf32>
    %3 = arith.truncf %2 : vector<12x2048xf32> to vector<12x2048xbf16>
    %4 = math.cos %1 : vector<12x2048xf32>
    %5 = arith.truncf %4 : vector<12x2048xf32> to vector<12x2048xbf16>
    %c0_3 = arith.constant 0 : index
    %c0_4 = arith.constant 0 : index
    %6 = vector.load %arg6[%c0_3, %c0_4] : memref<32x1xf32, #tpu.memory_space<vmem>>, vector<32x1xf32>
    %c0_5 = arith.constant 0 : index
    %c0_6 = arith.constant 0 : index
    %7 = vector.load %arg3[%c0_5, %c0_6] : memref<32x3xbf16, #tpu.memory_space<vmem>>, vector<32x3xbf16>
    %8 = arith.truncf %0 : vector<3x2048xf32> to vector<3x2048xbf16>
    %cst = arith.constant dense<0.000000e+00> : vector<32x2048xf32>
    %9 = tpu.matmul %7, %8, %cst {dimension_numbers = #tpu.dot_dimension_numbers<[1], [0], [0], [1], [0, 0, 1, 1], [], []>} : vector<32x3xbf16>, vector<3x2048xbf16>, vector<32x2048xf32> -> vector<32x2048xf32>
    %10 = vector.broadcast %6 : vector<32x1xf32> to vector<32x2048xf32>
    %11 = arith.addf %10, %9 : vector<32x2048xf32>
    %c0_7 = arith.constant 0 : index
    %c0_8 = arith.constant 0 : index
    %12 = vector.load %arg4[%c0_7, %c0_8] : memref<32x12xbf16, #tpu.memory_space<vmem>>, vector<32x12xbf16>
    %cst_9 = arith.constant dense<0.000000e+00> : vector<32x2048xf32>
    %13 = tpu.matmul %12, %3, %cst_9 {dimension_numbers = #tpu.dot_dimension_numbers<[1], [0], [0], [1], [0, 0, 1, 1], [], []>} : vector<32x12xbf16>, vector<12x2048xbf16>, vector<32x2048xf32> -> vector<32x2048xf32>
    %14 = arith.addf %11, %13 : vector<32x2048xf32>
    %c0_10 = arith.constant 0 : index
    %c0_11 = arith.constant 0 : index
    %15 = vector.load %arg5[%c0_10, %c0_11] : memref<32x12xbf16, #tpu.memory_space<vmem>>, vector<32x12xbf16>
    %cst_12 = arith.constant dense<0.000000e+00> : vector<32x2048xf32>
    %16 = tpu.matmul %15, %5, %cst_12 {dimension_numbers = #tpu.dot_dimension_numbers<[1], [0], [0], [1], [0, 0, 1, 1], [], []>} : vector<32x12xbf16>, vector<12x2048xbf16>, vector<32x2048xf32> -> vector<32x2048xf32>
    %17 = arith.addf %14, %16 : vector<32x2048xf32>
    %cst_13 = arith.constant 0.000000e+00 : f32
    %18 = vector.broadcast %cst_13 : f32 to vector<32x2048xf32>
    %19 = arith.maximumf %17, %18 : vector<32x2048xf32>
    %c0_14 = arith.constant 0 : index
    %c0_15 = arith.constant 0 : index
    %20 = vector.load %arg7[%c0_14, %c0_15] : memref<32x32xbf16, #tpu.memory_space<vmem>>, vector<32x32xbf16>
    %21 = arith.truncf %19 : vector<32x2048xf32> to vector<32x2048xbf16>
    %cst_16 = arith.constant dense<0.000000e+00> : vector<32x2048xf32>
    %22 = tpu.matmul %20, %21, %cst_16 {dimension_numbers = #tpu.dot_dimension_numbers<[1], [0], [0], [1], [0, 0, 1, 1], [], []>} : vector<32x32xbf16>, vector<32x2048xbf16>, vector<32x2048xf32> -> vector<32x2048xf32>
    %c0_17 = arith.constant 0 : index
    %c0_18 = arith.constant 0 : index
    %23 = vector.load %arg8[%c0_17, %c0_18] : memref<32x1xf32, #tpu.memory_space<vmem>>, vector<32x1xf32>
    %24 = vector.broadcast %23 : vector<32x1xf32> to vector<32x2048xf32>
    %25 = arith.addf %22, %24 : vector<32x2048xf32>
    %cst_19 = arith.constant 0.000000e+00 : f32
    %26 = vector.broadcast %cst_19 : f32 to vector<32x2048xf32>
    %27 = arith.maximumf %25, %26 : vector<32x2048xf32>
    %c0_20 = arith.constant 0 : index
    %c0_21 = arith.constant 0 : index
    %28 = vector.load %arg9[%c0_20, %c0_21] : memref<4x32xbf16, #tpu.memory_space<vmem>>, vector<4x32xbf16>
    %29 = arith.truncf %27 : vector<32x2048xf32> to vector<32x2048xbf16>
    %cst_22 = arith.constant dense<0.000000e+00> : vector<4x2048xf32>
    %30 = tpu.matmul %28, %29, %cst_22 {dimension_numbers = #tpu.dot_dimension_numbers<[1], [0], [0], [1], [0, 0, 1, 1], [], []>} : vector<4x32xbf16>, vector<32x2048xbf16>, vector<4x2048xf32> -> vector<4x2048xf32>
    %c0_23 = arith.constant 0 : index
    %c0_24 = arith.constant 0 : index
    %31 = vector.load %arg10[%c0_23, %c0_24] : memref<4x1xf32, #tpu.memory_space<vmem>>, vector<4x1xf32>
    %32 = vector.broadcast %31 : vector<4x1xf32> to vector<4x2048xf32>
    %33 = arith.addf %30, %32 : vector<4x2048xf32>
    %cst_25 = arith.constant 0.000000e+00 : f32
    %34 = vector.broadcast %cst_25 : f32 to vector<4x2048xf32>
    %35 = arith.subf %34, %33 : vector<4x2048xf32>
    %36 = math.exp %35 : vector<4x2048xf32>
    %cst_26 = arith.constant 1.000000e+00 : f32
    %37 = vector.broadcast %cst_26 : f32 to vector<4x2048xf32>
    %38 = arith.addf %37, %36 : vector<4x2048xf32>
    %39 = tpu.reciprocal %38 {approx = true} : vector<4x2048xf32> -> vector<4x2048xf32>
    %40 = tpu.iota {dimensions = array<i32: 0>} : vector<4x2048xi32>
    %c0_i32 = arith.constant 0 : i32
    %41 = vector.broadcast %c0_i32 : i32 to vector<4x2048xi32>
    %42 = arith.cmpi eq, %40, %41 : vector<4x2048xi32>
    %43 = arith.select %42, %33, %39 : vector<4x2048xi1>, vector<4x2048xf32>
    %c0_27 = arith.constant 0 : index
    %c0_28 = arith.constant 0 : index
    %44 = vector.load %arg11[%c0_27, %c0_28] : memref<4x2048xf32, #tpu.memory_space<vmem>>, vector<4x2048xf32>
    tpu.vector_store %arg11[%c0_27, %c0_28], %43 {strides = array<i32>} : memref<4x2048xf32, #tpu.memory_space<vmem>>, vector<4x2048xf32>,
    return
  }
  func.func @transform_0(%arg0: i32) -> (i32, i32) {
    %c0_i32 = arith.constant 0 : i32
    %c0_i32_0 = arith.constant 0 : i32
    return %c0_i32, %arg0 : i32, i32
  }
  func.func @transform_1(%arg0: i32) -> (i32, i32) {
    %c0_i32 = arith.constant 0 : i32
    %c0_i32_0 = arith.constant 0 : i32
    return %c0_i32, %arg0 : i32, i32
  }
  func.func @transform_2(%arg0: i32) -> (i32, i32) {
    %c0_i32 = arith.constant 0 : i32
    %c0_i32_0 = arith.constant 0 : i32
    %c0_i32_1 = arith.constant 0 : i32
    return %c0_i32, %c0_i32_0 : i32, i32
  }
  func.func @transform_3(%arg0: i32) -> (i32, i32) {
    %c0_i32 = arith.constant 0 : i32
    %c0_i32_0 = arith.constant 0 : i32
    %c0_i32_1 = arith.constant 0 : i32
    return %c0_i32, %c0_i32_0 : i32, i32
  }
  func.func @transform_4(%arg0: i32) -> (i32, i32) {
    %c0_i32 = arith.constant 0 : i32
    %c0_i32_0 = arith.constant 0 : i32
    %c0_i32_1 = arith.constant 0 : i32
    return %c0_i32, %c0_i32_0 : i32, i32
  }
  func.func @transform_5(%arg0: i32) -> (i32, i32) {
    %c0_i32 = arith.constant 0 : i32
    %c0_i32_0 = arith.constant 0 : i32
    %c0_i32_1 = arith.constant 0 : i32
    return %c0_i32, %c0_i32_0 : i32, i32
  }
  func.func @transform_6(%arg0: i32) -> (i32, i32) {
    %c0_i32 = arith.constant 0 : i32
    %c0_i32_0 = arith.constant 0 : i32
    %c0_i32_1 = arith.constant 0 : i32
    return %c0_i32, %c0_i32_0 : i32, i32
  }
  func.func @transform_7(%arg0: i32) -> (i32, i32) {
    %c0_i32 = arith.constant 0 : i32
    %c0_i32_0 = arith.constant 0 : i32
    %c0_i32_1 = arith.constant 0 : i32
    return %c0_i32, %c0_i32_0 : i32, i32
  }
  func.func @transform_8(%arg0: i32) -> (i32, i32) {
    %c0_i32 = arith.constant 0 : i32
    %c0_i32_0 = arith.constant 0 : i32
    %c0_i32_1 = arith.constant 0 : i32
    return %c0_i32, %c0_i32_0 : i32, i32
  }
  func.func @transform_9(%arg0: i32) -> (i32, i32) {
    %c0_i32 = arith.constant 0 : i32
    %c0_i32_0 = arith.constant 0 : i32
    %c0_i32_1 = arith.constant 0 : i32
    return %c0_i32, %c0_i32_0 : i32, i32
  }
  func.func @transform_10(%arg0: i32) -> (i32, i32) {
    %c0_i32 = arith.constant 0 : i32
    %c0_i32_0 = arith.constant 0 : i32
    return %c0_i32, %arg0 : i32, i32
  }
}

</mosaic_0001>

<bundles_post_ra>
// kernel: tpu_custom_call.1
= control target key start
LH: loop header
LB: loop body
LE: loop exit
PB: predicated region body
PF: predicated region fallthrough
CT: control target
= control target key end

     0   :  { %15 = vsyncpa [#allocation3], 0  ;;  %s15295_s0 = inlined_call_operand.vmem [shape: f32[3,2048], index: 0, kind: input, shape index: {}]   ;;  %s15296_s1 = inlined_call_operand.hbm [shape: f32[12,2048], index: 1, kind: input, shape index: {}]   ;;  %s15297_s2 = inlined_call_operand.vmem [shape: bf16[32,3], index: 2, kind: input, shape index: {}]   ;;  %s15298_s3 = inlined_call_operand.vmem [shape: bf16[32,12], index: 3, kind: input, shape index: {}]   ;;  %s15299_s4 = inlined_call_operand.vmem [shape: bf16[32,12], index: 4, kind: input, shape index: {}]   ;;  %s15300_s5 = inlined_call_operand.vmem [shape: f32[32,1], index: 5, kind: input, shape index: {}]   ;;  %s15301_s6 = inlined_call_operand.vmem [shape: bf16[32,32], index: 6, kind: input, shape index: {}]   ;;  %s15302_s7 = inlined_call_operand.vmem [shape: f32[32,1], index: 7, kind: input, shape index: {}]   ;;  %s15303_s8 = inlined_call_operand.vmem [shape: bf16[4,32], index: 8, kind: input, shape index: {}]   ;;  %s15304_s9 = inlined_call_operand.vmem [shape: f32[4,1], index: 9, kind: input, shape index: {}]   ;;  %s15305_s10 = inlined_call_operand.hbm [shape: f32[4,2048], index: 10, kind: output, shape index: {}]  }
   0x1   :  { %16 = vsyncpa [#allocation4], 0  ;;  %s10393_s13 = smov [#allocation2]  }
   0x2   :  { %s24_s14 = sshll.u32 %s10393_s13, 4  ;;  %s25_s14 = int_to_ptr.vmem [resolvable:$true] %s24_s14 }
   0x3   :  { %s10357_s15 = scalar_lea.vmem %s25_s14, 4096  ;;  %p10362_p1 = scmp.lt.s32.totalorder %s25_s14, %s25_s14 }
   0x4   :  { %p10358_p0 = scmp.ne.s32.totalorder %s25_s14, %s10357_s15  ;;  %p10363_p2 = scmp.lt.s32.totalorder %s10357_s15, %s10357_s15 }
   0x6   :  { %p10364_p3 = por %p10363_p2, %p10362_p1 }
   0x8   :  { %p10365_p4 = pnand %p10364_p3, %p10358_p0 }
   0xa   :  { %10368 = shalt.err (!%p10365_p4)
}
   0xb   :  { %s10394_s16 = smov 2048   ;;  %s10395_s17 = smov 128  }
   0xc   :  { %30 = dma.hbm_to_vmem [thread:$0]  %s15296_s1, 4096, %s25_s14, [#allocation3], %s10394_s16, %s10394_s16, %s10395_s17  }
   0xd   :  { %10389 = dma.done.wait [#allocation3], 4096  }
   0xe   :  { %10390 = vsyncadd [#allocation3], 4294963200  ;;  %vm6812_vm0 = vcmask 1040384   ;;  %v15315_v0 = vmov 0   ;;  %vm6813_vm1 = vcmask 1041408   ;;  %v10397_v1 = vmov 65535  }
   0xf   :  { %6896 = vmatprep.mubr.bf16.mxu0 %v15315_v0  ;;  %6949 = vmatprep.mubr.bf16.mxu1 %v15315_v0  ;;  %v6814_v2 = vsel %vm6812_vm0, 4294967295, %v10397_v1  ;;  %v51_v4 = vld [vmem:[%s15295_s0] sm:$0x77]  ;;  %v52_v5 = vld [vmem:[%s15295_s0 + $0x8] sm:$0x77]  ;;  %vm6805_vm2 = vcmask 23552  }
  0x10   :  { %10132 = vset.pattern.permute.xlu1 %v15315_v0  ;;  %10131 = vset.pattern.permute.xlu0 %v15315_v0  ;;  %v10467_v3 = vsel %vm6813_vm1, %v6814_v2, 0  ;;  %v6763_v6 = vcombine.high %v51_v4, %v51_v4  ;;  %v6764_v7 = vcombine.high %v52_v5, %v52_v5  ;;  %v6779_v8 = vpack.c.bf16 %v51_v4, %v51_v4  ;;  %v53_v10 = vld [vmem:[%s15295_s0 + $0x10] sm:$0x77]  ;;  %v54_v14 = vld [vmem:[%s15295_s0 + $0x18] sm:$0x77]  ;;  %v10500_v25 = vld [vmem:[%s15297_s2] sm:$0xff]  }
  0x11   :  { %v6781_v9 = vpack.c.bf16 %v52_v5, %v52_v5  ;;  %v10485_v15 = vld [vmem:[%s15295_s0 + $0x20] sm:$0x77]  ;;  %v6765_v17 = vcombine.high %v53_v10, %v53_v10  ;;  %v6783_v18 = vpack.c.bf16 %v53_v10, %v53_v10  ;;  %v6766_v19 = vcombine.high %v54_v14, %v54_v14  ;;  %v10491_v20 = vld [vmem:[%s15295_s0 + $0x28] sm:$0x77]  ;;  %v57_v30 = vld [vmem:[%s15295_s0 + $0x30] sm:$0x77] }
  0x12   :  { %v6780_v11 = vpack.c.bf16 %v6763_v6, %v6763_v6  ;;  %v6782_v12 = vpack.c.bf16 %v6764_v7, %v6764_v7  ;;  %v6817_v13 = vand.u32 %v10467_v3, %v6779_v8  ;;  %v6785_v23 = vpack.c.bf16 %v54_v14, %v54_v14  ;;  %v10507_v31 = vld [vmem:[#allocation2 + $0x8] sm:$0xff]  ;;  %v58_v39 = vld [vmem:[%s15295_s0 + $0x38] sm:$0x77] }
  0x13   :  { %v6823_v16 = vand.u32 %v10467_v3, %v6781_v9  ;;  %v6767_v24 = vcombine.high %v10485_v15, %v10485_v15  ;;  %v6784_v26 = vpack.c.bf16 %v6765_v17, %v6765_v17  ;;  %v6786_v27 = vpack.c.bf16 %v6766_v19, %v6766_v19  ;;  %v10523_v41 = vld [vmem:[#allocation2 + $0x88] sm:$0xf]  ;;  %v10530_v47 = vld [vmem:[#allocation2 + $0x18] sm:$0xff] }
  0x14   :  { %v6820_v21 = vand.u32 %v10467_v3, %v6780_v11  ;;  %v6826_v22 = vand.u32 %v10467_v3, %v6782_v12  ;;  %v6768_v29 = vcombine.high %v10491_v20, %v10491_v20  ;;  %v195_v34 = vand.u32 2147483647, %v10507_v31  ;;  %v10537_v50 = vld [vmem:[%s15297_s2 + $0x8] sm:$0xff]  }
  0x15   :  { %v6788_v28 = vpack.c.bf16 %v6767_v24, %v6767_v24  ;;  %v6832_v32 = vand.u32 %v10467_v3, %v6784_v26  ;;  %v6838_v33 = vand.u32 %v10467_v3, %v6786_v27  ;;  %v6829_v35 = vand.u32 %v10467_v3, %v6783_v18 }
  0x16   :  { %6878 = vmatprep.subr.bf16.mxu0 %v6820_v21  ;;  %6931 = vmatprep.subr.bf16.mxu1 %v6826_v22  ;;  %v6835_v36 = vand.u32 %v10467_v3, %v6785_v23  ;;  %v6790_v37 = vpack.c.bf16 %v6768_v29, %v6768_v29  ;;  %v198_v42 = vand.u32 2139095040, %v10507_v31  ;;  %v6769_v43 = vcombine.high %v57_v30, %v57_v30 }
  0x17   :  { %6879 = vmatpush1.bf16.msra.mxu0 %v6817_v13  ;;  %6932 = vmatpush1.bf16.msra.mxu1 %v6823_v16  ;;  %v6844_v38 = vand.u32 %v10467_v3, %v6788_v28  ;;  %v6770_v44 = vcombine.high %v58_v39, %v58_v39  ;;  %v202_v46 = vand.u32 8388607, %v195_v34  ;;  %v1859_v48 = vand.u32 2147483647, %v10523_v41 }
  0x18   :  { %6984 = vmatprep.subr.bf16.mxu0 %v6832_v32  ;;  %7037 = vmatprep.subr.bf16.mxu1 %v6838_v33  ;;  %v6850_v40 = vand.u32 %v10467_v3, %v6790_v37  ;;  %v199_v45 = vshrl.u32 %v198_v42, 23  ;;  %v1862_v49 = vand.u32 2139095040, %v10523_v41  ;;  %v6787_v51 = vpack.c.bf16 %v10485_v15, %v10485_v15 }
  0x19   :  { %v6789_v52 = vpack.c.bf16 %v10491_v20, %v10491_v20  ;;  %v6791_v53 = vpack.c.bf16 %v57_v30, %v57_v30  ;;  %v6792_v55 = vpack.c.bf16 %v6769_v43, %v6769_v43  ;;  %v6793_v56 = vpack.c.bf16 %v58_v39, %v58_v39 }
  0x1a   :  { %9897 = vmatmul.mubr.msk.bf16.vlgmr.msra.gmra.mxu0 %vm6805_vm2, %v10500_v25  ;;  %9899 = vmatmul.mubr.msk.bf16.vlgmr.msra.gmra.mxu1 %vm6805_vm2, %v10500_v25  ;;  %v9643_v54 = vadd.s32 4294967169, %v199_v45  ;;  %v1863_v57 = vshrl.u32 %v1862_v49, 23  ;;  %v406_v58 = vand.u32 2139095040, %v10530_v47  ;;  %v6794_v59 = vpack.c.bf16 %v6770_v44, %v6770_v44 }
  0x1b   :  { %6906 = vmatprep.mubr.bf16.mxu0 %v15315_v0  ;;  %6959 = vmatprep.mubr.bf16.mxu1 %v15315_v0  ;;  %v203_v60 = vor.u32 8388608, %v202_v46  ;;  %v10546_v63 = vand.u32 8388607, %v1859_v48  ;;  %v6841_v2 = vand.u32 %v10467_v3, %v6787_v51  ;;  %v6847_v4 = vand.u32 %v10467_v3, %v6789_v52 }
  0x1c   :  { %6985 = vmatpush1.bf16.msra.mxu0 %v6829_v35  ;;  %7038 = vmatpush1.bf16.msra.mxu1 %v6835_v36  ;;  %v205_v61 = vadd.s32 1, %v9643_v54  ;;  %v9707_v62 = vadd.s32 4294967169, %v1863_v57  ;;  %v407_v1 = vshrl.u32 %v406_v58, 23  ;;  %v10555_v5 = vand.u32 %v10467_v3, %v6791_v53 }
  0x1d   :  { %7090 = vmatprep.subr.bf16.mxu0 %v6844_v38  ;;  %7143 = vmatprep.subr.bf16.mxu1 %v6850_v40  ;;  %v6856_v6 = vand.u32 %v10467_v3, %v6792_v55  ;;  %v10561_v7 = vand.u32 %v10467_v3, %v6793_v56  ;;  %v6862_v10 = vand.u32 %v10467_v3, %v6794_v59  ;;  %v10564_v13 = vshll.u32 %v203_v60, 8 }
  0x1e   :  { %vm206_vm3 = vcmp.gt.s32.totalorder %v205_v61, 0  ;;  %v1869_v9 = vadd.s32 1, %v9707_v62  ;;  %v1867_v14 = vor.u32 8388608, %v10546_v63  ;;  %v403_v15 = vand.u32 2147483647, %v10530_v47 }
  0x1f   :  { %v207_v8 = vsel %vm206_vm3, %v205_v61, 0  ;;  %v10568_v16 = vadd.s32 4294967169, %v407_v1  ;;  %v15332_v18 = vmov 683565275   ;;  %v15322_v20 = vmov 2475754826  }
  0x20   :  { %v208_v11 = vshrl.u32 %v207_v8, 5  ;;  %v209_v12 = vand.u32 31, %v207_v8  ;;  %vm1870_vm4 = vcmp.gt.s32.totalorder %v1869_v9, 0  ;;  %v15326_v22 = vmov 2131351028  }
  0x21   :  { %v15324_v23 = vmov 2102212464   ;;  %v15343_v26 = vmov 920167782   ;;  %v15330_v35 = vmov 1326507024  }
  0x22   :  { %9898 = vmatmul.mubr.msk.bf16.gmra.mxu0 %vm6805_vm2, %v10537_v50  ;;  %9900 = vmatmul.mubr.msk.bf16.gmra.mxu1 %vm6805_vm2, %v10537_v50  ;;  %v210_v17 = vsub.s32 32, %v209_v12  ;;  %v212_v19 = vshll.u32 %v15332_v18, %v209_v12  ;;  %v215_v21 = vshll.u32 %v15322_v20, %v209_v12  ;;  %v218_v3 = vshll.u32 %v15326_v22, %v209_v12 }
  0x23   :  { %7002 = vmatprep.mubr.bf16.mxu0 %v15315_v0  ;;  %7055 = vmatprep.mubr.bf16.mxu1 %v15315_v0  ;;  %v221_v24 = vshll.u32 %v15324_v23, %v209_v12  ;;  %v224_v27 = vshll.u32 %v15343_v26, %v209_v12  ;;  %vm227_vm5 = vcmp.lt.s32.totalorder %v208_v11, 1  ;;  %vm228_vm6 = vcmp.lt.s32.totalorder %v208_v11, 2 }
  0x24   :  { %v211_v28 = vshrl.u32 %v15332_v18, %v210_v17  ;;  %v213_v29 = vshrl.u32 %v15322_v20, %v210_v17  ;;  %v216_v30 = vshrl.u32 %v15326_v22, %v210_v17  ;;  %v219_v32 = vshrl.u32 %v15324_v23, %v210_v17 }
  0x25   :  { %v222_v33 = vshrl.u32 %v15343_v26, %v210_v17  ;;  %v225_v36 = vshrl.u32 %v15330_v35, %v210_v17  ;;  %vm229_vm7 = vcmp.lt.s32.totalorder %v208_v11, 3  ;;  %vm230_vm8 = vcmp.lt.s32.totalorder %v208_v11, 4 }
  0x26   :  { %v214_v37 = vor.u32 %v213_v29, %v212_v19  ;;  %v217_v38 = vor.u32 %v216_v30, %v215_v21  ;;  %v220_v39 = vor.u32 %v219_v32, %v218_v3  ;;  %v1871_v40 = vsel %vm1870_vm4, %v1869_v9, 0 }
  0x27   :  { %v223_v42 = vor.u32 %v222_v33, %v221_v24  ;;  %v226_v43 = vor.u32 %v225_v36, %v224_v27  ;;  %v10588_v44 = vshrl.u32 %v1871_v40, 5  ;;  %v1873_v45 = vand.u32 31, %v1871_v40 }
  0x28   :  { %v231_v46 = vsel %vm227_vm5, %v211_v28, %v214_v37  ;;  %v232_v49 = vsel %vm230_vm8, %v220_v39, 2102212464  ;;  %v235_v51 = vsel %vm227_vm5, %v214_v37, %v217_v38  ;;  %v239_v52 = vsel %vm227_vm5, %v217_v38, %v220_v39 }
  0x29   :  { %v233_v53 = vsel %vm229_vm7, %v217_v38, %v232_v49  ;;  %v236_v54 = vsel %vm230_vm8, %v223_v42, 920167782  ;;  %v240_v55 = vsel %vm230_vm8, %v226_v43, 1326507024  ;;  %v1874_v56 = vsub.s32 32, %v1873_v45 }
  0x2a   :  { %9901 = vmatmul.mubr.msk.bf16.vlgmr.msra.gmra.mxu0 %vm6805_vm2, %v10500_v25  ;;  %9903 = vmatmul.mubr.msk.bf16.vlgmr.msra.gmra.mxu1 %vm6805_vm2, %v10500_v25  ;;  %v234_v57 = vsel %vm228_vm6, %v231_v46, %v233_v53  ;;  %v237_v58 = vsel %vm229_vm7, %v220_v39, %v236_v54  ;;  %v241_v59 = vsel %vm229_vm7, %v223_v42, %v240_v55  ;;  %v10627_v3 = vshll.u32 %v1867_v14, 8 }
  0x2b   :  { %7012 = vmatprep.mubr.bf16.mxu0 %v15315_v0  ;;  %7065 = vmatprep.mubr.bf16.mxu1 %v15315_v0  ;;  %v1876_v60 = vshll.u32 %v15332_v18, %v1873_v45  ;;  %v238_v61 = vsel %vm228_vm6, %v235_v51, %v237_v58  ;;  %v242_v62 = vsel %vm228_vm6, %v239_v52, %v241_v59  ;;  %vm1891_vm9 = vcmp.lt.s32.totalorder %v10588_v44, 1 }
  0x2c   :  { %7091 = vmatpush1.bf16.msra.mxu0 %v6841_v2  ;;  %7144 = vmatpush1.bf16.msra.mxu1 %v6847_v4  ;;  %v250_v1 = vmul.u32 %v10564_v13, %v234_v57  ;;  %v1875_v2 = vshrl.u32 %v15332_v18, %v1874_v56  ;;  %v10610_v8 = vmul.u32.u64.low %v10564_v13, %v238_v61  ;;  %v10611_v9 = vmul.u32.u64.high %v10564_v13, %v238_v61, %v10610_v8 }
  0x2d   :  { %7196 = vmatprep.subr.bf16.mxu0 %v6856_v6  ;;  %7249 = vmatprep.subr.bf16.mxu1 %v6862_v10  ;;  %v10606_v4 = vmul.u32.u64.low %v10564_v13, %v242_v62  ;;  %v10607_v6 = vmul.u32.u64.high %v10564_v13, %v242_v62, %v10606_v4  ;;  %v1877_v10 = vshrl.u32 %v15322_v20, %v1874_v56  ;;  %v1879_v12 = vshll.u32 %v15322_v20, %v1873_v45 }
  0x2e   :  { %v1880_v11 = vshrl.u32 %v15326_v22, %v1874_v56  ;;  %v1882_v17 = vshll.u32 %v15326_v22, %v1873_v45  ;;  %v1883_v19 = vshrl.u32 %v15324_v23, %v1874_v56  ;;  %v1885_v13 = vshll.u32 %v15324_v23, %v1873_v45 }
  0x2f   :  { %v1886_v21 = vshrl.u32 %v15343_v26, %v1874_v56  ;;  %v1878_v24 = vor.u32 %v1877_v10, %v1876_v60  ;;  %v1888_v28 = vshll.u32 %v15343_v26, %v1873_v45  ;;  %vm252_vm10 = vc.u32 %v10607_v6, %v10610_v8 }
  0x30   :  { %v1881_v27 = vor.u32 %v1880_v11, %v1879_v12  ;;  %v253_v29 = vadd.s32 1, %v10611_v9  ;;  %v1884_v30 = vor.u32 %v1883_v19, %v1882_v17  ;;  %v413_v63 = vadd.s32 1, %v10568_v16  ;;  %v10693_v19 = vld [vmem:[#allocation2 + $0x98] sm:$0xf] }
  0x31   :  { %v1887_v14 = vor.u32 %v1886_v21, %v1885_v13  ;;  %v1889_v32 = vshrl.u32 %v15330_v35, %v1874_v56  ;;  %vm1893_vm11 = vcmp.lt.s32.totalorder %v10588_v44, 3  ;;  %vm1894_vm12 = vcmp.lt.s32.totalorder %v10588_v44, 4  ;;  %15565 = vst [vmem:[#allocation8_spill] sm:$0xff] %v10693_v19 }
  0x32   :  { %9902 = vmatmul.mubr.msk.bf16.gmra.mxu0 %vm6805_vm2, %v10537_v50  ;;  %9904 = vmatmul.mubr.msk.bf16.gmra.mxu1 %vm6805_vm2, %v10537_v50  ;;  %v254_v33 = vsel %vm252_vm10, %v253_v29, %v10611_v9  ;;  %vm1892_vm13 = vcmp.lt.s32.totalorder %v10588_v44, 2  ;;  %v1896_v36 = vsel %vm1894_vm12, %v1884_v30, 2102212464  ;;  %v1899_v37 = vsel %vm1891_vm9, %v1878_v24, %v1881_v27 }
  0x33   :  { %7108 = vmatprep.mubr.bf16.mxu0 %v15315_v0  ;;  %7161 = vmatprep.mubr.bf16.mxu1 %v15315_v0  ;;  %v255_v38 = vadd.s32 %v254_v33, %v250_v1  ;;  %v1890_v39 = vor.u32 %v1889_v32, %v1888_v28  ;;  %v1895_v16 = vsel %vm1891_vm9, %v1875_v2, %v1878_v24  ;;  %v1900_v40 = vsel %vm1894_vm12, %v1887_v14, 920167782 }
  0x34   :  { %v1897_v42 = vsel %vm1893_vm11, %v1881_v27, %v1896_v36  ;;  %v1901_v43 = vsel %vm1893_vm11, %v1884_v30, %v1900_v40  ;;  %v1903_v45 = vsel %vm1891_vm9, %v1881_v27, %v1884_v30  ;;  %vm414_vm14 = vcmp.gt.s32.totalorder %v413_v63, 0 }
  0x35   :  { %v256_v46 = vadd.s32 536870912, %v255_v38  ;;  %v1902_v49 = vsel %vm1892_vm13, %v1899_v37, %v1901_v43  ;;  %v1904_v51 = vsel %vm1894_vm12, %v1890_v39, 1326507024  ;;  %v410_v52 = vand.u32 8388607, %v403_v15 }
  0x36   :  { %v1905_v53 = vsel %vm1893_vm11, %v1887_v14, %v1904_v51  ;;  %v10663_v54 = vmul.u32.u64.low %v10627_v3, %v1902_v49  ;;  %v10664_v55 = vmul.u32.u64.high %v10627_v3, %v1902_v49, %v10663_v54  ;;  %v415_v56 = vsel %vm414_vm14, %v413_v63, 0 }
  0x37   :  { %v10669_v57 = vshrl.u32 %v256_v46, 30  ;;  %v1898_v58 = vsel %vm1892_vm13, %v1895_v16, %v1897_v42  ;;  %v1906_v59 = vsel %vm1892_vm13, %v1903_v45, %v1905_v53  ;;  %v417_v60 = vand.u32 31, %v415_v56 }
  0x38   :  { %v10678_v61 = vmul.u32.u64.low %v10627_v3, %v1906_v59  ;;  %v10679_v62 = vmul.u32.u64.high %v10627_v3, %v1906_v59, %v10678_v61  ;;  %v1914_v4 = vmul.u32 %v10627_v3, %v1898_v58  ;;  %v1917_v9 = vadd.s32 1, %v10664_v55 }
  0x39   :  { %v258_v1 = vshll.u32 %v10669_v57, 30  ;;  %v418_v2 = vsub.s32 32, %v417_v60  ;;  %v411_v44 = vor.u32 8388608, %v410_v52  ;;  %v426_v12 = vshll.u32 %v15326_v22, %v417_v60 }
  0x3a   :  { %9905 = vmatmul.mubr.msk.bf16.vlgmr.msra.gmra.mxu0 %vm6805_vm2, %v10500_v25  ;;  %9907 = vmatmul.mubr.msk.bf16.vlgmr.msra.gmra.mxu1 %vm6805_vm2, %v10500_v25  ;;  %vm1916_vm15 = vc.u32 %v10679_v62, %v10663_v54  ;;  %v10701_v24 = vshrl.u32 %v415_v56, 5  ;;  %v429_v28 = vshll.u32 %v15324_v23, %v417_v60  ;;  %v2067_v63 = vand.u32 2147483647, %v10693_v19 }
  0x3b   :  { %7118 = vmatprep.mubr.bf16.mxu0 %v15315_v0  ;;  %7171 = vmatprep.mubr.bf16.mxu1 %v15315_v0  ;;  %v10684_v10 = vsub.s32 %v255_v38, %v258_v1  ;;  %v1918_v17 = vsel %vm1916_vm15, %v1917_v9, %v10664_v55  ;;  %v421_v13 = vshrl.u32 %v15322_v20, %v418_v2  ;;  %v2070_v36 = vand.u32 2139095040, %v10693_v19 }
  0x3c   :  { %7197 = vmatpush1.bf16.msra.mxu0 %v10555_v5  ;;  %7250 = vmatpush1.bf16.msra.mxu1 %v10561_v7  ;;  %v420_v5 = vshll.u32 %v15332_v18, %v417_v60  ;;  %v423_v7 = vshll.u32 %v15322_v20, %v417_v60  ;;  %v424_v21 = vshrl.u32 %v15326_v22, %v418_v2  ;;  %v10713_v16 = vshll.u32 %v411_v44, 8 }
  0x3d   :  { %v261_v11 = vsub.s32 0, %v10684_v10  ;;  %v1919_v3 = vadd.s32 %v1918_v17, %v1914_v4  ;;  %v427_v27 = vshrl.u32 %v15324_v23, %v418_v2  ;;  %v430_v30 = vshrl.u32 %v15343_v26, %v418_v2 }
  0x3e   :  { %v432_v32 = vshll.u32 %v15343_v26, %v417_v60  ;;  %v433_v33 = vshrl.u32 %v15330_v35, %v418_v2  ;;  %v422_v38 = vor.u32 %v421_v13, %v420_v5  ;;  %v425_v39 = vor.u32 %v424_v21, %v423_v7 }
  0x3f   :  { %v9644_v29 = vmin.u32 %v261_v11, %v10684_v10  ;;  %v1920_v14 = vadd.s32 536870912, %v1919_v3  ;;  %v428_v42 = vor.u32 %v427_v27, %v426_v12  ;;  %v431_v43 = vor.u32 %v430_v30, %v429_v28 }
  0x40   :  { %vm435_vm0 = vcmp.lt.s32.totalorder %v10701_v24, 1  ;;  %vm197_vm1 = vcmp.lt.s32.totalorder %v10507_v31, 0  ;;  %v251_v45 = vadd.s32 %v10610_v8, %v10607_v6  ;;  %vm437_vm3 = vcmp.lt.s32.totalorder %v10701_v24, 3 }
  0x41   :  { %v263_v37 = vclz %v9644_v29  ;;  %v10715_v40 = vshrl.u32 %v1920_v14, 30  ;;  %vm438_vm4 = vcmp.lt.s32.totalorder %v10701_v24, 4  ;;  %v419_v51 = vshrl.u32 %v15332_v18, %v418_v2 }
  0x42   :  { %9906 = vmatmul.mubr.msk.bf16.gmra.mxu0 %vm6805_vm2, %v10537_v50  ;;  %9908 = vmatmul.mubr.msk.bf16.gmra.mxu1 %vm6805_vm2, %v10537_v50  ;;  %v434_v52 = vor.u32 %v433_v33, %v432_v32  ;;  %v444_v53 = vsel %vm438_vm4, %v431_v43, 920167782  ;;  %vm436_vm6 = vcmp.lt.s32.totalorder %v10701_v24, 2  ;;  %v443_v55 = vsel %vm435_vm0, %v422_v38, %v425_v39 }
  0x43   :  { %7214 = vmatprep.mubr.bf16.mxu0 %v15315_v0  ;;  %7267 = vmatprep.mubr.bf16.mxu1 %v15315_v0  ;;  %v9645_v46 = vadd.s32 4294967294, %v263_v37  ;;  %v1922_v49 = vshll.u32 %v10715_v40, 30  ;;  %v2071_v6 = vshrl.u32 %v2070_v36, 23  ;;  %vm10736_vm7 = vcmp.le.f32.partialorder %v195_v34, 0.7853982 }
  0x44   :  { %v440_v59 = vsel %vm438_vm4, %v428_v42, 2102212464  ;;  %v445_v60 = vsel %vm437_vm3, %v428_v42, %v444_v53  ;;  %v447_v1 = vsel %vm435_vm0, %v425_v39, %v428_v42  ;;  %v281_v2 = vsub.s32 4, %v10669_v57 }
  0x45   :  { %vm9646_vm5 = vcmp.lt.s32.totalorder %v9645_v46, 0  ;;  %v10740_v58 = vsub.s32 %v1919_v3, %v1922_v49  ;;  %v439_v9 = vsel %vm435_vm0, %v419_v51, %v422_v38  ;;  %v448_v44 = vsel %vm438_vm4, %v434_v52, 1326507024 }
  0x46   :  { %v266_v56 = vsel %vm9646_vm5, 0, %v9645_v46  ;;  %v441_v12 = vsel %vm437_vm3, %v425_v39, %v440_v59  ;;  %v446_v17 = vsel %vm436_vm6, %v443_v55, %v445_v60  ;;  %v9715_v21 = vadd.s32 4294967169, %v2071_v6 }
  0x47   :  { %v268_v61 = vshll.u32 %v10684_v10, %v266_v56  ;;  %v271_v34 = vsub.s32 4294967266, %v266_v56  ;;  %v1925_v4 = vsub.s32 0, %v10740_v58  ;;  %v449_v10 = vsel %vm437_vm3, %v431_v43, %v448_v44 }
  0x48   :  { %v450_v13 = vsel %vm436_vm6, %v447_v1, %v449_v10  ;;  %v282_v30 = vsel %vm197_vm1, %v281_v2, %v10669_v57  ;;  %vm1861_vm8 = vcmp.lt.s32.totalorder %v10523_v41, 0  ;;  %v442_v32 = vsel %vm436_vm6, %v439_v9, %v441_v12 }
  0x49   :  { %v272_v7 = vadd.s32 127, %v271_v34  ;;  %v9708_v11 = vmin.u32 %v1925_v4, %v10740_v58  ;;  %v10767_v28 = vmul.u32.u64.low %v10713_v16, %v450_v13  ;;  %v10768_v29 = vmul.u32.u64.high %v10713_v16, %v450_v13, %v10767_v28 }
  0x4a   :  { %9909 = vmatmul.mubr.msk.bf16.vlgmr.msra.gmra.mxu0 %vm6805_vm2, %v10500_v25  ;;  %9911 = vmatmul.mubr.msk.bf16.vlgmr.msra.gmra.mxu1 %vm6805_vm2, %v10500_v25  ;;  %v267_v25 = vsub.s32 32, %v266_v56  ;;  %v10777_v37 = vmul.u32.u64.low %v10713_v16, %v446_v17  ;;  %v10778_v38 = vmul.u32.u64.high %v10713_v16, %v446_v17, %v10777_v37  ;;  %vm10787_vm9 = vcmp.le.f32.partialorder %v1859_v48, 0.7853982 }
  0x4b   :  { %7224 = vmatprep.mubr.bf16.mxu0 %v15315_v0  ;;  %7277 = vmatprep.mubr.bf16.mxu1 %v15315_v0  ;;  %v273_v27 = vshll.u32 %v272_v7, 23  ;;  %v1927_v14 = vclz %v9708_v11  ;;  %v1945_v39 = vsub.s32 4, %v10715_v40  ;;  %v2077_v42 = vadd.s32 1, %v9715_v21 }
  0x4c   :  { %v269_v5 = vshrl.u32 %v251_v45, %v267_v25  ;;  %v10794_v45 = vsel %vm10736_vm7, 0, %v282_v30  ;;  %v1915_v46 = vadd.s32 %v10663_v54, %v10679_v62  ;;  %v458_v48 = vmul.u32 %v10713_v16, %v442_v32 }
  0x4d   :  { %v274_v33 = vor.u32 4788187, %v273_v27  ;;  %v9709_v24 = vadd.s32 4294967294, %v1927_v14  ;;  %vm460_vm10 = vc.u32 %v10768_v29, %v10777_v37  ;;  %vm2078_vm11 = vcmp.gt.s32.totalorder %v2077_v42, 0 }
  0x4e   :  { %v270_v3 = vor.u32 %v269_v5, %v268_v61  ;;  %v461_v52 = vadd.s32 1, %v10778_v38  ;;  %v2079_v54 = vsel %vm2078_vm11, %v2077_v42, 0  ;;  %v1946_v6 = vsel %vm1861_vm8, %v1945_v39, %v10715_v40 }
  0x4f   :  { %v275_v43 = vand.u32 2147483647, %v274_v33  ;;  %v2081_v60 = vand.u32 31, %v2079_v54  ;;  %v288_v25 = vadd.s32 3, %v10794_v45  ;;  %v2080_v8 = vshrl.u32 %v2079_v54, 5 }
  0x50   :  { %v277_v36 = vcvt.s32.f32 %v270_v3  ;;  %v462_v16 = vsel %vm460_vm10, %v461_v52, %v10778_v38  ;;  %v10830_v3 = vld [vmem:[#allocation2] sm:$0xff]  ;;  %vm10908_vm10 = vcmp.le.f32.partialorder %v403_v15, 0.7853982 }
  0x51   :  { %v463_v1 = vadd.s32 %v462_v16, %v458_v48  ;;  %v2082_v4 = vsub.s32 32, %v2081_v60  ;;  %v2084_v40 = vshll.u32 %v15332_v18, %v2081_v60  ;;  %v2087_v10 = vshll.u32 %v15322_v20, %v2081_v60  ;;  %15570 = vst [vmem:[#allocation9_spill] sm:$0xff] %v10830_v3 }
  0x52   :  { %9910 = vmatmul.mubr.msk.bf16.gmra.mxu0 %vm6805_vm2, %v10537_v50  ;;  %9912 = vmatmul.mubr.msk.bf16.gmra.mxu1 %vm6805_vm2, %v10537_v50  ;;  %v10800_v50 = vand.u32 8388607, %v2067_v63  ;;  %vm9710_vm2 = vcmp.lt.s32.totalorder %v9709_v24, 0  ;;  %v278_v49 = vmul.f32 %v277_v36, %v275_v43  ;;  %v10832_v27 = vand.u32 3, %v288_v25 }
  0x53   :  { %7474 = vmatprep.mubr.bf16.mxu0 %v15315_v0  ;;  %7527 = vmatprep.mubr.bf16.mxu1 %v15315_v0  ;;  %v1930_v51 = vsel %vm9710_vm2, 0, %v9709_v24  ;;  %v464_v7 = vadd.s32 536870912, %v463_v1  ;;  %v2085_v12 = vshrl.u32 %v15322_v20, %v2082_v4  ;;  %v2088_v11 = vshrl.u32 %v15326_v22, %v2082_v4 }
  0x54   :  { %v1931_v62 = vsub.s32 32, %v1930_v51  ;;  %v1932_v53 = vshll.u32 %v10740_v58, %v1930_v51  ;;  %v1935_v55 = vsub.s32 4294967266, %v1930_v51  ;;  %v279_v56 = vxor.u32 2147483648, %v278_v49 }
  0x55   :  { %v2075_v59 = vor.u32 8388608, %v10800_v50  ;;  %v10819_v58 = vsel %vm10787_vm9, 0, %v1946_v6  ;;  %v10828_v21 = vshrl.u32 %v464_v7, 30  ;;  %v2090_v28 = vshll.u32 %v15326_v22, %v2081_v60 }
  0x56   :  { %v1933_v61 = vshrl.u32 %v1915_v46, %v1931_v62  ;;  %v1936_v34 = vadd.s32 127, %v1935_v55  ;;  %v280_v2 = vsel %vm197_vm1, %v279_v56, %v278_v49  ;;  %v2091_v30 = vshrl.u32 %v15324_v23, %v2082_v4 }
  0x57   :  { %v283_v9 = vsel %vm10736_vm7, %v10507_v31, %v280_v2  ;;  %v10837_v32 = vadd.s32 3, %v10819_v58  ;;  %v466_v33 = vshll.u32 %v10828_v21, 30  ;;  %v2093_v36 = vshll.u32 %v15324_v23, %v2081_v60 }
  0x58   :  { %v1934_v44 = vor.u32 %v1933_v61, %v1932_v53  ;;  %v1937_v5 = vshll.u32 %v1936_v34, 23  ;;  %10149 = vcosq.f32 %v283_v9  ;;  %v2094_v38 = vshrl.u32 %v15343_v26, %v2082_v4 }
  0x59   :  { %10151 = vsinq.f32 %v283_v9  ;;  %v2096_v24 = vshll.u32 %v15343_v26, %v2081_v60  ;;  %v2097_v39 = vshrl.u32 %v15330_v35, %v2082_v4  ;;  %v94_v42 = vand.u32 2139095040, %v10830_v3 }
  0x5a   :  { %v1938_v17 = vor.u32 4788187, %v1937_v5  ;;  %v1941_v13 = vcvt.s32.f32 %v1934_v44  ;;  %v10845_v46 = vsub.s32 %v463_v1, %v466_v33  ;;  %v2086_v50 = vor.u32 %v2085_v12, %v2084_v40 }
  0x5b   :  { %v2089_v48 = vor.u32 %v2088_v11, %v2087_v10  ;;  %v2083_v49 = vshrl.u32 %v15332_v18, %v2082_v4  ;;  %v2092_v51 = vor.u32 %v2091_v30, %v2090_v28  ;;  %v2095_v52 = vor.u32 %v2094_v38, %v2093_v36 }
  0x5c   :  { %v1939_v14 = vand.u32 2147483647, %v1938_v17  ;;  %vm2099_vm12 = vcmp.lt.s32.totalorder %v2080_v8, 1  ;;  %v469_v62 = vsub.s32 0, %v10845_v46  ;;  %vm2101_vm13 = vcmp.lt.s32.totalorder %v2080_v8, 3 }
  0x5d   :  { %vm2102_vm14 = vcmp.lt.s32.totalorder %v2080_v8, 4  ;;  %v2098_v53 = vor.u32 %v2097_v39, %v2096_v24  ;;  %v2115_v56 = vshll.u32 %v2075_v59, 8  ;;  %vm2100_vm15 = vcmp.lt.s32.totalorder %v2080_v8, 2 }
  0x5e   :  { %v1942_v43 = vmul.f32 %v1941_v13, %v1939_v14  ;;  %v2104_v55 = vsel %vm2102_vm14, %v2092_v51, 2102212464  ;;  %v2108_v6 = vsel %vm2102_vm14, %v2095_v52, 920167782  ;;  %v9652_v60 = vmin.u32 %v469_v62, %v10845_v46 }
  0x5f   :  { %v2107_v25 = vsel %vm2099_vm12, %v2086_v50, %v2089_v48  ;;  %v2103_v34 = vsel %vm2099_vm12, %v2083_v49, %v2086_v50  ;;  %v2109_v1 = vsel %vm2101_vm13, %v2092_v51, %v2108_v6  ;;  %v95_v2 = vshrl.u32 %v94_v42, 23 }
  0x60   :  { %v1943_v54 = vxor.u32 2147483648, %v1942_v43  ;;  %vm290_vm0 = vcmp.lt.s32.totalorder %v10832_v27, 2  ;;  %v471_v59 = vclz %v9652_v60  ;;  %v2105_v4 = vsel %vm2101_vm13, %v2089_v48, %v2104_v55 }
  0x61   :  { %v2111_v40 = vsel %vm2099_vm12, %v2089_v48, %v2092_v51  ;;  %v459_v9 = vadd.s32 %v10777_v37, %v10768_v29  ;;  %v2110_v57 = vsel %vm2100_vm15, %v2107_v25, %v2109_v1  ;;  %v2112_v44 = vsel %vm2102_vm14, %v2098_v53, 1326507024 }
  0x62   :  { %v1944_v16 = vsel %vm1861_vm8, %v1943_v54, %v1942_v43  ;;  %v9653_v7 = vadd.s32 4294967294, %v471_v59  ;;  %v2113_v12 = vsel %vm2101_vm13, %v2095_v52, %v2112_v44  ;;  %vm287_vm1 = vweird.f32 %v10507_v31 }
  0x63   :  { %v1947_v61 = vsel %vm10787_vm9, %v10523_v41, %v1944_v16  ;;  %v10870_v10 = vmul.u32.u64.low %v2115_v56, %v2110_v57  ;;  %v10871_v11 = vmul.u32.u64.high %v2115_v56, %v2110_v57, %v10870_v10  ;;  %v2106_v29 = vsel %vm2100_vm15, %v2103_v34, %v2105_v4 }
  0x64   :  { %10153 = vcosq.f32 %v1947_v61  ;;  %v2114_v37 = vsel %vm2100_vm15, %v2111_v40, %v2113_v12  ;;  %v9639_v28 = vadd.s32 4294967169, %v95_v2  ;;  %vm9654_vm3 = vcmp.lt.s32.totalorder %v9653_v7, 0 }
  0x65   :  { %10155 = vsinq.f32 %v1947_v61  ;;  %v10867_v5 = vpop.eup %10149  ;;  %v10881_v14 = vmul.u32.u64.low %v2115_v56, %v2114_v37  ;;  %v10882_v33 = vmul.u32.u64.high %v2115_v56, %v2114_v37, %v10881_v14  ;;  %vm291_vm4 = vcmp.eq.s32.totalorder %v10832_v27, 0 }
  0x66   :  { %v10874_v17 = vpop.eup %10151  ;;  %v15312_v13 = vxor.u32 2147483648, %v10867_v5  ;;  %vm294_vm5 = vcmp.eq.s32.totalorder %v10832_v27, 2  ;;  %v474_v36 = vsel %vm9654_vm3, 0, %v9653_v7  ;;  %v101_v38 = vadd.s32 1, %v9639_v28 }
  0x67   :  { %v15313_v30 = vxor.u32 2147483648, %v10874_v17  ;;  %v475_v24 = vsub.s32 32, %v474_v36  ;;  %v476_v39 = vshll.u32 %v10845_v46, %v474_v36  ;;  %v479_v42 = vsub.s32 4294967266, %v474_v36 }
  0x68   :  { %v91_v8 = vand.u32 2147483647, %v10830_v3  ;;  %v1953_v43 = vand.u32 3, %v10837_v32  ;;  %v2122_v50 = vmul.u32 %v2115_v56, %v2106_v29  ;;  %v2125_v48 = vadd.s32 1, %v10871_v11 }
  0x69   :  { %vm102_vm6 = vcmp.gt.s32.totalorder %v101_v38, 0  ;;  %v293_v49 = vsel %vm291_vm4, %v10867_v5, %v15313_v30  ;;  %v296_v51 = vsel %vm294_vm5, %v15312_v13, %v10874_v17  ;;  %vm1951_vm7 = vweird.f32 %v10523_v41 }
  0x6a   :  { %v477_v46 = vshrl.u32 %v459_v9, %v475_v24  ;;  %v480_v52 = vadd.s32 127, %v479_v42  ;;  %vm405_vm8 = vcmp.lt.s32.totalorder %v10530_v47, 0  ;;  %v489_v32 = vsub.s32 4, %v10828_v21 }
  0x6b   :  { %vm2124_vm9 = vc.u32 %v10882_v33, %v10870_v10  ;;  %v103_v54 = vsel %vm102_vm6, %v101_v38, 0  ;;  %v98_v6 = vand.u32 8388607, %v91_v8  ;;  %v297_v56 = vsel %vm290_vm0, %v293_v49, %v296_v51 }
  0x6c   :  { %v478_v62 = vor.u32 %v477_v46, %v476_v39  ;;  %v481_v53 = vshll.u32 %v480_v52, 23  ;;  %v2126_v55 = vsel %vm2124_vm9, %v2125_v48, %v10871_v11  ;;  %vm7393_vm2 = vcmask 1045504  }
  0x6d   :  { %v2127_v60 = vadd.s32 %v2126_v55, %v2122_v50  ;;  %v105_v25 = vand.u32 31, %v103_v54  ;;  %vm1954_vm11 = vcmp.lt.s32.totalorder %v1953_v43, 2  ;;  %vm1955_vm12 = vcmp.eq.s32.totalorder %v1953_v43, 0 }
  0x6e   :  { %v482_v61 = vor.u32 4788187, %v481_v53  ;;  %v485_v34 = vcvt.s32.f32 %v478_v62  ;;  %vm1958_vm13 = vcmp.eq.s32.totalorder %v1953_v43, 2  ;;  %v490_v27 = vsel %vm405_vm8, %v489_v32, %v10828_v21 }
  0x6f   :  { %v2128_v2 = vadd.s32 536870912, %v2127_v60  ;;  %v106_v59 = vsub.s32 32, %v105_v25  ;;  %v298_v15 = vsel %vm287_vm1, nan, %v297_v56  ;;  %v99_v57 = vor.u32 8388608, %v98_v6 }
  0x70   :  { %v483_v9 = vand.u32 2147483647, %v482_v61  ;;  %v108_v12 = vshll.u32 %v15332_v18, %v105_v25  ;;  %v111_v37 = vshll.u32 %v15322_v20, %v105_v25  ;;  %v104_v38 = vshrl.u32 %v103_v54, 5 }
  0x71   :  { %v10912_v1 = vpop.eup %10153  ;;  %v2129_v7 = vshrl.u32 %v2128_v2, 30  ;;  %v109_v11 = vshrl.u32 %v15322_v20, %v106_v59  ;;  %v112_v28 = vshrl.u32 %v15326_v22, %v106_v59  ;;  %v117_v24 = vshll.u32 %v15324_v23, %v105_v25 }
  0x72   :  { %v10917_v4 = vpop.eup %10155  ;;  %v15310_v40 = vxor.u32 2147483648, %v10912_v1  ;;  %v486_v29 = vmul.f32 %v485_v34, %v483_v9  ;;  %v114_v50 = vshll.u32 %v15326_v22, %v105_v25  ;;  %v115_v48 = vshrl.u32 %v15324_v23, %v106_v59 }
  0x73   :  { %v15311_v44 = vxor.u32 2147483648, %v10917_v4  ;;  %v2130_v36 = vshll.u32 %v2129_v7, 30  ;;  %v110_v46 = vor.u32 %v109_v11, %v108_v12  ;;  %v118_v52 = vshrl.u32 %v15343_v26, %v106_v59 }
  0x74   :  { %v1960_v21 = vsel %vm1958_vm13, %v15310_v40, %v10917_v4  ;;  %v487_v42 = vxor.u32 2147483648, %v486_v29  ;;  %v113_v62 = vor.u32 %v112_v28, %v111_v37  ;;  %v120_v43 = vshll.u32 %v15343_v26, %v105_v25 }
  0x75   :  { %v1957_v14 = vsel %vm1955_vm12, %v10912_v1, %v15311_v44  ;;  %v10940_v51 = vsub.s32 %v2127_v60, %v2130_v36  ;;  %vm2069_vm14 = vcmp.lt.s32.totalorder %v10693_v19, 0  ;;  %v107_v55 = vshrl.u32 %v15332_v18, %v106_v59  ;;  %v10967_v36 = vld [vmem:[#allocation2 + $0x80] sm:$0xf] }
  0x76   :  { %v1961_v39 = vsel %vm1954_vm11, %v1957_v14, %v1960_v21  ;;  %v488_v54 = vsel %vm405_vm8, %v487_v42, %v486_v29  ;;  %v119_v6 = vor.u32 %v118_v52, %v117_v24  ;;  %vm123_vm15 = vcmp.lt.s32.totalorder %v104_v38, 1  ;;  %15573 = vst [vmem:[#allocation10_spill] sm:$0xff] %v10967_v36 }
  0x77   :  { %v1962_v49 = vsel %vm1951_vm7, nan, %v1961_v39  ;;  %v2133_v53 = vsub.s32 0, %v10940_v51  ;;  %v491_v56 = vsel %vm10908_vm10, %v10530_v47, %v488_v54  ;;  %v116_v60 = vor.u32 %v115_v48, %v114_v50 }
  0x78   :  { %v3420_v32 = vpack.c.bf16 %v1962_v49, %v298_v15  ;;  %v121_v61 = vshrl.u32 %v15330_v35, %v106_v59  ;;  %vm126_vm0 = vcmp.lt.s32.totalorder %v104_v38, 4  ;;  %vm124_vm3 = vcmp.lt.s32.totalorder %v104_v38, 2 }
  0x79   :  { %v9716_v25 = vmin.u32 %v2133_v53, %v10940_v51  ;;  %vm125_vm4 = vcmp.lt.s32.totalorder %v104_v38, 3  ;;  %v139_v34 = vshll.u32 %v99_v57, 8  ;;  %v128_v15 = vsel %vm126_vm0, %v116_v60, 2102212464 }
  0x7a   :  { %9915 = vmatprep.subr.msk.bf16.mxu0 %vm7393_vm2, %v3420_v32  ;;  %v122_v2 = vor.u32 %v121_v61, %v120_v43  ;;  %v131_v9 = vsel %vm123_vm15, %v110_v46, %v113_v62  ;;  %v132_v12 = vsel %vm126_vm0, %v119_v6, 920167782  ;;  %10157 = vcosq.f32 %v491_v56 }
  0x7b   :  { %v2135_v11 = vclz %v9716_v25  ;;  %v2153_v21 = vsub.s32 4, %v2129_v7  ;;  %v127_v47 = vsel %vm123_vm15, %v107_v55, %v110_v46  ;;  %v129_v59 = vsel %vm125_vm4, %v113_v62, %v128_v15 }
  0x7c   :  { %v133_v29 = vsel %vm125_vm4, %v116_v60, %v132_v12  ;;  %v135_v37 = vsel %vm123_vm15, %v113_v62, %v116_v60  ;;  %v136_v57 = vsel %vm126_vm0, %v122_v2, 1326507024  ;;  %v10965_v28 = vsel %vm10908_vm10, 0, %v490_v27 }
  0x7d   :  { %v9717_v14 = vadd.s32 4294967294, %v2135_v11  ;;  %v134_v24 = vsel %vm124_vm3, %v131_v9, %v133_v29  ;;  %v137_v39 = vsel %vm125_vm4, %v119_v6, %v136_v57  ;;  %v130_v42 = vsel %vm124_vm3, %v127_v47, %v129_v59  ;;  %v11005_v29 = vld [vmem:[#allocation2 + $0x10] sm:$0xff] }
  0x7e   :  { %v138_v50 = vsel %vm124_vm3, %v135_v37, %v137_v39  ;;  %v10973_v48 = vmul.u32.u64.low %v139_v34, %v134_v24  ;;  %v10974_v49 = vmul.u32.u64.high %v139_v34, %v134_v24, %v10973_v48  ;;  %v2123_v46 = vadd.s32 %v10870_v10, %v10882_v33  ;;  %15576 = vst [vmem:[#allocation11_spill] sm:$0xff] %v11005_v29 }
  0x7f   :  { %vm9718_vm5 = vcmp.lt.s32.totalorder %v9717_v14, 0  ;;  %v10978_v16 = vmul.u32.u64.low %v139_v34, %v138_v50  ;;  %v10979_v27 = vmul.u32.u64.high %v139_v34, %v138_v50, %v10978_v16  ;;  %v2154_v32 = vsel %vm2069_vm14, %v2153_v21, %v2129_v7 }
  0x80   :  { %v2138_v52 = vsel %vm9718_vm5, 0, %v9717_v14  ;;  %v1755_v54 = vand.u32 2147483647, %v10967_v36  ;;  %v1758_v62 = vand.u32 2139095040, %v10967_v36  ;;  %v146_v55 = vmul.u32 %v139_v34, %v130_v42 }
  0x81   :  { %v2139_v38 = vsub.s32 32, %v2138_v52  ;;  %v2140_v43 = vshll.u32 %v10940_v51, %v2138_v52  ;;  %v2143_v53 = vsub.s32 4294967266, %v2138_v52  ;;  %v496_v6 = vadd.s32 3, %v10965_v28 }
  0x82   :  { %vm10989_vm6 = vcmp.le.f32.partialorder %v2067_v63, 0.7853982  ;;  %v149_v33 = vadd.s32 1, %v10974_v49  ;;  %v1759_v7 = vshrl.u32 %v1758_v62, 23  ;;  %10159 = vsinq.f32 %v491_v56 }
  0x83   :  { %v2141_v60 = vshrl.u32 %v2123_v46, %v2139_v38  ;;  %v2144_v61 = vadd.s32 127, %v2143_v53  ;;  %vm148_vm8 = vc.u32 %v10979_v27, %v10973_v48  ;;  %v10997_v51 = vsel %vm10989_vm6, 0, %v2154_v32 }
  0x84   :  { %v150_v25 = vsel %vm148_vm8, %v149_v33, %v10974_v49  ;;  %v9703_v34 = vadd.s32 4294967169, %v1759_v7  ;;  %v1762_v63 = vand.u32 8388607, %v1755_v54  ;;  %v11002_v12 = vand.u32 3, %v496_v6 }
  0x85   :  { %v2142_v2 = vor.u32 %v2141_v60, %v2140_v43  ;;  %v2145_v15 = vshll.u32 %v2144_v61, 23  ;;  %v151_v9 = vadd.s32 %v150_v25, %v146_v55  ;;  %v2160_v47 = vadd.s32 3, %v10997_v51 }
  0x86   :  { %v1765_v56 = vadd.s32 1, %v9703_v34  ;;  %v1763_v57 = vor.u32 8388608, %v1762_v63  ;;  %vm502_vm10 = vcmp.eq.s32.totalorder %v11002_v12, 2  ;;  %v302_v50 = vand.u32 2139095040, %v11005_v29 }
  0x87   :  { %v2146_v11 = vor.u32 4788187, %v2145_v15  ;;  %v2149_v21 = vcvt.s32.f32 %v2142_v2  ;;  %v152_v59 = vadd.s32 536870912, %v151_v9  ;;  %v11007_v37 = vpop.eup %10157  ;;  %v11013_v46 = vand.u32 3, %v2160_v47  ;;  %v6747_v2 = vld [vmem:[%s15300_s5] sm:$0xff] }
  0x88   :  { %15577 = vst [vmem:[#allocation12_spill] sm:$0xff] %v11007_v37  ;;  %vm1766_vm9 = vcmp.gt.s32.totalorder %v1765_v56, 0  ;;  %v11016_v16 = vadd.s32 %v10973_v48, %v10979_v27  ;;  %v15308_v32 = vxor.u32 2147483648, %v11007_v37  ;;  %v11021_v43 = vshll.u32 %v1763_v57, 8  ;;  %7290 = vperm.xlu1 %10132, %v6747_v2  }
  0x89   :  { %v2147_v14 = vand.u32 2147483647, %v2146_v11  ;;  %v11009_v24 = vshrl.u32 %v152_v59, 30  ;;  %v1767_v39 = vsel %vm1766_vm9, %v1765_v56, 0  ;;  %vm499_vm11 = vcmp.eq.s32.totalorder %v11002_v12, 0 }
  0x8a   :  { %v1769_v42 = vand.u32 31, %v1767_v39  ;;  %v303_v60 = vshrl.u32 %v302_v50, 23  ;;  %v1768_v34 = vshrl.u32 %v1767_v39, 5  ;;  %vm498_vm12 = vcmp.lt.s32.totalorder %v11002_v12, 2 }
  0x8b   :  { %v2150_v49 = vmul.f32 %v2149_v21, %v2147_v14  ;;  %v154_v52 = vshll.u32 %v11009_v24, 30  ;;  %vm2166_vm5 = vcmp.eq.s32.totalorder %v11013_v46, 2  ;;  %vm15368_vm9 = vweird.f32 %v10693_v19 }
  0x8c   :  { %v1770_v62 = vsub.s32 32, %v1769_v42  ;;  %v1772_v38 = vshll.u32 %v15332_v18, %v1769_v42  ;;  %v1775_v6 = vshll.u32 %v15322_v20, %v1769_v42  ;;  %v1778_v33 = vshll.u32 %v15326_v22, %v1769_v42 }
  0x8d   :  { %v2151_v53 = vxor.u32 2147483648, %v2150_v49  ;;  %v11024_v55 = vsub.s32 %v151_v9, %v154_v52  ;;  %v1781_v7 = vshll.u32 %v15324_v23, %v1769_v42  ;;  %v1784_v39 = vshll.u32 %v15343_v26, %v1769_v42 }
  0x8e   :  { %v1773_v48 = vshrl.u32 %v15322_v20, %v1770_v62  ;;  %v1776_v27 = vshrl.u32 %v15326_v22, %v1770_v62  ;;  %v1779_v63 = vshrl.u32 %v15324_v23, %v1770_v62  ;;  %v1771_v56 = vshrl.u32 %v15332_v18, %v1770_v62 }
  0x8f   :  { %v2152_v61 = vsel %vm2069_vm14, %v2151_v53, %v2150_v49  ;;  %v157_v25 = vsub.s32 0, %v11024_v55  ;;  %v11038_v15 = vpop.eup %10159  ;;  %v1782_v21 = vshrl.u32 %v15343_v26, %v1770_v62  ;;  %v1785_v10 = vshrl.u32 %v15330_v35, %v1770_v62  ;;  %v6748_v53 = vld [vmem:[%s15300_s5 + $0x8] sm:$0xff] }
  0x90   :  { %v2155_v9 = vsel %vm10989_vm6, %v10693_v19, %v2152_v61  ;;  %v1774_v11 = vor.u32 %v1773_v48, %v1772_v38  ;;  %v1777_v59 = vor.u32 %v1776_v27, %v1775_v6  ;;  %v1780_v57 = vor.u32 %v1779_v63, %v1778_v33  ;;  %7295 = vperm.xlu1 %10132, %v6748_v53  }
  0x91   :  { %10161 = vcosq.f32 %v2155_v9  ;;  %v9640_v47 = vmin.u32 %v157_v25, %v11024_v55  ;;  %v1783_v14 = vor.u32 %v1782_v21, %v1781_v7  ;;  %v15309_v50 = vxor.u32 2147483648, %v11038_v15 }
  0x92   :  { %10163 = vsinq.f32 %v2155_v9  ;;  %v504_v49 = vsel %vm502_vm10, %v15308_v32, %v11038_v15  ;;  %v9647_v38 = vadd.s32 4294967169, %v303_v60  ;;  %v1786_v6 = vor.u32 %v1785_v10, %v1784_v39 }
  0x93   :  { %v159_v52 = vclz %v9640_v47  ;;  %vm1787_vm13 = vcmp.lt.s32.totalorder %v1768_v34, 1  ;;  %vm1788_vm14 = vcmp.lt.s32.totalorder %v1768_v34, 2  ;;  %vm1789_vm15 = vcmp.lt.s32.totalorder %v1768_v34, 3 }
  0x94   :  { %vm1790_vm0 = vcmp.lt.s32.totalorder %v1768_v34, 4  ;;  %v1791_v62 = vsel %vm1787_vm13, %v1771_v56, %v1774_v11  ;;  %v1795_v33 = vsel %vm1787_vm13, %v1774_v11, %v1777_v59  ;;  %v1799_v7 = vsel %vm1787_vm13, %v1777_v59, %v1780_v57 }
  0x95   :  { %v9641_v42 = vadd.s32 4294967294, %v159_v52  ;;  %v1792_v48 = vsel %vm1790_vm0, %v1780_v57, 2102212464  ;;  %v1796_v27 = vsel %vm1790_vm0, %v1783_v14, 920167782  ;;  %v501_v2 = vsel %vm499_vm11, %v11007_v37, %v15309_v50 }
  0x96   :  { %v1800_v61 = vsel %vm1790_vm0, %v1786_v6, 1326507024  ;;  %v1793_v25 = vsel %vm1789_vm15, %v1777_v59, %v1792_v48  ;;  %v1797_v60 = vsel %vm1789_vm15, %v1780_v57, %v1796_v27  ;;  %v505_v34 = vsel %vm498_vm12, %v501_v2, %v504_v49 }
  0x97   :  { %vm9642_vm3 = vcmp.lt.s32.totalorder %v9641_v42, 0  ;;  %v1801_v63 = vsel %vm1789_vm15, %v1783_v14, %v1800_v61  ;;  %v1798_v21 = vsel %vm1788_vm14, %v1795_v33, %v1797_v60  ;;  %v1794_v10 = vsel %vm1788_vm14, %v1791_v62, %v1793_v25  ;;  %v11077_v33 = vld [vmem:[#allocation2 + $0x18] sm:$0xff] }
  0x98   :  { %v162_v9 = vsel %vm9642_vm3, 0, %v9641_v42  ;;  %v1802_v56 = vsel %vm1788_vm14, %v1799_v7, %v1801_v63  ;;  %v11072_v14 = vmul.u32.u64.low %v11021_v43, %v1798_v21  ;;  %v11073_v52 = vmul.u32.u64.high %v11021_v43, %v1798_v21, %v11072_v14  ;;  %15578 = vst [vmem:[#allocation13_spill] sm:$0xff] %v11077_v33 }
  0x99   :  { %v163_v11 = vsub.s32 32, %v162_v9  ;;  %v164_v47 = vshll.u32 %v11024_v55, %v162_v9  ;;  %v167_v39 = vsub.s32 4294967266, %v162_v9  ;;  %v309_v42 = vadd.s32 1, %v9647_v38 }
  0x9a   :  { %v11068_v59 = vmul.u32.u64.low %v11021_v43, %v1802_v56  ;;  %v11069_v57 = vmul.u32.u64.high %v11021_v43, %v1802_v56, %v11068_v59  ;;  %vm15369_vm4 = vweird.f32 %v11077_v33  ;;  %v299_v55 = vand.u32 2147483647, %v11005_v29 }
  0x9b   :  { %v165_v53 = vshrl.u32 %v11016_v16, %v163_v11  ;;  %v168_v6 = vadd.s32 127, %v167_v39  ;;  %v1810_v48 = vmul.u32 %v11021_v43, %v1794_v10  ;;  %vm310_vm6 = vcmp.gt.s32.totalorder %v309_v42, 0 }
  0x9c   :  { %vm1812_vm8 = vc.u32 %v11069_v57, %v11072_v14  ;;  %v1813_v38 = vadd.s32 1, %v11073_v52  ;;  %v311_v7 = vsel %vm310_vm6, %v309_v42, 0  ;;  %vm2163_vm10 = vcmp.eq.s32.totalorder %v11013_v46, 0 }
  0x9d   :  { %v169_v62 = vshll.u32 %v168_v6, 23  ;;  %v166_v16 = vor.u32 %v165_v53, %v164_v47  ;;  %vm2162_vm11 = vcmp.lt.s32.totalorder %v11013_v46, 2  ;;  %v313_v60 = vand.u32 31, %v311_v7 }
  0x9e   :  { %v11085_v27 = vpop.eup %10161  ;;  %v1814_v25 = vsel %vm1812_vm8, %v1813_v38, %v11073_v52  ;;  %v506_v63 = vsel %vm15369_vm4, nan, %v505_v34  ;;  %v306_v21 = vand.u32 8388607, %v299_v55  ;;  %v312_v47 = vshrl.u32 %v311_v7, 5 }
  0x9f   :  { %15579 = vst [vmem:[#allocation14_spill] sm:$0xff] %v11085_v27  ;;  %v11090_v61 = vpop.eup %10163  ;;  %v15306_v12 = vxor.u32 2147483648, %v11085_v27  ;;  %v170_v49 = vor.u32 4788187, %v169_v62  ;;  %v1815_v9 = vadd.s32 %v1814_v25, %v1810_v48  ;;  %v173_v11 = vcvt.s32.f32 %v166_v16 }
  0xa0   :  { %15580 = vst [vmem:[#allocation15_spill] sm:$0xff] %v11090_v61  ;;  %v15307_v43 = vxor.u32 2147483648, %v11090_v61  ;;  %v314_v39 = vsub.s32 32, %v313_v60  ;;  %v316_v53 = vshll.u32 %v15332_v18, %v313_v60  ;;  %v319_v42 = vshll.u32 %v15322_v20, %v313_v60 }
  0xa1   :  { %v2168_v2 = vsel %vm2166_vm5, %v15306_v12, %v11090_v61  ;;  %v171_v59 = vand.u32 2147483647, %v170_v49  ;;  %v1816_v52 = vadd.s32 536870912, %v1815_v9  ;;  %v322_v16 = vshll.u32 %v15326_v22, %v313_v60 }
  0xa2   :  { %v2165_v56 = vsel %vm2163_vm10, %v11085_v27, %v15307_v43  ;;  %v317_v6 = vshrl.u32 %v15322_v20, %v314_v39  ;;  %v320_v34 = vshrl.u32 %v15326_v22, %v314_v39  ;;  %v323_v38 = vshrl.u32 %v15324_v23, %v314_v39 }
  0xa3   :  { %v2169_v10 = vsel %vm2162_vm11, %v2165_v56, %v2168_v2  ;;  %v11116_v48 = vshrl.u32 %v1816_v52, 30  ;;  %vm93_vm12 = vcmp.lt.s32.totalorder %v10830_v3, 0  ;;  %v325_v7 = vshll.u32 %v15324_v23, %v313_v60  ;;  %v11125_v56 = vld [vmem:[#allocation2 + $0x90] sm:$0xf] }
  0xa4   :  { %v2170_v46 = vsel %vm15368_vm9, nan, %v2169_v10  ;;  %v326_v49 = vshrl.u32 %v15343_v26, %v314_v39  ;;  %v174_v25 = vmul.f32 %v173_v11, %v171_v59  ;;  %15581 = vst [vmem:[#allocation16_spill] sm:$0xff] %v11125_v56  ;;  %v318_v10 = vor.u32 %v317_v6, %v316_v53 }
  0xa5   :  { %v3422_v62 = vpack.c.bf16 %v2170_v46, %v506_v63  ;;  %v1818_v2 = vshll.u32 %v11116_v48, 30  ;;  %v307_v63 = vor.u32 8388608, %v306_v21  ;;  %v321_v52 = vor.u32 %v320_v34, %v319_v42 }
  0xa6   :  { %v327_v46 = vor.u32 %v326_v49, %v325_v7  ;;  %v328_v12 = vshll.u32 %v15343_v26, %v313_v60  ;;  %v329_v43 = vshrl.u32 %v15330_v35, %v314_v39  ;;  %v315_v50 = vshrl.u32 %v15332_v18, %v314_v39 }
  0xa7   :  { %9918 = vmatprep.subr.msk.bf16.mxu1 %vm7393_vm2, %v3422_v62  ;;  %v11129_v32 = vsub.s32 %v1815_v9, %v1818_v2  ;;  %v324_v40 = vor.u32 %v323_v38, %v322_v16  ;;  %vm331_vm13 = vcmp.lt.s32.totalorder %v312_v47, 1  ;;  %v177_v11 = vsub.s32 4, %v11009_v24 }
  0xa8   :  { %v330_v59 = vor.u32 %v329_v43, %v328_v12  ;;  %vm333_vm14 = vcmp.lt.s32.totalorder %v312_v47, 3  ;;  %v1966_v62 = vand.u32 2139095040, %v11125_v56  ;;  %vm332_vm15 = vcmp.lt.s32.totalorder %v312_v47, 2 }
  0xa9   :  { %v1821_v21 = vsub.s32 0, %v11129_v32  ;;  %vm334_vm0 = vcmp.lt.s32.totalorder %v312_v47, 4  ;;  %v347_v53 = vshll.u32 %v307_v63, 8  ;;  %v175_v60 = vxor.u32 2147483648, %v174_v25 }
  0xaa   :  { %v336_v6 = vsel %vm334_vm0, %v324_v40, 2102212464  ;;  %v339_v9 = vsel %vm331_vm13, %v318_v10, %v321_v52  ;;  %v340_v42 = vsel %vm334_vm0, %v327_v46, 920167782  ;;  %v335_v34 = vsel %vm331_vm13, %v315_v50, %v318_v10 }
  0xab   :  { %v9704_v39 = vmin.u32 %v1821_v21, %v11129_v32  ;;  %v341_v16 = vsel %vm333_vm14, %v324_v40, %v340_v42  ;;  %v343_v12 = vsel %vm331_vm13, %v321_v52, %v324_v40  ;;  %v337_v43 = vsel %vm333_vm14, %v321_v52, %v336_v6 }
  0xac   :  { %v342_v38 = vsel %vm332_vm15, %v339_v9, %v341_v16  ;;  %v344_v7 = vsel %vm334_vm0, %v330_v59, 1326507024  ;;  %v1967_v49 = vshrl.u32 %v1966_v62, 23  ;;  %vm92_vm3 = vcmp.le.f32.partialorder %v91_v8, 0.7853982 }
  0xad   :  { %v178_v2 = vsel %vm93_vm12, %v177_v11, %v11009_v24  ;;  %vm1757_vm5 = vcmp.lt.s32.totalorder %v10967_v36, 0  ;;  %v1823_v50 = vclz %v9704_v39  ;;  %v176_v63 = vsel %vm93_vm12, %v175_v60, %v174_v25 }
  0xae   :  { %v345_v40 = vsel %vm333_vm14, %v327_v46, %v344_v7  ;;  %v11151_v10 = vmul.u32.u64.low %v347_v53, %v342_v38  ;;  %v11152_v52 = vmul.u32.u64.high %v347_v53, %v342_v38, %v11151_v10  ;;  %v338_v62 = vsel %vm332_vm15, %v335_v34, %v337_v43 }
  0xaf   :  { %v9705_v59 = vadd.s32 4294967294, %v1823_v50  ;;  %v346_v8 = vsel %vm332_vm15, %v343_v12, %v345_v40  ;;  %v9711_v21 = vadd.s32 4294967169, %v1967_v49  ;;  %v11157_v6 = vsel %vm92_vm3, 0, %v178_v2 }
  0xb0   :  { %v11159_v24 = vmul.u32.u64.low %v347_v53, %v346_v8  ;;  %v11160_v11 = vmul.u32.u64.high %v347_v53, %v346_v8, %v11159_v24  ;;  %v15314_v9 = vand.u32 2147483647, %v11125_v56  ;;  %v179_v25 = vsel %vm92_vm3, %v10830_v3, %v176_v63 }
  0xb1   :  { %v1811_v46 = vadd.s32 %v11072_v14, %v11069_v57  ;;  %vm9706_vm6 = vcmp.lt.s32.totalorder %v9705_v59, 0  ;;  %v1973_v60 = vadd.s32 1, %v9711_v21  ;;  %v1841_v39 = vsub.s32 4, %v11116_v48 }
  0xb2   :  { %v1826_v42 = vsel %vm9706_vm6, 0, %v9705_v59  ;;  %v354_v47 = vmul.u32 %v347_v53, %v338_v62  ;;  %v357_v34 = vadd.s32 1, %v11152_v52  ;;  %10165 = vcosq.f32 %v179_v25  ;;  %v11178_v59 = vld [vmem:[#allocation2 + $0x28] sm:$0xff] }
  0xb3   :  { %v1827_v16 = vsub.s32 32, %v1826_v42  ;;  %v1828_v12 = vshll.u32 %v11129_v32, %v1826_v42  ;;  %v1831_v43 = vsub.s32 4294967266, %v1826_v42  ;;  %vm1974_vm8 = vcmp.gt.s32.totalorder %v1973_v60, 0  ;;  %15582 = vst [vmem:[#allocation17_spill] sm:$0xff] %v11178_v59 }
  0xb4   :  { %v184_v38 = vadd.s32 3, %v11157_v6  ;;  %vm356_vm10 = vc.u32 %v11160_v11, %v11151_v10  ;;  %v1975_v57 = vsel %vm1974_vm8, %v1973_v60, 0  ;;  %v1970_v53 = vand.u32 8388607, %v15314_v9 }
  0xb5   :  { %v1829_v14 = vshrl.u32 %v1811_v46, %v1827_v16  ;;  %v1832_v7 = vadd.s32 127, %v1831_v43  ;;  %v358_v49 = vsel %vm356_vm10, %v357_v34, %v11152_v52  ;;  %10167 = vsinq.f32 %v179_v25 }
  0xb6   :  { %v1842_v32 = vsel %vm1757_vm5, %v1841_v39, %v11116_v48  ;;  %v359_v2 = vadd.s32 %v358_v49, %v354_v47  ;;  %v1977_v50 = vand.u32 31, %v1975_v57  ;;  %v11180_v62 = vand.u32 3, %v184_v38 }
  0xb7   :  { %v1830_v63 = vor.u32 %v1829_v14, %v1828_v12  ;;  %v1833_v40 = vshll.u32 %v1832_v7, 23  ;;  %vm11184_vm11 = vcmp.le.f32.partialorder %v1755_v54, 0.7853982  ;;  %v1971_v46 = vor.u32 8388608, %v1970_v53 }
  0xb8   :  { %v360_v8 = vadd.s32 536870912, %v359_v2  ;;  %v1978_v21 = vsub.s32 32, %v1977_v50  ;;  %v11190_v48 = vsel %vm11184_vm11, 0, %v1842_v32  ;;  %v11194_v42 = vshrl.u32 %v1975_v57, 5 }
  0xb9   :  { %v1834_v24 = vor.u32 4788187, %v1833_v40  ;;  %v1837_v25 = vcvt.s32.f32 %v1830_v63  ;;  %v1980_v39 = vshll.u32 %v15332_v18, %v1977_v50  ;;  %v614_v54 = vand.u32 2139095040, %v11178_v59 }
  0xba   :  { %v11192_v60 = vshrl.u32 %v360_v8, 30  ;;  %v1981_v34 = vshrl.u32 %v15322_v20, %v1978_v21  ;;  %v1983_v16 = vshll.u32 %v15322_v20, %v1977_v50  ;;  %v1984_v12 = vshrl.u32 %v15326_v22, %v1978_v21 }
  0xbb   :  { %v1835_v47 = vand.u32 2147483647, %v1834_v24  ;;  %v1986_v38 = vshll.u32 %v15326_v22, %v1977_v50  ;;  %v1987_v14 = vshrl.u32 %v15324_v23, %v1978_v21  ;;  %v1989_v57 = vshll.u32 %v15324_v23, %v1977_v50 }
  0xbc   :  { %v362_v43 = vshll.u32 %v11192_v60, 30  ;;  %vm190_vm12 = vcmp.eq.s32.totalorder %v11180_v62, 2  ;;  %v1848_v49 = vadd.s32 3, %v11190_v48  ;;  %v1990_v53 = vshrl.u32 %v15343_v26, %v1978_v21 }
  0xbd   :  { %v1838_v7 = vmul.f32 %v1837_v25, %v1835_v47  ;;  %v15320_v32 = vand.u32 2147483647, %v11178_v59  ;;  %v1992_v40 = vshll.u32 %v15343_v26, %v1977_v50  ;;  %v1993_v8 = vshrl.u32 %v15330_v35, %v1978_v21 }
  0xbe   :  { %v11209_v63 = vsub.s32 %v359_v2, %v362_v43  ;;  %v11213_v24 = vshll.u32 %v1971_v46, 8  ;;  %vm187_vm13 = vcmp.eq.s32.totalorder %v11180_v62, 0  ;;  %v1982_v13 = vor.u32 %v1981_v34, %v1980_v39 }
  0xbf   :  { %v1839_v44 = vxor.u32 2147483648, %v1838_v7  ;;  %v1985_v30 = vor.u32 %v1984_v12, %v1983_v16  ;;  %v1991_v25 = vor.u32 %v1990_v53, %v1989_v57  ;;  %v1988_v9 = vor.u32 %v1987_v14, %v1986_v38  ;;  %v11218_v2 = vpop.eup %10165 }
  0xc0   :  { %v365_v47 = vsub.s32 0, %v11209_v63  ;;  %vm1995_vm14 = vcmp.lt.s32.totalorder %v11194_v42, 1  ;;  %v615_v0 = vshrl.u32 %v614_v54, 23  ;;  %v1979_v46 = vshrl.u32 %v15332_v18, %v1978_v21 }
  0xc1   :  { %v1840_v50 = vsel %vm1757_vm5, %v1839_v44, %v1838_v7  ;;  %v1994_v43 = vor.u32 %v1993_v8, %v1992_v40  ;;  %vm1998_vm15 = vcmp.lt.s32.totalorder %v11194_v42, 4  ;;  %vm186_vm0 = vcmp.lt.s32.totalorder %v11180_v62, 2 }
  0xc2   :  { %v1843_v39 = vsel %vm11184_vm11, %v10967_v36, %v1840_v50  ;;  %v9648_v34 = vmin.u32 %v365_v47, %v11209_v63  ;;  %vm1997_vm3 = vcmp.lt.s32.totalorder %v11194_v42, 3  ;;  %v2000_v54 = vsel %vm1998_vm15, %v1988_v9, 2102212464  ;;  %v11232_v16 = vpop.eup %10167 }
  0xc3   :  { %10169 = vcosq.f32 %v1843_v39  ;;  %vm1996_vm5 = vcmp.lt.s32.totalorder %v11194_v42, 2  ;;  %v2003_v44 = vsel %vm1995_vm14, %v1982_v13, %v1985_v30  ;;  %v2004_v21 = vsel %vm1998_vm15, %v1991_v25, 920167782 }
  0xc4   :  { %v15318_v52 = vxor.u32 2147483648, %v11218_v2  ;;  %10171 = vsinq.f32 %v1843_v39  ;;  %v355_v12 = vadd.s32 %v11151_v10, %v11160_v11  ;;  %v367_v38 = vclz %v9648_v34 }
  0xc5   :  { %v1999_v14 = vsel %vm1995_vm14, %v1979_v46, %v1982_v13  ;;  %v2001_v57 = vsel %vm1997_vm3, %v1985_v30, %v2000_v54  ;;  %v2005_v7 = vsel %vm1997_vm3, %v1988_v9, %v2004_v21  ;;  %v2007_v53 = vsel %vm1995_vm14, %v1985_v30, %v1988_v9 }
  0xc6   :  { %v15319_v40 = vxor.u32 2147483648, %v11232_v16  ;;  %v9649_v8 = vadd.s32 4294967294, %v367_v38  ;;  %v2006_v47 = vsel %vm1996_vm5, %v2003_v44, %v2005_v7  ;;  %v2008_v10 = vsel %vm1998_vm15, %v1994_v43, 1326507024 }
  0xc7   :  { %v2009_v13 = vsel %vm1997_vm3, %v1991_v25, %v2008_v10  ;;  %v11258_v11 = vmul.u32.u64.low %v11213_v24, %v2006_v47  ;;  %v11259_v50 = vmul.u32.u64.high %v11213_v24, %v2006_v47, %v11258_v11  ;;  %v9659_v46 = vadd.s32 4294967169, %v615_v0 }
  0xc8   :  { %v192_v30 = vsel %vm190_vm12, %v15318_v52, %v11232_v16  ;;  %vm9650_vm6 = vcmp.lt.s32.totalorder %v9649_v8, 0  ;;  %v2002_v9 = vsel %vm1996_vm5, %v1999_v14, %v2001_v57  ;;  %v2010_v43 = vsel %vm1996_vm5, %v2007_v53, %v2009_v13 }
  0xc9   :  { %v370_v25 = vsel %vm9650_vm6, 0, %v9649_v8  ;;  %v11272_v39 = vmul.u32.u64.low %v11213_v24, %v2010_v43  ;;  %v11273_v34 = vmul.u32.u64.high %v11213_v24, %v2010_v43, %v11272_v39  ;;  %v621_v54 = vadd.s32 1, %v9659_v46 }
  0xca   :  { %v189_v0 = vsel %vm187_vm13, %v11218_v2, %v15319_v40  ;;  %v371_v44 = vsub.s32 32, %v370_v25  ;;  %v372_v21 = vshll.u32 %v11209_v63, %v370_v25  ;;  %v375_v38 = vsub.s32 4294967266, %v370_v25 }
  0xcb   :  { %v1849_v14 = vand.u32 3, %v1848_v49  ;;  %v2018_v42 = vmul.u32 %v11213_v24, %v2002_v9  ;;  %v2021_v57 = vadd.s32 1, %v11259_v50  ;;  %vm622_vm8 = vcmp.gt.s32.totalorder %v621_v54, 0 }
  0xcc   :  { %vm183_vm10 = vweird.f32 %v10830_v3  ;;  %v373_v7 = vshrl.u32 %v355_v12, %v371_v44  ;;  %v376_v53 = vadd.s32 127, %v375_v38  ;;  %v623_v8 = vsel %vm622_vm8, %v621_v54, 0 }
  0xcd   :  { %v193_v47 = vsel %vm186_vm0, %v189_v0, %v192_v30  ;;  %vm2020_vm11 = vc.u32 %v11273_v34, %v11258_v11  ;;  %v618_v63 = vand.u32 8388607, %v15320_v32  ;;  %v625_v49 = vand.u32 31, %v623_v8 }
  0xce   :  { %vm15555_vm12 = vweird.f32 %v10967_v36  ;;  %v374_v24 = vor.u32 %v373_v7, %v372_v21  ;;  %v377_v10 = vshll.u32 %v376_v53, 23  ;;  %v2022_v13 = vsel %vm2020_vm11, %v2021_v57, %v11259_v50 }
  0xcf   :  { %vm1850_vm13 = vcmp.lt.s32.totalorder %v1849_v14, 2  ;;  %vm1851_vm14 = vcmp.eq.s32.totalorder %v1849_v14, 0  ;;  %vm301_vm15 = vcmp.lt.s32.totalorder %v11005_v29, 0  ;;  %v2023_v12 = vadd.s32 %v2022_v13, %v2018_v42 }
  0xd0   :  { %v626_v62 = vsub.s32 32, %v625_v49  ;;  %v11293_v46 = vpop.eup %10169  ;;  %v194_v30 = vsel %vm183_vm10, nan, %v193_v47  ;;  %vm1854_vm0 = vcmp.eq.s32.totalorder %v1849_v14, 2  ;;  %v378_v9 = vor.u32 4788187, %v377_v10 }
  0xd1   :  { %15585 = vst [vmem:[#allocation18_spill] sm:$0xff] %v11293_v46  ;;  %v381_v43 = vcvt.s32.f32 %v374_v24  ;;  %v11297_v25 = vpop.eup %10171  ;;  %v15317_v39 = vxor.u32 2147483648, %v11293_v46  ;;  %v2024_v54 = vadd.s32 536870912, %v2023_v12  ;;  %v619_v50 = vor.u32 8388608, %v618_v63  ;;  %v11335_v14 = vld [vmem:[#allocation2 + $0xa8] sm:$0xf] }
  0xd2   :  { %15586 = vst [vmem:[#allocation19_spill] sm:$0xff] %v11297_v25  ;;  %v11300_v0 = vshrl.u32 %v623_v8, 5  ;;  %v15321_v44 = vxor.u32 2147483648, %v11297_v25  ;;  %v379_v21 = vand.u32 2147483647, %v378_v9  ;;  %vm7386_vm3 = vcmask 97280  }
  0xd3   :  { %v628_v38 = vshll.u32 %v15332_v18, %v625_v49  ;;  %v631_v42 = vshll.u32 %v15322_v20, %v625_v49  ;;  %v1856_v57 = vsel %vm1854_vm0, %v15317_v39, %v11297_v25  ;;  %vm11310_vm5 = vcmp.le.f32.partialorder %v299_v55, 0.7853982  ;;  %15589 = vst [vmem:[#allocation20_spill] sm:$0xff] %v11335_v14 }
  0xd4   :  { %v11314_v53 = vshrl.u32 %v2024_v54, 30  ;;  %v629_v8 = vshrl.u32 %v15322_v20, %v626_v62  ;;  %v637_v47 = vshll.u32 %v15324_v23, %v625_v49  ;;  %v1853_v63 = vsel %vm1851_vm14, %v11293_v46, %v15321_v44 }
  0xd5   :  { %v382_v24 = vmul.f32 %v381_v43, %v379_v21  ;;  %v632_v10 = vshrl.u32 %v15326_v22, %v626_v62  ;;  %v638_v13 = vshrl.u32 %v15343_v26, %v626_v62  ;;  %v1857_v55 = vsel %vm1850_vm13, %v1853_v63, %v1856_v57 }
  0xd6   :  { %v2026_v9 = vshll.u32 %v11314_v53, 30  ;;  %v634_v54 = vshll.u32 %v15326_v22, %v625_v49  ;;  %v635_v39 = vshrl.u32 %v15324_v23, %v626_v62  ;;  %v1858_v52 = vsel %vm15555_vm12, nan, %v1857_v55 }
  0xd7   :  { %v383_v40 = vxor.u32 2147483648, %v382_v24  ;;  %v640_v32 = vshll.u32 %v15343_v26, %v625_v49  ;;  %v641_v43 = vshrl.u32 %v15330_v35, %v626_v62  ;;  %v3419_v21 = vpack.c.bf16 %v1858_v52, %v194_v30  ;;  %v11346_v52 = vld [vmem:[%s15298_s3] sm:$0xff]  }
  0xd8   :  { %v385_v44 = vsub.s32 4, %v11192_v60  ;;  %v11333_v20 = vsub.s32 %v2023_v12, %v2026_v9  ;;  %v11337_v57 = vshll.u32 %v619_v50, 8  ;;  %v627_v63 = vshrl.u32 %v15332_v18, %v626_v62 }
  0xd9   :  { %v630_v23 = vor.u32 %v629_v8, %v628_v38  ;;  %v633_v22 = vor.u32 %v632_v10, %v631_v42  ;;  %v639_v19 = vor.u32 %v638_v13, %v637_v47  ;;  %v7395_v55 = vsel %vm7393_vm2, %v3419_v21, 0 }
  0xda   :  { %vm1965_vm6 = vcmp.lt.s32.totalorder %v11125_v56, 0  ;;  %v2029_v49 = vsub.s32 0, %v11333_v20  ;;  %v636_v12 = vor.u32 %v635_v39, %v634_v54  ;;  %vm643_vm8 = vcmp.lt.s32.totalorder %v11300_v0, 1  ;;  %7457 = vmatpush1.bf16.msra.mxu0 %v7395_v55 }
  0xdb   :  { %v384_v62 = vsel %vm301_vm15, %v383_v40, %v382_v24  ;;  %v642_v30 = vor.u32 %v641_v43, %v640_v32  ;;  %vm646_vm11 = vcmp.lt.s32.totalorder %v11300_v0, 4  ;;  %v2278_v50 = vand.u32 2139095040, %v11335_v14 }
  0xdc   :  { %v9712_v38 = vmin.u32 %v2029_v49, %v11333_v20  ;;  %vm644_vm13 = vcmp.lt.s32.totalorder %v11300_v0, 2  ;;  %vm645_vm14 = vcmp.lt.s32.totalorder %v11300_v0, 3  ;;  %v648_v39 = vsel %vm646_vm11, %v636_v12, 2102212464 }
  0xdd   :  { %v647_v42 = vsel %vm643_vm8, %v627_v63, %v630_v23  ;;  %v649_v40 = vsel %vm645_vm14, %v633_v22, %v648_v39  ;;  %v651_v32 = vsel %vm643_vm8, %v630_v23, %v633_v22  ;;  %v652_v8 = vsel %vm646_vm11, %v639_v19, 920167782  ;;  %9916 = vmatmul.mubr.msk.bf16.vlgmr.msra.gmra.mxu0 %vm7386_vm3, %v11346_v52 }
  0xde   :  { %v386_v47 = vsel %vm301_vm15, %v385_v44, %v11192_v60  ;;  %v2031_v24 = vclz %v9712_v38  ;;  %v2049_v10 = vsub.s32 4, %v11314_v53  ;;  %v655_v13 = vsel %vm643_vm8, %v633_v22, %v636_v12 }
  0xdf   :  { %v387_v23 = vsel %vm11310_vm5, %v11005_v29, %v384_v62  ;;  %v15590_v9 = vmov 0   ;;  %v653_v54 = vsel %vm645_vm14, %v636_v12, %v652_v8  ;;  %v656_v60 = vsel %vm646_vm11, %v642_v30, 1326507024 }
  0xe0   :  { %7484 = vmatprep.mubr.bf16.mxu0 %v15590_v9  ;;  %v2279_v44 = vshrl.u32 %v2278_v50, 23  ;;  %v9713_v43 = vadd.s32 4294967294, %v2031_v24  ;;  %v650_v21 = vsel %vm644_vm13, %v647_v42, %v649_v40  ;;  %v654_v22 = vsel %vm644_vm13, %v651_v32, %v653_v54  ;;  %v11400_v50 = vld [vmem:[%s15298_s3 + $0x8] sm:$0xff]  }
  0xe1   :  { %v657_v63 = vsel %vm645_vm14, %v639_v19, %v656_v60  ;;  %v11391_v49 = vmul.u32.u64.low %v11337_v57, %v654_v22  ;;  %v11392_v12 = vmul.u32.u64.high %v11337_v57, %v654_v22, %v11391_v49  ;;  %v2019_v30 = vadd.s32 %v11258_v11, %v11273_v34  ;;  %v6749_v22 = vld [vmem:[%s15300_s5 + $0x10] sm:$0xff] }
  0xe2   :  { %v658_v55 = vsel %vm644_vm13, %v655_v13, %v657_v63  ;;  %v9723_v62 = vadd.s32 4294967169, %v2279_v44  ;;  %vm9714_vm15 = vcmp.lt.s32.totalorder %v9713_v43, 0  ;;  %10173 = vcosq.f32 %v387_v23  ;;  %7300 = vperm.xlu0 %10131, %v6749_v22  }
  0xe3   :  { %v11403_v19 = vmul.u32.u64.low %v11337_v57, %v658_v55  ;;  %v11404_v38 = vmul.u32.u64.high %v11337_v57, %v658_v55, %v11403_v19  ;;  %v2034_v0 = vsel %vm9714_vm15, 0, %v9713_v43  ;;  %v2050_v39 = vsel %vm1965_vm6, %v2049_v10, %v11314_v53 }
  0xe4   :  { %v2285_v42 = vadd.s32 1, %v9723_v62  ;;  %v2035_v40 = vsub.s32 32, %v2034_v0  ;;  %v2036_v11 = vshll.u32 %v11333_v20, %v2034_v0  ;;  %v2039_v34 = vsub.s32 4294967266, %v2034_v0 }
  0xe5   :  { %v666_v32 = vmul.u32 %v11337_v57, %v650_v21  ;;  %v11413_v8 = vsel %vm11310_vm5, 0, %v386_v47  ;;  %v15592_v24 = vand.u32 2147483647, %v11125_v56  ;;  %v669_v54 = vadd.s32 1, %v11392_v12  ;;  %9917 = vmatmul.mubr.msk.bf16.gmra.mxu0 %vm7386_vm3, %v11400_v50 }
  0xe6   :  { %15591 = vst [vmem:[#allocation21_spill] sm:$0xff] %v11413_v8  ;;  %vm2286_vm8 = vcmp.gt.s32.totalorder %v2285_v42, 0  ;;  %v2037_v53 = vshrl.u32 %v2019_v30, %v2035_v40  ;;  %v2040_v10 = vadd.s32 127, %v2039_v34  ;;  %vm668_vm5 = vc.u32 %v11404_v38, %v11391_v49  ;;  %7580 = vmatprep.mubr.bf16.mxu0 %v15590_v9 }
  0xe7   :  { %vm11417_vm0 = vcmp.le.f32.partialorder %v15592_v24, 0.7853982  ;;  %v670_v7 = vsel %vm668_vm5, %v669_v54, %v11392_v12  ;;  %v15329_v57 = vand.u32 2147483647, %v11335_v14  ;;  %v2287_v47 = vsel %vm2286_vm8, %v2285_v42, 0  ;;  %v11449_v54 = vld [vmem:[#allocation2 + $0x38] sm:$0xff] }
  0xe8   :  { %v11424_v20 = vsel %vm11417_vm0, 0, %v2050_v39  ;;  %v392_v60 = vadd.s32 3, %v11413_v8  ;;  %v2038_v44 = vor.u32 %v2037_v53, %v2036_v11  ;;  %v2041_v43 = vshll.u32 %v2040_v10, 23  ;;  %15597 = vst [vmem:[#allocation23_spill] sm:$0xff] %v11449_v54 }
  0xe9   :  { %15595 = vst [vmem:[#allocation22_spill] sm:$0xff] %v11424_v20  ;;  %v671_v21 = vadd.s32 %v670_v7, %v666_v32  ;;  %10175 = vsinq.f32 %v387_v23  ;;  %v2056_v63 = vadd.s32 3, %v11424_v20  ;;  %v2289_v55 = vand.u32 31, %v2287_v47 }
  0xea   :  { %v2042_v12 = vor.u32 4788187, %v2041_v43  ;;  %v2045_v62 = vcvt.s32.f32 %v2038_v44  ;;  %v2282_v19 = vand.u32 8388607, %v15329_v57  ;;  %v11440_v39 = vand.u32 3, %v392_v60 }
  0xeb   :  { %v672_v30 = vadd.s32 536870912, %v671_v21  ;;  %v2290_v0 = vsub.s32 32, %v2289_v55  ;;  %v11444_v11 = vand.u32 3, %v2056_v63  ;;  %v2292_v23 = vshll.u32 %v15332_v18, %v2289_v55 }
  0xec   :  { %v2043_v42 = vand.u32 2147483647, %v2042_v12  ;;  %v15596_v34 = vmov 2475754826   ;;  %v15598_v7 = vmov 2131351028   ;;  %v2304_v8 = vshll.u32 %v15343_v26, %v2289_v55 }
  0xed   :  { %v11442_v40 = vshrl.u32 %v672_v30, 30  ;;  %v2293_v32 = vshrl.u32 %v15596_v34, %v2290_v0  ;;  %v2295_v24 = vshll.u32 %v15596_v34, %v2289_v55  ;;  %v2296_v44 = vshrl.u32 %v15598_v7, %v2290_v0 }
  0xee   :  { %v2046_v53 = vmul.f32 %v2045_v62, %v2043_v42  ;;  %v2298_v60 = vshll.u32 %v15598_v7, %v2289_v55  ;;  %v2283_v43 = vor.u32 8388608, %v2282_v19  ;;  %v2288_v22 = vshrl.u32 %v2287_v47, 5 }
  0xef   :  { %v674_v10 = vshll.u32 %v11442_v40, 30  ;;  %v15599_v12 = vmov 2102212464   ;;  %v11456_v57 = vpop.eup %10173  ;;  %v2302_v33 = vshrl.u32 %v15343_v26, %v2290_v0  ;;  %v822_v62 = vand.u32 2139095040, %v11449_v54 }
  0xf0   :  { %v2299_v63 = vshrl.u32 %v15599_v12, %v2290_v0  ;;  %v2301_v30 = vshll.u32 %v15599_v12, %v2289_v55  ;;  %15600 = vst [vmem:[#allocation24_spill] sm:$0xff] %v11456_v57  ;;  %v2047_v35 = vxor.u32 2147483648, %v2046_v53  ;;  %v15601_v42 = vmov 683565275  }
  0xf1   :  { %v11458_v18 = vsub.s32 %v671_v21, %v674_v10  ;;  %v2291_v20 = vshrl.u32 %v15601_v42, %v2290_v0  ;;  %v2294_v36 = vor.u32 %v2293_v32, %v2292_v23  ;;  %v15602_v19 = vmov 1326507024  }
  0xf2   :  { %v2305_v47 = vshrl.u32 %v15602_v19, %v2290_v0  ;;  %vm395_vm11 = vcmp.eq.s32.totalorder %v11440_v39, 0  ;;  %vm398_vm13 = vcmp.eq.s32.totalorder %v11440_v39, 2  ;;  %v2048_v3 = vsel %vm1965_vm6, %v2047_v35, %v2046_v53 }
  0xf3   :  { %v677_v21 = vsub.s32 0, %v11458_v18  ;;  %v2297_v10 = vor.u32 %v2296_v44, %v2295_v24  ;;  %v2300_v27 = vor.u32 %v2299_v63, %v2298_v60  ;;  %v2051_v61 = vsel %vm11417_vm0, %v11125_v56, %v2048_v3 }
  0xf4   :  { %v2303_v23 = vor.u32 %v2302_v33, %v2301_v30  ;;  %v2306_v32 = vor.u32 %v2305_v47, %v2304_v8  ;;  %vm2307_vm14 = vcmp.lt.s32.totalorder %v2288_v22, 1  ;;  %v15345_v55 = vxor.u32 2147483648, %v11456_v57 }
  0xf5   :  { %10177 = vcosq.f32 %v2051_v61  ;;  %v9660_v0 = vmin.u32 %v677_v21, %v11458_v18  ;;  %v11475_v26 = vshll.u32 %v2283_v43, 8  ;;  %vm2309_vm6 = vcmp.lt.s32.totalorder %v2288_v22, 3 }
  0xf6   :  { %10179 = vsinq.f32 %v2051_v61  ;;  %vm2310_vm15 = vcmp.lt.s32.totalorder %v2288_v22, 4  ;;  %v823_v35 = vshrl.u32 %v822_v62, 23  ;;  %v11477_v24 = vpop.eup %10175  ;;  %vm2308_vm8 = vcmp.lt.s32.totalorder %v2288_v22, 2 }
  0xf7   :  { %15603 = vst [vmem:[#allocation25_spill] sm:$0xff] %v11477_v24  ;;  %v679_v53 = vclz %v9660_v0  ;;  %v2311_v3 = vsel %vm2307_vm14, %v2291_v20, %v2294_v36  ;;  %v2315_v33 = vsel %vm2307_vm14, %v2294_v36, %v2297_v10  ;;  %v2312_v8 = vsel %vm2310_vm15, %v2300_v27, 2102212464 }
  0xf8   :  { %v2316_v13 = vsel %vm2310_vm15, %v2303_v23, 920167782  ;;  %v2319_v44 = vsel %vm2307_vm14, %v2297_v10, %v2300_v27  ;;  %v2320_v60 = vsel %vm2310_vm15, %v2306_v32, 1326507024  ;;  %vm15367_vm0 = vweird.f32 %v11005_v29 }
  0xf9   :  { %v9661_v43 = vadd.s32 4294967294, %v679_v53  ;;  %v2313_v61 = vsel %vm2309_vm6, %v2297_v10, %v2312_v8  ;;  %v2317_v63 = vsel %vm2309_vm6, %v2300_v27, %v2316_v13  ;;  %v2321_v30 = vsel %vm2309_vm6, %v2303_v23, %v2320_v60 }
  0xfa   :  { %v15347_v62 = vxor.u32 2147483648, %v11477_v24  ;;  %v2318_v20 = vsel %vm2308_vm8, %v2315_v33, %v2317_v63  ;;  %v2322_v36 = vsel %vm2308_vm8, %v2319_v44, %v2321_v30  ;;  %v9667_v47 = vadd.s32 4294967169, %v823_v35 }
  0xfb   :  { %v667_v21 = vadd.s32 %v11391_v49, %v11404_v38  ;;  %vm9662_vm5 = vcmp.lt.s32.totalorder %v9661_v43, 0  ;;  %v11492_v32 = vmul.u32.u64.low %v11475_v26, %v2322_v36  ;;  %v11493_v0 = vmul.u32.u64.high %v11475_v26, %v2322_v36, %v11492_v32  ;;  %v11527_v36 = vld [vmem:[#allocation2 + $0xb8] sm:$0xf] }
  0xfc   :  { %v682_v10 = vsel %vm9662_vm5, 0, %v9661_v43  ;;  %v2314_v27 = vsel %vm2308_vm8, %v2311_v3, %v2313_v61  ;;  %v11497_v23 = vmul.u32.u64.low %v11475_v26, %v2318_v20  ;;  %v11498_v53 = vmul.u32.u64.high %v11475_v26, %v2318_v20, %v11497_v23  ;;  %15605 = vst [vmem:[#allocation27_spill] sm:$0xff] %v11527_v36 }
  0xfd   :  { %v683_v33 = vsub.s32 32, %v682_v10  ;;  %v687_v8 = vsub.s32 4294967266, %v682_v10  ;;  %v15348_v35 = vand.u32 2147483647, %v11449_v54  ;;  %v829_v13 = vadd.s32 1, %v9667_v47 }
  0xfe   :  { %vm394_vm14 = vcmp.lt.s32.totalorder %v11440_v39, 2  ;;  %v397_v49 = vsel %vm395_vm11, %v11456_v57, %v15347_v62  ;;  %v400_v38 = vsel %vm398_vm13, %v15345_v55, %v11477_v24  ;;  %v684_v22 = vshll.u32 %v11458_v18, %v682_v10 }
  0xff   :  { %v685_v3 = vshrl.u32 %v667_v21, %v683_v33  ;;  %v688_v44 = vadd.s32 127, %v687_v8  ;;  %v2330_v60 = vmul.u32 %v11475_v26, %v2314_v27  ;;  %vm2332_vm6 = vc.u32 %v11493_v0, %v11497_v23 }
 0x100   :  { %vm15366_vm15 = vweird.f32 %v11125_v56  ;;  %vm2058_vm8 = vcmp.lt.s32.totalorder %v11444_v11, 2  ;;  %v2333_v43 = vadd.s32 1, %v11498_v53  ;;  %vm830_vm11 = vcmp.gt.s32.totalorder %v829_v13, 0 }
 0x101   :  { %v401_v61 = vsel %vm394_vm14, %v397_v49, %v400_v38  ;;  %v689_v63 = vshll.u32 %v688_v44, 23  ;;  %v826_v39 = vand.u32 8388607, %v15348_v35  ;;  %v831_v18 = vsel %vm830_vm11, %v829_v13, 0 }
 0x102   :  { %v11522_v30 = vpop.eup %10177  ;;  %vm2062_vm13 = vcmp.eq.s32.totalorder %v11444_v11, 2  ;;  %vm613_vm5 = vcmp.lt.s32.totalorder %v11178_v59, 0  ;;  %v686_v26 = vor.u32 %v685_v3, %v684_v22  ;;  %v2334_v20 = vsel %vm2332_vm6, %v2333_v43, %v11498_v53 }
 0x103   :  { %15604 = vst [vmem:[#allocation26_spill] sm:$0xff] %v11522_v30  ;;  %v833_v47 = vand.u32 31, %v831_v18  ;;  %v11529_v21 = vpop.eup %10179  ;;  %vm2059_vm14 = vcmp.eq.s32.totalorder %v11444_v11, 0  ;;  %v15346_v32 = vxor.u32 2147483648, %v11522_v30  ;;  %v690_v10 = vor.u32 4788187, %v689_v63 }
 0x104   :  { %15606 = vst [vmem:[#allocation28_spill] sm:$0xff] %v11529_v21  ;;  %v2335_v27 = vadd.s32 %v2334_v20, %v2330_v60  ;;  %v402_v33 = vsel %vm15367_vm0, nan, %v401_v61  ;;  %v15349_v8 = vxor.u32 2147483648, %v11529_v21  ;;  %v697_v13 = vsub.s32 4, %v11442_v40 }
 0x105   :  { %v834_v49 = vsub.s32 32, %v833_v47  ;;  %v2064_v53 = vsel %vm2062_vm13, %v15346_v32, %v11529_v21  ;;  %v827_v22 = vor.u32 8388608, %v826_v39  ;;  %v2486_v3 = vand.u32 2139095040, %v11527_v36 }
 0x106   :  { %v2336_v38 = vadd.s32 536870912, %v2335_v27  ;;  %v2061_v44 = vsel %vm2059_vm14, %v11522_v30, %v15349_v8  ;;  %v691_v60 = vand.u32 2147483647, %v690_v10  ;;  %v693_v43 = vcvt.s32.f32 %v686_v26 }
 0x107   :  { %v832_v61 = vshrl.u32 %v831_v18, 5  ;;  %v2065_v63 = vsel %vm2058_vm8, %v2061_v44, %v2064_v53  ;;  %v836_v55 = vshll.u32 %v15601_v42, %v833_v47  ;;  %v839_v32 = vshll.u32 %v15596_v34, %v833_v47 }
 0x108   :  { %v11546_v20 = vshrl.u32 %v2336_v38, 30  ;;  %v2066_v39 = vsel %vm15366_vm15, nan, %v2065_v63  ;;  %v837_v62 = vshrl.u32 %v15596_v34, %v834_v49  ;;  %v840_v35 = vshrl.u32 %v15598_v7, %v834_v49 }
 0x109   :  { %v845_v10 = vshll.u32 %v15599_v12, %v833_v47  ;;  %v3421_v26 = vpack.c.bf16 %v2066_v39, %v402_v33  ;;  %v842_v11 = vshll.u32 %v15598_v7, %v833_v47  ;;  %v843_v53 = vshrl.u32 %v15599_v12, %v834_v49 }
 0x10a   :  { %v2338_v18 = vshll.u32 %v11546_v20, 30  ;;  %v694_v38 = vmul.f32 %v693_v43, %v691_v60  ;;  %v15607_v44 = vmov 920167782   ;;  %v849_v63 = vshrl.u32 %v15602_v19, %v834_v49 }
 0x10b   :  { %v846_v8 = vshrl.u32 %v15607_v44, %v834_v49  ;;  %v848_v29 = vshll.u32 %v15607_v44, %v833_v47  ;;  %v7401_v56 = vsel %vm7393_vm2, %v3421_v26, 0  ;;  %v15608_v30 = vand.u32 2147483647, %v11178_v59 }
 0x10c   :  { %v698_v33 = vsel %vm613_vm5, %v697_v13, %v11442_v40  ;;  %v11571_v39 = vsub.s32 %v2335_v27, %v2338_v18  ;;  %7510 = vmatpush1.bf16.msra.mxu1 %v7401_v56  ;;  %v835_v60 = vshrl.u32 %v15601_v42, %v834_v49  ;;  %v838_v47 = vor.u32 %v837_v62, %v836_v55 }
 0x10d   :  { %vm11564_vm6 = vcmp.le.f32.partialorder %v15608_v30, 0.7853982  ;;  %v841_v43 = vor.u32 %v840_v35, %v839_v32  ;;  %v847_v57 = vor.u32 %v846_v8, %v845_v10  ;;  %v844_v24 = vor.u32 %v843_v53, %v842_v11 }
 0x10e   :  { %v2341_v26 = vsub.s32 0, %v11571_v39  ;;  %vm851_vm8 = vcmp.lt.s32.totalorder %v832_v61, 1  ;;  %v11575_v30 = vshll.u32 %v827_v22, 8  ;;  %v695_v46 = vxor.u32 2147483648, %v694_v38 }
 0x10f   :  { %v850_v25 = vor.u32 %v849_v63, %v848_v29  ;;  %vm854_vm11 = vcmp.lt.s32.totalorder %v832_v61, 4  ;;  %v2487_v37 = vshrl.u32 %v2486_v3, 23  ;;  %9919 = vmatmul.mubr.msk.bf16.vlgmr.msra.gmra.mxu1 %vm7386_vm3, %v11346_v52  ;;  %vm2277_vm13 = vcmp.lt.s32.totalorder %v11335_v14, 0 }
 0x110   :  { %v9724_v56 = vmin.u32 %v2341_v26, %v11571_v39  ;;  %vm852_vm14 = vcmp.lt.s32.totalorder %v832_v61, 2  ;;  %vm853_vm15 = vcmp.lt.s32.totalorder %v832_v61, 3  ;;  %v856_v40 = vsel %vm854_vm11, %v844_v24, 2102212464  ;;  %7537 = vmatprep.mubr.bf16.mxu1 %v15590_v9 }
 0x111   :  { %v855_v55 = vsel %vm851_vm8, %v835_v60, %v838_v47  ;;  %v857_v62 = vsel %vm853_vm15, %v841_v43, %v856_v40  ;;  %v859_v29 = vsel %vm851_vm8, %v838_v47, %v841_v43  ;;  %v860_v35 = vsel %vm854_vm11, %v847_v57, 920167782 }
 0x112   :  { %v11589_v52 = vsel %vm11564_vm6, 0, %v698_v33  ;;  %v2331_v32 = vadd.s32 %v11497_v23, %v11493_v0  ;;  %v2343_v27 = vclz %v9724_v56  ;;  %v863_v8 = vsel %vm851_vm8, %v841_v43, %v844_v24 }
 0x113   :  { %15611 = vst [vmem:[#allocation29_spill] sm:$0xff] %v11589_v52  ;;  %v696_v13 = vsel %vm613_vm5, %v695_v46, %v694_v38  ;;  %v15612_v49 = vand.u32 2147483647, %v11335_v14  ;;  %v861_v3 = vsel %vm853_vm15, %v844_v24, %v860_v35  ;;  %v864_v10 = vsel %vm854_vm11, %v850_v25, 1326507024 }
 0x114   :  { %v9731_v18 = vadd.s32 4294967169, %v2487_v37  ;;  %v9725_v11 = vadd.s32 4294967294, %v2343_v27  ;;  %v858_v0 = vsel %vm852_vm14, %v855_v55, %v857_v62  ;;  %v862_v23 = vsel %vm852_vm14, %v859_v29, %v861_v3 }
 0x115   :  { %vm11598_vm0 = vcmp.le.f32.partialorder %v15612_v49, 0.7853982  ;;  %v865_v53 = vsel %vm853_vm15, %v847_v57, %v864_v10  ;;  %v2361_v46 = vsub.s32 4, %v11546_v20  ;;  %v699_v60 = vsel %vm11564_vm6, %v11178_v59, %v696_v13 }
 0x116   :  { %v866_v38 = vsel %vm852_vm14, %v863_v8, %v865_v53  ;;  %v11610_v63 = vmul.u32.u64.low %v11575_v30, %v862_v23  ;;  %v11611_v33 = vmul.u32.u64.high %v11575_v30, %v862_v23, %v11610_v63  ;;  %vm9726_vm5 = vcmp.lt.s32.totalorder %v9725_v11, 0 }
 0x117   :  { %v11615_v25 = vmul.u32.u64.low %v11575_v30, %v866_v38  ;;  %v11616_v37 = vmul.u32.u64.high %v11575_v30, %v866_v38, %v11615_v25  ;;  %v2493_v24 = vadd.s32 1, %v9731_v18  ;;  %v2346_v57 = vsel %vm9726_vm5, 0, %v9725_v11  ;;  %9920 = vmatmul.mubr.msk.bf16.gmra.mxu1 %vm7386_vm3, %v11400_v50 }
 0x118   :  { %v874_v47 = vmul.u32 %v11575_v30, %v858_v0  ;;  %v15375_v61 = vand.u32 2147483647, %v11527_v36  ;;  %v2347_v43 = vsub.s32 32, %v2346_v57  ;;  %v2348_v26 = vshll.u32 %v11571_v39, %v2346_v57  ;;  %7633 = vmatprep.mubr.bf16.mxu1 %v15590_v9 }
 0x119   :  { %v2351_v56 = vsub.s32 4294967266, %v2346_v57  ;;  %vm2494_vm15 = vcmp.gt.s32.totalorder %v2493_v24, 0  ;;  %v704_v40 = vadd.s32 3, %v11589_v52  ;;  %v2362_v21 = vsel %vm2277_vm13, %v2361_v46, %v11546_v20  ;;  %v11654_v57 = vld [vmem:[#allocation2 + $0x20] sm:$0xff] }
 0x11a   :  { %v877_v55 = vadd.s32 1, %v11611_v33  ;;  %v2495_v62 = vsel %vm2494_vm15, %v2493_v24, 0  ;;  %10181 = vcosq.f32 %v699_v60  ;;  %v2349_v30 = vshrl.u32 %v2331_v32, %v2347_v43  ;;  %15616 = vst [vmem:[#allocation31_spill] sm:$0xff] %v11654_v57 }
 0x11b   :  { %v2352_v29 = vadd.s32 127, %v2351_v56  ;;  %vm876_vm6 = vc.u32 %v11616_v37, %v11610_v63  ;;  %10183 = vsinq.f32 %v699_v60  ;;  %v2490_v39 = vand.u32 8388607, %v15375_v61 }
 0x11c   :  { %v878_v50 = vsel %vm876_vm6, %v877_v55, %v11611_v33  ;;  %v2497_v35 = vand.u32 31, %v2495_v62  ;;  %v2350_v27 = vor.u32 %v2349_v30, %v2348_v26  ;;  %v11639_v8 = vsel %vm11598_vm0, 0, %v2362_v21 }
 0x11d   :  { %v2353_v20 = vshll.u32 %v2352_v29, 23  ;;  %15615 = vst [vmem:[#allocation30_spill] sm:$0xff] %v11639_v8  ;;  %v879_v13 = vadd.s32 %v878_v50, %v874_v47  ;;  %v11641_v18 = vand.u32 3, %v704_v40  ;;  %v11644_v11 = vadd.s32 3, %v11639_v8 }
 0x11e   :  { %v2498_v49 = vsub.s32 32, %v2497_v35  ;;  %v2357_v3 = vcvt.s32.f32 %v2350_v27  ;;  %v2491_v0 = vor.u32 8388608, %v2490_v39  ;;  %v2500_v46 = vshll.u32 %v15601_v42, %v2497_v35 }
 0x11f   :  { %v2354_v32 = vor.u32 4788187, %v2353_v20  ;;  %v880_v10 = vadd.s32 536870912, %v879_v13  ;;  %v2503_v38 = vshll.u32 %v15596_v34, %v2497_v35  ;;  %v2506_v24 = vshll.u32 %v15598_v7, %v2497_v35 }
 0x120   :  { %v2501_v33 = vshrl.u32 %v15596_v34, %v2498_v49  ;;  %v2504_v25 = vshrl.u32 %v15598_v7, %v2498_v49  ;;  %v2507_v60 = vshrl.u32 %v15599_v12, %v2498_v49  ;;  %v2496_v26 = vshrl.u32 %v2495_v62, 5 }
 0x121   :  { %v2355_v23 = vand.u32 2147483647, %v2354_v32  ;;  %v11646_v53 = vshrl.u32 %v880_v10, 30  ;;  %v2509_v56 = vshll.u32 %v15599_v12, %v2497_v35  ;;  %vm710_vm8 = vcmp.eq.s32.totalorder %v11641_v18, 2 }
 0x122   :  { %v2510_v40 = vshrl.u32 %v15607_v44, %v2498_v49  ;;  %v2512_v21 = vshll.u32 %v15607_v44, %v2497_v35  ;;  %v2513_v55 = vshrl.u32 %v15602_v19, %v2498_v49  ;;  %v11662_v30 = vshll.u32 %v2491_v0, 8 }
 0x123   :  { %v2358_v47 = vmul.f32 %v2357_v3, %v2355_v23  ;;  %v882_v43 = vshll.u32 %v11646_v53, 30  ;;  %vm707_vm11 = vcmp.eq.s32.totalorder %v11641_v18, 0  ;;  %v2499_v39 = vshrl.u32 %v15601_v42, %v2498_v49 }
 0x124   :  { %v510_v62 = vand.u32 2139095040, %v11654_v57  ;;  %v2502_v27 = vor.u32 %v2501_v33, %v2500_v46  ;;  %v2505_v20 = vor.u32 %v2504_v25, %v2503_v38  ;;  %v2508_v32 = vor.u32 %v2507_v60, %v2506_v24 }
 0x125   :  { %v2359_v29 = vxor.u32 2147483648, %v2358_v47  ;;  %v11665_v50 = vsub.s32 %v879_v13, %v882_v43  ;;  %v2511_v3 = vor.u32 %v2510_v40, %v2509_v56  ;;  %v2514_v0 = vor.u32 %v2513_v55, %v2512_v21 }
 0x126   :  { %vm2515_vm14 = vcmp.lt.s32.totalorder %v2496_v26, 1  ;;  %vm2516_vm5 = vcmp.lt.s32.totalorder %v2496_v26, 2  ;;  %vm2517_vm15 = vcmp.lt.s32.totalorder %v2496_v26, 3  ;;  %vm2518_vm6 = vcmp.lt.s32.totalorder %v2496_v26, 4 }
 0x127   :  { %v2360_v35 = vsel %vm2277_vm13, %v2359_v29, %v2358_v47  ;;  %v885_v10 = vsub.s32 0, %v11665_v50  ;;  %v11672_v23 = vpop.eup %10181  ;;  %vm706_vm9 = vcmp.lt.s32.totalorder %v11641_v18, 2  ;;  %v2519_v38 = vsel %vm2515_vm14, %v2499_v39, %v2502_v27 }
 0x128   :  { %15617 = vst [vmem:[#allocation32_spill] sm:$0xff] %v11672_v23  ;;  %v2363_v13 = vsel %vm11598_vm0, %v11335_v14, %v2360_v35  ;;  %v11677_v49 = vpop.eup %10183  ;;  %v2520_v33 = vsel %vm2518_vm6, %v2508_v32, 2102212464  ;;  %v2523_v22 = vsel %vm2515_vm14, %v2502_v27, %v2505_v20  ;;  %v2524_v24 = vsel %vm2518_vm6, %v2511_v3, 920167782 }
 0x129   :  { %15618 = vst [vmem:[#allocation33_spill] sm:$0xff] %v11677_v49  ;;  %10185 = vcosq.f32 %v2363_v13  ;;  %v9668_v46 = vmin.u32 %v885_v10, %v11665_v50  ;;  %v2521_v25 = vsel %vm2517_vm15, %v2505_v20, %v2520_v33  ;;  %v15371_v60 = vxor.u32 2147483648, %v11672_v23 }
 0x12a   :  { %10187 = vsinq.f32 %v2363_v13  ;;  %v875_v47 = vadd.s32 %v11610_v63, %v11616_v37  ;;  %v2527_v56 = vsel %vm2515_vm14, %v2505_v20, %v2508_v32  ;;  %v15373_v40 = vxor.u32 2147483648, %v11677_v49 }
 0x12b   :  { %v887_v43 = vclz %v9668_v46  ;;  %v2525_v21 = vsel %vm2517_vm15, %v2508_v32, %v2524_v24  ;;  %v2528_v55 = vsel %vm2518_vm6, %v2514_v0, 1326507024  ;;  %v511_v29 = vshrl.u32 %v510_v62, 23 }
 0x12c   :  { %vm15523_vm0 = vweird.f32 %v11178_v59  ;;  %v2522_v27 = vsel %vm2516_vm5, %v2519_v38, %v2521_v25  ;;  %v2526_v35 = vsel %vm2516_vm5, %v2523_v22, %v2525_v21  ;;  %v2529_v10 = vsel %vm2517_vm15, %v2511_v3, %v2528_v55 }
 0x12d   :  { %v9669_v39 = vadd.s32 4294967294, %v887_v43  ;;  %v2530_v63 = vsel %vm2516_vm5, %v2527_v56, %v2529_v10  ;;  %v11699_v37 = vmul.u32.u64.low %v11662_v30, %v2526_v35  ;;  %v11700_v20 = vmul.u32.u64.high %v11662_v30, %v2526_v35, %v11699_v37 }
 0x12e   :  { %v9655_v32 = vadd.s32 4294967169, %v511_v29  ;;  %v712_v62 = vsel %vm710_vm8, %v15371_v60, %v11677_v49  ;;  %v11709_v0 = vmul.u32.u64.low %v11662_v30, %v2530_v63  ;;  %v11710_v13 = vmul.u32.u64.high %v11662_v30, %v2530_v63, %v11709_v0 }
 0x12f   :  { %vm9670_vm13 = vcmp.lt.s32.totalorder %v9669_v39, 0  ;;  %v709_v26 = vsel %vm707_vm11, %v11672_v23, %v15373_v40  ;;  %v905_v46 = vsub.s32 4, %v11646_v53  ;;  %vm15404_vm14 = vweird.f32 %v11335_v14 }
 0x130   :  { %v890_v3 = vsel %vm9670_vm13, 0, %v9669_v39  ;;  %v517_v38 = vadd.s32 1, %v9655_v32  ;;  %v2538_v24 = vmul.u32 %v11662_v30, %v2522_v27  ;;  %v2369_v43 = vand.u32 3, %v11644_v11 }
 0x131   :  { %v891_v33 = vsub.s32 32, %v890_v3  ;;  %v892_v25 = vshll.u32 %v11665_v50, %v890_v3  ;;  %v895_v22 = vsub.s32 4294967266, %v890_v3  ;;  %v15619_v56 = vand.u32 2147483647, %v11449_v54 }
 0x132   :  { %v2541_v55 = vadd.s32 1, %v11700_v20  ;;  %vm518_vm11 = vcmp.gt.s32.totalorder %v517_v38, 0  ;;  %vm821_vm5 = vcmp.lt.s32.totalorder %v11449_v54, 0  ;;  %vm2540_vm15 = vc.u32 %v11710_v13, %v11699_v37 }
 0x133   :  { %vm11724_vm8 = vcmp.le.f32.partialorder %v15619_v56, 0.7853982  ;;  %v893_v29 = vshrl.u32 %v875_v47, %v891_v33  ;;  %v896_v39 = vadd.s32 127, %v895_v22  ;;  %v713_v30 = vsel %vm706_vm9, %v709_v26, %v712_v62 }
 0x134   :  { %v2542_v11 = vsel %vm2540_vm15, %v2541_v55, %v11700_v20  ;;  %v15374_v50 = vand.u32 2147483647, %v11654_v57  ;;  %v519_v27 = vsel %vm518_vm11, %v517_v38, 0  ;;  %v906_v63 = vsel %vm821_vm5, %v905_v46, %v11646_v53  ;;  %v11751_v46 = vld [vmem:[#allocation2 + $0xa0] sm:$0xf] }
 0x135   :  { %v894_v35 = vor.u32 %v893_v29, %v892_v25  ;;  %v897_v10 = vshll.u32 %v896_v39, 23  ;;  %v2543_v32 = vadd.s32 %v2542_v11, %v2538_v24  ;;  %vm2370_vm6 = vcmp.lt.s32.totalorder %v2369_v43, 2  ;;  %15625 = vst [vmem:[#allocation37_spill] sm:$0xff] %v11751_v46 }
 0x136   :  { %v11739_v47 = vpop.eup %10185  ;;  %vm2371_vm13 = vcmp.eq.s32.totalorder %v2369_v43, 0  ;;  %vm2374_vm4 = vcmp.eq.s32.totalorder %v2369_v43, 2  ;;  %v521_v0 = vand.u32 31, %v519_v27  ;;  %v714_v38 = vsel %vm15523_vm0, nan, %v713_v30 }
 0x137   :  { %15622 = vst [vmem:[#allocation34_spill] sm:$0xff] %v11739_v47  ;;  %v11741_v18 = vpop.eup %10187  ;;  %v15370_v20 = vxor.u32 2147483648, %v11739_v47  ;;  %v898_v62 = vor.u32 4788187, %v897_v10  ;;  %v901_v26 = vcvt.s32.f32 %v894_v35  ;;  %v2544_v3 = vadd.s32 536870912, %v2543_v32 }
 0x138   :  { %15623 = vst [vmem:[#allocation35_spill] sm:$0xff] %v11741_v18  ;;  %v15372_v33 = vxor.u32 2147483648, %v11741_v18  ;;  %v11749_v53 = vsel %vm11724_vm8, 0, %v906_v63  ;;  %v522_v25 = vsub.s32 32, %v521_v0  ;;  %v514_v55 = vand.u32 8388607, %v15374_v50 }
 0x139   :  { %15624 = vst [vmem:[#allocation36_spill] sm:$0xff] %v11749_v53  ;;  %v2376_v22 = vsel %vm2374_vm4, %v15370_v20, %v11741_v18  ;;  %v899_v24 = vand.u32 2147483647, %v898_v62  ;;  %v11756_v56 = vshrl.u32 %v2544_v3, 30  ;;  %v520_v39 = vshrl.u32 %v519_v27, 5 }
 0x13a   :  { %v2373_v29 = vsel %vm2371_vm13, %v11739_v47, %v15372_v33  ;;  %v524_v30 = vshll.u32 %v15601_v42, %v521_v0  ;;  %v525_v62 = vshrl.u32 %v15596_v34, %v522_v25  ;;  %v527_v20 = vshll.u32 %v15596_v34, %v521_v0 }
 0x13b   :  { %v2377_v35 = vsel %vm2370_vm6, %v2373_v29, %v2376_v22  ;;  %v902_v10 = vmul.f32 %v901_v26, %v899_v24  ;;  %v2546_v63 = vshll.u32 %v11756_v56, 30  ;;  %v528_v60 = vshrl.u32 %v15598_v7, %v522_v25 }
 0x13c   :  { %v2378_v3 = vsel %vm15404_vm14, nan, %v2377_v35  ;;  %v530_v27 = vshll.u32 %v15598_v7, %v521_v0  ;;  %v531_v43 = vshrl.u32 %v15599_v12, %v522_v25  ;;  %v515_v26 = vor.u32 8388608, %v514_v55 }
 0x13d   :  { %v3424_v33 = vpack.c.bf16 %v2378_v3, %v714_v38  ;;  %v903_v40 = vxor.u32 2147483648, %v902_v10  ;;  %v11774_v50 = vsub.s32 %v2543_v32, %v2546_v63  ;;  %v533_v22 = vshll.u32 %v15599_v12, %v521_v0 }
 0x13e   :  { %v534_v24 = vshrl.u32 %v15607_v44, %v522_v25  ;;  %v2174_v29 = vand.u32 2139095040, %v11751_v46  ;;  %v523_v61 = vshrl.u32 %v15601_v42, %v522_v25  ;;  %v526_v11 = vor.u32 %v525_v62, %v524_v30 }
 0x13f   :  { %9921 = vmatprep.subr.msk.bf16.mxu0 %vm7393_vm2, %v3424_v33  ;;  %v2549_v35 = vsub.s32 0, %v11774_v50  ;;  %v536_v38 = vshll.u32 %v15607_v44, %v521_v0  ;;  %v904_v32 = vsel %vm821_vm5, %v903_v40, %v902_v10  ;;  %v529_v63 = vor.u32 %v528_v60, %v527_v20 }
 0x140   :  { %v535_v55 = vor.u32 %v534_v24, %v533_v22  ;;  %v537_v3 = vshrl.u32 %v15602_v19, %v522_v25  ;;  %v2539_v14 = vadd.s32 %v11699_v37, %v11710_v13  ;;  %v532_v33 = vor.u32 %v531_v43, %v530_v27 }
 0x141   :  { %v9732_v59 = vmin.u32 %v2549_v35, %v11774_v50  ;;  %vm539_vm4 = vcmp.lt.s32.totalorder %v520_v39, 1  ;;  %vm541_vm9 = vcmp.lt.s32.totalorder %v520_v39, 3  ;;  %vm542_vm11 = vcmp.lt.s32.totalorder %v520_v39, 4 }
 0x142   :  { %v538_v47 = vor.u32 %v537_v3, %v536_v38  ;;  %v2175_v30 = vshrl.u32 %v2174_v29, 23  ;;  %v907_v0 = vsel %vm11724_vm8, %v11449_v54, %v904_v32  ;;  %vm540_vm5 = vcmp.lt.s32.totalorder %v520_v39, 2 }
 0x143   :  { %v2551_v40 = vclz %v9732_v59  ;;  %v555_v60 = vshll.u32 %v515_v26, 8  ;;  %v543_v20 = vsel %vm539_vm4, %v523_v61, %v526_v11  ;;  %v544_v25 = vsel %vm542_vm11, %v532_v33, 2102212464 }
 0x144   :  { %v547_v37 = vsel %vm539_vm4, %v526_v11, %v529_v63  ;;  %v548_v13 = vsel %vm542_vm11, %v535_v55, 920167782  ;;  %v545_v62 = vsel %vm541_vm9, %v529_v63, %v544_v25  ;;  %v551_v43 = vsel %vm539_vm4, %v529_v63, %v532_v33 }
 0x145   :  { %v9733_v10 = vadd.s32 4294967294, %v2551_v40  ;;  %v549_v27 = vsel %vm541_vm9, %v532_v33, %v548_v13  ;;  %v2569_v21 = vsub.s32 4, %v11756_v56  ;;  %v552_v26 = vsel %vm542_vm11, %v538_v47, 1326507024 }
 0x146   :  { %v550_v59 = vsel %vm540_vm5, %v547_v37, %v549_v27  ;;  %v9719_v61 = vadd.s32 4294967169, %v2175_v30  ;;  %v553_v22 = vsel %vm541_vm9, %v535_v55, %v552_v26  ;;  %10189 = vcosq.f32 %v907_v0 }
 0x147   :  { %vm9734_vm8 = vcmp.lt.s32.totalorder %v9733_v10, 0  ;;  %v11804_v11 = vmul.u32.u64.low %v555_v60, %v550_v59  ;;  %v11805_v24 = vmul.u32.u64.high %v555_v60, %v550_v59, %v11804_v11  ;;  %v546_v35 = vsel %vm540_vm5, %v543_v20, %v545_v62  ;;  %v11830_v59 = vld [vmem:[#allocation2 + $0x30] sm:$0xff] }
 0x148   :  { %v2554_v29 = vsel %vm9734_vm8, 0, %v9733_v10  ;;  %v554_v38 = vsel %vm540_vm5, %v551_v43, %v553_v22  ;;  %v2181_v33 = vadd.s32 1, %v9719_v61  ;;  %10191 = vsinq.f32 %v907_v0  ;;  %15630 = vst [vmem:[#allocation38_spill] sm:$0xff] %v11830_v59 }
 0x149   :  { %v2555_v32 = vsub.s32 32, %v2554_v29  ;;  %v2556_v63 = vshll.u32 %v11774_v50, %v2554_v29  ;;  %v2559_v3 = vsub.s32 4294967266, %v2554_v29  ;;  %vm2485_vm15 = vcmp.lt.s32.totalorder %v11527_v36, 0 }
 0x14a   :  { %v11812_v47 = vmul.u32.u64.low %v555_v60, %v554_v38  ;;  %v11813_v55 = vmul.u32.u64.high %v555_v60, %v554_v38, %v11812_v47  ;;  %v565_v25 = vadd.s32 1, %v11805_v24  ;;  %vm2182_vm6 = vcmp.gt.s32.totalorder %v2181_v33, 0 }
 0x14b   :  { %v2557_v30 = vshrl.u32 %v2539_v14, %v2555_v32  ;;  %v2560_v40 = vadd.s32 127, %v2559_v3  ;;  %v912_v20 = vadd.s32 3, %v11749_v53  ;;  %v2570_v39 = vsel %vm2485_vm15, %v2569_v21, %v11756_v56 }
 0x14c   :  { %v562_v50 = vmul.u32 %v555_v60, %v546_v35  ;;  %v2183_v37 = vsel %vm2182_vm6, %v2181_v33, 0  ;;  %v15626_v10 = vand.u32 2147483647, %v11751_v46  ;;  %v15627_v14 = vand.u32 2147483647, %v11527_v36 }
 0x14d   :  { %v2558_v13 = vor.u32 %v2557_v30, %v2556_v63  ;;  %v2561_v0 = vshll.u32 %v2560_v40, 23  ;;  %v2185_v27 = vand.u32 31, %v2183_v37  ;;  %vm564_vm4 = vc.u32 %v11813_v55, %v11804_v11 }
 0x14e   :  { %v2178_v62 = vand.u32 8388607, %v15626_v10  ;;  %vm11824_vm13 = vcmp.le.f32.partialorder %v15627_v14, 0.7853982  ;;  %v566_v26 = vsel %vm564_vm4, %v565_v25, %v11805_v24  ;;  %v11837_v29 = vand.u32 3, %v912_v20 }
 0x14f   :  { %v2562_v56 = vor.u32 4788187, %v2561_v0  ;;  %v2565_v60 = vcvt.s32.f32 %v2558_v13  ;;  %v11834_v21 = vsel %vm11824_vm13, 0, %v2570_v39  ;;  %v567_v61 = vadd.s32 %v566_v26, %v562_v50 }
 0x150   :  { %15631 = vst [vmem:[#allocation39_spill] sm:$0xff] %v11834_v21  ;;  %v2186_v22 = vsub.s32 32, %v2185_v27  ;;  %v2179_v38 = vor.u32 8388608, %v2178_v62  ;;  %v718_v32 = vand.u32 2139095040, %v11830_v59  ;;  %v2576_v63 = vadd.s32 3, %v11834_v21 }
 0x151   :  { %v2563_v35 = vand.u32 2147483647, %v2562_v56  ;;  %v568_v3 = vadd.s32 536870912, %v567_v61  ;;  %v11841_v33 = vshrl.u32 %v2183_v37, 5  ;;  %v2188_v47 = vshll.u32 %v15601_v42, %v2185_v27  ;;  %v6750_v37 = vld [vmem:[%s15300_s5 + $0x18] sm:$0xff] }
 0x152   :  { %v2189_v40 = vshrl.u32 %v15596_v34, %v2186_v22  ;;  %v2191_v24 = vshll.u32 %v15596_v34, %v2185_v27  ;;  %v2192_v25 = vshrl.u32 %v15598_v7, %v2186_v22  ;;  %v2194_v39 = vshll.u32 %v15598_v7, %v2185_v27  ;;  %7305 = vperm.xlu0 %10131, %v6750_v37  }
 0x153   :  { %v2566_v30 = vmul.f32 %v2565_v60, %v2563_v35  ;;  %v11847_v20 = vshrl.u32 %v568_v3, 30  ;;  %v2195_v50 = vshrl.u32 %v15599_v12, %v2186_v22  ;;  %v2197_v13 = vshll.u32 %v15599_v12, %v2185_v27  ;;  %v11855_v0 = vpop.eup %10189 }
 0x154   :  { %15632 = vst [vmem:[#allocation40_spill] sm:$0xff] %v11855_v0  ;;  %v2198_v62 = vshrl.u32 %v15607_v44, %v2186_v22  ;;  %v11858_v14 = vshll.u32 %v2179_v38, 8  ;;  %v719_v56 = vshrl.u32 %v718_v32, 23  ;;  %v2187_v26 = vshrl.u32 %v15601_v42, %v2186_v22 }
 0x155   :  { %v2567_v10 = vxor.u32 2147483648, %v2566_v30  ;;  %v570_v60 = vshll.u32 %v11847_v20, 30  ;;  %v2200_v35 = vshll.u32 %v15607_v44, %v2185_v27  ;;  %v2201_v3 = vshrl.u32 %v15602_v19, %v2186_v22  ;;  %v11864_v21 = vpop.eup %10191 }
 0x156   :  { %15633 = vst [vmem:[#allocation41_spill] sm:$0xff] %v11864_v21  ;;  %v2190_v18 = vor.u32 %v2189_v40, %v2188_v47  ;;  %v2193_v8 = vor.u32 %v2192_v25, %v2191_v24  ;;  %v2199_v23 = vor.u32 %v2198_v62, %v2197_v13  ;;  %v2196_v37 = vor.u32 %v2195_v50, %v2194_v39 }
 0x157   :  { %v2568_v53 = vsel %vm2485_vm15, %v2567_v10, %v2566_v30  ;;  %v11871_v32 = vsub.s32 %v567_v61, %v570_v60  ;;  %vm2203_vm9 = vcmp.lt.s32.totalorder %v11841_v33, 1  ;;  %vm914_vm11 = vcmp.lt.s32.totalorder %v11837_v29, 2 }
 0x158   :  { %v2571_v38 = vsel %vm11824_vm13, %v11527_v36, %v2568_v53  ;;  %v2202_v27 = vor.u32 %v2201_v3, %v2200_v35  ;;  %vm2205_vm5 = vcmp.lt.s32.totalorder %v11841_v33, 3  ;;  %vm2206_vm8 = vcmp.lt.s32.totalorder %v11841_v33, 4 }
 0x159   :  { %10193 = vcosq.f32 %v2571_v38  ;;  %v15389_v22 = vxor.u32 2147483648, %v11855_v0  ;;  %v573_v47 = vsub.s32 0, %v11871_v32  ;;  %vm2204_vm15 = vcmp.lt.s32.totalorder %v11841_v33, 2 }
 0x15a   :  { %10195 = vsinq.f32 %v2571_v38  ;;  %v15390_v53 = vxor.u32 2147483648, %v11864_v21  ;;  %v2208_v43 = vsel %vm2206_vm8, %v2196_v37, 2102212464  ;;  %v2211_v61 = vsel %vm2203_vm9, %v2190_v18, %v2193_v8 }
 0x15b   :  { %v2212_v30 = vsel %vm2206_vm8, %v2199_v23, 920167782  ;;  %vm15394_vm6 = vweird.f32 %v11449_v54  ;;  %v9656_v40 = vmin.u32 %v573_v47, %v11871_v32  ;;  %v2207_v24 = vsel %vm2203_vm9, %v2187_v26, %v2190_v18 }
 0x15c   :  { %v2213_v25 = vsel %vm2205_vm5, %v2196_v37, %v2212_v30  ;;  %v2215_v39 = vsel %vm2203_vm9, %v2193_v8, %v2196_v37  ;;  %v2209_v50 = vsel %vm2205_vm5, %v2193_v8, %v2208_v43  ;;  %v2216_v10 = vsel %vm2206_vm8, %v2202_v27, 1326507024 }
 0x15d   :  { %v2214_v13 = vsel %vm2204_vm15, %v2211_v61, %v2213_v25  ;;  %v9663_v62 = vadd.s32 4294967169, %v719_v56  ;;  %vm915_vm13 = vcmp.eq.s32.totalorder %v11837_v29, 0  ;;  %vm918_vm4 = vcmp.eq.s32.totalorder %v11837_v29, 2 }
 0x15e   :  { %v2577_v18 = vand.u32 3, %v2576_v63  ;;  %v575_v60 = vclz %v9656_v40  ;;  %v2217_v26 = vsel %vm2205_vm5, %v2199_v23, %v2216_v10  ;;  %v15391_v8 = vand.u32 2147483647, %v11830_v59 }
 0x15f   :  { %v11906_v35 = vmul.u32.u64.low %v11858_v14, %v2214_v13  ;;  %v11907_v3 = vmul.u32.u64.high %v11858_v14, %v2214_v13, %v11906_v35  ;;  %v2210_v56 = vsel %vm2204_vm15, %v2207_v24, %v2209_v50  ;;  %v2218_v37 = vsel %vm2204_vm15, %v2215_v39, %v2217_v26 }
 0x160   :  { %v9657_v38 = vadd.s32 4294967294, %v575_v60  ;;  %v725_v27 = vadd.s32 1, %v9663_v62  ;;  %v917_v63 = vsel %vm915_vm13, %v11855_v0, %v15390_v53  ;;  %v920_v23 = vsel %vm918_vm4, %v15389_v22, %v11864_v21  ;;  %v11982_v53 = vld [vmem:[#allocation2 + $0xb0] sm:$0xf] }
 0x161   :  { %vm15393_vm9 = vweird.f32 %v11527_v36  ;;  %v11923_v47 = vmul.u32.u64.low %v11858_v14, %v2218_v37  ;;  %v11924_v43 = vmul.u32.u64.high %v11858_v14, %v2218_v37, %v11923_v47  ;;  %vm2578_vm5 = vcmp.lt.s32.totalorder %v2577_v18, 2  ;;  %15639 = vst [vmem:[#allocation44_spill] sm:$0xff] %v11982_v53 }
 0x162   :  { %v563_v33 = vadd.s32 %v11804_v11, %v11813_v55  ;;  %vm9658_vm8 = vcmp.lt.s32.totalorder %v9657_v38, 0  ;;  %vm726_vm15 = vcmp.gt.s32.totalorder %v725_v27, 0  ;;  %v2226_v30 = vmul.u32 %v11858_v14, %v2210_v56 }
 0x163   :  { %v578_v61 = vsel %vm9658_vm8, 0, %v9657_v38  ;;  %v2229_v40 = vadd.s32 1, %v11907_v3  ;;  %v727_v24 = vsel %vm726_vm15, %v725_v27, 0  ;;  %v921_v25 = vsel %vm914_vm11, %v917_v63, %v920_v23 }
 0x164   :  { %v579_v39 = vsub.s32 32, %v578_v61  ;;  %v580_v50 = vshll.u32 %v11871_v32, %v578_v61  ;;  %v583_v13 = vsub.s32 4294967266, %v578_v61  ;;  %vm2579_vm13 = vcmp.eq.s32.totalorder %v2577_v18, 0 }
 0x165   :  { %vm2228_vm4 = vc.u32 %v11924_v43, %v11906_v35  ;;  %v722_v11 = vand.u32 8388607, %v15391_v8  ;;  %v729_v55 = vand.u32 31, %v727_v24  ;;  %vm2582_vm8 = vcmp.eq.s32.totalorder %v2577_v18, 2 }
 0x166   :  { %v11937_v10 = vpop.eup %10193  ;;  %v581_v14 = vshrl.u32 %v563_v33, %v579_v39  ;;  %v584_v62 = vadd.s32 127, %v583_v13  ;;  %v2230_v29 = vsel %vm2228_vm4, %v2229_v40, %v11907_v3  ;;  %v922_v32 = vsel %vm15394_vm6, nan, %v921_v25 }
 0x167   :  { %15634 = vst [vmem:[#allocation42_spill] sm:$0xff] %v11937_v10  ;;  %v11940_v60 = vpop.eup %10195  ;;  %v15387_v26 = vxor.u32 2147483648, %v11937_v10  ;;  %v2231_v38 = vadd.s32 %v2230_v29, %v2226_v30  ;;  %v730_v56 = vsub.s32 32, %v729_v55  ;;  %v593_v23 = vsub.s32 4, %v11847_v20 }
 0x168   :  { %15635 = vst [vmem:[#allocation43_spill] sm:$0xff] %v11940_v60  ;;  %v15388_v37 = vxor.u32 2147483648, %v11940_v60  ;;  %v582_v27 = vor.u32 %v581_v14, %v580_v50  ;;  %v585_v63 = vshll.u32 %v584_v62, 23  ;;  %v723_v33 = vor.u32 8388608, %v722_v11 }
 0x169   :  { %v2584_v47 = vsel %vm2582_vm8, %v15387_v26, %v11940_v60  ;;  %v2232_v3 = vadd.s32 536870912, %v2231_v38  ;;  %v732_v61 = vshll.u32 %v15601_v42, %v729_v55  ;;  %v735_v39 = vshll.u32 %v15596_v34, %v729_v55 }
 0x16a   :  { %v2581_v30 = vsel %vm2579_vm13, %v11937_v10, %v15388_v37  ;;  %v586_v40 = vor.u32 4788187, %v585_v63  ;;  %v589_v25 = vcvt.s32.f32 %v582_v27  ;;  %v733_v14 = vshrl.u32 %v15596_v34, %v730_v56 }
 0x16b   :  { %v2585_v50 = vsel %vm2578_vm5, %v2581_v30, %v2584_v47  ;;  %v2233_v13 = vshrl.u32 %v2232_v3, 30  ;;  %v736_v62 = vshrl.u32 %v15598_v7, %v730_v56  ;;  %v15636_v29 = vand.u32 2147483647, %v11654_v57 }
 0x16c   :  { %v2586_v11 = vsel %vm15393_vm9, nan, %v2585_v50  ;;  %v587_v63 = vand.u32 2147483647, %v586_v40  ;;  %v738_v27 = vshll.u32 %v15598_v7, %v729_v55  ;;  %v739_v18 = vshrl.u32 %v15599_v12, %v730_v56 }
 0x16d   :  { %vm11963_vm11 = vcmp.le.f32.partialorder %v15636_v29, 0.7853982  ;;  %v3426_v47 = vpack.c.bf16 %v2586_v11, %v922_v32  ;;  %v2234_v3 = vshll.u32 %v2233_v13, 30  ;;  %v728_v30 = vshrl.u32 %v727_v24, 5 }
 0x16e   :  { %v741_v37 = vshll.u32 %v15599_v12, %v729_v55  ;;  %vm509_vm5 = vcmp.lt.s32.totalorder %v11654_v57, 0  ;;  %v590_v22 = vmul.f32 %v589_v25, %v587_v63  ;;  %v742_v50 = vshrl.u32 %v15607_v44, %v730_v56 }
 0x16f   :  { %v744_v29 = vshll.u32 %v15607_v44, %v729_v55  ;;  %9924 = vmatprep.subr.msk.bf16.mxu1 %vm7393_vm2, %v3426_v47  ;;  %v594_v40 = vsel %vm509_vm5, %v593_v23, %v11847_v20  ;;  %vm2173_vm15 = vcmp.lt.s32.totalorder %v11751_v46, 0  ;;  %v11978_v32 = vsub.s32 %v2231_v38, %v2234_v3 }
 0x170   :  { %v731_v24 = vshrl.u32 %v15601_v42, %v730_v56  ;;  %v745_v11 = vshrl.u32 %v15602_v19, %v730_v56  ;;  %v734_v25 = vor.u32 %v733_v14, %v732_v61  ;;  %v737_v63 = vor.u32 %v736_v62, %v735_v39 }
 0x171   :  { %v740_v8 = vor.u32 %v739_v18, %v738_v27  ;;  %v743_v55 = vor.u32 %v742_v50, %v741_v37  ;;  %v2237_v47 = vsub.s32 0, %v11978_v32  ;;  %vm747_vm13 = vcmp.lt.s32.totalorder %v728_v30, 1 }
 0x172   :  { %vm750_vm4 = vcmp.lt.s32.totalorder %v728_v30, 4  ;;  %v763_v36 = vshll.u32 %v723_v33, 8  ;;  %v591_v20 = vxor.u32 2147483648, %v590_v22  ;;  %v746_v23 = vor.u32 %v745_v11, %v744_v29 }
 0x173   :  { %vm749_vm8 = vcmp.lt.s32.totalorder %v728_v30, 3  ;;  %v752_v38 = vsel %vm750_vm4, %v740_v8, 2102212464  ;;  %v15640_v3 = vand.u32 2147483647, %v11751_v46  ;;  %v9720_v61 = vmin.u32 %v2237_v47, %v11978_v32 }
 0x174   :  { %v751_v37 = vsel %vm747_vm13, %v731_v24, %v734_v25  ;;  %v753_v39 = vsel %vm749_vm8, %v737_v63, %v752_v38  ;;  %v2382_v14 = vand.u32 2139095040, %v11982_v53  ;;  %v2257_v33 = vsub.s32 4, %v2233_v13 }
 0x175   :  { %vm11988_vm9 = vcmp.le.f32.partialorder %v15640_v3, 0.7853982  ;;  %vm748_vm6 = vcmp.lt.s32.totalorder %v728_v30, 2  ;;  %v755_v62 = vsel %vm747_vm13, %v734_v25, %v737_v63  ;;  %v756_v27 = vsel %vm750_vm4, %v743_v55, 920167782 }
 0x176   :  { %v12000_v18 = vsel %vm11963_vm11, 0, %v594_v40  ;;  %v2227_v50 = vadd.s32 %v11906_v35, %v11924_v43  ;;  %v2239_v29 = vclz %v9720_v61  ;;  %v759_v24 = vsel %vm747_vm13, %v737_v63, %v740_v8 }
 0x177   :  { %15643 = vst [vmem:[#allocation45_spill] sm:$0xff] %v12000_v18  ;;  %v592_v11 = vsel %vm509_vm5, %v591_v20, %v590_v22  ;;  %v754_v47 = vsel %vm748_vm6, %v751_v37, %v753_v39  ;;  %v757_v38 = vsel %vm749_vm8, %v740_v8, %v756_v27  ;;  %v760_v25 = vsel %vm750_vm4, %v746_v23, 1326507024 }
 0x178   :  { %v9721_v3 = vadd.s32 4294967294, %v2239_v29  ;;  %v758_v54 = vsel %vm748_vm6, %v755_v62, %v757_v38  ;;  %v761_v40 = vsel %vm749_vm8, %v743_v55, %v760_v25  ;;  %v2383_v10 = vshrl.u32 %v2382_v14, 23 }
 0x179   :  { %v2258_v35 = vsel %vm2173_vm15, %v2257_v33, %v2233_v13  ;;  %v762_v43 = vsel %vm748_vm6, %v759_v24, %v761_v40  ;;  %v12015_v63 = vmul.u32.u64.low %v763_v36, %v758_v54  ;;  %v12016_v61 = vmul.u32.u64.high %v763_v36, %v758_v54, %v12015_v63 }
 0x17a   :  { %vm9722_vm5 = vcmp.lt.s32.totalorder %v9721_v3, 0  ;;  %v12019_v22 = vmul.u32.u64.low %v763_v36, %v762_v43  ;;  %v12020_v8 = vmul.u32.u64.high %v763_v36, %v762_v43, %v12019_v22  ;;  %v9727_v20 = vadd.s32 4294967169, %v2383_v10 }
 0x17b   :  { %v595_v23 = vsel %vm11963_vm11, %v11654_v57, %v592_v11  ;;  %v2242_v55 = vsel %vm9722_vm5, 0, %v9721_v3  ;;  %v770_v37 = vmul.u32 %v763_v36, %v754_v47  ;;  %v15398_v39 = vand.u32 2147483647, %v11982_v53 }
 0x17c   :  { %v2243_v13 = vsub.s32 32, %v2242_v55  ;;  %v2244_v30 = vshll.u32 %v11978_v32, %v2242_v55  ;;  %v2247_v14 = vsub.s32 4294967266, %v2242_v55  ;;  %v2389_v54 = vadd.s32 1, %v9727_v20 }
 0x17d   :  { %v600_v33 = vadd.s32 3, %v12000_v18  ;;  %v12030_v62 = vsel %vm11988_vm9, 0, %v2258_v35  ;;  %v773_v10 = vadd.s32 1, %v12016_v61  ;;  %10197 = vcosq.f32 %v595_v23  ;;  %v12039_v35 = vld [vmem:[#allocation2 + $0x48] sm:$0xff] }
 0x17e   :  { %15644 = vst [vmem:[#allocation46_spill] sm:$0xff] %v12030_v62  ;;  %v2245_v26 = vshrl.u32 %v2227_v50, %v2243_v13  ;;  %v2248_v27 = vadd.s32 127, %v2247_v14  ;;  %vm772_vm6 = vc.u32 %v12020_v8, %v12015_v63  ;;  %10199 = vsinq.f32 %v595_v23  ;;  %15645 = vst [vmem:[#allocation47_spill] sm:$0xff] %v12039_v35 }
 0x17f   :  { %v774_v36 = vsel %vm772_vm6, %v773_v10, %v12016_v61  ;;  %v2386_v32 = vand.u32 8388607, %v15398_v39  ;;  %vm2390_vm11 = vcmp.gt.s32.totalorder %v2389_v54, 0  ;;  %v2264_v38 = vadd.s32 3, %v12030_v62 }
 0x180   :  { %v2246_v29 = vor.u32 %v2245_v26, %v2244_v30  ;;  %v2249_v24 = vshll.u32 %v2248_v27, 23  ;;  %v775_v11 = vadd.s32 %v774_v36, %v770_v37  ;;  %v2391_v47 = vsel %vm2390_vm11, %v2389_v54, 0 }
 0x181   :  { %v2393_v25 = vand.u32 31, %v2391_v47  ;;  %v2387_v43 = vor.u32 8388608, %v2386_v32  ;;  %v12041_v20 = vand.u32 3, %v600_v33  ;;  %v12045_v55 = vand.u32 3, %v2264_v38 }
 0x182   :  { %v2250_v3 = vor.u32 4788187, %v2249_v24  ;;  %v2253_v50 = vcvt.s32.f32 %v2246_v29  ;;  %v776_v40 = vadd.s32 536870912, %v775_v11  ;;  %v1030_v13 = vand.u32 2139095040, %v12039_v35 }
 0x183   :  { %v2394_v22 = vsub.s32 32, %v2393_v25  ;;  %v2396_v54 = vshll.u32 %v15601_v42, %v2393_v25  ;;  %v12052_v26 = vshrl.u32 %v2391_v47, 5  ;;  %v2399_v33 = vshll.u32 %v15596_v34, %v2393_v25 }
 0x184   :  { %v2251_v61 = vand.u32 2147483647, %v2250_v3  ;;  %v12043_v23 = vshrl.u32 %v776_v40, 30  ;;  %v12056_v36 = vshll.u32 %v2387_v43, 8  ;;  %vm606_vm13 = vcmp.eq.s32.totalorder %v12041_v20, 2 }
 0x185   :  { %v2397_v10 = vshrl.u32 %v15596_v34, %v2394_v22  ;;  %v2400_v27 = vshrl.u32 %v15598_v7, %v2394_v22  ;;  %v2402_v24 = vshll.u32 %v15598_v7, %v2393_v25  ;;  %v2403_v38 = vshrl.u32 %v15599_v12, %v2394_v22 }
 0x186   :  { %v2254_v30 = vmul.f32 %v2253_v50, %v2251_v61  ;;  %v778_v14 = vshll.u32 %v12043_v23, 30  ;;  %v2395_v3 = vshrl.u32 %v15601_v42, %v2394_v22  ;;  %v2405_v47 = vshll.u32 %v15599_v12, %v2393_v25 }
 0x187   :  { %v2406_v50 = vshrl.u32 %v15607_v44, %v2394_v22  ;;  %v1031_v40 = vshrl.u32 %v1030_v13, 23  ;;  %vm603_vm4 = vcmp.eq.s32.totalorder %v12041_v20, 0  ;;  %v2401_v60 = vor.u32 %v2400_v27, %v2399_v33 }
 0x188   :  { %v2255_v32 = vxor.u32 2147483648, %v2254_v30  ;;  %v12059_v29 = vsub.s32 %v775_v11, %v778_v14  ;;  %v2398_v11 = vor.u32 %v2397_v10, %v2396_v54  ;;  %v2408_v14 = vshll.u32 %v15607_v44, %v2393_v25 }
 0x189   :  { %v2407_v62 = vor.u32 %v2406_v50, %v2405_v47  ;;  %v2409_v13 = vshrl.u32 %v15602_v19, %v2394_v22  ;;  %vm602_vm8 = vcmp.lt.s32.totalorder %v12041_v20, 2  ;;  %vm2413_vm5 = vcmp.lt.s32.totalorder %v12052_v26, 3 }
 0x18a   :  { %v2256_v43 = vsel %vm2173_vm15, %v2255_v32, %v2254_v30  ;;  %v781_v61 = vsub.s32 0, %v12059_v29  ;;  %v12071_v39 = vpop.eup %10197  ;;  %v2404_v32 = vor.u32 %v2403_v38, %v2402_v24  ;;  %vm2411_vm15 = vcmp.lt.s32.totalorder %v12052_v26, 1 }
 0x18b   :  { %15646 = vst [vmem:[#allocation48_spill] sm:$0xff] %v12071_v39  ;;  %v2259_v37 = vsel %vm11988_vm9, %v11751_v46, %v2256_v43  ;;  %v12077_v0 = vpop.eup %10199  ;;  %v2410_v25 = vor.u32 %v2409_v13, %v2408_v14  ;;  %vm2414_vm9 = vcmp.lt.s32.totalorder %v12052_v26, 4  ;;  %v15407_v56 = vxor.u32 2147483648, %v12071_v39 }
 0x18c   :  { %15647 = vst [vmem:[#allocation49_spill] sm:$0xff] %v12077_v0  ;;  %10201 = vcosq.f32 %v2259_v37  ;;  %v9664_v30 = vmin.u32 %v781_v61, %v12059_v29  ;;  %v771_v22 = vadd.s32 %v12015_v63, %v12020_v8  ;;  %vm2412_vm6 = vcmp.lt.s32.totalorder %v12052_v26, 2 }
 0x18d   :  { %10203 = vsinq.f32 %v2259_v37  ;;  %v15408_v10 = vxor.u32 2147483648, %v12077_v0  ;;  %v2416_v33 = vsel %vm2414_vm9, %v2404_v32, 2102212464  ;;  %v2419_v37 = vsel %vm2411_vm15, %v2398_v11, %v2401_v60 }
 0x18e   :  { %v783_v54 = vclz %v9664_v30  ;;  %v2420_v27 = vsel %vm2414_vm9, %v2407_v62, 920167782  ;;  %vm15429_vm11 = vweird.f32 %v11654_v57  ;;  %v2415_v63 = vsel %vm2411_vm15, %v2395_v3, %v2398_v11 }
 0x18f   :  { %v2421_v8 = vsel %vm2413_vm5, %v2404_v32, %v2420_v27  ;;  %v2423_v38 = vsel %vm2411_vm15, %v2401_v60, %v2404_v32  ;;  %v2417_v47 = vsel %vm2413_vm5, %v2401_v60, %v2416_v33  ;;  %v2424_v43 = vsel %vm2414_vm9, %v2410_v25, 1326507024 }
 0x190   :  { %v9665_v24 = vadd.s32 4294967294, %v783_v54  ;;  %v2422_v50 = vsel %vm2412_vm6, %v2419_v37, %v2421_v8  ;;  %v9675_v61 = vadd.s32 4294967169, %v1031_v40  ;;  %v2425_v3 = vsel %vm2413_vm5, %v2407_v62, %v2424_v43 }
 0x191   :  { %v12111_v11 = vmul.u32.u64.low %v12056_v36, %v2422_v50  ;;  %v12112_v14 = vmul.u32.u64.high %v12056_v36, %v2422_v50, %v12111_v11  ;;  %v608_v60 = vsel %vm606_vm13, %v15407_v56, %v12077_v0  ;;  %v2426_v30 = vsel %vm2412_vm6, %v2423_v38, %v2425_v3 }
 0x192   :  { %vm9666_vm14 = vcmp.lt.s32.totalorder %v9665_v24, 0  ;;  %v1037_v40 = vadd.s32 1, %v9675_v61  ;;  %vm15428_vm15 = vweird.f32 %v11751_v46  ;;  %v2418_v54 = vsel %vm2412_vm6, %v2415_v63, %v2417_v47  ;;  %v12192_v46 = vld [vmem:[#allocation2 + $0xc8] sm:$0xf] }
 0x193   :  { %v786_v13 = vsel %vm9666_vm14, 0, %v9665_v24  ;;  %v605_v33 = vsel %vm603_vm4, %v12071_v39, %v15408_v10  ;;  %v12132_v37 = vmul.u32.u64.low %v12056_v36, %v2426_v30  ;;  %v12133_v27 = vmul.u32.u64.high %v12056_v36, %v2426_v30, %v12132_v37  ;;  %15654 = vst [vmem:[#allocation52_spill] sm:$0xff] %v12192_v46 }
 0x194   :  { %v787_v32 = vsub.s32 32, %v786_v13  ;;  %v788_v62 = vshll.u32 %v12059_v29, %v786_v13  ;;  %v791_v25 = vsub.s32 4294967266, %v786_v13  ;;  %vm1038_vm14 = vcmp.gt.s32.totalorder %v1037_v40, 0 }
 0x195   :  { %v2437_v38 = vadd.s32 1, %v12112_v14  ;;  %v1039_v29 = vsel %vm1038_vm14, %v1037_v40, 0  ;;  %vm2266_vm13 = vcmp.lt.s32.totalorder %v12045_v55, 2  ;;  %vm2267_vm5 = vcmp.eq.s32.totalorder %v12045_v55, 0 }
 0x196   :  { %v789_v24 = vshrl.u32 %v771_v22, %v787_v32  ;;  %v792_v8 = vadd.s32 127, %v791_v25  ;;  %v2434_v26 = vmul.u32 %v12056_v36, %v2418_v54  ;;  %v1041_v63 = vand.u32 31, %v1039_v29 }
 0x197   :  { %v609_v47 = vsel %vm602_vm8, %v605_v33, %v608_v60  ;;  %vm2270_vm4 = vcmp.eq.s32.totalorder %v12045_v55, 2  ;;  %v801_v22 = vsub.s32 4, %v12043_v23  ;;  %vm2436_vm9 = vc.u32 %v12133_v27, %v12111_v11 }
 0x198   :  { %v790_v50 = vor.u32 %v789_v24, %v788_v62  ;;  %v793_v43 = vshll.u32 %v792_v8, 23  ;;  %v15649_v3 = vand.u32 2147483647, %v12039_v35  ;;  %v1042_v30 = vsub.s32 32, %v1041_v63 }
 0x199   :  { %v12142_v61 = vpop.eup %10201  ;;  %v2438_v32 = vsel %vm2436_vm9, %v2437_v38, %v12112_v14  ;;  %v610_v62 = vsel %vm15429_vm11, nan, %v609_v47  ;;  %v12156_v33 = vshrl.u32 %v1039_v29, 5  ;;  %v1044_v8 = vshll.u32 %v15601_v42, %v1041_v63 }
 0x19a   :  { %15648 = vst [vmem:[#allocation50_spill] sm:$0xff] %v12142_v61  ;;  %v1034_v13 = vand.u32 8388607, %v15649_v3  ;;  %v12149_v36 = vpop.eup %10203  ;;  %v15405_v20 = vxor.u32 2147483648, %v12142_v61  ;;  %v794_v60 = vor.u32 4788187, %v793_v43  ;;  %v797_v40 = vcvt.s32.f32 %v790_v50 }
 0x19b   :  { %15650 = vst [vmem:[#allocation51_spill] sm:$0xff] %v12149_v36  ;;  %v15406_v25 = vxor.u32 2147483648, %v12149_v36  ;;  %v2439_v54 = vadd.s32 %v2438_v32, %v2434_v26  ;;  %v1045_v50 = vshrl.u32 %v15596_v34, %v1042_v30  ;;  %v1047_v29 = vshll.u32 %v15596_v34, %v1041_v63 }
 0x19c   :  { %v2272_v37 = vsel %vm2270_vm4, %v15405_v20, %v12149_v36  ;;  %v795_v24 = vand.u32 2147483647, %v794_v60  ;;  %v1048_v26 = vshrl.u32 %v15598_v7, %v1042_v30  ;;  %v15651_v43 = vand.u32 2147483647, %v11830_v59 }
 0x19d   :  { %v2269_v14 = vsel %vm2267_vm5, %v12142_v61, %v15406_v25  ;;  %v2440_v38 = vadd.s32 536870912, %v2439_v54  ;;  %v1050_v32 = vshll.u32 %v15598_v7, %v1041_v63  ;;  %v1051_v20 = vshrl.u32 %v15599_v12, %v1042_v30 }
 0x19e   :  { %v2273_v47 = vsel %vm2266_vm13, %v2269_v14, %v2272_v37  ;;  %vm12176_vm8 = vcmp.le.f32.partialorder %v15651_v43, 0.7853982  ;;  %v798_v60 = vmul.f32 %v797_v40, %v795_v24  ;;  %v1053_v10 = vshll.u32 %v15599_v12, %v1041_v63 }
 0x19f   :  { %v2274_v25 = vsel %vm15428_vm15, nan, %v2273_v47  ;;  %v2441_v56 = vshrl.u32 %v2440_v38, 30  ;;  %v1054_v55 = vshrl.u32 %v15607_v44, %v1042_v30  ;;  %vm717_vm6 = vcmp.lt.s32.totalorder %v11830_v59, 0 }
 0x1a0   :  { %v3423_v37 = vpack.c.bf16 %v2274_v25, %v610_v62  ;;  %v1035_v14 = vor.u32 8388608, %v1034_v13  ;;  %v1056_v43 = vshll.u32 %v15607_v44, %v1041_v63  ;;  %v802_v40 = vsel %vm717_vm6, %v801_v22, %v12043_v23 }
 0x1a1   :  { %vm2381_vm14 = vcmp.lt.s32.totalorder %v11982_v53, 0  ;;  %v2442_v24 = vshll.u32 %v2441_v56, 30  ;;  %v1046_v38 = vor.u32 %v1045_v50, %v1044_v8  ;;  %v1057_v47 = vshrl.u32 %v15602_v19, %v1042_v30 }
 0x1a2   :  { %v7407_v61 = vsel %vm7393_vm2, %v3423_v37, 0  ;;  %v799_v62 = vxor.u32 2147483648, %v798_v60  ;;  %v1049_v25 = vor.u32 %v1048_v26, %v1047_v29  ;;  %v1055_v36 = vor.u32 %v1054_v55, %v1053_v10 }
 0x1a3   :  { %7563 = vmatpush1.bf16.msra.mxu0 %v7407_v61  ;;  %v12196_v13 = vsub.s32 %v2439_v54, %v2442_v24  ;;  %v1043_v63 = vshrl.u32 %v15601_v42, %v1042_v30  ;;  %v1052_v57 = vor.u32 %v1051_v20, %v1050_v32  ;;  %vm1059_vm13 = vcmp.lt.s32.totalorder %v12156_v33, 1  ;;  %v12210_v30 = vld [vmem:[%s15298_s3] sm:$0xff]  }
 0x1a4   :  { %v1058_v23 = vor.u32 %v1057_v47, %v1056_v43  ;;  %vm1061_vm5 = vcmp.lt.s32.totalorder %v12156_v33, 3  ;;  %vm1062_vm4 = vcmp.lt.s32.totalorder %v12156_v33, 4  ;;  %v2694_v22 = vand.u32 2139095040, %v12192_v46 }
 0x1a5   :  { %v2445_v8 = vsub.s32 0, %v12196_v13  ;;  %v2465_v50 = vsub.s32 4, %v2441_v56  ;;  %vm1060_vm9 = vcmp.lt.s32.totalorder %v12156_v33, 2  ;;  %v1075_v10 = vshll.u32 %v1035_v14, 8  ;;  %v12273_v33 = vld [vmem:[%s15298_s3 + $0x8] sm:$0xff]  }
 0x1a6   :  { %v800_v61 = vsel %vm717_vm6, %v799_v62, %v798_v60  ;;  %9922 = vmatmul.mubr.msk.bf16.vlgmr.msra.gmra.mxu0 %vm7386_vm3, %v12210_v30  ;;  %v1064_v20 = vsel %vm1062_vm4, %v1052_v57, 2102212464  ;;  %v1067_v54 = vsel %vm1059_vm13, %v1046_v38, %v1049_v25  ;;  %v1068_v29 = vsel %vm1062_vm4, %v1055_v36, 920167782 }
 0x1a7   :  { %v9728_v26 = vmin.u32 %v2445_v8, %v12196_v13  ;;  %7590 = vmatprep.mubr.bf16.mxu0 %v15590_v9  ;;  %v1063_v60 = vsel %vm1059_vm13, %v1043_v63, %v1046_v38  ;;  %v1069_v32 = vsel %vm1061_vm5, %v1052_v57, %v1068_v29  ;;  %v1071_v55 = vsel %vm1059_vm13, %v1049_v25, %v1052_v57 }
 0x1a8   :  { %v1065_v37 = vsel %vm1061_vm5, %v1049_v25, %v1064_v20  ;;  %v1070_v14 = vsel %vm1060_vm9, %v1067_v54, %v1069_v32  ;;  %v1072_v43 = vsel %vm1062_vm4, %v1058_v23, 1326507024  ;;  %v2695_v24 = vshrl.u32 %v2694_v22, 23 }
 0x1a9   :  { %v803_v38 = vsel %vm12176_vm8, %v11830_v59, %v800_v61  ;;  %v12239_v47 = vsel %vm12176_vm8, 0, %v802_v40  ;;  %v15656_v57 = vand.u32 2147483647, %v11982_v53  ;;  %v2447_v25 = vclz %v9728_v26 }
 0x1aa   :  { %15655 = vst [vmem:[#allocation53_spill] sm:$0xff] %v12239_v47  ;;  %v2466_v63 = vsel %vm2381_vm14, %v2465_v50, %v2441_v56  ;;  %v1073_v23 = vsel %vm1061_vm5, %v1055_v36, %v1072_v43  ;;  %v12251_v22 = vmul.u32.u64.low %v1075_v10, %v1070_v14  ;;  %v12252_v8 = vmul.u32.u64.high %v1075_v10, %v1070_v14, %v12251_v22 }
 0x1ab   :  { %vm12243_vm6 = vcmp.le.f32.partialorder %v15656_v57, 0.7853982  ;;  %v9729_v3 = vadd.s32 4294967294, %v2447_v25  ;;  %v1066_v40 = vsel %vm1060_vm9, %v1063_v60, %v1065_v37  ;;  %v1074_v61 = vsel %vm1060_vm9, %v1071_v55, %v1073_v23 }
 0x1ac   :  { %v9739_v20 = vadd.s32 4294967169, %v2695_v24  ;;  %10205 = vcosq.f32 %v803_v38  ;;  %v12259_v54 = vmul.u32.u64.low %v1075_v10, %v1074_v61  ;;  %v12260_v29 = vmul.u32.u64.high %v1075_v10, %v1074_v61, %v12259_v54  ;;  %v12286_v61 = vld [vmem:[#allocation2 + $0x58] sm:$0xff] }
 0x1ad   :  { %v15416_v56 = vand.u32 2147483647, %v12192_v46  ;;  %v808_v36 = vadd.s32 3, %v12239_v47  ;;  %v2435_v50 = vadd.s32 %v12111_v11, %v12133_v27  ;;  %vm9730_vm8 = vcmp.lt.s32.totalorder %v9729_v3, 0  ;;  %15660 = vst [vmem:[#allocation55_spill] sm:$0xff] %v12286_v61 }
 0x1ae   :  { %v2701_v26 = vadd.s32 1, %v9739_v20  ;;  %v2450_v32 = vsel %vm9730_vm8, 0, %v9729_v3  ;;  %v12268_v60 = vsel %vm12243_vm6, 0, %v2466_v63  ;;  %9923 = vmatmul.mubr.msk.bf16.gmra.mxu0 %vm7386_vm3, %v12273_v33  ;;  %v1082_v55 = vmul.u32 %v1075_v10, %v1066_v40 }
 0x1af   :  { %15659 = vst [vmem:[#allocation54_spill] sm:$0xff] %v12268_v60  ;;  %v1085_v37 = vadd.s32 1, %v12252_v8  ;;  %v2451_v14 = vsub.s32 32, %v2450_v32  ;;  %v2452_v11 = vshll.u32 %v12196_v13, %v2450_v32  ;;  %v2455_v27 = vsub.s32 4294967266, %v2450_v32  ;;  %7686 = vmatprep.mubr.bf16.mxu0 %v15590_v9 }
 0x1b0   :  { %vm2702_vm13 = vcmp.gt.s32.totalorder %v2701_v26, 0  ;;  %10207 = vsinq.f32 %v803_v38  ;;  %vm1084_vm5 = vc.u32 %v12260_v29, %v12251_v22  ;;  %v2698_v43 = vand.u32 8388607, %v15416_v56 }
 0x1b1   :  { %v2703_v24 = vsel %vm2702_vm13, %v2701_v26, 0  ;;  %v2453_v57 = vshrl.u32 %v2435_v50, %v2451_v14  ;;  %v2456_v25 = vadd.s32 127, %v2455_v27  ;;  %v2472_v10 = vadd.s32 3, %v12268_v60 }
 0x1b2   :  { %v1086_v63 = vsel %vm1084_vm5, %v1085_v37, %v12252_v8  ;;  %v2705_v13 = vand.u32 31, %v2703_v24  ;;  %v12288_v38 = vand.u32 3, %v808_v36  ;;  %v2699_v50 = vor.u32 8388608, %v2698_v43 }
 0x1b3   :  { %v1087_v23 = vadd.s32 %v1086_v63, %v1082_v55  ;;  %v2454_v3 = vor.u32 %v2453_v57, %v2452_v11  ;;  %v2457_v40 = vshll.u32 %v2456_v25, 23  ;;  %v12290_v56 = vand.u32 3, %v2472_v10 }
 0x1b4   :  { %v2706_v54 = vsub.s32 32, %v2705_v13  ;;  %v2708_v14 = vshll.u32 %v15601_v42, %v2705_v13  ;;  %v1238_v55 = vand.u32 2139095040, %v12286_v61  ;;  %v2711_v11 = vshll.u32 %v15596_v34, %v2705_v13 }
 0x1b5   :  { %v1088_v20 = vadd.s32 536870912, %v1087_v23  ;;  %v2458_v32 = vor.u32 4788187, %v2457_v40  ;;  %v2461_v47 = vcvt.s32.f32 %v2454_v3  ;;  %vm814_vm4 = vcmp.eq.s32.totalorder %v12288_v38, 2 }
 0x1b6   :  { %v2709_v8 = vshrl.u32 %v15596_v34, %v2706_v54  ;;  %v2712_v36 = vshrl.u32 %v15598_v7, %v2706_v54  ;;  %v2704_v43 = vshrl.u32 %v2703_v24, 5  ;;  %v2714_v25 = vshll.u32 %v15598_v7, %v2705_v13 }
 0x1b7   :  { %v12292_v26 = vshrl.u32 %v1088_v20, 30  ;;  %v2459_v37 = vand.u32 2147483647, %v2458_v32  ;;  %v2715_v10 = vshrl.u32 %v15599_v12, %v2706_v54  ;;  %v2717_v40 = vshll.u32 %v15599_v12, %v2705_v13 }
 0x1b8   :  { %v2718_v20 = vshrl.u32 %v15607_v44, %v2706_v54  ;;  %v12308_v32 = vshll.u32 %v2699_v50, 8  ;;  %vm811_vm9 = vcmp.eq.s32.totalorder %v12288_v38, 0  ;;  %v2710_v60 = vor.u32 %v2709_v8, %v2708_v14 }
 0x1b9   :  { %v1090_v57 = vshll.u32 %v12292_v26, 30  ;;  %v12304_v63 = vpop.eup %10205  ;;  %v2462_v3 = vmul.f32 %v2461_v47, %v2459_v37  ;;  %v2720_v24 = vshll.u32 %v15607_v44, %v2705_v13  ;;  %v1239_v39 = vshrl.u32 %v1238_v55, 23 }
 0x1ba   :  { %15661 = vst [vmem:[#allocation56_spill] sm:$0xff] %v12304_v63  ;;  %v2713_v21 = vor.u32 %v2712_v36, %v2711_v11  ;;  %v2719_v18 = vor.u32 %v2718_v20, %v2717_v40  ;;  %v2721_v49 = vshrl.u32 %v15602_v19, %v2706_v54  ;;  %v15431_v47 = vxor.u32 2147483648, %v12304_v63 }
 0x1bb   :  { %v12311_v27 = vsub.s32 %v1087_v23, %v1090_v57  ;;  %v2463_v0 = vxor.u32 2147483648, %v2462_v3  ;;  %v2716_v52 = vor.u32 %v2715_v10, %v2714_v25  ;;  %vm2723_vm8 = vcmp.lt.s32.totalorder %v2704_v43, 1 }
 0x1bc   :  { %vm810_vm13 = vcmp.lt.s32.totalorder %v12288_v38, 2  ;;  %v2707_v13 = vshrl.u32 %v15601_v42, %v2706_v54  ;;  %vm2725_vm5 = vcmp.lt.s32.totalorder %v2704_v43, 3  ;;  %vm2726_vm15 = vcmp.lt.s32.totalorder %v2704_v43, 4 }
 0x1bd   :  { %v1093_v37 = vsub.s32 0, %v12311_v27  ;;  %v12317_v50 = vpop.eup %10207  ;;  %v2464_v23 = vsel %vm2381_vm14, %v2463_v0, %v2462_v3  ;;  %v2722_v55 = vor.u32 %v2721_v49, %v2720_v24  ;;  %v2728_v11 = vsel %vm2726_vm15, %v2716_v52, 2102212464 }
 0x1be   :  { %15662 = vst [vmem:[#allocation57_spill] sm:$0xff] %v12317_v50  ;;  %v2467_v14 = vsel %vm12243_vm6, %v11982_v53, %v2464_v23  ;;  %vm2724_vm11 = vcmp.lt.s32.totalorder %v2704_v43, 2  ;;  %v2731_v36 = vsel %vm2723_vm8, %v2710_v60, %v2713_v21  ;;  %v2732_v57 = vsel %vm2726_vm15, %v2719_v18, 920167782 }
 0x1bf   :  { %v9676_v8 = vmin.u32 %v1093_v37, %v12311_v27  ;;  %10209 = vcosq.f32 %v2467_v14  ;;  %vm15447_vm14 = vweird.f32 %v11830_v59  ;;  %v15432_v0 = vxor.u32 2147483648, %v12317_v50 }
 0x1c0   :  { %10211 = vsinq.f32 %v2467_v14  ;;  %v9683_v25 = vadd.s32 4294967169, %v1239_v39  ;;  %v2727_v62 = vsel %vm2723_vm8, %v2707_v13, %v2710_v60  ;;  %v2729_v10 = vsel %vm2725_vm5, %v2713_v21, %v2728_v11 }
 0x1c1   :  { %v1095_v54 = vclz %v9676_v8  ;;  %v2733_v49 = vsel %vm2725_vm5, %v2716_v52, %v2732_v57  ;;  %v2735_v3 = vsel %vm2723_vm8, %v2713_v21, %v2716_v52  ;;  %vm1029_vm6 = vcmp.lt.s32.totalorder %v12039_v35, 0 }
 0x1c2   :  { %v1083_v40 = vadd.s32 %v12251_v22, %v12260_v29  ;;  %v2734_v24 = vsel %vm2724_vm11, %v2731_v36, %v2733_v49  ;;  %v2736_v37 = vsel %vm2726_vm15, %v2722_v55, 1326507024  ;;  %v816_v39 = vsel %vm814_vm4, %v15431_v47, %v12317_v50 }
 0x1c3   :  { %v9677_v20 = vadd.s32 4294967294, %v1095_v54  ;;  %v2737_v60 = vsel %vm2725_vm5, %v2719_v18, %v2736_v37  ;;  %v12348_v52 = vmul.u32.u64.low %v12308_v32, %v2734_v24  ;;  %v12349_v21 = vmul.u32.u64.high %v12308_v32, %v2734_v24, %v12348_v52 }
 0x1c4   :  { %v2730_v22 = vsel %vm2724_vm11, %v2727_v62, %v2729_v10  ;;  %v2738_v29 = vsel %vm2724_vm11, %v2735_v3, %v2737_v60  ;;  %v1245_v23 = vadd.s32 1, %v9683_v25  ;;  %v813_v13 = vsel %vm811_vm9, %v12304_v63, %v15432_v0 }
 0x1c5   :  { %vm9678_vm8 = vcmp.lt.s32.totalorder %v9677_v20, 0  ;;  %v12360_v18 = vmul.u32.u64.low %v12308_v32, %v2738_v29  ;;  %v12361_v8 = vmul.u32.u64.high %v12308_v32, %v2738_v29, %v12360_v18  ;;  %vm15444_vm4 = vweird.f32 %v11982_v53 }
 0x1c6   :  { %v1098_v14 = vsel %vm9678_vm8, 0, %v9677_v20  ;;  %vm1246_vm15 = vcmp.gt.s32.totalorder %v1245_v23, 0  ;;  %v1113_v43 = vsub.s32 4, %v12292_v26  ;;  %v2746_v57 = vmul.u32 %v12308_v32, %v2730_v22 }
 0x1c7   :  { %v1099_v55 = vsub.s32 32, %v1098_v14  ;;  %v1100_v11 = vshll.u32 %v12311_v27, %v1098_v14  ;;  %v1103_v36 = vsub.s32 4294967266, %v1098_v14  ;;  %v2749_v54 = vadd.s32 1, %v12349_v21 }
 0x1c8   :  { %v1247_v25 = vsel %vm1246_vm15, %v1245_v23, 0  ;;  %v817_v62 = vsel %vm810_vm13, %v813_v13, %v816_v39  ;;  %vm2474_vm11 = vcmp.lt.s32.totalorder %v12290_v56, 2  ;;  %vm2475_vm9 = vcmp.eq.s32.totalorder %v12290_v56, 0 }
 0x1c9   :  { %v1101_v10 = vshrl.u32 %v1083_v40, %v1099_v55  ;;  %v1104_v49 = vadd.s32 127, %v1103_v36  ;;  %v1249_v3 = vand.u32 31, %v1247_v25  ;;  %vm2478_vm5 = vcmp.eq.s32.totalorder %v12290_v56, 2 }
 0x1ca   :  { %vm2748_vm8 = vc.u32 %v12361_v8, %v12348_v52  ;;  %v818_v38 = vsel %vm15447_vm14, nan, %v817_v62  ;;  %v15663_v40 = vand.u32 2147483647, %v12039_v35  ;;  %v1114_v39 = vsel %vm1029_vm6, %v1113_v43, %v12292_v26 }
 0x1cb   :  { %v1102_v27 = vor.u32 %v1101_v10, %v1100_v11  ;;  %v1105_v32 = vshll.u32 %v1104_v49, 23  ;;  %v2750_v20 = vsel %vm2748_vm8, %v2749_v54, %v12349_v21  ;;  %v1250_v24 = vsub.s32 32, %v1249_v3 }
 0x1cc   :  { %vm12380_vm13 = vcmp.le.f32.partialorder %v15663_v40, 0.7853982  ;;  %v2751_v60 = vadd.s32 %v2750_v20, %v2746_v57  ;;  %v15666_v22 = vand.u32 2147483647, %v12286_v61  ;;  %v12389_v23 = vpop.eup %10209  ;;  %v12391_v14 = vshrl.u32 %v1247_v25, 5 }
 0x1cd   :  { %15667 = vst [vmem:[#allocation58_spill] sm:$0xff] %v12389_v23  ;;  %v1106_v21 = vor.u32 4788187, %v1105_v32  ;;  %v1109_v13 = vcvt.s32.f32 %v1102_v27  ;;  %v1252_v18 = vshll.u32 %v15601_v42, %v1249_v3  ;;  %v12394_v55 = vpop.eup %10211  ;;  %v15430_v11 = vxor.u32 2147483648, %v12389_v23 }
 0x1ce   :  { %v1242_v29 = vand.u32 8388607, %v15666_v22  ;;  %15668 = vst [vmem:[#allocation59_spill] sm:$0xff] %v12394_v55  ;;  %v2752_v36 = vadd.s32 536870912, %v2751_v60  ;;  %v1255_v54 = vshll.u32 %v15596_v34, %v1249_v3  ;;  %v1258_v26 = vshll.u32 %v15598_v7, %v1249_v3 }
 0x1cf   :  { %v15436_v43 = vxor.u32 2147483648, %v12394_v55  ;;  %v1107_v57 = vand.u32 2147483647, %v1106_v21  ;;  %v1253_v62 = vshrl.u32 %v15596_v34, %v1250_v24  ;;  %v1256_v10 = vshrl.u32 %v15598_v7, %v1250_v24 }
 0x1d0   :  { %v2480_v25 = vsel %vm2478_vm5, %v15430_v11, %v12394_v55  ;;  %v2753_v49 = vshrl.u32 %v2752_v36, 30  ;;  %v1259_v27 = vshrl.u32 %v15599_v12, %v1250_v24  ;;  %v1261_v32 = vshll.u32 %v15599_v12, %v1249_v3 }
 0x1d1   :  { %v2477_v20 = vsel %vm2475_vm9, %v12389_v23, %v15436_v43  ;;  %v1110_v40 = vmul.f32 %v1109_v13, %v1107_v57  ;;  %vm2693_vm15 = vcmp.lt.s32.totalorder %v12192_v46, 0  ;;  %v1262_v22 = vshrl.u32 %v15607_v44, %v1250_v24 }
 0x1d2   :  { %v1264_v21 = vshll.u32 %v15607_v44, %v1249_v3  ;;  %v2481_v36 = vsel %vm2474_vm11, %v2477_v20, %v2480_v25  ;;  %v2754_v11 = vshll.u32 %v2753_v49, 30  ;;  %v1243_v47 = vor.u32 8388608, %v1242_v29 }
 0x1d3   :  { %v1265_v0 = vshrl.u32 %v15602_v19, %v1250_v24  ;;  %v2482_v59 = vsel %vm15444_vm4, nan, %v2481_v36  ;;  %v1111_v55 = vxor.u32 2147483648, %v1110_v40  ;;  %v1251_v43 = vshrl.u32 %v15601_v42, %v1250_v24 }
 0x1d4   :  { %v1254_v13 = vor.u32 %v1253_v62, %v1252_v18  ;;  %v3425_v57 = vpack.c.bf16 %v2482_v59, %v818_v38  ;;  %v12423_v23 = vsub.s32 %v2751_v60, %v2754_v11  ;;  %v1257_v63 = vor.u32 %v1256_v10, %v1255_v54  ;;  %v12443_v18 = vld [vmem:[#allocation2 + $0xd8] sm:$0xf] }
 0x1d5   :  { %v1260_v50 = vor.u32 %v1259_v27, %v1258_v26  ;;  %v1112_v56 = vsel %vm1029_vm6, %v1111_v55, %v1110_v40  ;;  %v1263_v3 = vor.u32 %v1262_v22, %v1261_v32  ;;  %v1266_v25 = vor.u32 %v1265_v0, %v1264_v21  ;;  %15672 = vst [vmem:[#allocation60_spill] sm:$0xff] %v12443_v18 }
 0x1d6   :  { %vm1267_vm11 = vcmp.lt.s32.totalorder %v12391_v14, 1  ;;  %v7413_v29 = vsel %vm7393_vm2, %v3425_v57, 0  ;;  %v15669_v20 = vand.u32 2147483647, %v12192_v46  ;;  %v2757_v59 = vsub.s32 0, %v12423_v23 }
 0x1d7   :  { %v2777_v24 = vsub.s32 4, %v2753_v49  ;;  %v1283_v38 = vshll.u32 %v1243_v47, 8  ;;  %7616 = vmatpush1.bf16.msra.mxu1 %v7413_v29  ;;  %v1115_v60 = vsel %vm12380_vm13, %v12039_v35, %v1112_v56  ;;  %vm1268_vm6 = vcmp.lt.s32.totalorder %v12391_v14, 2 }
 0x1d8   :  { %vm12431_vm9 = vcmp.le.f32.partialorder %v15669_v20, 0.7853982  ;;  %vm1269_vm5 = vcmp.lt.s32.totalorder %v12391_v14, 3  ;;  %vm1270_vm8 = vcmp.lt.s32.totalorder %v12391_v14, 4  ;;  %v9740_v0 = vmin.u32 %v2757_v59, %v12423_v23 }
 0x1d9   :  { %v1271_v55 = vsel %vm1267_vm11, %v1251_v43, %v1254_v13  ;;  %v1272_v11 = vsel %vm1270_vm8, %v1260_v50, 2102212464  ;;  %v1275_v47 = vsel %vm1267_vm11, %v1254_v13, %v1257_v63  ;;  %v1276_v26 = vsel %vm1270_vm8, %v1263_v3, 920167782 }
 0x1da   :  { %v1273_v54 = vsel %vm1269_vm5, %v1257_v63, %v1272_v11  ;;  %v1279_v62 = vsel %vm1267_vm11, %v1257_v63, %v1260_v50  ;;  %v1280_v10 = vsel %vm1270_vm8, %v1266_v25, 1326507024  ;;  %9925 = vmatmul.mubr.msk.bf16.vlgmr.msra.gmra.mxu1 %vm7386_vm3, %v12210_v30  ;;  %v12457_v27 = vsel %vm12380_vm13, 0, %v1114_v39 }
 0x1db   :  { %10213 = vcosq.f32 %v1115_v60  ;;  %v2759_v43 = vclz %v9740_v0  ;;  %v2778_v32 = vsel %vm2693_vm15, %v2777_v24, %v2753_v49  ;;  %7643 = vmatprep.mubr.bf16.mxu1 %v15590_v9  ;;  %v1277_v40 = vsel %vm1269_vm5, %v1260_v50, %v1276_v26 }
 0x1dc   :  { %10215 = vsinq.f32 %v1115_v60  ;;  %v1281_v63 = vsel %vm1269_vm5, %v1263_v3, %v1280_v10  ;;  %v2902_v30 = vand.u32 2139095040, %v12443_v18  ;;  %v1274_v37 = vsel %vm1268_vm6, %v1271_v55, %v1273_v54  ;;  %v12492_v54 = vld [vmem:[#allocation2 + $0x40] sm:$0xff] }
 0x1dd   :  { %v9741_v22 = vadd.s32 4294967294, %v2759_v43  ;;  %v1278_v39 = vsel %vm1268_vm6, %v1275_v47, %v1277_v40  ;;  %v1282_v49 = vsel %vm1268_vm6, %v1279_v62, %v1281_v63  ;;  %v1120_v56 = vadd.s32 3, %v12457_v27  ;;  %15674 = vst [vmem:[#allocation62_spill] sm:$0xff] %v12492_v54 }
 0x1de   :  { %v12473_v21 = vmul.u32.u64.low %v1283_v38, %v1282_v49  ;;  %v12474_v13 = vmul.u32.u64.high %v1283_v38, %v1282_v49, %v12473_v21  ;;  %v12476_v57 = vmul.u32.u64.low %v1283_v38, %v1278_v39  ;;  %v12477_v50 = vmul.u32.u64.high %v1283_v38, %v1278_v39, %v12476_v57 }
 0x1df   :  { %v2747_v3 = vadd.s32 %v12348_v52, %v12361_v8  ;;  %vm9742_vm13 = vcmp.lt.s32.totalorder %v9741_v22, 0  ;;  %v2903_v25 = vshrl.u32 %v2902_v30, 23  ;;  %v12484_v20 = vsel %vm12431_vm9, 0, %v2778_v32 }
 0x1e0   :  { %v2762_v29 = vsel %vm9742_vm13, 0, %v9741_v22  ;;  %15673 = vst [vmem:[#allocation61_spill] sm:$0xff] %v12484_v20  ;;  %v1290_v14 = vmul.u32 %v1283_v38, %v1274_v37  ;;  %v15443_v59 = vand.u32 2147483647, %v12443_v18  ;;  %vm1292_vm11 = vc.u32 %v12474_v13, %v12476_v57 }
 0x1e1   :  { %v2763_v24 = vsub.s32 32, %v2762_v29  ;;  %v2764_v60 = vshll.u32 %v12423_v23, %v2762_v29  ;;  %v2767_v0 = vsub.s32 4294967266, %v2762_v29  ;;  %v9747_v55 = vadd.s32 4294967169, %v2903_v25 }
 0x1e2   :  { %v1293_v11 = vadd.s32 1, %v12477_v50  ;;  %9926 = vmatmul.mubr.msk.bf16.gmra.mxu1 %vm7386_vm3, %v12273_v33  ;;  %v12494_v38 = vand.u32 3, %v1120_v56  ;;  %v2784_v26 = vadd.s32 3, %v12484_v20  ;;  %v2906_v62 = vand.u32 8388607, %v15443_v59 }
 0x1e3   :  { %v2765_v52 = vshrl.u32 %v2747_v3, %v2763_v24  ;;  %v2768_v8 = vadd.s32 127, %v2767_v0  ;;  %v2909_v47 = vadd.s32 1, %v9747_v55  ;;  %7739 = vmatprep.mubr.bf16.mxu1 %v15590_v9  ;;  %v926_v40 = vand.u32 2139095040, %v12492_v54 }
 0x1e4   :  { %v1294_v23 = vsel %vm1292_vm11, %v1293_v11, %v12477_v50  ;;  %vm1123_vm5 = vcmp.eq.s32.totalorder %v12494_v38, 0  ;;  %v2907_v39 = vor.u32 8388608, %v2906_v62  ;;  %vm1126_vm8 = vcmp.eq.s32.totalorder %v12494_v38, 2 }
 0x1e5   :  { %v2766_v10 = vor.u32 %v2765_v52, %v2764_v60  ;;  %v2769_v43 = vshll.u32 %v2768_v8, 23  ;;  %v1295_v32 = vadd.s32 %v1294_v23, %v1290_v14  ;;  %vm2910_vm6 = vcmp.gt.s32.totalorder %v2909_v47, 0 }
 0x1e6   :  { %v2911_v33 = vsel %vm2910_vm6, %v2909_v47, 0  ;;  %v12508_v56 = vand.u32 3, %v2784_v26  ;;  %v12513_v25 = vadd.s32 %v12476_v57, %v12474_v13  ;;  %v927_v24 = vshrl.u32 %v926_v40, 23 }
 0x1e7   :  { %v2770_v63 = vor.u32 4788187, %v2769_v43  ;;  %v2773_v30 = vcvt.s32.f32 %v2766_v10  ;;  %v1296_v22 = vadd.s32 536870912, %v1295_v32  ;;  %v2913_v49 = vand.u32 31, %v2911_v33 }
 0x1e8   :  { %v12502_v37 = vpop.eup %10213  ;;  %v2912_v52 = vshrl.u32 %v2911_v33, 5  ;;  %v12521_v26 = vshll.u32 %v2907_v39, 8  ;;  %v9671_v33 = vadd.s32 4294967169, %v927_v24  ;;  %vm1122_vm13 = vcmp.lt.s32.totalorder %v12494_v38, 2 }
 0x1e9   :  { %15675 = vst [vmem:[#allocation63_spill] sm:$0xff] %v12502_v37  ;;  %v12505_v21 = vpop.eup %10215  ;;  %v2771_v50 = vand.u32 2147483647, %v2770_v63  ;;  %v12510_v3 = vshrl.u32 %v1296_v22, 30  ;;  %v2914_v29 = vsub.s32 32, %v2913_v49  ;;  %v2916_v55 = vshll.u32 %v15601_v42, %v2913_v49 }
 0x1ea   :  { %15676 = vst [vmem:[#allocation64_spill] sm:$0xff] %v12505_v21  ;;  %v2919_v11 = vshll.u32 %v15596_v34, %v2913_v49  ;;  %v2922_v23 = vshll.u32 %v15598_v7, %v2913_v49  ;;  %v15446_v10 = vxor.u32 2147483648, %v12505_v21  ;;  %v15445_v43 = vxor.u32 2147483648, %v12502_v37 }
 0x1eb   :  { %v2774_v60 = vmul.f32 %v2773_v30, %v2771_v50  ;;  %v1298_v0 = vshll.u32 %v12510_v3, 30  ;;  %v2917_v8 = vshrl.u32 %v15596_v34, %v2914_v29  ;;  %v2920_v47 = vshrl.u32 %v15598_v7, %v2914_v29 }
 0x1ec   :  { %v2923_v62 = vshrl.u32 %v15599_v12, %v2914_v29  ;;  %v2925_v40 = vshll.u32 %v15599_v12, %v2913_v49  ;;  %v2926_v50 = vshrl.u32 %v15607_v44, %v2914_v29  ;;  %v2929_v59 = vshrl.u32 %v15602_v19, %v2914_v29 }
 0x1ed   :  { %v2775_v13 = vxor.u32 2147483648, %v2774_v60  ;;  %v12523_v57 = vsub.s32 %v1295_v32, %v1298_v0  ;;  %v2918_v22 = vor.u32 %v2917_v8, %v2916_v55  ;;  %v2921_v39 = vor.u32 %v2920_v47, %v2919_v11 }
 0x1ee   :  { %v2928_v0 = vshll.u32 %v15607_v44, %v2913_v49  ;;  %v2915_v55 = vshrl.u32 %v15601_v42, %v2914_v29  ;;  %v2927_v11 = vor.u32 %v2926_v50, %v2925_v40  ;;  %vm15482_vm11 = vweird.f32 %v12039_v35 }
 0x1ef   :  { %v2776_v63 = vsel %vm2693_vm15, %v2775_v13, %v2774_v60  ;;  %v1301_v30 = vsub.s32 0, %v12523_v57  ;;  %v2924_v60 = vor.u32 %v2923_v62, %v2922_v23  ;;  %vm2931_vm15 = vcmp.lt.s32.totalorder %v2912_v52, 1 }
 0x1f0   :  { %v2779_v32 = vsel %vm12431_vm9, %v12192_v46, %v2776_v63  ;;  %v2930_v8 = vor.u32 %v2929_v59, %v2928_v0  ;;  %v1125_v36 = vsel %vm1123_vm5, %v12502_v37, %v15446_v10  ;;  %v1128_v49 = vsel %vm1126_vm8, %v15445_v43, %v12505_v21 }
 0x1f1   :  { %10217 = vcosq.f32 %v2779_v32  ;;  %v9684_v24 = vmin.u32 %v1301_v30, %v12523_v57  ;;  %v933_v13 = vadd.s32 1, %v9671_v33  ;;  %vm2932_vm9 = vcmp.lt.s32.totalorder %v2912_v52, 2 }
 0x1f2   :  { %10219 = vsinq.f32 %v2779_v32  ;;  %vm2933_vm6 = vcmp.lt.s32.totalorder %v2912_v52, 3  ;;  %vm2934_vm4 = vcmp.lt.s32.totalorder %v2912_v52, 4  ;;  %v2939_v59 = vsel %vm2931_vm15, %v2918_v22, %v2921_v39 }
 0x1f3   :  { %v1303_v47 = vclz %v9684_v24  ;;  %v2936_v23 = vsel %vm2934_vm4, %v2924_v60, 2102212464  ;;  %v2940_v62 = vsel %vm2934_vm4, %v2927_v11, 920167782  ;;  %v2943_v40 = vsel %vm2931_vm15, %v2921_v39, %v2924_v60 }
 0x1f4   :  { %v2935_v63 = vsel %vm2931_vm15, %v2915_v55, %v2918_v22  ;;  %v2937_v30 = vsel %vm2933_vm6, %v2921_v39, %v2936_v23  ;;  %v2941_v32 = vsel %vm2933_vm6, %v2924_v60, %v2940_v62  ;;  %v2944_v50 = vsel %vm2934_vm4, %v2930_v8, 1326507024 }
 0x1f5   :  { %v9685_v29 = vadd.s32 4294967294, %v1303_v47  ;;  %v2942_v0 = vsel %vm2932_vm9, %v2939_v59, %v2941_v32  ;;  %v2945_v24 = vsel %vm2933_vm6, %v2927_v11, %v2944_v50  ;;  %vm934_vm8 = vcmp.gt.s32.totalorder %v933_v13, 0 }
 0x1f6   :  { %v2946_v43 = vsel %vm2932_vm9, %v2943_v40, %v2945_v24  ;;  %v12559_v10 = vmul.u32.u64.low %v12521_v26, %v2942_v0  ;;  %v12560_v47 = vmul.u32.u64.high %v12521_v26, %v2942_v0, %v12559_v10  ;;  %vm15460_vm14 = vweird.f32 %v12192_v46 }
 0x1f7   :  { %vm9686_vm5 = vcmp.lt.s32.totalorder %v9685_v29, 0  ;;  %v2938_v60 = vsel %vm2932_vm9, %v2935_v63, %v2937_v30  ;;  %v12567_v55 = vmul.u32.u64.low %v12521_v26, %v2946_v43  ;;  %v12568_v11 = vmul.u32.u64.high %v12521_v26, %v2946_v43, %v12567_v55 }
 0x1f8   :  { %v1306_v33 = vsel %vm9686_vm5, 0, %v9685_v29  ;;  %v15677_v8 = vand.u32 2147483647, %v12492_v54  ;;  %v935_v29 = vsel %vm934_vm8, %v933_v13, 0  ;;  %v1129_v23 = vsel %vm1122_vm13, %v1125_v36, %v1128_v49 }
 0x1f9   :  { %v1307_v14 = vsub.s32 32, %v1306_v33  ;;  %v1308_v22 = vshll.u32 %v12523_v57, %v1306_v33  ;;  %v1311_v39 = vsub.s32 4294967266, %v1306_v33  ;;  %v937_v32 = vand.u32 31, %v935_v29 }
 0x1fa   :  { %v12572_v59 = vand.u32 8388607, %v15677_v8  ;;  %vm2786_vm4 = vcmp.lt.s32.totalorder %v12508_v56, 2  ;;  %vm1237_vm15 = vcmp.lt.s32.totalorder %v12286_v61, 0  ;;  %v2954_v52 = vmul.u32 %v12521_v26, %v2938_v60 }
 0x1fb   :  { %v1309_v62 = vshrl.u32 %v12513_v25, %v1307_v14  ;;  %v1312_v40 = vadd.s32 127, %v1311_v39  ;;  %v2957_v57 = vadd.s32 1, %v12560_v47  ;;  %vm2787_vm9 = vcmp.eq.s32.totalorder %v12508_v56, 0 }
 0x1fc   :  { %v938_v13 = vsub.s32 32, %v937_v32  ;;  %v1130_v38 = vsel %vm15482_vm11, nan, %v1129_v23  ;;  %vm2790_vm13 = vcmp.eq.s32.totalorder %v12508_v56, 2  ;;  %vm2956_vm6 = vc.u32 %v12568_v11, %v12559_v10 }
 0x1fd   :  { %v1310_v43 = vor.u32 %v1309_v62, %v1308_v22  ;;  %v1313_v63 = vshll.u32 %v1312_v40, 23  ;;  %v931_v25 = vor.u32 8388608, %v12572_v59  ;;  %v15680_v36 = vand.u32 2147483647, %v12286_v61 }
 0x1fe   :  { %v12582_v30 = vpop.eup %10217  ;;  %v2958_v24 = vsel %vm2956_vm6, %v2957_v57, %v12560_v47  ;;  %v940_v39 = vshll.u32 %v15601_v42, %v937_v32  ;;  %v943_v60 = vshll.u32 %v15596_v34, %v937_v32  ;;  %v941_v59 = vshrl.u32 %v15596_v34, %v938_v13 }
 0x1ff   :  { %15678 = vst [vmem:[#allocation65_spill] sm:$0xff] %v12582_v30  ;;  %v12590_v14 = vpop.eup %10219  ;;  %v15448_v26 = vxor.u32 2147483648, %v12582_v30  ;;  %vm12595_vm5 = vcmp.le.f32.partialorder %v15680_v36, 0.7853982  ;;  %v1314_v50 = vor.u32 4788187, %v1313_v63  ;;  %v1317_v0 = vcvt.s32.f32 %v1310_v43 }
 0x200   :  { %15679 = vst [vmem:[#allocation66_spill] sm:$0xff] %v12590_v14  ;;  %v15449_v33 = vxor.u32 2147483648, %v12590_v14  ;;  %v2959_v22 = vadd.s32 %v2958_v24, %v2954_v52  ;;  %v946_v23 = vshll.u32 %v15598_v7, %v937_v32  ;;  %v944_v40 = vshrl.u32 %v15598_v7, %v938_v13 }
 0x201   :  { %v2792_v55 = vsel %vm2790_vm13, %v15448_v26, %v12590_v14  ;;  %v1315_v8 = vand.u32 2147483647, %v1314_v50  ;;  %v947_v52 = vshrl.u32 %v15599_v12, %v938_v13  ;;  %v936_v63 = vshrl.u32 %v935_v29, 5 }
 0x202   :  { %v2789_v47 = vsel %vm2787_vm9, %v12582_v30, %v15449_v33  ;;  %v2960_v62 = vadd.s32 536870912, %v2959_v22  ;;  %v949_v36 = vshll.u32 %v15599_v12, %v937_v32  ;;  %v950_v26 = vshrl.u32 %v15607_v44, %v938_v13 }
 0x203   :  { %v2793_v57 = vsel %vm2786_vm4, %v2789_v47, %v2792_v55  ;;  %v1318_v43 = vmul.f32 %v1317_v0, %v1315_v8  ;;  %v952_v33 = vshll.u32 %v15607_v44, %v937_v32  ;;  %v939_v30 = vshrl.u32 %v15601_v42, %v938_v13 }
 0x204   :  { %v2794_v50 = vsel %vm15460_vm14, nan, %v2793_v57  ;;  %v2961_v24 = vshrl.u32 %v2960_v62, 30  ;;  %v953_v14 = vshrl.u32 %v15602_v19, %v938_v13  ;;  %v942_v55 = vor.u32 %v941_v59, %v940_v39  ;;  %v12628_v57 = vld [vmem:[#allocation2 + $0xc0] sm:$0xf] }
 0x205   :  { %v3428_v53 = vpack.c.bf16 %v2794_v50, %v1130_v38  ;;  %v1319_v35 = vxor.u32 2147483648, %v1318_v43  ;;  %v945_v0 = vor.u32 %v944_v40, %v943_v60  ;;  %v948_v29 = vor.u32 %v947_v52, %v946_v23  ;;  %15683 = vst [vmem:[#allocation67_spill] sm:$0xff] %v12628_v57 }
 0x206   :  { %v2962_v56 = vshll.u32 %v2961_v24, 30  ;;  %v951_v47 = vor.u32 %v950_v26, %v949_v36  ;;  %v954_v62 = vor.u32 %v953_v14, %v952_v33  ;;  %vm955_vm8 = vcmp.lt.s32.totalorder %v936_v63, 1 }
 0x207   :  { %9927 = vmatprep.subr.msk.bf16.mxu0 %vm7393_vm2, %v3428_v53  ;;  %v1320_v8 = vsel %vm1237_vm15, %v1319_v35, %v1318_v43  ;;  %v1321_v32 = vsub.s32 4, %v12510_v3  ;;  %vm958_vm4 = vcmp.lt.s32.totalorder %v936_v63, 4  ;;  %v971_v50 = vshll.u32 %v931_v25, 8 }
 0x208   :  { %v2963_v38 = vsub.s32 %v2959_v22, %v2962_v56  ;;  %v2985_v13 = vsub.s32 4, %v2961_v24  ;;  %vm956_vm9 = vcmp.lt.s32.totalorder %v936_v63, 2  ;;  %vm957_vm13 = vcmp.lt.s32.totalorder %v936_v63, 3 }
 0x209   :  { %v960_v39 = vsel %vm958_vm4, %v948_v29, 2102212464  ;;  %v1323_v53 = vsel %vm12595_vm5, %v12286_v61, %v1320_v8  ;;  %v959_v35 = vsel %vm955_vm8, %v939_v30, %v942_v55  ;;  %v963_v14 = vsel %vm955_vm8, %v942_v55, %v945_v0 }
 0x20a   :  { %v2965_v60 = vsub.s32 0, %v2963_v38  ;;  %v961_v26 = vsel %vm957_vm13, %v945_v0, %v960_v39  ;;  %v964_v33 = vsel %vm958_vm4, %v951_v47, 920167782  ;;  %v967_v22 = vsel %vm955_vm8, %v945_v0, %v948_v29 }
 0x20b   :  { %v968_v59 = vsel %vm958_vm4, %v954_v62, 1326507024  ;;  %v965_v25 = vsel %vm957_vm13, %v948_v29, %v964_v33  ;;  %v2590_v52 = vand.u32 2139095040, %v12628_v57  ;;  %v1322_v43 = vsel %vm1237_vm15, %v1321_v32, %v12510_v3 }
 0x20c   :  { %v9748_v23 = vmin.u32 %v2965_v60, %v2963_v38  ;;  %v969_v40 = vsel %vm957_vm13, %v951_v47, %v968_v59  ;;  %vm2901_vm6 = vcmp.lt.s32.totalorder %v12443_v18, 0  ;;  %v966_v30 = vsel %vm956_vm9, %v963_v14, %v965_v25 }
 0x20d   :  { %v970_v36 = vsel %vm956_vm9, %v967_v22, %v969_v40  ;;  %10221 = vcosq.f32 %v1323_v53  ;;  %v2986_v55 = vsel %vm2901_vm6, %v2985_v13, %v2961_v24  ;;  %v962_v0 = vsel %vm956_vm9, %v959_v35, %v961_v26  ;;  %v12673_v40 = vld [vmem:[#allocation2 + $0x50] sm:$0xff] }
 0x20e   :  { %v2967_v56 = vclz %v9748_v23  ;;  %v12646_v29 = vmul.u32.u64.low %v971_v50, %v970_v36  ;;  %v12647_v8 = vmul.u32.u64.high %v971_v50, %v970_v36, %v12646_v29  ;;  %v2591_v32 = vshrl.u32 %v2590_v52, 23  ;;  %15689 = vst [vmem:[#allocation70_spill] sm:$0xff] %v12673_v40 }
 0x20f   :  { %v12649_v47 = vmul.u32.u64.low %v971_v50, %v966_v30  ;;  %v12650_v62 = vmul.u32.u64.high %v971_v50, %v966_v30, %v12649_v47  ;;  %v12654_v39 = vsel %vm12595_vm5, 0, %v1322_v43  ;;  %v15685_v60 = vand.u32 2147483647, %v12443_v18 }
 0x210   :  { %v9749_v3 = vadd.s32 4294967294, %v2967_v56  ;;  %15684 = vst [vmem:[#allocation68_spill] sm:$0xff] %v12654_v39  ;;  %v2955_v63 = vadd.s32 %v12559_v10, %v12568_v11  ;;  %v15456_v24 = vand.u32 2147483647, %v12628_v57  ;;  %v978_v35 = vmul.u32 %v971_v50, %v962_v0 }
 0x211   :  { %vm12658_vm15 = vcmp.le.f32.partialorder %v15685_v60, 0.7853982  ;;  %v9735_v49 = vadd.s32 4294967169, %v2591_v32  ;;  %10223 = vsinq.f32 %v1323_v53  ;;  %vm980_vm5 = vc.u32 %v12647_v8, %v12649_v47 }
 0x212   :  { %vm9750_vm8 = vcmp.lt.s32.totalorder %v9749_v3, 0  ;;  %v12667_v13 = vsel %vm12658_vm15, 0, %v2986_v55  ;;  %v981_v33 = vadd.s32 1, %v12650_v62  ;;  %v1328_v10 = vadd.s32 3, %v12654_v39 }
 0x213   :  { %15688 = vst [vmem:[#allocation69_spill] sm:$0xff] %v12667_v13  ;;  %v2970_v26 = vsel %vm9750_vm8, 0, %v9749_v3  ;;  %v2597_v25 = vadd.s32 1, %v9735_v49  ;;  %v2992_v53 = vadd.s32 3, %v12667_v13  ;;  %v2594_v30 = vand.u32 8388607, %v15456_v24 }
 0x214   :  { %v2971_v22 = vsub.s32 32, %v2970_v26  ;;  %v2972_v59 = vshll.u32 %v2963_v38, %v2970_v26  ;;  %v2975_v23 = vsub.s32 4294967266, %v2970_v26  ;;  %v982_v11 = vsel %vm980_vm5, %v981_v33, %v12650_v62 }
 0x215   :  { %v983_v50 = vadd.s32 %v982_v11, %v978_v35  ;;  %vm2598_vm4 = vcmp.gt.s32.totalorder %v2597_v25, 0  ;;  %v1134_v0 = vand.u32 2139095040, %v12673_v40  ;;  %v12679_v29 = vand.u32 3, %v1328_v10 }
 0x216   :  { %v2973_v52 = vshrl.u32 %v2955_v63, %v2971_v22  ;;  %v2976_v43 = vadd.s32 127, %v2975_v23  ;;  %v2599_v36 = vsel %vm2598_vm4, %v2597_v25, 0  ;;  %v12685_v35 = vand.u32 3, %v2992_v53 }
 0x217   :  { %v984_v55 = vadd.s32 536870912, %v983_v50  ;;  %v2601_v62 = vand.u32 31, %v2599_v36  ;;  %v2595_v49 = vor.u32 8388608, %v2594_v30  ;;  %v1135_v25 = vshrl.u32 %v1134_v0, 23 }
 0x218   :  { %v2974_v56 = vor.u32 %v2973_v52, %v2972_v59  ;;  %v2977_v38 = vshll.u32 %v2976_v43, 23  ;;  %v12689_v59 = vadd.s32 %v12649_v47, %v12647_v8  ;;  %vm1334_vm9 = vcmp.eq.s32.totalorder %v12679_v29, 2 }
 0x219   :  { %v12681_v60 = vshrl.u32 %v984_v55, 30  ;;  %v2602_v26 = vsub.s32 32, %v2601_v62  ;;  %v2604_v10 = vshll.u32 %v15601_v42, %v2601_v62  ;;  %v2607_v52 = vshll.u32 %v15596_v34, %v2601_v62 }
 0x21a   :  { %v2978_v3 = vor.u32 4788187, %v2977_v38  ;;  %v2981_v32 = vcvt.s32.f32 %v2974_v56  ;;  %v12683_v63 = vpop.eup %10221  ;;  %v2610_v56 = vshll.u32 %v15598_v7, %v2601_v62  ;;  %v2600_v38 = vshrl.u32 %v2599_v36, 5 }
 0x21b   :  { %15690 = vst [vmem:[#allocation71_spill] sm:$0xff] %v12683_v63  ;;  %v986_v23 = vshll.u32 %v12681_v60, 30  ;;  %v2605_v11 = vshrl.u32 %v15596_v34, %v2602_v26  ;;  %v2608_v43 = vshrl.u32 %v15598_v7, %v2602_v26  ;;  %v2611_v8 = vshrl.u32 %v15599_v12, %v2602_v26 }
 0x21c   :  { %v2979_v22 = vand.u32 2147483647, %v2978_v3  ;;  %v2613_v55 = vshll.u32 %v15599_v12, %v2601_v62  ;;  %v12703_v0 = vshll.u32 %v2595_v49, 8  ;;  %vm1331_vm13 = vcmp.eq.s32.totalorder %v12679_v29, 0 }
 0x21d   :  { %v12697_v30 = vsub.s32 %v983_v50, %v986_v23  ;;  %v2603_v50 = vshrl.u32 %v15601_v42, %v2602_v26  ;;  %v2606_v23 = vor.u32 %v2605_v11, %v2604_v10  ;;  %v2614_v33 = vshrl.u32 %v15607_v44, %v2602_v26 }
 0x21e   :  { %v2982_v53 = vmul.f32 %v2981_v32, %v2979_v22  ;;  %v12705_v3 = vpop.eup %10223  ;;  %v9679_v22 = vadd.s32 4294967169, %v1135_v25  ;;  %v2616_v47 = vshll.u32 %v15607_v44, %v2601_v62  ;;  %v2617_v36 = vshrl.u32 %v15602_v19, %v2602_v26 }
 0x21f   :  { %15691 = vst [vmem:[#allocation72_spill] sm:$0xff] %v12705_v3  ;;  %v989_v32 = vsub.s32 0, %v12697_v30  ;;  %v2609_v46 = vor.u32 %v2608_v43, %v2607_v52  ;;  %v2612_v39 = vor.u32 %v2611_v8, %v2610_v56  ;;  %vm1330_vm8 = vcmp.lt.s32.totalorder %v12679_v29, 2 }
 0x220   :  { %v2983_v24 = vxor.u32 2147483648, %v2982_v53  ;;  %v2615_v10 = vor.u32 %v2614_v33, %v2613_v55  ;;  %v2618_v11 = vor.u32 %v2617_v36, %v2616_v47  ;;  %vm2619_vm5 = vcmp.lt.s32.totalorder %v2600_v38, 1 }
 0x221   :  { %v9672_v13 = vmin.u32 %v989_v32, %v12697_v30  ;;  %v15462_v62 = vxor.u32 2147483648, %v12705_v3  ;;  %vm2621_vm4 = vcmp.lt.s32.totalorder %v2600_v38, 3  ;;  %vm2622_vm14 = vcmp.lt.s32.totalorder %v2600_v38, 4 }
 0x222   :  { %v2984_v49 = vsel %vm2901_vm6, %v2983_v24, %v2982_v53  ;;  %vm2620_vm6 = vcmp.lt.s32.totalorder %v2600_v38, 2  ;;  %v2623_v24 = vsel %vm2619_vm5, %v2603_v50, %v2606_v23  ;;  %v2624_v43 = vsel %vm2622_vm14, %v2612_v39, 2102212464 }
 0x223   :  { %v2987_v25 = vsel %vm12658_vm15, %v12443_v18, %v2984_v49  ;;  %v991_v26 = vclz %v9672_v13  ;;  %v2627_v53 = vsel %vm2619_vm5, %v2606_v23, %v2609_v46  ;;  %v2628_v56 = vsel %vm2622_vm14, %v2615_v10, 920167782 }
 0x224   :  { %10225 = vcosq.f32 %v2987_v25  ;;  %v2625_v8 = vsel %vm2621_vm4, %v2609_v46, %v2624_v43  ;;  %v2629_v14 = vsel %vm2621_vm4, %v2612_v39, %v2628_v56  ;;  %v2631_v33 = vsel %vm2619_vm5, %v2609_v46, %v2612_v39 }
 0x225   :  { %10227 = vsinq.f32 %v2987_v25  ;;  %v9673_v52 = vadd.s32 4294967294, %v991_v26  ;;  %v2632_v47 = vsel %vm2622_vm14, %v2618_v11, 1326507024  ;;  %v15692_v55 = vxor.u32 2147483648, %v12683_v63 }
 0x226   :  { %v2630_v32 = vsel %vm2620_vm6, %v2627_v53, %v2629_v14  ;;  %v2633_v50 = vsel %vm2621_vm4, %v2615_v10, %v2632_v47  ;;  %v2626_v26 = vsel %vm2620_vm6, %v2623_v24, %v2625_v8  ;;  %v1333_v10 = vsel %vm1331_vm13, %v12683_v63, %v15462_v62 }
 0x227   :  { %v1336_v13 = vsel %vm1334_vm9, %v15692_v55, %v12705_v3  ;;  %vm9674_vm15 = vcmp.lt.s32.totalorder %v9673_v52, 0  ;;  %v2634_v23 = vsel %vm2620_vm6, %v2631_v33, %v2633_v50  ;;  %v1141_v53 = vadd.s32 1, %v9679_v22 }
 0x228   :  { %v994_v36 = vsel %vm9674_vm15, 0, %v9673_v52  ;;  %v12732_v49 = vmul.u32.u64.low %v12703_v0, %v2630_v32  ;;  %v12733_v25 = vmul.u32.u64.high %v12703_v0, %v2630_v32, %v12732_v49  ;;  %vm15481_vm14 = vweird.f32 %v12286_v61 }
 0x229   :  { %v995_v46 = vsub.s32 32, %v994_v36  ;;  %v996_v39 = vshll.u32 %v12697_v30, %v994_v36  ;;  %v999_v11 = vsub.s32 4294967266, %v994_v36  ;;  %v15693_v30 = vand.u32 2147483647, %v12673_v40 }
 0x22a   :  { %v12744_v52 = vmul.u32.u64.low %v12703_v0, %v2634_v23  ;;  %v12745_v43 = vmul.u32.u64.high %v12703_v0, %v2634_v23, %v12744_v52  ;;  %vm15477_vm9 = vweird.f32 %v12443_v18  ;;  %v2642_v24 = vmul.u32 %v12703_v0, %v2626_v26 }
 0x22b   :  { %v997_v56 = vshrl.u32 %v12689_v59, %v995_v46  ;;  %v1000_v14 = vadd.s32 127, %v999_v11  ;;  %v12751_v38 = vand.u32 8388607, %v15693_v30  ;;  %v2645_v8 = vadd.s32 1, %v12733_v25 }
 0x22c   :  { %vm1142_vm13 = vcmp.gt.s32.totalorder %v1141_v53, 0  ;;  %v1337_v33 = vsel %vm1330_vm8, %v1333_v10, %v1336_v13  ;;  %vm2994_vm5 = vcmp.lt.s32.totalorder %v12685_v35, 2  ;;  %vm2995_vm4 = vcmp.eq.s32.totalorder %v12685_v35, 0 }
 0x22d   :  { %v998_v22 = vor.u32 %v997_v56, %v996_v39  ;;  %v1001_v47 = vshll.u32 %v1000_v14, 23  ;;  %v1143_v55 = vsel %vm1142_vm13, %v1141_v53, 0  ;;  %vm2644_vm6 = vc.u32 %v12745_v43, %v12732_v49  ;;  %v12778_v14 = vld [vmem:[#allocation2 + $0xd0] sm:$0xf] }
 0x22e   :  { %v1145_v59 = vand.u32 31, %v1143_v55  ;;  %vm2998_vm15 = vcmp.eq.s32.totalorder %v12685_v35, 2  ;;  %v2646_v32 = vsel %vm2644_vm6, %v2645_v8, %v12733_v25  ;;  %v1139_v50 = vor.u32 8388608, %v12751_v38  ;;  %15696 = vst [vmem:[#allocation75_spill] sm:$0xff] %v12778_v14 }
 0x22f   :  { %v1002_v0 = vor.u32 4788187, %v1001_v47  ;;  %v1338_v13 = vsel %vm15481_vm14, nan, %v1337_v33  ;;  %vm925_vm8 = vcmp.lt.s32.totalorder %v12492_v54, 0  ;;  %v2647_v36 = vadd.s32 %v2646_v32, %v2642_v24 }
 0x230   :  { %v12770_v23 = vshrl.u32 %v1143_v55, 5  ;;  %v1146_v46 = vsub.s32 32, %v1145_v59  ;;  %v1005_v26 = vcvt.s32.f32 %v998_v22  ;;  %v1148_v25 = vshll.u32 %v15601_v42, %v1145_v59 }
 0x231   :  { %v12765_v29 = vpop.eup %10225  ;;  %v1151_v10 = vshll.u32 %v15596_v34, %v1145_v59  ;;  %v1003_v53 = vand.u32 2147483647, %v1002_v0  ;;  %v2648_v56 = vadd.s32 536870912, %v2647_v36  ;;  %v1154_v8 = vshll.u32 %v15598_v7, %v1145_v59 }
 0x232   :  { %15694 = vst [vmem:[#allocation73_spill] sm:$0xff] %v12765_v29  ;;  %v12772_v39 = vpop.eup %10227  ;;  %v15461_v11 = vxor.u32 2147483648, %v12765_v29  ;;  %v1149_v30 = vshrl.u32 %v15596_v34, %v1146_v46  ;;  %v1152_v24 = vshrl.u32 %v15598_v7, %v1146_v46  ;;  %v1157_v33 = vshll.u32 %v15599_v12, %v1145_v59 }
 0x233   :  { %15695 = vst [vmem:[#allocation74_spill] sm:$0xff] %v12772_v39  ;;  %v15468_v52 = vxor.u32 2147483648, %v12772_v39  ;;  %v12794_v47 = vshrl.u32 %v2648_v56, 30  ;;  %v1155_v55 = vshrl.u32 %v15599_v12, %v1146_v46  ;;  %v1158_v0 = vshrl.u32 %v15607_v44, %v1146_v46 }
 0x234   :  { %v3000_v38 = vsel %vm2998_vm15, %v15461_v11, %v12772_v39  ;;  %v1009_v11 = vsub.s32 4, %v12681_v60  ;;  %v1147_v62 = vshrl.u32 %v15601_v42, %v1146_v46  ;;  %v2798_v61 = vand.u32 2139095040, %v12778_v14 }
 0x235   :  { %v2997_v22 = vsel %vm2995_vm4, %v12765_v29, %v15468_v52  ;;  %v1006_v63 = vmul.f32 %v1005_v26, %v1003_v53  ;;  %v2650_v56 = vshll.u32 %v12794_v47, 30  ;;  %v1150_v52 = vor.u32 %v1149_v30, %v1148_v25 }
 0x236   :  { %v3001_v32 = vsel %vm2994_vm5, %v2997_v22, %v3000_v38  ;;  %v1153_v3 = vor.u32 %v1152_v24, %v1151_v10  ;;  %v1160_v37 = vshll.u32 %v15607_v44, %v1145_v59  ;;  %v1161_v35 = vshrl.u32 %v15602_v19, %v1146_v46 }
 0x237   :  { %v3002_v39 = vsel %vm15477_vm9, nan, %v3001_v32  ;;  %v12808_v38 = vsub.s32 %v2647_v36, %v2650_v56  ;;  %v1156_v22 = vor.u32 %v1155_v55, %v1154_v8  ;;  %v1159_v21 = vor.u32 %v1158_v0, %v1157_v33 }
 0x238   :  { %v3430_v29 = vpack.c.bf16 %v3002_v39, %v1338_v13  ;;  %vm1163_vm13 = vcmp.lt.s32.totalorder %v12770_v23, 1  ;;  %v15697_v32 = vand.u32 2147483647, %v12492_v54  ;;  %v1010_v59 = vsel %vm925_vm8, %v1009_v11, %v12681_v60 }
 0x239   :  { %v1162_v13 = vor.u32 %v1161_v35, %v1160_v37  ;;  %v2799_v46 = vshrl.u32 %v2798_v61, 23  ;;  %v1007_v36 = vxor.u32 2147483648, %v1006_v63  ;;  %v2653_v39 = vsub.s32 0, %v12808_v38 }
 0x23a   :  { %9930 = vmatprep.subr.msk.bf16.mxu1 %vm7393_vm2, %v3430_v29  ;;  %vm12814_vm5 = vcmp.le.f32.partialorder %v15697_v32, 0.7853982  ;;  %vm1165_vm4 = vcmp.lt.s32.totalorder %v12770_v23, 3  ;;  %v1179_v25 = vshll.u32 %v1139_v50, 8  ;;  %vm1164_vm6 = vcmp.lt.s32.totalorder %v12770_v23, 2 }
 0x23b   :  { %vm1166_vm15 = vcmp.lt.s32.totalorder %v12770_v23, 4  ;;  %v1167_v29 = vsel %vm1163_vm13, %v1147_v62, %v1150_v52  ;;  %v1171_v10 = vsel %vm1163_vm13, %v1150_v52, %v1153_v3  ;;  %v9736_v60 = vmin.u32 %v2653_v39, %v12808_v38 }
 0x23c   :  { %v1168_v37 = vsel %vm1166_vm15, %v1156_v22, 2102212464  ;;  %v1172_v61 = vsel %vm1166_vm15, %v1159_v21, 920167782  ;;  %v1175_v11 = vsel %vm1163_vm13, %v1153_v3, %v1156_v22  ;;  %v1176_v30 = vsel %vm1166_vm15, %v1162_v13, 1326507024 }
 0x23d   :  { %v1169_v50 = vsel %vm1165_vm4, %v1153_v3, %v1168_v37  ;;  %v1173_v53 = vsel %vm1165_vm4, %v1156_v22, %v1172_v61  ;;  %v9743_v24 = vadd.s32 4294967169, %v2799_v46  ;;  %v12838_v62 = vsel %vm12814_vm5, 0, %v1010_v59 }
 0x23e   :  { %15700 = vst [vmem:[#allocation76_spill] sm:$0xff] %v12838_v62  ;;  %vm2589_vm9 = vcmp.lt.s32.totalorder %v12628_v57, 0  ;;  %v2655_v52 = vclz %v9736_v60  ;;  %v1008_v8 = vsel %vm925_vm8, %v1007_v36, %v1006_v63  ;;  %v1170_v33 = vsel %vm1164_vm6, %v1167_v29, %v1169_v50 }
 0x23f   :  { %v1174_v3 = vsel %vm1164_vm6, %v1171_v10, %v1173_v53  ;;  %v1177_v55 = vsel %vm1165_vm4, %v1159_v21, %v1176_v30  ;;  %v2673_v32 = vsub.s32 4, %v12794_v47  ;;  %v2805_v13 = vadd.s32 1, %v9743_v24 }
 0x240   :  { %v9737_v0 = vadd.s32 4294967294, %v2655_v52  ;;  %v1178_v56 = vsel %vm1164_vm6, %v1175_v11, %v1177_v55  ;;  %v12851_v35 = vmul.u32.u64.low %v1179_v25, %v1174_v3  ;;  %v12852_v22 = vmul.u32.u64.high %v1179_v25, %v1174_v3, %v12851_v35  ;;  %v12886_v55 = vld [vmem:[#allocation2 + $0x68] sm:$0xff] }
 0x241   :  { %v12856_v63 = vmul.u32.u64.low %v1179_v25, %v1178_v56  ;;  %v12857_v59 = vmul.u32.u64.high %v1179_v25, %v1178_v56, %v12856_v63  ;;  %v1011_v46 = vsel %vm12814_vm5, %v12492_v54, %v1008_v8  ;;  %v2643_v21 = vadd.s32 %v12732_v49, %v12745_v43  ;;  %15705 = vst [vmem:[#allocation78_spill] sm:$0xff] %v12886_v55 }
 0x242   :  { %vm9738_vm8 = vcmp.lt.s32.totalorder %v9737_v0, 0  ;;  %v15478_v23 = vand.u32 2147483647, %v12778_v14  ;;  %v1016_v36 = vadd.s32 3, %v12838_v62  ;;  %v1186_v29 = vmul.u32 %v1179_v25, %v1170_v33 }
 0x243   :  { %v2658_v39 = vsel %vm9738_vm8, 0, %v9737_v0  ;;  %vm2806_vm13 = vcmp.gt.s32.totalorder %v2805_v13, 0  ;;  %v1189_v61 = vadd.s32 1, %v12852_v22  ;;  %10229 = vcosq.f32 %v1011_v46 }
 0x244   :  { %v2659_v10 = vsub.s32 32, %v2658_v39  ;;  %v2660_v60 = vshll.u32 %v12808_v38, %v2658_v39  ;;  %v2663_v37 = vsub.s32 4294967266, %v2658_v39  ;;  %v2674_v26 = vsel %vm2589_vm9, %v2673_v32, %v12794_v47 }
 0x245   :  { %vm1188_vm5 = vc.u32 %v12857_v59, %v12851_v35  ;;  %v2807_v49 = vsel %vm2806_vm13, %v2805_v13, 0  ;;  %v2802_v50 = vand.u32 8388607, %v15478_v23  ;;  %10231 = vsinq.f32 %v1011_v46 }
 0x246   :  { %v2661_v43 = vshrl.u32 %v2643_v21, %v2659_v10  ;;  %v2664_v11 = vadd.s32 127, %v2663_v37  ;;  %v1190_v25 = vsel %vm1188_vm5, %v1189_v61, %v12852_v22  ;;  %v15701_v38 = vand.u32 2147483647, %v12628_v57 }
 0x247   :  { %v1191_v30 = vadd.s32 %v1190_v25, %v1186_v29  ;;  %v2809_v47 = vand.u32 31, %v2807_v49  ;;  %v12888_v0 = vand.u32 3, %v1016_v36  ;;  %v2803_v32 = vor.u32 8388608, %v2802_v50 }
 0x248   :  { %vm12878_vm4 = vcmp.le.f32.partialorder %v15701_v38, 0.7853982  ;;  %v2662_v24 = vor.u32 %v2661_v43, %v2660_v60  ;;  %v2665_v52 = vshll.u32 %v2664_v11, 23  ;;  %v1446_v36 = vand.u32 2139095040, %v12886_v55 }
 0x249   :  { %v12884_v8 = vsel %vm12878_vm4, 0, %v2674_v26  ;;  %v1192_v33 = vadd.s32 536870912, %v1191_v30  ;;  %v2810_v3 = vsub.s32 32, %v2809_v47  ;;  %v2812_v46 = vshll.u32 %v15601_v42, %v2809_v47 }
 0x24a   :  { %15704 = vst [vmem:[#allocation77_spill] sm:$0xff] %v12884_v8  ;;  %v2666_v56 = vor.u32 4788187, %v2665_v52  ;;  %v2669_v22 = vcvt.s32.f32 %v2662_v24  ;;  %v12891_v63 = vadd.s32 3, %v12884_v8  ;;  %v2815_v29 = vshll.u32 %v15596_v34, %v2809_v47 }
 0x24b   :  { %v12893_v13 = vshrl.u32 %v1192_v33, 30  ;;  %v2813_v21 = vshrl.u32 %v15596_v34, %v2810_v3  ;;  %v2816_v10 = vshrl.u32 %v15598_v7, %v2810_v3  ;;  %v2808_v37 = vshrl.u32 %v2807_v49, 5 }
 0x24c   :  { %v2667_v39 = vand.u32 2147483647, %v2666_v56  ;;  %v2818_v61 = vshll.u32 %v15598_v7, %v2809_v47  ;;  %v2819_v26 = vshrl.u32 %v15599_v12, %v2810_v3  ;;  %vm1022_vm6 = vcmp.eq.s32.totalorder %v12888_v0, 2 }
 0x24d   :  { %v1194_v60 = vshll.u32 %v12893_v13, 30  ;;  %v2821_v11 = vshll.u32 %v15599_v12, %v2809_v47  ;;  %v2822_v25 = vshrl.u32 %v15607_v44, %v2810_v3  ;;  %v12906_v50 = vshll.u32 %v2803_v32, 8 }
 0x24e   :  { %v2670_v43 = vmul.f32 %v2669_v22, %v2667_v39  ;;  %v2814_v24 = vor.u32 %v2813_v21, %v2812_v46  ;;  %v2824_v52 = vshll.u32 %v15607_v44, %v2809_v47  ;;  %v15486_v49 = vand.u32 2147483647, %v12886_v55 }
 0x24f   :  { %v12908_v38 = vsub.s32 %v1191_v30, %v1194_v60  ;;  %vm1019_vm15 = vcmp.eq.s32.totalorder %v12888_v0, 0  ;;  %v2817_v56 = vor.u32 %v2816_v10, %v2815_v29  ;;  %v2823_v23 = vor.u32 %v2822_v25, %v2821_v11 }
 0x250   :  { %v2671_v33 = vxor.u32 2147483648, %v2670_v43  ;;  %v2825_v22 = vshrl.u32 %v15602_v19, %v2810_v3  ;;  %v2820_v18 = vor.u32 %v2819_v26, %v2818_v61  ;;  %vm2827_vm8 = vcmp.lt.s32.totalorder %v2808_v37, 1  ;;  %v12915_v8 = vpop.eup %10229 }
 0x251   :  { %v1197_v39 = vsub.s32 0, %v12908_v38  ;;  %v1447_v32 = vshrl.u32 %v1446_v36, 23  ;;  %15706 = vst [vmem:[#allocation79_spill] sm:$0xff] %v12915_v8  ;;  %v2811_v47 = vshrl.u32 %v15601_v42, %v2810_v3  ;;  %vm2829_vm13 = vcmp.lt.s32.totalorder %v2808_v37, 3 }
 0x252   :  { %v2672_v30 = vsel %vm2589_vm9, %v2671_v33, %v2670_v43  ;;  %vm2830_vm5 = vcmp.lt.s32.totalorder %v2808_v37, 4  ;;  %vm1018_vm14 = vcmp.lt.s32.totalorder %v12888_v0, 2  ;;  %v2826_v29 = vor.u32 %v2825_v22, %v2824_v52  ;;  %v12926_v36 = vpop.eup %10231 }
 0x253   :  { %v2675_v46 = vsel %vm12878_vm4, %v12628_v57, %v2672_v30  ;;  %v9680_v21 = vmin.u32 %v1197_v39, %v12908_v38  ;;  %v2832_v10 = vsel %vm2830_vm5, %v2820_v18, 2102212464  ;;  %15707 = vst [vmem:[#allocation80_spill] sm:$0xff] %v12926_v36  ;;  %vm2828_vm11 = vcmp.lt.s32.totalorder %v2808_v37, 2 }
 0x254   :  { %10233 = vcosq.f32 %v2675_v46  ;;  %v2835_v60 = vsel %vm2827_vm8, %v2814_v24, %v2817_v56  ;;  %v2836_v3 = vsel %vm2830_vm5, %v2823_v23, 920167782  ;;  %v15484_v61 = vxor.u32 2147483648, %v12915_v8 }
 0x255   :  { %10235 = vsinq.f32 %v2675_v46  ;;  %v1187_v53 = vadd.s32 %v12851_v35, %v12857_v59  ;;  %v1199_v26 = vclz %v9680_v21  ;;  %v2831_v43 = vsel %vm2827_vm8, %v2811_v47, %v2814_v24 }
 0x256   :  { %v2833_v11 = vsel %vm2829_vm13, %v2817_v56, %v2832_v10  ;;  %v2837_v25 = vsel %vm2829_vm13, %v2820_v18, %v2836_v3  ;;  %v2839_v52 = vsel %vm2827_vm8, %v2817_v56, %v2820_v18  ;;  %v15485_v33 = vxor.u32 2147483648, %v12926_v36 }
 0x257   :  { %v9681_v22 = vadd.s32 4294967294, %v1199_v26  ;;  %v2838_v39 = vsel %vm2828_vm11, %v2835_v60, %v2837_v25  ;;  %v2840_v30 = vsel %vm2830_vm5, %v2826_v29, 1326507024  ;;  %v9691_v24 = vadd.s32 4294967169, %v1447_v32 }
 0x258   :  { %v2841_v46 = vsel %vm2829_vm13, %v2823_v23, %v2840_v30  ;;  %v12942_v35 = vmul.u32.u64.low %v12906_v50, %v2838_v39  ;;  %v12943_v59 = vmul.u32.u64.high %v12906_v50, %v2838_v39, %v12942_v35  ;;  %v1024_v18 = vsel %vm1022_vm6, %v15484_v61, %v12926_v36 }
 0x259   :  { %vm9682_vm9 = vcmp.lt.s32.totalorder %v9681_v22, 0  ;;  %v2834_v56 = vsel %vm2828_vm11, %v2831_v43, %v2833_v11  ;;  %v2842_v47 = vsel %vm2828_vm11, %v2839_v52, %v2841_v46  ;;  %v1453_v10 = vadd.s32 1, %v9691_v24 }
 0x25a   :  { %v1202_v21 = vsel %vm9682_vm9, 0, %v9681_v22  ;;  %v12954_v23 = vmul.u32.u64.low %v12906_v50, %v2842_v47  ;;  %v12955_v29 = vmul.u32.u64.high %v12906_v50, %v2842_v47, %v12954_v23  ;;  %v1021_v32 = vsel %vm1019_vm15, %v12915_v8, %v15485_v33 }
 0x25b   :  { %v1203_v60 = vsub.s32 32, %v1202_v21  ;;  %v1204_v3 = vshll.u32 %v12908_v38, %v1202_v21  ;;  %v1207_v26 = vsub.s32 4294967266, %v1202_v21  ;;  %v2681_v43 = vand.u32 3, %v12891_v63 }
 0x25c   :  { %v2850_v37 = vmul.u32 %v12906_v50, %v2834_v56  ;;  %v2853_v11 = vadd.s32 1, %v12943_v59  ;;  %vm1454_vm11 = vcmp.gt.s32.totalorder %v1453_v10, 0  ;;  %vm15503_vm4 = vweird.f32 %v12492_v54 }
 0x25d   :  { %v1205_v25 = vshrl.u32 %v1187_v53, %v1203_v60  ;;  %v1208_v52 = vadd.s32 127, %v1207_v26  ;;  %v1455_v22 = vsel %vm1454_vm11, %v1453_v10, 0  ;;  %v1025_v39 = vsel %vm1018_vm14, %v1021_v32, %v1024_v18 }
 0x25e   :  { %vm2852_vm6 = vc.u32 %v12955_v29, %v12942_v35  ;;  %v1450_v38 = vand.u32 8388607, %v15486_v49  ;;  %v1457_v63 = vand.u32 31, %v1455_v22  ;;  %vm15502_vm15 = vweird.f32 %v12628_v57 }
 0x25f   :  { %v1206_v50 = vor.u32 %v1205_v25, %v1204_v3  ;;  %v1209_v30 = vshll.u32 %v1208_v52, 23  ;;  %v2854_v46 = vsel %vm2852_vm6, %v2853_v11, %v12943_v59  ;;  %vm2682_vm8 = vcmp.lt.s32.totalorder %v2681_v43, 2  ;;  %v13107_v52 = vld [vmem:[%s15298_s3 + $0x8] sm:$0xff]  }
 0x260   :  { %vm2683_vm13 = vcmp.eq.s32.totalorder %v2681_v43, 0  ;;  %vm1133_vm5 = vcmp.lt.s32.totalorder %v12673_v40, 0  ;;  %v2855_v53 = vadd.s32 %v2854_v46, %v2850_v37  ;;  %v1458_v0 = vsub.s32 32, %v1457_v63 }
 0x261   :  { %v12976_v24 = vpop.eup %10233  ;;  %v1026_v18 = vsel %vm15503_vm4, nan, %v1025_v39  ;;  %vm2686_vm14 = vcmp.eq.s32.totalorder %v2681_v43, 2  ;;  %v1210_v56 = vor.u32 4788187, %v1209_v30  ;;  %v1213_v47 = vcvt.s32.f32 %v1206_v50  ;;  %v13018_v43 = vld [vmem:[#allocation2 + $0xe8] sm:$0xf] }
 0x262   :  { %15708 = vst [vmem:[#allocation81_spill] sm:$0xff] %v12976_v24  ;;  %v12980_v21 = vpop.eup %10235  ;;  %v15483_v23 = vxor.u32 2147483648, %v12976_v24  ;;  %v2856_v10 = vadd.s32 536870912, %v2855_v53  ;;  %v1451_v59 = vor.u32 8388608, %v1450_v38  ;;  %v12983_v32 = vshrl.u32 %v1455_v22, 5  ;;  %15713 = vst [vmem:[#allocation83_spill] sm:$0xff] %v13018_v43 }
 0x263   :  { %15709 = vst [vmem:[#allocation82_spill] sm:$0xff] %v12980_v21  ;;  %v15489_v60 = vxor.u32 2147483648, %v12980_v21  ;;  %v1211_v3 = vand.u32 2147483647, %v1210_v56  ;;  %v1460_v26 = vshll.u32 %v15601_v42, %v1457_v63  ;;  %v1463_v37 = vshll.u32 %v15596_v34, %v1457_v63 }
 0x264   :  { %v2688_v11 = vsel %vm2686_vm14, %v15483_v23, %v12980_v21  ;;  %v15710_v25 = vand.u32 2147483647, %v12673_v40  ;;  %v12997_v39 = vshrl.u32 %v2856_v10, 30  ;;  %v1461_v22 = vshrl.u32 %v15596_v34, %v1458_v0 }
 0x265   :  { %v1469_v38 = vshll.u32 %v15599_v12, %v1457_v63  ;;  %v2685_v50 = vsel %vm2683_vm13, %v12976_v24, %v15489_v60  ;;  %v1214_v30 = vmul.f32 %v1213_v47, %v1211_v3  ;;  %v1464_v46 = vshrl.u32 %v15598_v7, %v1458_v0 }
 0x266   :  { %vm12993_vm9 = vcmp.le.f32.partialorder %v15710_v25, 0.7853982  ;;  %v1470_v56 = vshrl.u32 %v15607_v44, %v1458_v0  ;;  %v2689_v25 = vsel %vm2682_vm8, %v2685_v50, %v2688_v11  ;;  %v2858_v23 = vshll.u32 %v12997_v39, 30 }
 0x267   :  { %v1466_v10 = vshll.u32 %v15598_v7, %v1457_v63  ;;  %v1467_v61 = vshrl.u32 %v15599_v12, %v1458_v0  ;;  %v2690_v33 = vsel %vm15502_vm15, nan, %v2689_v25  ;;  %v1215_v49 = vxor.u32 2147483648, %v1214_v30 }
 0x268   :  { %v1472_v21 = vshll.u32 %v15607_v44, %v1457_v63  ;;  %v1473_v47 = vshrl.u32 %v15602_v19, %v1458_v0  ;;  %v3427_v3 = vpack.c.bf16 %v2690_v33, %v1026_v18  ;;  %v1217_v60 = vsub.s32 4, %v12893_v13 }
 0x269   :  { %v13016_v24 = vsub.s32 %v2855_v53, %v2858_v23  ;;  %v13020_v11 = vshll.u32 %v1451_v59, 8  ;;  %v1459_v50 = vshrl.u32 %v15601_v42, %v1458_v0  ;;  %v1462_v54 = vor.u32 %v1461_v22, %v1460_v26 }
 0x26a   :  { %v1465_v8 = vor.u32 %v1464_v46, %v1463_v37  ;;  %v1471_v57 = vor.u32 %v1470_v56, %v1469_v38  ;;  %v7419_v25 = vsel %vm7393_vm2, %v3427_v3, 0  ;;  %vm2797_vm11 = vcmp.lt.s32.totalorder %v12778_v14, 0 }
 0x26b   :  { %v2861_v63 = vsub.s32 0, %v13016_v24  ;;  %v1468_v33 = vor.u32 %v1467_v61, %v1466_v10  ;;  %vm1475_vm6 = vcmp.lt.s32.totalorder %v12983_v32, 1  ;;  %7669 = vmatpush1.bf16.msra.mxu0 %v7419_v25  ;;  %v1216_v53 = vsel %vm1133_vm5, %v1215_v49, %v1214_v30  ;;  %v13051_v30 = vld [vmem:[%s15298_s3] sm:$0xff]  }
 0x26c   :  { %v1474_v18 = vor.u32 %v1473_v47, %v1472_v21  ;;  %vm1478_vm8 = vcmp.lt.s32.totalorder %v12983_v32, 4  ;;  %v3110_v0 = vand.u32 2139095040, %v13018_v43  ;;  %vm1476_vm13 = vcmp.lt.s32.totalorder %v12983_v32, 2 }
 0x26d   :  { %v9744_v23 = vmin.u32 %v2861_v63, %v13016_v24  ;;  %vm1477_vm14 = vcmp.lt.s32.totalorder %v12983_v32, 3  ;;  %v1480_v61 = vsel %vm1478_vm8, %v1468_v33, 2102212464  ;;  %v1479_v59 = vsel %vm1475_vm6, %v1459_v50, %v1462_v54 }
 0x26e   :  { %v1481_v49 = vsel %vm1477_vm14, %v1465_v8, %v1480_v61  ;;  %v1483_v21 = vsel %vm1475_vm6, %v1462_v54, %v1465_v8  ;;  %v1484_v26 = vsel %vm1478_vm8, %v1471_v57, 920167782  ;;  %v1218_v37 = vsel %vm1133_vm5, %v1217_v60, %v12893_v13  ;;  %9928 = vmatmul.mubr.msk.bf16.vlgmr.msra.gmra.mxu0 %vm7386_vm3, %v13051_v30 }
 0x26f   :  { %v2863_v22 = vclz %v9744_v23  ;;  %v2881_v38 = vsub.s32 4, %v12997_v39  ;;  %v1487_v54 = vsel %vm1475_vm6, %v1465_v8, %v1468_v33  ;;  %v1219_v46 = vsel %vm12993_vm9, %v12673_v40, %v1216_v53  ;;  %7696 = vmatprep.mubr.bf16.mxu0 %v15590_v9 }
 0x270   :  { %v1485_v13 = vsel %vm1477_vm14, %v1468_v33, %v1484_v26  ;;  %v1488_v60 = vsel %vm1478_vm8, %v1474_v18, 1326507024  ;;  %v3111_v56 = vshrl.u32 %v3110_v0, 23  ;;  %v1482_v47 = vsel %vm1476_vm13, %v1479_v59, %v1481_v49 }
 0x271   :  { %v9745_v10 = vadd.s32 4294967294, %v2863_v22  ;;  %v1486_v8 = vsel %vm1476_vm13, %v1483_v21, %v1485_v13  ;;  %v1489_v3 = vsel %vm1477_vm14, %v1471_v57, %v1488_v60  ;;  %v2851_v53 = vadd.s32 %v12942_v35, %v12955_v29 }
 0x272   :  { %v1490_v50 = vsel %vm1476_vm13, %v1487_v54, %v1489_v3  ;;  %v13074_v25 = vmul.u32.u64.low %v13020_v11, %v1486_v8  ;;  %v13075_v63 = vmul.u32.u64.high %v13020_v11, %v1486_v8, %v13074_v25  ;;  %v9755_v33 = vadd.s32 4294967169, %v3111_v56 }
 0x273   :  { %vm9746_vm5 = vcmp.lt.s32.totalorder %v9745_v10, 0  ;;  %v13081_v18 = vmul.u32.u64.low %v13020_v11, %v1490_v50  ;;  %v13082_v0 = vmul.u32.u64.high %v13020_v11, %v1490_v50, %v13081_v18  ;;  %10237 = vcosq.f32 %v1219_v46 }
 0x274   :  { %v2866_v23 = vsel %vm9746_vm5, 0, %v9745_v10  ;;  %v2882_v57 = vsel %vm2797_vm11, %v2881_v38, %v12997_v39  ;;  %v3117_v32 = vadd.s32 1, %v9755_v33  ;;  %v1498_v21 = vmul.u32 %v13020_v11, %v1482_v47 }
 0x275   :  { %v2867_v61 = vsub.s32 32, %v2866_v23  ;;  %v2868_v59 = vshll.u32 %v13016_v24, %v2866_v23  ;;  %v2871_v49 = vsub.s32 4294967266, %v2866_v23  ;;  %v13091_v35 = vsel %vm12993_vm9, 0, %v1218_v37 }
 0x276   :  { %15714 = vst [vmem:[#allocation84_spill] sm:$0xff] %v13091_v35  ;;  %v15715_v29 = vand.u32 2147483647, %v12778_v14  ;;  %v1501_v22 = vadd.s32 1, %v13075_v63  ;;  %vm3118_vm8 = vcmp.gt.s32.totalorder %v3117_v32, 0  ;;  %9929 = vmatmul.mubr.msk.bf16.gmra.mxu0 %vm7386_vm3, %v13107_v52  ;;  %vm1500_vm9 = vc.u32 %v13082_v0, %v13074_v25 }
 0x277   :  { %v2869_v39 = vshrl.u32 %v2851_v53, %v2867_v61  ;;  %v2872_v38 = vadd.s32 127, %v2871_v49  ;;  %v15496_v37 = vand.u32 2147483647, %v13018_v43  ;;  %v3119_v54 = vsel %vm3118_vm8, %v3117_v32, 0  ;;  %7792 = vmatprep.mubr.bf16.mxu0 %v15590_v9  ;;  %v13129_v49 = vld [vmem:[#allocation2 + $0x78] sm:$0xff] }
 0x278   :  { %vm13095_vm6 = vcmp.le.f32.partialorder %v15715_v29, 0.7853982  ;;  %v1502_v11 = vsel %vm1500_vm9, %v1501_v22, %v13075_v63  ;;  %v1224_v13 = vadd.s32 3, %v13091_v35  ;;  %10239 = vsinq.f32 %v1219_v46  ;;  %15719 = vst [vmem:[#allocation86_spill] sm:$0xff] %v13129_v49 }
 0x279   :  { %v13102_v24 = vsel %vm13095_vm6, 0, %v2882_v57  ;;  %v2870_v60 = vor.u32 %v2869_v39, %v2868_v59  ;;  %v2873_v56 = vshll.u32 %v2872_v38, 23  ;;  %v1503_v10 = vadd.s32 %v1502_v11, %v1498_v21 }
 0x27a   :  { %15718 = vst [vmem:[#allocation85_spill] sm:$0xff] %v13102_v24  ;;  %v2888_v47 = vadd.s32 3, %v13102_v24  ;;  %v3121_v8 = vand.u32 31, %v3119_v54  ;;  %v3114_v63 = vand.u32 8388607, %v15496_v37  ;;  %v13120_v18 = vand.u32 3, %v1224_v13 }
 0x27b   :  { %v2874_v3 = vor.u32 4788187, %v2873_v56  ;;  %v2877_v50 = vcvt.s32.f32 %v2870_v60  ;;  %v1504_v33 = vadd.s32 536870912, %v1503_v10  ;;  %v3120_v11 = vshrl.u32 %v3119_v54, 5 }
 0x27c   :  { %v3122_v53 = vsub.s32 32, %v3121_v8  ;;  %v13124_v32 = vand.u32 3, %v2888_v47  ;;  %v3124_v61 = vshll.u32 %v15601_v42, %v3121_v8  ;;  %v3127_v59 = vshll.u32 %v15596_v34, %v3121_v8 }
 0x27d   :  { %v2875_v23 = vand.u32 2147483647, %v2874_v3  ;;  %v13122_v57 = vshrl.u32 %v1504_v33, 30  ;;  %v3130_v39 = vshll.u32 %v15598_v7, %v3121_v8  ;;  %v3115_v38 = vor.u32 8388608, %v3114_v63 }
 0x27e   :  { %v3125_v46 = vshrl.u32 %v15596_v34, %v3122_v53  ;;  %v3128_v22 = vshrl.u32 %v15598_v7, %v3122_v53  ;;  %v3131_v13 = vshrl.u32 %v15599_v12, %v3122_v53  ;;  %v3133_v60 = vshll.u32 %v15599_v12, %v3121_v8 }
 0x27f   :  { %v2878_v21 = vmul.f32 %v2877_v50, %v2875_v23  ;;  %v1506_v29 = vshll.u32 %v13122_v57, 30  ;;  %v3134_v33 = vshrl.u32 %v15607_v44, %v3122_v53  ;;  %v1654_v50 = vand.u32 2139095040, %v13129_v49 }
 0x280   :  { %v13136_v56 = vpop.eup %10237  ;;  %v3123_v23 = vshrl.u32 %v15601_v42, %v3122_v53  ;;  %v3126_v37 = vor.u32 %v3125_v46, %v3124_v61  ;;  %v3136_v24 = vshll.u32 %v15607_v44, %v3121_v8  ;;  %v3137_v54 = vshrl.u32 %v15602_v19, %v3122_v53 }
 0x281   :  { %15720 = vst [vmem:[#allocation87_spill] sm:$0xff] %v13136_v56  ;;  %v2879_v47 = vxor.u32 2147483648, %v2878_v21  ;;  %v13138_v3 = vsub.s32 %v1503_v10, %v1506_v29  ;;  %vm1227_vm13 = vcmp.eq.s32.totalorder %v13120_v18, 0  ;;  %vm1230_vm14 = vcmp.eq.s32.totalorder %v13120_v18, 2 }
 0x282   :  { %v3129_v29 = vor.u32 %v3128_v22, %v3127_v59  ;;  %v3132_v35 = vor.u32 %v3131_v13, %v3130_v39  ;;  %v3135_v61 = vor.u32 %v3134_v33, %v3133_v60  ;;  %v3138_v46 = vor.u32 %v3137_v54, %v3136_v24 }
 0x283   :  { %v2880_v63 = vsel %vm2797_vm11, %v2879_v47, %v2878_v21  ;;  %v1509_v10 = vsub.s32 0, %v13138_v3  ;;  %vm3139_vm5 = vcmp.lt.s32.totalorder %v3120_v11, 1  ;;  %v15506_v8 = vxor.u32 2147483648, %v13136_v56 }
 0x284   :  { %v2883_v36 = vsel %vm13095_vm6, %v12778_v14, %v2880_v63  ;;  %v3155_v62 = vshll.u32 %v3115_v38, 8  ;;  %vm3141_vm8 = vcmp.lt.s32.totalorder %v3120_v11, 3  ;;  %vm3142_vm11 = vcmp.lt.s32.totalorder %v3120_v11, 4 }
 0x285   :  { %10241 = vcosq.f32 %v2883_v36  ;;  %v9692_v53 = vmin.u32 %v1509_v10, %v13138_v3  ;;  %v1655_v21 = vshrl.u32 %v1654_v50, 23  ;;  %v13155_v47 = vpop.eup %10239  ;;  %vm3140_vm9 = vcmp.lt.s32.totalorder %v3120_v11, 2 }
 0x286   :  { %10243 = vsinq.f32 %v2883_v36  ;;  %15721 = vst [vmem:[#allocation88_spill] sm:$0xff] %v13155_v47  ;;  %v3143_v26 = vsel %vm3139_vm5, %v3123_v23, %v3126_v37  ;;  %v3147_v22 = vsel %vm3139_vm5, %v3126_v37, %v3129_v29  ;;  %v3144_v24 = vsel %vm3142_vm11, %v3132_v35, 2102212464 }
 0x287   :  { %v1511_v59 = vclz %v9692_v53  ;;  %v3148_v39 = vsel %vm3142_vm11, %v3135_v61, 920167782  ;;  %v3151_v13 = vsel %vm3139_vm5, %v3129_v29, %v3132_v35  ;;  %v3152_v60 = vsel %vm3142_vm11, %v3138_v46, 1326507024 }
 0x288   :  { %vm15522_vm6 = vweird.f32 %v12673_v40  ;;  %v3145_v36 = vsel %vm3141_vm8, %v3129_v29, %v3144_v24  ;;  %v3149_v33 = vsel %vm3141_vm8, %v3132_v35, %v3148_v39  ;;  %v3153_v50 = vsel %vm3141_vm8, %v3135_v61, %v3152_v60 }
 0x289   :  { %v9693_v38 = vadd.s32 4294967294, %v1511_v59  ;;  %v15507_v54 = vxor.u32 2147483648, %v13155_v47  ;;  %v3150_v23 = vsel %vm3140_vm9, %v3147_v22, %v3149_v33  ;;  %v3154_v37 = vsel %vm3140_vm9, %v3151_v13, %v3153_v50 }
 0x28a   :  { %v9699_v63 = vadd.s32 4294967169, %v1655_v21  ;;  %v1499_v10 = vadd.s32 %v13074_v25, %v13082_v0  ;;  %v13169_v46 = vmul.u32.u64.low %v3155_v62, %v3154_v37  ;;  %v13170_v53 = vmul.u32.u64.high %v3155_v62, %v3154_v37, %v13169_v46 }
 0x28b   :  { %vm9694_vm5 = vcmp.lt.s32.totalorder %v9693_v38, 0  ;;  %v3146_v29 = vsel %vm3140_vm9, %v3143_v26, %v3145_v36  ;;  %v13173_v35 = vmul.u32.u64.low %v3155_v62, %v3150_v23  ;;  %v13174_v24 = vmul.u32.u64.high %v3155_v62, %v3150_v23, %v13173_v35 }
 0x28c   :  { %v1514_v59 = vsel %vm9694_vm5, 0, %v9693_v38  ;;  %v1661_v13 = vadd.s32 1, %v9699_v63  ;;  %vm1226_vm8 = vcmp.lt.s32.totalorder %v13120_v18, 2  ;;  %v1229_v25 = vsel %vm1227_vm13, %v13136_v56, %v15507_v54 }
 0x28d   :  { %v1515_v61 = vsub.s32 32, %v1514_v59  ;;  %v1516_v22 = vshll.u32 %v13138_v3, %v1514_v59  ;;  %v1519_v39 = vsub.s32 4294967266, %v1514_v59  ;;  %v1232_v0 = vsel %vm1230_vm14, %v15506_v8, %v13155_v47 }
 0x28e   :  { %v15508_v11 = vand.u32 2147483647, %v13129_v49  ;;  %v3162_v26 = vmul.u32 %v3155_v62, %v3146_v29  ;;  %vm3164_vm11 = vc.u32 %v13170_v53, %v13173_v35  ;;  %vm15520_vm9 = vweird.f32 %v12778_v14 }
 0x28f   :  { %v1517_v21 = vshrl.u32 %v1499_v10, %v1515_v61  ;;  %v1520_v3 = vadd.s32 127, %v1519_v39  ;;  %vm2890_vm5 = vcmp.lt.s32.totalorder %v13124_v32, 2  ;;  %v3165_v60 = vadd.s32 1, %v13174_v24 }
 0x290   :  { %vm1662_vm13 = vcmp.gt.s32.totalorder %v1661_v13, 0  ;;  %v1233_v38 = vsel %vm1226_vm8, %v1229_v25, %v1232_v0  ;;  %vm2894_vm14 = vcmp.eq.s32.totalorder %v13124_v32, 2  ;;  %vm1445_vm15 = vcmp.lt.s32.totalorder %v12886_v55, 0 }
 0x291   :  { %v1518_v36 = vor.u32 %v1517_v21, %v1516_v22  ;;  %v1521_v33 = vshll.u32 %v1520_v3, 23  ;;  %v1663_v18 = vsel %vm1662_vm13, %v1661_v13, 0  ;;  %v3166_v62 = vsel %vm3164_vm11, %v3165_v60, %v13174_v24 }
 0x292   :  { %v13195_v50 = vpop.eup %10241  ;;  %v1658_v23 = vand.u32 8388607, %v15508_v11  ;;  %v1665_v37 = vand.u32 31, %v1663_v18  ;;  %vm2891_vm4 = vcmp.eq.s32.totalorder %v13124_v32, 0  ;;  %v3167_v59 = vadd.s32 %v3166_v62, %v3162_v26  ;;  %v13223_v62 = vld [vmem:[#allocation2 + $0xf8] sm:$0xf] }
 0x293   :  { %15722 = vst [vmem:[#allocation89_spill] sm:$0xff] %v13195_v50  ;;  %v13202_v63 = vpop.eup %10243  ;;  %v15504_v10 = vxor.u32 2147483648, %v13195_v50  ;;  %v1522_v46 = vor.u32 4788187, %v1521_v33  ;;  %v1234_v29 = vsel %vm15522_vm6, nan, %v1233_v38  ;;  %v1529_v22 = vsub.s32 4, %v13122_v57 }
 0x294   :  { %15723 = vst [vmem:[#allocation90_spill] sm:$0xff] %v13202_v63  ;;  %v15505_v61 = vxor.u32 2147483648, %v13202_v63  ;;  %v1666_v24 = vsub.s32 32, %v1665_v37  ;;  %v1525_v25 = vcvt.s32.f32 %v1518_v36  ;;  %v3168_v0 = vadd.s32 536870912, %v3167_v59  ;;  %15724 = vst [vmem:[#allocation91_spill] sm:$0xff] %v13223_v62 }
 0x295   :  { %v2896_v39 = vsel %vm2894_vm14, %v15504_v10, %v13202_v63  ;;  %v1523_v13 = vand.u32 2147483647, %v1522_v46  ;;  %v1659_v3 = vor.u32 8388608, %v1658_v23  ;;  %v13216_v26 = vshrl.u32 %v1663_v18, 5 }
 0x296   :  { %v2893_v21 = vsel %vm2891_vm4, %v13195_v50, %v15505_v61  ;;  %v1668_v60 = vshll.u32 %v15601_v42, %v1665_v37  ;;  %v13221_v33 = vshrl.u32 %v3168_v0, 30  ;;  %v1671_v46 = vshll.u32 %v15596_v34, %v1665_v37 }
 0x297   :  { %v2897_v38 = vsel %vm2890_vm5, %v2893_v21, %v2896_v39  ;;  %v1674_v36 = vshll.u32 %v15598_v7, %v1665_v37  ;;  %v1669_v23 = vshrl.u32 %v15596_v34, %v1666_v24  ;;  %v1672_v18 = vshrl.u32 %v15598_v7, %v1666_v24 }
 0x298   :  { %v2898_v10 = vsel %vm15520_vm9, nan, %v2897_v38  ;;  %v1677_v61 = vshll.u32 %v15599_v12, %v1665_v37  ;;  %v15725_v32 = vand.u32 2147483647, %v12886_v55  ;;  %v1526_v0 = vmul.f32 %v1525_v25, %v1523_v13 }
 0x299   :  { %v3429_v8 = vpack.c.bf16 %v2898_v10, %v1234_v29  ;;  %v3170_v21 = vshll.u32 %v13221_v33, 30  ;;  %v1675_v54 = vshrl.u32 %v15599_v12, %v1666_v24  ;;  %v1678_v38 = vshrl.u32 %v15607_v44, %v1666_v24 }
 0x29a   :  { %vm13234_vm4 = vcmp.le.f32.partialorder %v15725_v32, 0.7853982  ;;  %v1680_v11 = vshll.u32 %v15607_v44, %v1665_v37  ;;  %v1681_v14 = vshrl.u32 %v15602_v19, %v1666_v24  ;;  %v3318_v40 = vand.u32 2139095040, %v13223_v62 }
 0x29b   :  { %v7425_v10 = vsel %vm7393_vm2, %v3429_v8, 0  ;;  %v1530_v29 = vsel %vm1445_vm15, %v1529_v22, %v13122_v57  ;;  %v13248_v32 = vsub.s32 %v3167_v59, %v3170_v21  ;;  %v13250_v13 = vshll.u32 %v1659_v3, 8 }
 0x29c   :  { %7722 = vmatpush1.bf16.msra.mxu1 %v7425_v10  ;;  %v1667_v25 = vshrl.u32 %v15601_v42, %v1666_v24  ;;  %v1670_v50 = vor.u32 %v1669_v23, %v1668_v60  ;;  %v1673_v63 = vor.u32 %v1672_v18, %v1671_v46  ;;  %v1679_v37 = vor.u32 %v1678_v38, %v1677_v61 }
 0x29d   :  { %v1527_v56 = vxor.u32 2147483648, %v1526_v0  ;;  %v3173_v47 = vsub.s32 0, %v13248_v32  ;;  %v1676_v20 = vor.u32 %v1675_v54, %v1674_v36  ;;  %vm1683_vm8 = vcmp.lt.s32.totalorder %v13216_v26, 1 }
 0x29e   :  { %v1682_v8 = vor.u32 %v1681_v14, %v1680_v11  ;;  %vm1686_vm11 = vcmp.lt.s32.totalorder %v13216_v26, 4  ;;  %v15521_v57 = vand.u32 2147483647, %v13223_v62  ;;  %v3319_v59 = vshrl.u32 %v3318_v40, 23 }
 0x29f   :  { %9931 = vmatmul.mubr.msk.bf16.vlgmr.msra.gmra.mxu1 %vm7386_vm3, %v13051_v30  ;;  %vm3109_vm5 = vcmp.lt.s32.totalorder %v13018_v43, 0  ;;  %v9756_v22 = vmin.u32 %v3173_v47, %v13248_v32  ;;  %vm1684_vm13 = vcmp.lt.s32.totalorder %v13216_v26, 2  ;;  %vm1685_vm14 = vcmp.lt.s32.totalorder %v13216_v26, 3 }
 0x2a0   :  { %v1688_v54 = vsel %vm1686_vm11, %v1676_v20, 2102212464  ;;  %7749 = vmatprep.mubr.bf16.mxu1 %v15590_v9  ;;  %v1687_v14 = vsel %vm1683_vm8, %v1667_v25, %v1670_v50  ;;  %v1691_v30 = vsel %vm1683_vm8, %v1670_v50, %v1673_v63  ;;  %v1692_v47 = vsel %vm1686_vm11, %v1679_v37, 920167782 }
 0x2a1   :  { %v1689_v40 = vsel %vm1685_vm14, %v1673_v63, %v1688_v54  ;;  %v1528_v11 = vsel %vm1445_vm15, %v1527_v56, %v1526_v0  ;;  %v3163_v61 = vadd.s32 %v13173_v35, %v13170_v53  ;;  %v3175_v24 = vclz %v9756_v22 }
 0x2a2   :  { %v1695_v3 = vsel %vm1683_vm8, %v1673_v63, %v1676_v20  ;;  %v15728_v60 = vand.u32 2147483647, %v13018_v43  ;;  %v3193_v50 = vsub.s32 4, %v13221_v33  ;;  %v1693_v36 = vsel %vm1685_vm14, %v1676_v20, %v1692_v47 }
 0x2a3   :  { %v1696_v56 = vsel %vm1686_vm11, %v1682_v8, 1326507024  ;;  %v9763_v23 = vadd.s32 4294967169, %v3319_v59  ;;  %v9757_v53 = vadd.s32 4294967294, %v3175_v24  ;;  %v1690_v35 = vsel %vm1684_vm13, %v1687_v14, %v1689_v40 }
 0x2a4   :  { %vm13282_vm9 = vcmp.le.f32.partialorder %v15728_v60, 0.7853982  ;;  %v1694_v63 = vsel %vm1684_vm13, %v1691_v30, %v1693_v36  ;;  %v1697_v18 = vsel %vm1685_vm14, %v1679_v37, %v1696_v56  ;;  %v1531_v0 = vsel %vm13234_vm4, %v12886_v55, %v1528_v11 }
 0x2a5   :  { %v1698_v20 = vsel %vm1684_vm13, %v1695_v3, %v1697_v18  ;;  %v13303_v21 = vmul.u32.u64.low %v13250_v13, %v1694_v63  ;;  %v13304_v38 = vmul.u32.u64.high %v13250_v13, %v1694_v63, %v13303_v21  ;;  %vm9758_vm15 = vcmp.lt.s32.totalorder %v9757_v53, 0 }
 0x2a6   :  { %v13307_v10 = vmul.u32.u64.low %v13250_v13, %v1698_v20  ;;  %v13308_v25 = vmul.u32.u64.high %v13250_v13, %v1698_v20, %v13307_v10  ;;  %v3325_v8 = vadd.s32 1, %v9763_v23  ;;  %v13312_v37 = vsel %vm13234_vm4, 0, %v1530_v29 }
 0x2a7   :  { %v3178_v59 = vsel %vm9758_vm15, 0, %v9757_v53  ;;  %v1706_v22 = vmul.u32 %v13250_v13, %v1690_v35  ;;  %v3322_v26 = vand.u32 8388607, %v15521_v57  ;;  %9932 = vmatmul.mubr.msk.bf16.gmra.mxu1 %vm7386_vm3, %v13107_v52  ;;  %10245 = vcosq.f32 %v1531_v0  ;;  %v13332_v53 = vld [vmem:[#allocation2 + $0x60] sm:$0xff] }
 0x2a8   :  { %v3179_v54 = vsub.s32 32, %v3178_v59  ;;  %v3180_v14 = vshll.u32 %v13248_v32, %v3178_v59  ;;  %v3183_v40 = vsub.s32 4294967266, %v3178_v59  ;;  %vm3326_vm8 = vcmp.gt.s32.totalorder %v3325_v8, 0  ;;  %7845 = vmatprep.mubr.bf16.mxu1 %v15590_v9 }
 0x2a9   :  { %v3194_v39 = vsel %vm3109_vm5, %v3193_v50, %v13221_v33  ;;  %v1709_v29 = vadd.s32 1, %v13304_v38  ;;  %v3327_v30 = vsel %vm3326_vm8, %v3325_v8, 0  ;;  %10247 = vsinq.f32 %v1531_v0 }
 0x2aa   :  { %v3181_v13 = vshrl.u32 %v3163_v61, %v3179_v54  ;;  %v3184_v47 = vadd.s32 127, %v3183_v40  ;;  %vm1708_vm4 = vc.u32 %v13308_v25, %v13303_v21  ;;  %v1536_v52 = vadd.s32 3, %v13312_v37 }
 0x2ab   :  { %v1710_v32 = vsel %vm1708_vm4, %v1709_v29, %v13304_v38  ;;  %v3323_v11 = vor.u32 8388608, %v3322_v26  ;;  %v3329_v24 = vand.u32 31, %v3327_v30  ;;  %v13330_v33 = vsel %vm13282_vm9, 0, %v3194_v39 }
 0x2ac   :  { %v3182_v3 = vor.u32 %v3181_v13, %v3180_v14  ;;  %v3185_v60 = vshll.u32 %v3184_v47, 23  ;;  %15731 = vst [vmem:[#allocation92_spill] sm:$0xff] %v13330_v33  ;;  %v1711_v50 = vadd.s32 %v1710_v32, %v1706_v22  ;;  %v13334_v35 = vand.u32 3, %v1536_v52 }
 0x2ad   :  { %v3330_v36 = vsub.s32 32, %v3329_v24  ;;  %v13337_v63 = vadd.s32 3, %v13330_v33  ;;  %v13339_v18 = vshll.u32 %v3323_v11, 8  ;;  %v15526_v0 = vand.u32 2147483647, %v13332_v53 }
 0x2ae   :  { %v3186_v56 = vor.u32 4788187, %v3185_v60  ;;  %v3189_v23 = vcvt.s32.f32 %v3182_v3  ;;  %v1712_v61 = vadd.s32 536870912, %v1711_v50  ;;  %v3332_v10 = vshll.u32 %v15601_v42, %v3329_v24 }
 0x2af   :  { %v3335_v8 = vshll.u32 %v15596_v34, %v3329_v24  ;;  %v3333_v59 = vshrl.u32 %v15596_v34, %v3330_v36  ;;  %v3336_v22 = vshrl.u32 %v15598_v7, %v3330_v36  ;;  %v3338_v26 = vshll.u32 %v15598_v7, %v3329_v24 }
 0x2b0   :  { %v3187_v20 = vand.u32 2147483647, %v3186_v56  ;;  %v13342_v38 = vshrl.u32 %v1712_v61, 30  ;;  %v3339_v54 = vshrl.u32 %v15599_v12, %v3330_v36  ;;  %v3328_v39 = vshrl.u32 %v3327_v30, 5 }
 0x2b1   :  { %v3341_v29 = vshll.u32 %v15599_v12, %v3329_v24  ;;  %vm1542_vm11 = vcmp.eq.s32.totalorder %v13334_v35, 2  ;;  %v13354_v13 = vadd.s32 %v13303_v21, %v13308_v25  ;;  %v3342_v47 = vshrl.u32 %v15607_v44, %v3330_v36 }
 0x2b2   :  { %v3190_v14 = vmul.f32 %v3189_v23, %v3187_v20  ;;  %v1714_v40 = vshll.u32 %v13342_v38, 30  ;;  %v3344_v52 = vshll.u32 %v15607_v44, %v3329_v24  ;;  %v3345_v32 = vshrl.u32 %v15602_v19, %v3330_v36 }
 0x2b3   :  { %vm1539_vm13 = vcmp.eq.s32.totalorder %v13334_v35, 0  ;;  %v3331_v30 = vshrl.u32 %v15601_v42, %v3330_v36  ;;  %v1342_v60 = vand.u32 2139095040, %v13332_v53  ;;  %v3334_v56 = vor.u32 %v3333_v59, %v3332_v10 }
 0x2b4   :  { %v3191_v11 = vxor.u32 2147483648, %v3190_v14  ;;  %v13360_v3 = vsub.s32 %v1711_v50, %v1714_v40  ;;  %v3337_v23 = vor.u32 %v3336_v22, %v3335_v8  ;;  %v3340_v61 = vor.u32 %v3339_v54, %v3338_v26  ;;  %v13364_v25 = vpop.eup %10245 }
 0x2b5   :  { %v3343_v21 = vor.u32 %v3342_v47, %v3341_v29  ;;  %15732 = vst [vmem:[#allocation93_spill] sm:$0xff] %v13364_v25  ;;  %vm1653_vm14 = vcmp.lt.s32.totalorder %v13129_v49, 0  ;;  %v3346_v57 = vor.u32 %v3345_v32, %v3344_v52  ;;  %vm3347_vm15 = vcmp.lt.s32.totalorder %v3328_v39, 1 }
 0x2b6   :  { %v3192_v24 = vsel %vm3109_vm5, %v3191_v11, %v3190_v14  ;;  %v1717_v20 = vsub.s32 0, %v13360_v3  ;;  %v13370_v50 = vpop.eup %10247  ;;  %vm3348_vm8 = vcmp.lt.s32.totalorder %v3328_v39, 2  ;;  %vm3349_vm4 = vcmp.lt.s32.totalorder %v3328_v39, 3 }
 0x2b7   :  { %15733 = vst [vmem:[#allocation94_spill] sm:$0xff] %v13370_v50  ;;  %v3195_v36 = vsel %vm13282_vm9, %v13018_v43, %v3192_v24  ;;  %vm3350_vm6 = vcmp.lt.s32.totalorder %v3328_v39, 4  ;;  %vm1538_vm0 = vcmp.lt.s32.totalorder %v13334_v35, 2  ;;  %v3351_v8 = vsel %vm3347_vm15, %v3331_v30, %v3334_v56 }
 0x2b8   :  { %10249 = vcosq.f32 %v3195_v36  ;;  %v9700_v10 = vmin.u32 %v1717_v20, %v13360_v3  ;;  %v3352_v59 = vsel %vm3350_vm6, %v3340_v61, 2102212464  ;;  %v3355_v26 = vsel %vm3347_vm15, %v3334_v56, %v3337_v23 }
 0x2b9   :  { %10251 = vsinq.f32 %v3195_v36  ;;  %v3353_v22 = vsel %vm3349_vm4, %v3337_v23, %v3352_v59  ;;  %v3356_v46 = vsel %vm3350_vm6, %v3343_v21, 920167782  ;;  %v15525_v54 = vxor.u32 2147483648, %v13370_v50 }
 0x2ba   :  { %v15524_v14 = vxor.u32 2147483648, %v13364_v25  ;;  %v1719_v40 = vclz %v9700_v10  ;;  %v3359_v29 = vsel %vm3347_vm15, %v3337_v23, %v3340_v61  ;;  %v1737_v47 = vsub.s32 4, %v13342_v38 }
 0x2bb   :  { %v3357_v52 = vsel %vm3349_vm4, %v3340_v61, %v3356_v46  ;;  %v3360_v32 = vsel %vm3350_vm6, %v3346_v57, 1326507024  ;;  %v1343_v11 = vshrl.u32 %v1342_v60, 23  ;;  %vm15544_vm9 = vweird.f32 %v12886_v55 }
 0x2bc   :  { %v9701_v30 = vadd.s32 4294967294, %v1719_v40  ;;  %v3354_v56 = vsel %vm3348_vm8, %v3351_v8, %v3353_v22  ;;  %v3358_v24 = vsel %vm3348_vm8, %v3355_v26, %v3357_v52  ;;  %v3361_v20 = vsel %vm3349_vm4, %v3343_v21, %v3360_v32 }
 0x2bd   :  { %v3362_v36 = vsel %vm3348_vm8, %v3359_v29, %v3361_v20  ;;  %v13394_v23 = vmul.u32.u64.low %v13339_v18, %v3358_v24  ;;  %v13395_v10 = vmul.u32.u64.high %v13339_v18, %v3358_v24, %v13394_v23  ;;  %v9687_v61 = vadd.s32 4294967169, %v1343_v11 }
 0x2be   :  { %v1544_v57 = vsel %vm1542_vm11, %v15524_v14, %v13370_v50  ;;  %vm9702_vm6 = vcmp.lt.s32.totalorder %v9701_v30, 0  ;;  %v13404_v60 = vmul.u32.u64.low %v13339_v18, %v3362_v36  ;;  %v13405_v8 = vmul.u32.u64.high %v13339_v18, %v3362_v36, %v13404_v60 }
 0x2bf   :  { %v1541_v39 = vsel %vm1539_vm13, %v13364_v25, %v15525_v54  ;;  %v1722_v21 = vsel %vm9702_vm6, 0, %v9701_v30  ;;  %v1738_v59 = vsel %vm1653_vm14, %v1737_v47, %v13342_v38  ;;  %v1349_v22 = vadd.s32 1, %v9687_v61 }
 0x2c0   :  { %v1723_v26 = vsub.s32 32, %v1722_v21  ;;  %v1724_v46 = vshll.u32 %v13360_v3, %v1722_v21  ;;  %v1727_v40 = vsub.s32 4294967266, %v1722_v21  ;;  %v3370_v29 = vmul.u32 %v13339_v18, %v3354_v56 }
 0x2c1   :  { %vm15543_vm5 = vweird.f32 %v13018_v43  ;;  %v3201_v52 = vand.u32 3, %v13337_v63  ;;  %v3373_v32 = vadd.s32 1, %v13395_v10  ;;  %vm1350_vm11 = vcmp.gt.s32.totalorder %v1349_v22, 0 }
 0x2c2   :  { %v15734_v11 = vand.u32 2147483647, %v13129_v49  ;;  %v1725_v38 = vshrl.u32 %v13354_v13, %v1723_v26  ;;  %v1728_v47 = vadd.s32 127, %v1727_v40  ;;  %vm3372_vm15 = vc.u32 %v13405_v8, %v13394_v23 }
 0x2c3   :  { %v1545_v18 = vsel %vm1538_vm0, %v1541_v39, %v1544_v57  ;;  %v3374_v3 = vsel %vm3372_vm15, %v3373_v32, %v13395_v10  ;;  %v1351_v56 = vsel %vm1350_vm11, %v1349_v22, 0  ;;  %v1346_v13 = vand.u32 8388607, %v15526_v0 }
 0x2c4   :  { %vm13422_vm13 = vcmp.le.f32.partialorder %v15734_v11, 0.7853982  ;;  %v1726_v24 = vor.u32 %v1725_v38, %v1724_v46  ;;  %v1729_v20 = vshll.u32 %v1728_v47, 23  ;;  %v3375_v36 = vadd.s32 %v3374_v3, %v3370_v29 }
 0x2c5   :  { %v13433_v63 = vsel %vm13422_vm13, 0, %v1738_v59  ;;  %v13438_v61 = vpop.eup %10249  ;;  %vm3202_vm8 = vcmp.lt.s32.totalorder %v3201_v52, 2  ;;  %vm3203_vm4 = vcmp.eq.s32.totalorder %v3201_v52, 0  ;;  %vm3206_vm6 = vcmp.eq.s32.totalorder %v3201_v52, 2  ;;  %v13443_v59 = vld [vmem:[#allocation2 + $0xe0] sm:$0xf] }
 0x2c6   :  { %15737 = vst [vmem:[#allocation95_spill] sm:$0xff] %v13433_v63  ;;  %15738 = vst [vmem:[#allocation96_spill] sm:$0xff] %v13438_v61  ;;  %v1353_v35 = vand.u32 31, %v1351_v56  ;;  %v13440_v57 = vpop.eup %10251  ;;  %v15527_v60 = vxor.u32 2147483648, %v13438_v61  ;;  %v1730_v39 = vor.u32 4788187, %v1729_v20  ;;  %v1733_v21 = vcvt.s32.f32 %v1726_v24 }
 0x2c7   :  { %15739 = vst [vmem:[#allocation97_spill] sm:$0xff] %v13440_v57  ;;  %v3376_v10 = vadd.s32 536870912, %v3375_v36  ;;  %v1546_v22 = vsel %vm15544_vm9, nan, %v1545_v18  ;;  %v15528_v26 = vxor.u32 2147483648, %v13440_v57  ;;  %v13449_v46 = vadd.s32 3, %v13433_v63 }
 0x2c8   :  { %v1354_v40 = vsub.s32 32, %v1353_v35  ;;  %v3208_v29 = vsel %vm3206_vm6, %v15527_v60, %v13440_v57  ;;  %v1731_v32 = vand.u32 2147483647, %v1730_v39  ;;  %v1347_v38 = vor.u32 8388608, %v1346_v13 }
 0x2c9   :  { %v3377_v11 = vshrl.u32 %v3376_v10, 30  ;;  %v3205_v47 = vsel %vm3203_vm4, %v13438_v61, %v15528_v26  ;;  %v1352_v3 = vshrl.u32 %v1351_v56, 5  ;;  %v1356_v18 = vshll.u32 %v15601_v42, %v1353_v35 }
 0x2ca   :  { %v3006_v24 = vand.u32 2139095040, %v13443_v59  ;;  %v3209_v20 = vsel %vm3202_vm8, %v3205_v47, %v3208_v29  ;;  %v1734_v14 = vmul.f32 %v1733_v21, %v1731_v32  ;;  %v1357_v0 = vshrl.u32 %v15596_v34, %v1354_v40 }
 0x2cb   :  { %v3378_v54 = vshll.u32 %v3377_v11, 30  ;;  %v3210_v39 = vsel %vm15543_vm5, nan, %v3209_v20  ;;  %v1359_v13 = vshll.u32 %v15596_v34, %v1353_v35  ;;  %v1360_v10 = vshrl.u32 %v15598_v7, %v1354_v40 }
 0x2cc   :  { %v1362_v60 = vshll.u32 %v15598_v7, %v1353_v35  ;;  %v3432_v56 = vpack.c.bf16 %v3210_v39, %v1546_v22  ;;  %v1735_v26 = vxor.u32 2147483648, %v1734_v14  ;;  %vm3317_vm0 = vcmp.lt.s32.totalorder %v13223_v62, 0 }
 0x2cd   :  { %v13468_v63 = vsub.s32 %v3375_v36, %v3378_v54  ;;  %v1363_v52 = vshrl.u32 %v15599_v12, %v1354_v40  ;;  %v3371_v21 = vadd.s32 %v13394_v23, %v13405_v8  ;;  %v1355_v29 = vshrl.u32 %v15601_v42, %v1354_v40 }
 0x2ce   :  { %v1365_v32 = vshll.u32 %v15599_v12, %v1353_v35  ;;  %v1366_v47 = vshrl.u32 %v15607_v44, %v1354_v40  ;;  %9933 = vmatprep.subr.msk.bf16.mxu0 %vm7393_vm2, %v3432_v56  ;;  %v1736_v22 = vsel %vm1653_vm14, %v1735_v26, %v1734_v14  ;;  %v1358_v54 = vor.u32 %v1357_v0, %v1356_v18 }
 0x2cf   :  { %v3381_v20 = vsub.s32 0, %v13468_v63  ;;  %v1368_v36 = vshll.u32 %v15607_v44, %v1353_v35  ;;  %v1739_v23 = vsel %vm13422_vm13, %v13129_v49, %v1736_v22  ;;  %v1361_v8 = vor.u32 %v1360_v10, %v1359_v13 }
 0x2d0   :  { %v1367_v39 = vor.u32 %v1366_v47, %v1365_v32  ;;  %v1369_v43 = vshrl.u32 %v15602_v19, %v1354_v40  ;;  %v15740_v55 = vand.u32 2147483647, %v13223_v62  ;;  %v1364_v26 = vor.u32 %v1363_v52, %v1362_v60 }
 0x2d1   :  { %v9764_v14 = vmin.u32 %v3381_v20, %v13468_v63  ;;  %vm1371_vm14 = vcmp.lt.s32.totalorder %v1352_v3, 1  ;;  %v3007_v0 = vshrl.u32 %v3006_v24, 23  ;;  %v3401_v35 = vsub.s32 4, %v3377_v11 }
 0x2d2   :  { %vm13487_vm11 = vcmp.le.f32.partialorder %v15740_v55, 0.7853982  ;;  %v1370_v18 = vor.u32 %v1369_v43, %v1368_v36  ;;  %vm1373_vm15 = vcmp.lt.s32.totalorder %v1352_v3, 3  ;;  %vm1374_vm8 = vcmp.lt.s32.totalorder %v1352_v3, 4 }
 0x2d3   :  { %10253 = vcosq.f32 %v1739_v23  ;;  %v3383_v30 = vclz %v9764_v14  ;;  %vm1372_vm13 = vcmp.lt.s32.totalorder %v1352_v3, 2  ;;  %v1387_v13 = vshll.u32 %v1347_v38, 8 }
 0x2d4   :  { %v1375_v40 = vsel %vm1371_vm14, %v1355_v29, %v1358_v54  ;;  %v1376_v10 = vsel %vm1374_vm8, %v1364_v26, 2102212464  ;;  %v1379_v55 = vsel %vm1371_vm14, %v1358_v54, %v1361_v8  ;;  %v1380_v32 = vsel %vm1374_vm8, %v1367_v39, 920167782 }
 0x2d5   :  { %v9765_v47 = vadd.s32 4294967294, %v3383_v30  ;;  %v1377_v22 = vsel %vm1373_vm15, %v1361_v8, %v1376_v10  ;;  %v1381_v60 = vsel %vm1373_vm15, %v1364_v26, %v1380_v32  ;;  %v1383_v24 = vsel %vm1371_vm14, %v1361_v8, %v1364_v26 }
 0x2d6   :  { %v3402_v43 = vsel %vm3317_vm0, %v3401_v35, %v3377_v11  ;;  %v1382_v52 = vsel %vm1372_vm13, %v1379_v55, %v1381_v60  ;;  %v1384_v20 = vsel %vm1374_vm8, %v1370_v18, 1326507024  ;;  %v9751_v38 = vadd.s32 4294967169, %v3007_v0 }
 0x2d7   :  { %vm9766_vm4 = vcmp.lt.s32.totalorder %v9765_v47, 0  ;;  %v1385_v29 = vsel %vm1373_vm15, %v1367_v39, %v1384_v20  ;;  %v13501_v36 = vmul.u32.u64.low %v1387_v13, %v1382_v52  ;;  %v13502_v54 = vmul.u32.u64.high %v1387_v13, %v1382_v52, %v13501_v36 }
 0x2d8   :  { %v3386_v14 = vsel %vm9766_vm4, 0, %v9765_v47  ;;  %v1378_v30 = vsel %vm1372_vm13, %v1375_v40, %v1377_v22  ;;  %v1386_v10 = vsel %vm1372_vm13, %v1383_v24, %v1385_v29  ;;  %v15532_v8 = vand.u32 2147483647, %v13443_v59 }
 0x2d9   :  { %v3387_v26 = vsub.s32 32, %v3386_v14  ;;  %v3388_v11 = vshll.u32 %v13468_v63, %v3386_v14  ;;  %v3391_v35 = vsub.s32 4294967266, %v3386_v14  ;;  %v3013_v18 = vadd.s32 1, %v9751_v38 }
 0x2da   :  { %10255 = vsinq.f32 %v1739_v23  ;;  %v13511_v39 = vsel %vm13487_vm11, 0, %v3402_v43  ;;  %v13513_v0 = vmul.u32.u64.low %v1387_v13, %v1386_v10  ;;  %v13514_v55 = vmul.u32.u64.high %v1387_v13, %v1386_v10, %v13513_v0  ;;  %v13522_v43 = vld [vmem:[#allocation2 + $0x70] sm:$0xff] }
 0x2db   :  { %15743 = vst [vmem:[#allocation98_spill] sm:$0xff] %v13511_v39  ;;  %v3389_v32 = vshrl.u32 %v3371_v21, %v3387_v26  ;;  %v3392_v47 = vadd.s32 127, %v3391_v35  ;;  %v1397_v3 = vadd.s32 1, %v13502_v54  ;;  %vm3014_vm6 = vcmp.gt.s32.totalorder %v3013_v18, 0 }
 0x2dc   :  { %v1394_v40 = vmul.u32 %v1387_v13, %v1378_v30  ;;  %v3015_v22 = vsel %vm3014_vm6, %v3013_v18, 0  ;;  %v3408_v63 = vadd.s32 3, %v13511_v39  ;;  %vm1396_vm14 = vc.u32 %v13514_v55, %v13501_v36 }
 0x2dd   :  { %v3390_v60 = vor.u32 %v3389_v32, %v3388_v11  ;;  %v3393_v24 = vshll.u32 %v3392_v47, 23  ;;  %v3017_v52 = vand.u32 31, %v3015_v22  ;;  %v3010_v23 = vand.u32 8388607, %v15532_v8 }
 0x2de   :  { %v13525_v21 = vand.u32 3, %v13449_v46  ;;  %v1398_v13 = vsel %vm1396_vm14, %v1397_v3, %v13502_v54  ;;  %v13530_v26 = vand.u32 3, %v3408_v63  ;;  %v1550_v11 = vand.u32 2139095040, %v13522_v43 }
 0x2df   :  { %v3394_v20 = vor.u32 4788187, %v3393_v24  ;;  %v3397_v38 = vcvt.s32.f32 %v3390_v60  ;;  %v1399_v14 = vadd.s32 %v1398_v13, %v1394_v40  ;;  %v3018_v30 = vsub.s32 32, %v3017_v52 }
 0x2e0   :  { %v13528_v29 = vpop.eup %10253  ;;  %v3011_v18 = vor.u32 8388608, %v3010_v23  ;;  %v13533_v0 = vshrl.u32 %v3015_v22, 5  ;;  %v3020_v46 = vshll.u32 %v15601_v42, %v3017_v52  ;;  %vm1747_vm15 = vcmp.eq.s32.totalorder %v13525_v21, 0 }
 0x2e1   :  { %v3395_v10 = vand.u32 2147483647, %v3394_v20  ;;  %v1400_v35 = vadd.s32 536870912, %v1399_v14  ;;  %vm1750_vm8 = vcmp.eq.s32.totalorder %v13525_v21, 2  ;;  %v3021_v32 = vshrl.u32 %v15596_v34, %v3018_v30 }
 0x2e2   :  { %v3023_v47 = vshll.u32 %v15596_v34, %v3017_v52  ;;  %v3024_v3 = vshrl.u32 %v15598_v7, %v3018_v30  ;;  %v3026_v60 = vshll.u32 %v15598_v7, %v3017_v52  ;;  %v3027_v22 = vshrl.u32 %v15599_v12, %v3018_v30 }
 0x2e3   :  { %v3398_v54 = vmul.f32 %v3397_v38, %v3395_v10  ;;  %v13541_v40 = vshrl.u32 %v1400_v35, 30  ;;  %v3029_v24 = vshll.u32 %v15599_v12, %v3017_v52  ;;  %v3030_v20 = vshrl.u32 %v15607_v44, %v3018_v30 }
 0x2e4   :  { %v1551_v38 = vshrl.u32 %v1550_v11, 23  ;;  %v3019_v10 = vshrl.u32 %v15601_v42, %v3018_v30  ;;  %v3032_v8 = vshll.u32 %v15607_v44, %v3017_v52  ;;  %v3033_v35 = vshrl.u32 %v15602_v19, %v3018_v30 }
 0x2e5   :  { %v3399_v23 = vxor.u32 2147483648, %v3398_v54  ;;  %v1402_v13 = vshll.u32 %v13541_v40, 30  ;;  %vm1746_vm13 = vcmp.lt.s32.totalorder %v13525_v21, 2  ;;  %v3022_v63 = vor.u32 %v3021_v32, %v3020_v46 }
 0x2e6   :  { %v3025_v57 = vor.u32 %v3024_v3, %v3023_v47  ;;  %v3031_v25 = vor.u32 %v3030_v20, %v3029_v24  ;;  %v3028_v33 = vor.u32 %v3027_v22, %v3026_v60  ;;  %vm3035_vm4 = vcmp.lt.s32.totalorder %v13533_v0, 1 }
 0x2e7   :  { %v13552_v39 = vpop.eup %10255  ;;  %v3400_v61 = vsel %vm3317_vm0, %v3399_v23, %v3398_v54  ;;  %v13560_v50 = vsub.s32 %v1399_v14, %v1402_v13  ;;  %v3034_v52 = vor.u32 %v3033_v35, %v3032_v8  ;;  %vm3037_vm6 = vcmp.lt.s32.totalorder %v13533_v0, 3 }
 0x2e8   :  { %v3403_v11 = vsel %vm13487_vm11, %v13223_v62, %v3400_v61  ;;  %vm3038_vm14 = vcmp.lt.s32.totalorder %v13533_v0, 4  ;;  %v15547_v30 = vxor.u32 2147483648, %v13552_v39  ;;  %vm3036_vm0 = vcmp.lt.s32.totalorder %v13533_v0, 2 }
 0x2e9   :  { %10257 = vcosq.f32 %v3403_v11  ;;  %v1405_v46 = vsub.s32 0, %v13560_v50  ;;  %vm15554_vm11 = vweird.f32 %v13129_v49  ;;  %vm1341_vm5 = vcmp.lt.s32.totalorder %v13332_v53, 0 }
 0x2ea   :  { %10259 = vsinq.f32 %v3403_v11  ;;  %v3040_v61 = vsel %vm3038_vm14, %v3028_v33, 2102212464  ;;  %v3043_v56 = vsel %vm3035_vm4, %v3022_v63, %v3025_v57  ;;  %v3044_v8 = vsel %vm3038_vm14, %v3031_v25, 920167782 }
 0x2eb   :  { %v3051_v14 = vshll.u32 %v3011_v18, 8  ;;  %v9688_v54 = vmin.u32 %v1405_v46, %v13560_v50  ;;  %v3039_v32 = vsel %vm3035_vm4, %v3019_v10, %v3022_v63  ;;  %v3045_v47 = vsel %vm3037_vm6, %v3028_v33, %v3044_v8 }
 0x2ec   :  { %v3047_v3 = vsel %vm3035_vm4, %v3025_v57, %v3028_v33  ;;  %v3041_v60 = vsel %vm3037_vm6, %v3025_v57, %v3040_v61  ;;  %v3046_v22 = vsel %vm3036_vm0, %v3043_v56, %v3045_v47  ;;  %v3048_v18 = vsel %vm3038_vm14, %v3034_v52, 1326507024 }
 0x2ed   :  { %v9695_v24 = vadd.s32 4294967169, %v1551_v38  ;;  %v1749_v63 = vsel %vm1747_vm15, %v13528_v29, %v15547_v30  ;;  %v15744_v23 = vxor.u32 2147483648, %v13528_v29  ;;  %v15745_v57 = vand.u32 2147483647, %v13332_v53 }
 0x2ee   :  { %v1407_v13 = vclz %v9688_v54  ;;  %v15548_v38 = vand.u32 2147483647, %v13522_v43  ;;  %v1425_v10 = vsub.s32 4, %v13541_v40  ;;  %v3049_v35 = vsel %vm3037_vm6, %v3031_v25, %v3048_v18 }
 0x2ef   :  { %v1752_v33 = vsel %vm1750_vm8, %v15744_v23, %v13552_v39  ;;  %vm13601_vm4 = vcmp.le.f32.partialorder %v15745_v57, 0.7853982  ;;  %v13609_v11 = vmul.u32.u64.low %v3051_v14, %v3046_v22  ;;  %v13610_v52 = vmul.u32.u64.high %v3051_v14, %v3046_v22, %v13609_v11 }
 0x2f0   :  { %v9689_v46 = vadd.s32 4294967294, %v1407_v13  ;;  %v3042_v61 = vsel %vm3036_vm0, %v3039_v32, %v3041_v60  ;;  %v3050_v56 = vsel %vm3036_vm0, %v3047_v3, %v3049_v35  ;;  %v1557_v8 = vadd.s32 1, %v9695_v24 }
 0x2f1   :  { %vm15553_vm15 = vweird.f32 %v13223_v62  ;;  %vm3410_vm8 = vcmp.lt.s32.totalorder %v13530_v26, 2  ;;  %v1395_v54 = vadd.s32 %v13501_v36, %v13514_v55  ;;  %v1753_v22 = vsel %vm1746_vm13, %v1749_v63, %v1752_v33 }
 0x2f2   :  { %v13621_v25 = vmul.u32.u64.low %v3051_v14, %v3050_v56  ;;  %v13622_v47 = vmul.u32.u64.high %v3051_v14, %v3050_v56, %v13621_v25  ;;  %vm9690_vm6 = vcmp.lt.s32.totalorder %v9689_v46, 0  ;;  %v13628_v32 = vand.u32 8388607, %v15548_v38 }
 0x2f3   :  { %vm1558_vm14 = vcmp.gt.s32.totalorder %v1557_v8, 0  ;;  %v1410_v0 = vsel %vm9690_vm6, 0, %v9689_v46  ;;  %v3058_v3 = vmul.u32 %v3051_v14, %v3042_v61  ;;  %v3061_v60 = vadd.s32 1, %v13610_v52  ;;  %v13652_v25 = vld [vmem:[#allocation2 + $0xf0] sm:$0xf] }
 0x2f4   :  { %v1559_v18 = vsel %vm1558_vm14, %v1557_v8, 0  ;;  %v1411_v24 = vsub.s32 32, %v1410_v0  ;;  %v1412_v36 = vshll.u32 %v13560_v50, %v1410_v0  ;;  %v1415_v55 = vsub.s32 4294967266, %v1410_v0 }
 0x2f5   :  { %v1426_v21 = vsel %vm1341_vm5, %v1425_v10, %v13541_v40  ;;  %vm3411_vm13 = vcmp.eq.s32.totalorder %v13530_v26, 0  ;;  %vm3414_vm0 = vcmp.eq.s32.totalorder %v13530_v26, 2  ;;  %vm3060_vm9 = vc.u32 %v13622_v47, %v13609_v11 }
 0x2f6   :  { %v1561_v63 = vand.u32 31, %v1559_v18  ;;  %v13639_v14 = vpop.eup %10257  ;;  %v1754_v23 = vsel %vm15554_vm11, nan, %v1753_v22  ;;  %v1413_v33 = vshrl.u32 %v1395_v54, %v1411_v24  ;;  %v1416_v50 = vadd.s32 127, %v1415_v55 }
 0x2f7   :  { %15748 = vst [vmem:[#allocation99_spill] sm:$0xff] %v13639_v14  ;;  %v3062_v57 = vsel %vm3060_vm9, %v3061_v60, %v13610_v52  ;;  %v13644_v13 = vpop.eup %10259  ;;  %v15545_v40 = vxor.u32 2147483648, %v13639_v14  ;;  %v13649_v10 = vsel %vm13601_vm4, 0, %v1426_v21  ;;  %v1555_v54 = vor.u32 8388608, %v13628_v32 }
 0x2f8   :  { %v3063_v35 = vadd.s32 %v3062_v57, %v3058_v3  ;;  %v1562_v46 = vsub.s32 32, %v1561_v63  ;;  %v15546_v61 = vxor.u32 2147483648, %v13644_v13  ;;  %v1414_v56 = vor.u32 %v1413_v33, %v1412_v36 }
 0x2f9   :  { %v1417_v8 = vshll.u32 %v1416_v50, 23  ;;  %v3416_v52 = vsel %vm3414_vm0, %v15545_v40, %v13644_v13  ;;  %v1564_v0 = vshll.u32 %v15601_v42, %v1561_v63  ;;  %v1567_v32 = vshll.u32 %v15596_v34, %v1561_v63 }
 0x2fa   :  { %v3064_v22 = vadd.s32 536870912, %v3063_v35  ;;  %v3413_v60 = vsel %vm3411_vm13, %v13639_v14, %v15546_v61  ;;  %v1421_v36 = vcvt.s32.f32 %v1414_v56  ;;  %v1565_v33 = vshrl.u32 %v15596_v34, %v1562_v46 }
 0x2fb   :  { %v1418_v24 = vor.u32 4788187, %v1417_v8  ;;  %v3417_v55 = vsel %vm3410_vm8, %v3413_v60, %v3416_v52  ;;  %v1568_v50 = vshrl.u32 %v15598_v7, %v1562_v46  ;;  %vm3005_vm9 = vcmp.lt.s32.totalorder %v13443_v59, 0 }
 0x2fc   :  { %v3065_v21 = vshrl.u32 %v3064_v22, 30  ;;  %v3418_v57 = vsel %vm15553_vm15, nan, %v3417_v55  ;;  %v1570_v61 = vshll.u32 %v15598_v7, %v1561_v63  ;;  %v1571_v56 = vshrl.u32 %v15599_v12, %v1562_v46 }
 0x2fd   :  { %v1419_v40 = vand.u32 2147483647, %v1418_v24  ;;  %v3434_v8 = vpack.c.bf16 %v3418_v57, %v1754_v23  ;;  %v1560_v38 = vshrl.u32 %v1559_v18, 5  ;;  %v1573_v26 = vshll.u32 %v15599_v12, %v1561_v63 }
 0x2fe   :  { %v3066_v30 = vshll.u32 %v3065_v21, 30  ;;  %v1574_v22 = vshrl.u32 %v15607_v44, %v1562_v46  ;;  %v1576_v60 = vshll.u32 %v15607_v44, %v1561_v63  ;;  %v3214_v3 = vand.u32 2139095040, %v13652_v25 }
 0x2ff   :  { %v1422_v52 = vmul.f32 %v1421_v36, %v1419_v40  ;;  %9936 = vmatprep.subr.msk.bf16.mxu1 %vm7393_vm2, %v3434_v8  ;;  %v1563_v55 = vshrl.u32 %v15601_v42, %v1562_v46  ;;  %v1566_v62 = vor.u32 %v1565_v33, %v1564_v0  ;;  %v1577_v23 = vshrl.u32 %v15602_v19, %v1562_v46 }
 0x300   :  { %v13682_v24 = vsub.s32 %v3063_v35, %v3066_v30  ;;  %v1569_v18 = vor.u32 %v1568_v50, %v1567_v32  ;;  %v1572_v49 = vor.u32 %v1571_v56, %v1570_v61  ;;  %v1575_v14 = vor.u32 %v1574_v22, %v1573_v26 }
 0x301   :  { %v1423_v57 = vxor.u32 2147483648, %v1422_v52  ;;  %v15749_v40 = vand.u32 2147483647, %v13443_v59  ;;  %v3089_v8 = vsub.s32 4, %v3065_v21  ;;  %vm1579_vm6 = vcmp.lt.s32.totalorder %v1560_v38, 1 }
 0x302   :  { %v3069_v63 = vsub.s32 0, %v13682_v24  ;;  %vm1582_vm14 = vcmp.lt.s32.totalorder %v1560_v38, 4  ;;  %v1578_v35 = vor.u32 %v1577_v23, %v1576_v60  ;;  %vm1581_vm13 = vcmp.lt.s32.totalorder %v1560_v38, 3 }
 0x303   :  { %vm13688_vm8 = vcmp.le.f32.partialorder %v15749_v40, 0.7853982  ;;  %v1424_v30 = vsel %vm1341_vm5, %v1423_v57, %v1422_v52  ;;  %v1584_v46 = vsel %vm1582_vm14, %v1572_v49, 2102212464  ;;  %v1583_v32 = vsel %vm1579_vm6, %v1563_v55, %v1566_v62 }
 0x304   :  { %v1427_v61 = vsel %vm13601_vm4, %v13332_v53, %v1424_v30  ;;  %v9752_v0 = vmin.u32 %v3069_v63, %v13682_v24  ;;  %v1585_v33 = vsel %vm1581_vm13, %v1569_v18, %v1584_v46  ;;  %vm1580_vm0 = vcmp.lt.s32.totalorder %v1560_v38, 2 }
 0x305   :  { %v1587_v50 = vsel %vm1579_vm6, %v1566_v62, %v1569_v18  ;;  %v1588_v56 = vsel %vm1582_vm14, %v1575_v14, 920167782  ;;  %v1595_v26 = vshll.u32 %v1555_v54, 8  ;;  %v3059_v52 = vadd.s32 %v13609_v11, %v13622_v47 }
 0x306   :  { %v3071_v22 = vclz %v9752_v0  ;;  %v3090_v20 = vsel %vm3005_vm9, %v3089_v8, %v3065_v21  ;;  %v1591_v60 = vsel %vm1579_vm6, %v1569_v18, %v1572_v49  ;;  %10261 = vcosq.f32 %v1427_v61 }
 0x307   :  { %v1586_v55 = vsel %vm1580_vm0, %v1583_v32, %v1585_v33  ;;  %v1589_v23 = vsel %vm1581_vm13, %v1572_v49, %v1588_v56  ;;  %v1592_v57 = vsel %vm1582_vm14, %v1578_v35, 1326507024  ;;  %v3215_v63 = vshrl.u32 %v3214_v3, 23 }
 0x308   :  { %v9753_v62 = vadd.s32 4294967294, %v3071_v22  ;;  %v1590_v40 = vsel %vm1580_vm0, %v1587_v50, %v1589_v23  ;;  %v1593_v54 = vsel %vm1581_vm13, %v1575_v14, %v1592_v57  ;;  %10263 = vsinq.f32 %v1427_v61 }
 0x309   :  { %v1594_v11 = vsel %vm1580_vm0, %v1591_v60, %v1593_v54  ;;  %v13715_v47 = vmul.u32.u64.low %v1595_v26, %v1590_v40  ;;  %v13716_v21 = vmul.u32.u64.high %v1595_v26, %v1590_v40, %v13715_v47  ;;  %v9759_v30 = vadd.s32 4294967169, %v3215_v63 }
 0x30a   :  { %vm9754_vm5 = vcmp.lt.s32.totalorder %v9753_v62, 0  ;;  %v13718_v18 = vmul.u32.u64.low %v1595_v26, %v1594_v11  ;;  %v13719_v8 = vmul.u32.u64.high %v1595_v26, %v1594_v11, %v13718_v18  ;;  %v1432_v49 = vadd.s32 3, %v13649_v10 }
 0x30b   :  { %v3074_v35 = vsel %vm9754_vm5, 0, %v9753_v62  ;;  %v13724_v46 = vsel %vm13688_vm8, 0, %v3090_v20  ;;  %v1602_v14 = vmul.u32 %v1595_v26, %v1586_v55  ;;  %v3221_v0 = vadd.s32 1, %v9759_v30 }
 0x30c   :  { %v3075_v3 = vsub.s32 32, %v3074_v35  ;;  %v3076_v38 = vshll.u32 %v13682_v24, %v3074_v35  ;;  %v3079_v61 = vsub.s32 4294967266, %v3074_v35  ;;  %v1605_v32 = vadd.s32 1, %v13716_v21 }
 0x30d   :  { %v15752_v33 = vand.u32 2147483647, %v13652_v25  ;;  %vm1604_vm4 = vc.u32 %v13719_v8, %v13715_v47  ;;  %v13732_v60 = vand.u32 3, %v10794_v45  ;;  %v13734_v20 = vand.u32 3, %v1432_v49 }
 0x30e   :  { %v3077_v56 = vshrl.u32 %v3059_v52, %v3075_v3  ;;  %v3080_v22 = vadd.s32 127, %v3079_v61  ;;  %v3096_v26 = vadd.s32 3, %v13724_v46  ;;  %v1606_v24 = vsel %vm1604_vm4, %v1605_v32, %v13716_v21 }
 0x30f   :  { %v3218_v50 = vand.u32 8388607, %v15752_v33  ;;  %vm3222_vm6 = vcmp.gt.s32.totalorder %v3221_v0, 0  ;;  %v1607_v57 = vadd.s32 %v1606_v24, %v1602_v14  ;;  %vm3633_vm14 = vcmp.eq.s32.totalorder %v13732_v60, 0 }
 0x310   :  { %v3078_v55 = vor.u32 %v3077_v56, %v3076_v38  ;;  %v3081_v23 = vshll.u32 %v3080_v22, 23  ;;  %v3223_v62 = vsel %vm3222_vm6, %v3221_v0, 0  ;;  %vm1438_vm13 = vcmp.eq.s32.totalorder %v13734_v20, 2 }
 0x311   :  { %v3219_v40 = vor.u32 8388608, %v3218_v50  ;;  %v3225_v54 = vand.u32 31, %v3223_v62  ;;  %v1608_v11 = vadd.s32 536870912, %v1607_v57  ;;  %v13742_v49 = vand.u32 3, %v3096_v26 }
 0x312   :  { %v3082_v52 = vor.u32 4788187, %v3081_v23  ;;  %v3085_v63 = vcvt.s32.f32 %v3078_v55  ;;  %vm3636_vm0 = vcmp.eq.s32.totalorder %v13732_v60, 2  ;;  %v13748_v35 = vadd.s32 %v13715_v47, %v13719_v8 }
 0x313   :  { %v3226_v45 = vsub.s32 32, %v3225_v54  ;;  %v13740_v18 = vpop.eup %10261  ;;  %v13744_v21 = vshrl.u32 %v1608_v11, 30  ;;  %v13750_v14 = vshrl.u32 %v3223_v62, 5  ;;  %v13752_v3 = vshll.u32 %v3219_v40, 8 }
 0x314   :  { %v3083_v30 = vand.u32 2147483647, %v3082_v52  ;;  %v15753_v38 = vxor.u32 2147483648, %v10874_v17  ;;  %vm1435_vm5 = vcmp.eq.s32.totalorder %v13734_v20, 0  ;;  %v3228_v50 = vshll.u32 %v15601_v42, %v3225_v54 }
 0x315   :  { %v13759_v0 = vpop.eup %10263  ;;  %v1610_v33 = vshll.u32 %v13744_v21, 30  ;;  %v3229_v47 = vshrl.u32 %v15596_v34, %v3226_v45  ;;  %v15558_v8 = vxor.u32 2147483648, %v13740_v18  ;;  %v3231_v56 = vshll.u32 %v15596_v34, %v3225_v54 }
 0x316   :  { %v13757_v61 = vsel %vm3633_vm14, %v10867_v5, %v15753_v38  ;;  %v3086_v32 = vmul.f32 %v3085_v63, %v3083_v30  ;;  %v3232_v22 = vshrl.u32 %v15598_v7, %v3226_v45  ;;  %v15754_v26 = vxor.u32 2147483648, %v10867_v5 }
 0x317   :  { %v13773_v23 = vsub.s32 %v1607_v57, %v1610_v33  ;;  %v3234_v62 = vshll.u32 %v15598_v7, %v3225_v54  ;;  %v3235_v40 = vshrl.u32 %v15599_v12, %v3226_v45  ;;  %v15559_v52 = vxor.u32 2147483648, %v13759_v0 }
 0x318   :  { %v13771_v24 = vsel %vm3636_vm0, %v15754_v26, %v10874_v17  ;;  %v3087_v55 = vxor.u32 2147483648, %v3086_v32  ;;  %v3227_v63 = vshrl.u32 %v15601_v42, %v3226_v45  ;;  %v3237_v34 = vshll.u32 %v15599_v12, %v3225_v54 }
 0x319   :  { %v3238_v11 = vshrl.u32 %v15607_v44, %v3226_v45  ;;  %v1613_v17 = vsub.s32 0, %v13773_v23  ;;  %v3230_v30 = vor.u32 %v3229_v47, %v3228_v50  ;;  %v3240_v57 = vshll.u32 %v15607_v44, %v3225_v54 }
 0x31a   :  { %v3088_v5 = vsel %vm3005_vm9, %v3087_v55, %v3086_v32  ;;  %v3233_v38 = vor.u32 %v3232_v22, %v3231_v56  ;;  %v3241_v42 = vshrl.u32 %v15602_v19, %v3226_v45  ;;  %v3236_v26 = vor.u32 %v3235_v40, %v3234_v62 }
 0x31b   :  { %v3091_v7 = vsel %vm13688_vm8, %v13443_v59, %v3088_v5  ;;  %v3239_v33 = vor.u32 %v3238_v11, %v3237_v34  ;;  %v9696_v12 = vmin.u32 %v1613_v17, %v13773_v23  ;;  %vm3243_vm4 = vcmp.lt.s32.totalorder %v13750_v14, 1 }
 0x31c   :  { %10265 = vcosq.f32 %v3091_v7  ;;  %vm1434_vm9 = vcmp.lt.s32.totalorder %v13734_v20, 2  ;;  %v3242_v32 = vor.u32 %v3241_v42, %v3240_v57  ;;  %vm3245_vm6 = vcmp.lt.s32.totalorder %v13750_v14, 3 }
 0x31d   :  { %10267 = vsinq.f32 %v3091_v7  ;;  %vm3246_vm14 = vcmp.lt.s32.totalorder %v13750_v14, 4  ;;  %v1440_v19 = vsel %vm1438_vm13, %v15558_v8, %v13759_v0  ;;  %v1615_v44 = vclz %v9696_v12 }
 0x31e   :  { %vm3244_vm8 = vcmp.lt.s32.totalorder %v13750_v14, 2  ;;  %vm3632_vm0 = vcmp.lt.s32.totalorder %v13732_v60, 2  ;;  %v5279_v36 = vand.u32 3, %v10819_v58  ;;  %v3247_v54 = vsel %vm3243_vm4, %v3227_v63, %v3230_v30 }
 0x31f   :  { %v3248_v45 = vsel %vm3246_vm14, %v3236_v26, 2102212464  ;;  %v3251_v50 = vsel %vm3243_vm4, %v3230_v30, %v3233_v38  ;;  %v3252_v47 = vsel %vm3246_vm14, %v3239_v33, 920167782  ;;  %vm15562_vm13 = vweird.f32 %v13332_v53 }
 0x320   :  { %v9697_v56 = vadd.s32 4294967294, %v1615_v44  ;;  %v3249_v22 = vsel %vm3245_vm6, %v3233_v38, %v3248_v45  ;;  %v3253_v58 = vsel %vm3245_vm6, %v3236_v26, %v3252_v47  ;;  %v3255_v55 = vsel %vm3243_vm4, %v3233_v38, %v3236_v26 }
 0x321   :  { %v1437_v62 = vsel %vm1435_vm5, %v13740_v18, %v15559_v52  ;;  %v1633_v40 = vsub.s32 4, %v13744_v21  ;;  %v3254_v63 = vsel %vm3244_vm8, %v3251_v50, %v3253_v58  ;;  %v3256_v34 = vsel %vm3246_vm14, %v3242_v32, 1326507024 }
 0x322   :  { %v15755_v11 = vand.u32 2147483647, %v13522_v43  ;;  %vm9698_vm4 = vcmp.lt.s32.totalorder %v9697_v56, 0  ;;  %v3257_v17 = vsel %vm3245_vm6, %v3239_v33, %v3256_v34  ;;  %v3250_v38 = vsel %vm3244_vm8, %v3247_v54, %v3249_v22 }
 0x323   :  { %v13836_v30 = vmul.u32.u64.low %v13752_v3, %v3254_v63  ;;  %v13837_v57 = vmul.u32.u64.high %v13752_v3, %v3254_v63, %v13836_v30  ;;  %v1618_v7 = vsel %vm9698_vm4, 0, %v9697_v56  ;;  %v3258_v42 = vsel %vm3244_vm8, %v3255_v55, %v3257_v17 }
 0x324   :  { %vm13829_vm15 = vcmp.le.f32.partialorder %v15755_v11, 0.7853982  ;;  %vm5280_vm5 = vcmp.lt.s32.totalorder %v5279_v36, 2  ;;  %vm15561_vm14 = vweird.f32 %v13443_v59  ;;  %v1619_v12 = vsub.s32 32, %v1618_v7 }
 0x325   :  { %v1620_v26 = vshll.u32 %v13773_v23, %v1618_v7  ;;  %v1623_v32 = vsub.s32 4294967266, %v1618_v7  ;;  %vm5281_vm6 = vcmp.eq.s32.totalorder %v5279_v36, 0  ;;  %v15758_v45 = vxor.u32 2147483648, %v10917_v4 }
 0x326   :  { %v13847_v33 = vmul.u32.u64.low %v13752_v3, %v3258_v42  ;;  %v13848_v44 = vmul.u32.u64.high %v13752_v3, %v3258_v42, %v13847_v33  ;;  %vm5284_vm4 = vcmp.eq.s32.totalorder %v5279_v36, 2  ;;  %v1621_v14 = vshrl.u32 %v13748_v35, %v1619_v12 }
 0x327   :  { %v5283_v50 = vsel %vm5281_vm6, %v10912_v1, %v15758_v45  ;;  %v1624_v54 = vadd.s32 127, %v1623_v32  ;;  %v3269_v47 = vadd.s32 1, %v13837_v57  ;;  %v15759_v56 = vxor.u32 2147483648, %v10912_v1 }
 0x328   :  { %vm3098_vm8 = vcmp.lt.s32.totalorder %v13742_v49, 2  ;;  %vm3099_vm11 = vcmp.eq.s32.totalorder %v13742_v49, 0  ;;  %vm1549_vm12 = vcmp.lt.s32.totalorder %v13522_v43, 0  ;;  %v3266_v22 = vmul.u32 %v13752_v3, %v3250_v38 }
 0x329   :  { %v5286_v23 = vsel %vm5284_vm4, %v15759_v56, %v10917_v4  ;;  %v1441_v58 = vsel %vm1434_vm9, %v1437_v62, %v1440_v19  ;;  %v1622_v55 = vor.u32 %v1621_v14, %v1620_v26  ;;  %v1625_v35 = vshll.u32 %v1624_v54, 23  ;;  %v13867_v34 = vpop.eup %10265  ;;  %v13922_v56 = vpop.f32.mrf.mxu0 }
 0x32a   :  { %v1634_v63 = vsel %vm1549_vm12, %v1633_v40, %v13744_v21  ;;  %vm3102_vm6 = vcmp.eq.s32.totalorder %v13742_v49, 2  ;;  %vm3268_vm4 = vc.u32 %v13848_v44, %v13836_v30  ;;  %v3639_v1 = vsel %vm3632_vm0, %v13757_v61, %v13771_v24  ;;  %v13877_v20 = vpop.eup %10267  ;;  %15763 = vst [vmem:[#allocation100_spill] sm:$0xff] %v13922_v56  ;;  %v15843_v49 = vld [vmem:[#allocation31_spill] sm:$0xff] }
 0x32b   :  { %v5287_v4 = vsel %vm5280_vm5, %v5283_v50, %v5286_v23  ;;  %v15556_v3 = vxor.u32 2147483648, %v13867_v34  ;;  %v1626_v19 = vor.u32 4788187, %v1625_v35  ;;  %v1629_v21 = vcvt.s32.f32 %v1622_v55  ;;  %v13924_v23 = vpop.f32.mrf.mxu1 }
 0x32c   :  { %v3270_v62 = vsel %vm3268_vm4, %v3269_v47, %v13837_v57  ;;  %v1442_v40 = vsel %vm15562_vm13, nan, %v1441_v58  ;;  %v15557_v11 = vxor.u32 2147483648, %v13877_v20  ;;  %v13886_v17 = vsel %vm13829_vm15, 0, %v1634_v63  ;;  %15764 = vst [vmem:[#allocation101_spill] sm:$0xff] %v13924_v23 }
 0x32d   :  { %v3271_v60 = vadd.s32 %v3270_v62, %v3266_v22  ;;  %v3104_v61 = vsel %vm3102_vm6, %v15556_v3, %v13877_v20  ;;  %v1627_v24 = vand.u32 2147483647, %v1626_v19  ;;  %v3640_v36 = vsel %vm287_vm1, nan, %v3639_v1  ;;  %v8589_v22 = vld [vmem:[%s15302_s7 + $0x18] sm:$0xff]  ;;  %v13947_v62 = vpop.f32.mrf.mxu1 }
 0x32e   :  { %v13894_v57 = vand.u32 3, %v10965_v28  ;;  %v3101_v7 = vsel %vm3099_vm11, %v13867_v34, %v15557_v11  ;;  %v5288_v42 = vsel %vm1951_vm7, nan, %v5287_v4  ;;  %v3528_v12 = vand.u32 3, %v11157_v6  ;;  %8607 = vperm.xlu1 %10132, %v8589_v22   ;;  %15767 = vst [vmem:[#allocation103_spill] sm:$0xff] %v13947_v62  ;;  %v15781_v22 = vld [vmem:[#allocation14_spill] sm:$0xff]  ;;  %v15803_v11 = vld [vmem:[#allocation24_spill] sm:$0xff] }
 0x32f   :  { %v3272_v38 = vadd.s32 536870912, %v3271_v60  ;;  %v3105_v26 = vsel %vm3098_vm8, %v3101_v7, %v3104_v61  ;;  %v1630_v31 = vmul.f32 %v1629_v21, %v1627_v24  ;;  %v13909_v32 = vadd.s32 3, %v13886_v17  ;;  %v13945_v21 = vpop.f32.mrf.mxu0 }
 0x330   :  { %v3106_v28 = vsel %vm15561_vm14, nan, %v3105_v26  ;;  %vm3213_vm1 = vcmp.lt.s32.totalorder %v13652_v25, 0  ;;  %v6732_v14 = vpack.c.bf16 %v5288_v42, %v3640_v36  ;;  %v13913_v41 = vand.u32 3, %v10997_v51  ;;  %v8588_v51 = vld [vmem:[%s15302_s7 + $0x10] sm:$0xff]  ;;  %15766 = vst [vmem:[#allocation102_spill] sm:$0xff] %v13945_v21  ;;  %v13972_v42 = vpop.f32.mrf.mxu1  ;;  %v13977_v26 = vld [vmem:[%s15298_s3] sm:$0xff]  }
 0x331   :  { %v3273_v33 = vshrl.u32 %v3272_v38, 30  ;;  %v3431_v45 = vpack.c.bf16 %v3106_v28, %v1442_v40  ;;  %v1631_v50 = vxor.u32 2147483648, %v1630_v31  ;;  %v15760_v6 = vand.u32 2147483647, %v13652_v25  ;;  %8602 = vperm.xlu0 %10131, %v8588_v51   ;;  %v13970_v38 = vpop.f32.mrf.mxu0  ;;  %15772 = vst [vmem:[#allocation104_spill] sm:$0xff] %v13972_v42 }
 0x332   :  { %vm3839_vm11 = vcmp.eq.s32.totalorder %v13894_v57, 0  ;;  %vm3530_vm9 = vcmp.eq.s32.totalorder %v3528_v12, 0  ;;  %vm3838_vm0 = vcmp.lt.s32.totalorder %v13894_v57, 2  ;;  %v5176_v35 = vand.u32 3, %v11190_v48  ;;  %v8586_v48 = vld [vmem:[%s15302_s7] sm:$0xff] }
 0x333   :  { %vm13917_vm7 = vcmp.le.f32.partialorder %v15760_v6, 0.7853982  ;;  %v3274_v54 = vshll.u32 %v3273_v33, 30  ;;  %v3297_v47 = vsub.s32 4, %v3273_v33  ;;  %v7431_v58 = vsel %vm7393_vm2, %v3431_v45, 0 }
 0x334   :  { %v1632_v55 = vsel %vm1549_vm12, %v1631_v50, %v1630_v31  ;;  %7775 = vmatpush1.bf16.msra.mxu0 %v7431_v58  ;;  %vm3529_vm5 = vcmp.lt.s32.totalorder %v3528_v12, 2  ;;  %v15765_v4 = vxor.u32 2147483648, %v11232_v16  ;;  %v15768_v5 = vxor.u32 2147483648, %v11038_v15  ;;  %v13987_v50 = vpop.f32.mrf.mxu0 }
 0x335   :  { %v1635_v63 = vsel %vm13829_vm15, %v13522_v43, %v1632_v55  ;;  %v13940_v1 = vsub.s32 %v3271_v60, %v3274_v54  ;;  %9941 = vmatprep.subr.msk.bf16.mxu0 %vm7393_vm2, %v6732_v14  ;;  %v15769_v43 = vld [vmem:[#allocation12_spill] sm:$0xff]  ;;  %vm3842_vm12 = vcmp.eq.s32.totalorder %v13894_v57, 2  ;;  %vm5487_vm15 = vcmp.eq.s32.totalorder %v13913_v41, 0  ;;  %v8587_v60 = vld [vmem:[%s15302_s7 + $0x8] sm:$0xff]  ;;  %8592 = vperm.xlu0 %10131, %v8586_v48   ;;  %v13989_v14 = vpop.f32.mrf.mxu1 }
 0x336   :  { %v3532_v19 = vsel %vm3530_vm9, %v11218_v2, %v15765_v4  ;;  %v3841_v40 = vsel %vm3839_vm11, %v15769_v43, %v15768_v5  ;;  %vm3533_vm8 = vcmp.eq.s32.totalorder %v3528_v12, 2  ;;  %v3298_v24 = vsel %vm3213_vm1, %v3297_v47, %v3273_v33  ;;  %15771 = vst [vmem:[#allocation12_spill] sm:$0xff] %v13970_v38  ;;  %v15775_v33 = vld [vmem:[#allocation18_spill] sm:$0xff]  ;;  %v9148_v12 = vld [vmem:[%s15304_s9] sm:$0xf]  ;;  %8597 = vperm.xlu1 %10132, %v8587_v60   ;;  %v15779_v47 = vld [vmem:[#allocation15_spill] sm:$0xff] }
 0x337   :  { %v3277_v61 = vsub.s32 0, %v13940_v1  ;;  %vm5490_vm6 = vcmp.eq.s32.totalorder %v13913_v41, 2  ;;  %v15770_v36 = vxor.u32 2147483648, %v11218_v2  ;;  %10269 = vcosq.f32 %v1635_v63  ;;  %9934 = vmatmul.mubr.msk.bf16.vlgmr.msra.gmra.mxu0 %vm7386_vm3, %v13977_v26  ;;  %15777 = vst [vmem:[#allocation18_spill] sm:$0xff] %v13989_v14  ;;  %v14061_v57 = vld [vmem:[%s15298_s3 + $0x8] sm:$0xff]  }
 0x338   :  { %vm5178_vm4 = vcmp.eq.s32.totalorder %v5176_v35, 0  ;;  %vm5181_vm11 = vcmp.eq.s32.totalorder %v5176_v35, 2  ;;  %10271 = vsinq.f32 %v1635_v63  ;;  %7802 = vmatprep.mubr.bf16.mxu0 %v15590_v9  ;;  %vm5177_vm9 = vcmp.lt.s32.totalorder %v5176_v35, 2 }
 0x339   :  { %v3535_v7 = vsel %vm3533_vm8, %v15770_v36, %v11232_v16  ;;  %v9760_v2 = vmin.u32 %v3277_v61, %v13940_v1  ;;  %v15773_v16 = vld [vmem:[#allocation19_spill] sm:$0xff]  ;;  %v15778_v6 = vxor.u32 2147483648, %v15769_v43  ;;  %v15780_v51 = vxor.u32 2147483648, %v15779_v47  ;;  %v15785_v43 = vld [vmem:[#allocation21_spill] sm:$0xff]  ;;  %v14018_v61 = vpop.f32.mrf.mxu0  ;;  %v14020_v36 = vpop.f32.mrf.mxu1  ;;  %9151 = vperm.xlu0 %10131, %v9148_v12  }
 0x33a   :  { %v3536_v31 = vsel %vm3529_vm5, %v3532_v19, %v3535_v7  ;;  %v15774_v28 = vxor.u32 2147483648, %v15773_v16  ;;  %15776 = vst [vmem:[#allocation19_spill] sm:$0xff] %v13987_v50  ;;  %vm5486_vm5 = vcmp.lt.s32.totalorder %v13913_v41, 2  ;;  %v15782_v55 = vxor.u32 2147483648, %v15775_v33  ;;  %15786 = vst [vmem:[#allocation15_spill] sm:$0xff] %v14018_v61  ;;  %v15838_v50 = vld [vmem:[#allocation48_spill] sm:$0xff] }
 0x33b   :  { %v3844_v54 = vsel %vm3842_vm12, %v15778_v6, %v11038_v15  ;;  %v5489_v58 = vsel %vm5487_vm15, %v15781_v22, %v15780_v51  ;;  %v3279_v4 = vclz %v9760_v2  ;;  %v15783_v19 = vxor.u32 2147483648, %v15781_v22  ;;  %15787 = vst [vmem:[#allocation14_spill] sm:$0xff] %v14020_v36  ;;  %v15790_v6 = vld [vmem:[#allocation29_spill] sm:$0xff]  ;;  %v14033_v51 = vpop.f32.mrf.mxu0  ;;  %v14035_v22 = vpop.f32.mrf.mxu1 }
 0x33c   :  { %v5180_v45 = vsel %vm5178_vm4, %v15775_v33, %v15774_v28  ;;  %v5183_v63 = vsel %vm5181_vm11, %v15782_v55, %v15773_v16  ;;  %v3537_v5 = vsel %vm183_vm10, nan, %v3536_v31  ;;  %v14016_v60 = vand.u32 3, %v15785_v43  ;;  %v15788_v33 = vld [vmem:[#allocation10_spill] sm:$0xff]  ;;  %v15796_v15 = vld [vmem:[#allocation33_spill] sm:$0xff]  ;;  %v15798_v43 = vld [vmem:[#allocation32_spill] sm:$0xff] }
 0x33d   :  { %v5492_v48 = vsel %vm5490_vm6, %v15783_v19, %v15779_v47  ;;  %v14024_v7 = vsel %vm13917_vm7, 0, %v3298_v24  ;;  %v5184_v2 = vsel %vm5177_vm9, %v5180_v45, %v5183_v63  ;;  %v14028_v16 = vand.u32 3, %v13909_v32  ;;  %v15791_v55 = vld [vmem:[#allocation22_spill] sm:$0xff] }
 0x33e   :  { %v9761_v28 = vadd.s32 4294967294, %v3279_v4  ;;  %vm15789_vm10 = vweird.f32 %v15788_v33  ;;  %v4043_v47 = vand.u32 3, %v15790_v6  ;;  %v3267_v24 = vadd.s32 %v13836_v30, %v13848_v44  ;;  %v14054_v4 = vpop.f32.mrf.mxu0  ;;  %v14056_v30 = vpop.f32.mrf.mxu1 }
 0x33f   :  { %v5185_v31 = vsel %vm15789_vm10, nan, %v5184_v2  ;;  %v14041_v35 = vsel %vm3838_vm0, %v3841_v40, %v3844_v54  ;;  %v14045_v32 = vsel %vm5486_vm5, %v5489_v58, %v5492_v48  ;;  %v14048_v12 = vadd.s32 3, %v14024_v7  ;;  %15792 = vst [vmem:[#allocation9_spill] sm:$0xff] %v14054_v4  ;;  %15793 = vst [vmem:[#allocation21_spill] sm:$0xff] %v14056_v30  ;;  %9935 = vmatmul.mubr.msk.bf16.gmra.mxu0 %vm7386_vm3, %v14061_v57  ;;  %v15811_v30 = vld [vmem:[#allocation17_spill] sm:$0xff] }
 0x340   :  { %v6731_v45 = vpack.c.bf16 %v5185_v31, %v3537_v5  ;;  %vm9762_vm12 = vcmp.lt.s32.totalorder %v9761_v28, 0  ;;  %vm3736_vm15 = vcmp.eq.s32.totalorder %v14016_v60, 0  ;;  %v14052_v63 = vand.u32 3, %v15791_v55  ;;  %8030 = vmatprep.mubr.bf16.mxu0 %v15590_v9  ;;  %v14070_v19 = vpop.f32.mrf.mxu0  ;;  %v14072_v48 = vpop.f32.mrf.mxu1 }
 0x341   :  { %v3282_v44 = vsel %vm9762_vm12, 0, %v9761_v28  ;;  %vm3739_vm0 = vcmp.eq.s32.totalorder %v14016_v60, 2  ;;  %vm4045_vm8 = vcmp.eq.s32.totalorder %v4043_v47, 0  ;;  %vm1646_vm6 = vcmp.eq.s32.totalorder %v14028_v16, 2  ;;  %15794 = vst [vmem:[#allocation10_spill] sm:$0xff] %v14070_v19  ;;  %15795 = vst [vmem:[#allocation29_spill] sm:$0xff] %v14072_v48 }
 0x342   :  { %v7951_v41 = vsel %vm7393_vm2, %v6731_v45, 0  ;;  %v3283_v40 = vsub.s32 32, %v3282_v44  ;;  %v3284_v54 = vshll.u32 %v13940_v1, %v3282_v44  ;;  %v3287_v58 = vsub.s32 4294967266, %v3282_v44  ;;  %v15799_v28 = vld [vmem:[#allocation30_spill] sm:$0xff]  ;;  %v14083_v55 = vpop.f32.mrf.mxu0  ;;  %v14085_v44 = vpop.f32.mrf.mxu1 }
 0x343   :  { %8013 = vmatpush1.bf16.msra.mxu0 %v7951_v41  ;;  %vm4044_vm4 = vcmp.lt.s32.totalorder %v4043_v47, 2  ;;  %vm3735_vm11 = vcmp.lt.s32.totalorder %v14016_v60, 2  ;;  %v15797_v5 = vxor.u32 2147483648, %v15796_v15  ;;  %vm4048_vm9 = vcmp.eq.s32.totalorder %v4043_v47, 2  ;;  %v15801_v41 = vld [vmem:[#allocation25_spill] sm:$0xff]  ;;  %v15807_v47 = vld [vmem:[#allocation26_spill] sm:$0xff] }
 0x344   :  { %v5691_v33 = vand.u32 3, %v15799_v28  ;;  %v3285_v31 = vshrl.u32 %v3267_v24, %v3283_v40  ;;  %v3288_v1 = vadd.s32 127, %v3287_v58  ;;  %vm5384_vm5 = vcmp.eq.s32.totalorder %v14052_v63, 0  ;;  %v14100_v58 = vld [vmem:[%s15299_s4] sm:$0xff]   ;;  %v14183_v60 = vld [vmem:[%s15299_s4 + $0x8] sm:$0xff]  }
 0x345   :  { %v4047_v2 = vsel %vm4045_vm8, %v15798_v43, %v15797_v5  ;;  %v15800_v6 = vxor.u32 2147483648, %v15798_v43  ;;  %v15802_v3 = vxor.u32 2147483648, %v15801_v41  ;;  %v15804_v24 = vxor.u32 2147483648, %v15803_v11  ;;  %v14103_v43 = vpop.eup %10269 }
 0x346   :  { %vm5693_vm10 = vcmp.eq.s32.totalorder %v5691_v33, 0  ;;  %v3286_v28 = vor.u32 %v3285_v31, %v3284_v54  ;;  %vm5387_vm12 = vcmp.eq.s32.totalorder %v14052_v63, 2  ;;  %v15810_v31 = vld [vmem:[#allocation34_spill] sm:$0xff]  ;;  %vm5696_vm8 = vcmp.eq.s32.totalorder %v5691_v33, 2 }
 0x347   :  { %v4050_v45 = vsel %vm4048_vm9, %v15800_v6, %v15796_v15  ;;  %v3738_v5 = vsel %vm3736_vm15, %v15803_v11, %v15802_v3  ;;  %v3741_v40 = vsel %vm3739_vm0, %v15804_v24, %v15801_v41  ;;  %v3289_v6 = vshll.u32 %v3288_v1, 23  ;;  %v14106_v3 = vpop.f32.mrf.mxu0  ;;  %v14108_v11 = vpop.f32.mrf.mxu1  ;;  %v15805_v24 = vld [vmem:[#allocation28_spill] sm:$0xff]  ;;  %9942 = vmatmul.mubr.msk.bf16.vlgmr.msra.gmra.mxu0 %vm7386_vm3, %v14100_v58 }
 0x348   :  { %v4051_v15 = vsel %vm4044_vm4, %v4047_v2, %v4050_v45  ;;  %vm5692_vm15 = vcmp.lt.s32.totalorder %v5691_v33, 2  ;;  %v14110_v41 = vpop.eup %10271  ;;  %vm5383_vm0 = vcmp.lt.s32.totalorder %v14052_v63, 2  ;;  %v15806_v8 = vxor.u32 2147483648, %v15805_v24  ;;  %v15808_v45 = vld [vmem:[#allocation35_spill] sm:$0xff]  ;;  %8040 = vmatprep.mubr.bf16.mxu0 %v15590_v9 }
 0x349   :  { %v15809_v54 = vxor.u32 2147483648, %v15808_v45  ;;  %v3290_v52 = vor.u32 4788187, %v3289_v6  ;;  %v3293_v48 = vcvt.s32.f32 %v3286_v28  ;;  %vm15812_vm4 = vweird.f32 %v15811_v30  ;;  %v14126_v62 = vpop.f32.mrf.mxu0  ;;  %v14128_v23 = vpop.f32.mrf.mxu1 }
 0x34a   :  { %v5386_v2 = vsel %vm5384_vm5, %v15807_v47, %v15806_v8  ;;  %v4052_v36 = vsel %vm15812_vm4, nan, %v4051_v15  ;;  %v15813_v14 = vxor.u32 2147483648, %v15810_v31  ;;  %v15814_v19 = vxor.u32 2147483648, %v15807_v47  ;;  %v15815_v15 = vld [vmem:[#allocation36_spill] sm:$0xff]  ;;  %v15818_v47 = vld [vmem:[#allocation45_spill] sm:$0xff] }
 0x34b   :  { %v5695_v1 = vsel %vm5693_vm10, %v15810_v31, %v15809_v54  ;;  %v14140_v28 = vand.u32 3, %v15815_v15  ;;  %v15816_v54 = vld [vmem:[#allocation20_spill] sm:$0xff]  ;;  %v3940_v8 = vand.u32 3, %v15818_v47  ;;  %v14147_v4 = vpop.f32.mrf.mxu0  ;;  %vm1643_vm5 = vcmp.eq.s32.totalorder %v14028_v16, 0 }
 0x34c   :  { %v5698_v42 = vsel %vm5696_vm8, %v15813_v14, %v15808_v45  ;;  %v5389_v6 = vsel %vm5387_vm12, %v15814_v19, %v15805_v24  ;;  %v15560_v14 = vxor.u32 2147483648, %v14110_v41  ;;  %v3291_v45 = vand.u32 2147483647, %v3290_v52  ;;  %15819 = vst [vmem:[#allocation22_spill] sm:$0xff] %v14147_v4  ;;  %v14149_v19 = vpop.f32.mrf.mxu1  ;;  %v15823_v52 = vld [vmem:[#allocation8_spill] sm:$0xff]  ;;  %v15836_v4 = vld [vmem:[#allocation49_spill] sm:$0xff] }
 0x34d   :  { %v5699_v30 = vsel %vm5692_vm15, %v5695_v1, %v5698_v42  ;;  %vm15817_vm9 = vweird.f32 %v15816_v54  ;;  %15820 = vst [vmem:[#allocation33_spill] sm:$0xff] %v14149_v19  ;;  %v15821_v42 = vld [vmem:[#allocation13_spill] sm:$0xff]  ;;  %vm15824_vm12 = vweird.f32 %v15823_v52  ;;  %vm1642_vm15 = vcmp.lt.s32.totalorder %v14028_v16, 2  ;;  %v14169_v47 = vpop.f32.mrf.mxu0 }
 0x34e   :  { %v5700_v31 = vsel %vm15817_vm9, nan, %v5699_v30  ;;  %vm15822_vm10 = vweird.f32 %v15821_v42  ;;  %v14160_v24 = vsel %vm15824_vm12, nan, %v14045_v32  ;;  %v3294_v30 = vmul.f32 %v3293_v48, %v3291_v45  ;;  %15825 = vst [vmem:[#allocation32_spill] sm:$0xff] %v14169_v47  ;;  %v15833_v42 = vld [vmem:[#allocation40_spill] sm:$0xff] }
 0x34f   :  { %v14155_v33 = vsel %vm15822_vm10, nan, %v14041_v35  ;;  %v6736_v1 = vpack.c.bf16 %v5700_v31, %v4052_v36  ;;  %v14164_v15 = vand.u32 3, %v14048_v12  ;;  %v3742_v54 = vsel %vm3735_vm11, %v3738_v5, %v3741_v40  ;;  %v14171_v35 = vpop.f32.mrf.mxu1  ;;  %v15828_v12 = vld [vmem:[#allocation39_spill] sm:$0xff]  ;;  %v14194_v63 = vpop.f32.mrf.mxu0  ;;  %9943 = vmatmul.mubr.msk.bf16.gmra.mxu0 %vm7386_vm3, %v14183_v60 }
 0x350   :  { %vm4251_vm8 = vcmp.eq.s32.totalorder %v14140_v28, 0  ;;  %15826 = vst [vmem:[#allocation30_spill] sm:$0xff] %v14171_v35  ;;  %v15827_v32 = vxor.u32 2147483648, %v14103_v43  ;;  %v5390_v48 = vsel %vm5383_vm0, %v5386_v2, %v5389_v6  ;;  %vm4254_vm11 = vcmp.eq.s32.totalorder %v14140_v28, 2  ;;  %15829 = vst [vmem:[#allocation25_spill] sm:$0xff] %v14194_v63  ;;  %v15831_v6 = vld [vmem:[#allocation41_spill] sm:$0xff]  ;;  %8136 = vmatprep.mubr.bf16.mxu0 %v15590_v9 }
 0x351   :  { %9947 = vmatprep.subr.msk.bf16.mxu0 %vm7393_vm2, %v6736_v1  ;;  %v5897_v5 = vand.u32 3, %v15828_v12  ;;  %v1645_v40 = vsel %vm1643_vm5, %v14103_v43, %v15560_v14  ;;  %v3295_v45 = vxor.u32 2147483648, %v3294_v30  ;;  %vm3941_vm0 = vcmp.lt.s32.totalorder %v3940_v8, 2  ;;  %v14196_v2 = vpop.f32.mrf.mxu1  ;;  %v15834_v1 = vld [vmem:[#allocation46_spill] sm:$0xff] }
 0x352   :  { %v1648_v36 = vsel %vm1646_vm6, %v15827_v32, %v14110_v41  ;;  %vm4250_vm6 = vcmp.lt.s32.totalorder %v14140_v28, 2  ;;  %15830 = vst [vmem:[#allocation24_spill] sm:$0xff] %v14196_v2  ;;  %v15832_v31 = vxor.u32 2147483648, %v15831_v6  ;;  %vm3942_vm4 = vcmp.eq.s32.totalorder %v3940_v8, 0  ;;  %v15868_v28 = vld [vmem:[#allocation64_spill] sm:$0xff] }
 0x353   :  { %vm3945_vm9 = vcmp.eq.s32.totalorder %v3940_v8, 2  ;;  %v5588_v32 = vand.u32 3, %v15834_v1  ;;  %v3296_v12 = vsel %vm3213_vm1, %v3295_v45, %v3294_v30  ;;  %v15835_v14 = vxor.u32 2147483648, %v15833_v42  ;;  %v14215_v2 = vpop.f32.mrf.mxu1  ;;  %v15849_v1 = vld [vmem:[#allocation53_spill] sm:$0xff] }
 0x354   :  { %v4253_v52 = vsel %vm4251_vm8, %v15833_v42, %v15832_v31  ;;  %v15837_v61 = vxor.u32 2147483648, %v15836_v4  ;;  %v15839_v21 = vxor.u32 2147483648, %v15838_v50  ;;  %v14213_v31 = vpop.f32.mrf.mxu0  ;;  %v3299_v30 = vsel %vm13917_vm7, %v13652_v25, %v3296_v12 }
 0x355   :  { %v4256_v19 = vsel %vm4254_vm11, %v15835_v14, %v15831_v6  ;;  %15840 = vst [vmem:[#allocation28_spill] sm:$0xff] %v14213_v31  ;;  %vm5899_vm1 = vcmp.eq.s32.totalorder %v5897_v5, 0  ;;  %vm5589_vm5 = vcmp.lt.s32.totalorder %v5588_v32, 2  ;;  %10273 = vcosq.f32 %v3299_v30  ;;  %v15847_v6 = vld [vmem:[#allocation50_spill] sm:$0xff] }
 0x356   :  { %v3944_v38 = vsel %vm3942_vm4, %v15838_v50, %v15837_v61  ;;  %v3947_v56 = vsel %vm3945_vm9, %v15839_v21, %v15836_v4  ;;  %vm5902_vm10 = vcmp.eq.s32.totalorder %v5897_v5, 2  ;;  %vm5590_vm12 = vcmp.eq.s32.totalorder %v5588_v32, 0  ;;  %v14224_v21 = vpop.f32.mrf.mxu0  ;;  %v14226_v50 = vpop.f32.mrf.mxu1  ;;  %v15845_v4 = vld [vmem:[#allocation51_spill] sm:$0xff] }
 0x357   :  { %v3948_v14 = vsel %vm3941_vm0, %v3944_v38, %v3947_v56  ;;  %vm5593_vm8 = vcmp.eq.s32.totalorder %v5588_v32, 2  ;;  %15841 = vst [vmem:[#allocation26_spill] sm:$0xff] %v14224_v21  ;;  %15842 = vst [vmem:[#allocation35_spill] sm:$0xff] %v14226_v50  ;;  %10275 = vsinq.f32 %v3299_v30  ;;  %vm15844_vm7 = vweird.f32 %v15843_v49  ;;  %v15854_v21 = vld [vmem:[#allocation42_spill] sm:$0xff] }
 0x358   :  { %v3949_v61 = vsel %vm15844_vm7, nan, %v3948_v14  ;;  %v15846_v45 = vxor.u32 2147483648, %v15845_v4  ;;  %v15848_v56 = vxor.u32 2147483648, %v15847_v6  ;;  %vm5898_vm11 = vcmp.lt.s32.totalorder %v5897_v5, 2  ;;  %v14240_v50 = vpop.f32.mrf.mxu0  ;;  %v14242_v30 = vpop.f32.mrf.mxu1  ;;  %v15852_v14 = vld [vmem:[#allocation43_spill] sm:$0xff] }
 0x359   :  { %v14237_v32 = vand.u32 3, %v15849_v1  ;;  %v4455_v12 = vand.u32 3, %v12457_v27  ;;  %15850 = vst [vmem:[#allocation34_spill] sm:$0xff] %v14240_v50  ;;  %15851 = vst [vmem:[#allocation17_spill] sm:$0xff] %v14242_v30  ;;  %v15853_v49 = vxor.u32 2147483648, %v15852_v14  ;;  %v14257_v27 = vld [vmem:[#allocation2 + $0x70] sm:$0xff] }
 0x35a   :  { %v5592_v8 = vsel %vm5590_vm12, %v15847_v6, %v15846_v45  ;;  %v5595_v38 = vsel %vm5593_vm8, %v15848_v56, %v15845_v4  ;;  %v15855_v6 = vxor.u32 2147483648, %v15854_v21  ;;  %vm1639_vm4 = vweird.f32 %v14257_v27  ;;  %v14263_v63 = vpop.f32.mrf.mxu0  ;;  %v15880_v30 = vld [vmem:[#allocation47_spill] sm:$0xff] }
 0x35b   :  { %v5596_v42 = vsel %vm5589_vm5, %v5592_v8, %v5595_v38  ;;  %v5901_v45 = vsel %vm5899_vm1, %v15854_v21, %v15853_v49  ;;  %v15856_v8 = vld [vmem:[#allocation37_spill] sm:$0xff]  ;;  %v15858_v38 = vld [vmem:[#allocation54_spill] sm:$0xff]  ;;  %15860 = vst [vmem:[#allocation36_spill] sm:$0xff] %v14263_v63  ;;  %v14265_v21 = vpop.f32.mrf.mxu1  ;;  %vm3310_vm9 = vcmp.eq.s32.totalorder %v14164_v15, 2  ;;  %vm4456_vm12 = vcmp.lt.s32.totalorder %v4455_v12, 2 }
 0x35c   :  { %v5904_v4 = vsel %vm5902_vm10, %v15855_v6, %v15852_v14  ;;  %vm15857_vm0 = vweird.f32 %v15856_v8  ;;  %v14255_v1 = vand.u32 3, %v15858_v38  ;;  %v15859_v49 = vld [vmem:[#allocation61_spill] sm:$0xff]  ;;  %15861 = vst [vmem:[#allocation20_spill] sm:$0xff] %v14265_v21  ;;  %v15862_v14 = vld [vmem:[#allocation11_spill] sm:$0xff]  ;;  %v15864_v8 = vld [vmem:[#allocation16_spill] sm:$0xff]  ;;  %vm3307_vm10 = vcmp.eq.s32.totalorder %v14164_v15, 0 }
 0x35d   :  { %v5597_v56 = vsel %vm15857_vm0, nan, %v5596_v42  ;;  %v6103_v31 = vand.u32 3, %v15859_v49  ;;  %v1649_v42 = vsel %vm1642_vm15, %v1645_v40, %v1648_v36  ;;  %vm15863_vm1 = vweird.f32 %v15862_v14  ;;  %v14284_v36 = vpop.f32.mrf.mxu0  ;;  %v15874_v49 = vld [vmem:[#allocation66_spill] sm:$0xff]  ;;  %v15896_v63 = vld [vmem:[#allocation69_spill] sm:$0xff] }
 0x35e   :  { %v6735_v50 = vpack.c.bf16 %v5597_v56, %v3949_v61  ;;  %v14272_v6 = vsel %vm15863_vm1, nan, %v3742_v54  ;;  %vm15865_vm5 = vweird.f32 %v15864_v8  ;;  %v4257_v61 = vsel %vm4250_vm6, %v4253_v52, %v4256_v19  ;;  %15866 = vst [vmem:[#allocation45_spill] sm:$0xff] %v14284_v36  ;;  %v14286_v54 = vpop.f32.mrf.mxu1  ;;  %v15876_v8 = vld [vmem:[#allocation65_spill] sm:$0xff] }
 0x35f   :  { %v14276_v38 = vsel %vm15865_vm5, nan, %v5390_v48  ;;  %v5905_v56 = vsel %vm5898_vm11, %v5901_v45, %v5904_v4  ;;  %vm4148_vm15 = vcmp.eq.s32.totalorder %v14237_v32, 0  ;;  %15867 = vst [vmem:[#allocation13_spill] sm:$0xff] %v14286_v54  ;;  %vm3306_vm8 = vcmp.lt.s32.totalorder %v14164_v15, 2  ;;  %v15870_v48 = vld [vmem:[#allocation63_spill] sm:$0xff] }
 0x360   :  { %v7963_v16 = vsel %vm7393_vm2, %v6735_v50, 0  ;;  %vm4151_vm7 = vcmp.eq.s32.totalorder %v14237_v32, 2  ;;  %vm5796_vm6 = vcmp.eq.s32.totalorder %v14255_v1, 0  ;;  %vm4457_vm0 = vcmp.eq.s32.totalorder %v4455_v12, 0  ;;  %v14298_v50 = vpop.f32.mrf.mxu0  ;;  %v14300_v45 = vpop.f32.mrf.mxu1 }
 0x361   :  { %8119 = vmatpush1.bf16.msra.mxu0 %v7963_v16  ;;  %vm4460_vm1 = vcmp.eq.s32.totalorder %v4455_v12, 2  ;;  %v15869_v19 = vxor.u32 2147483648, %v15868_v28  ;;  %v15871_v40 = vxor.u32 2147483648, %v15870_v48  ;;  %vm6104_vm5 = vcmp.lt.s32.totalorder %v6103_v31, 2  ;;  %15872 = vst [vmem:[#allocation8_spill] sm:$0xff] %v14298_v50  ;;  %15873 = vst [vmem:[#allocation39_spill] sm:$0xff] %v14300_v45 }
 0x362   :  { %vm6105_vm14 = vcmp.eq.s32.totalorder %v6103_v31, 0  ;;  %vm5799_vm13 = vcmp.eq.s32.totalorder %v14255_v1, 2  ;;  %v15875_v14 = vxor.u32 2147483648, %v15874_v49  ;;  %vm6108_vm11 = vcmp.eq.s32.totalorder %v6103_v31, 2  ;;  %v14322_v45 = vpop.f32.mrf.mxu1  ;;  %v15893_v31 = vld [vmem:[#allocation76_spill] sm:$0xff]  ;;  %v14352_v36 = vpop.eup %10273 }
 0x363   :  { %v4459_v5 = vsel %vm4457_vm0, %v15870_v48, %v15869_v19  ;;  %v4462_v52 = vsel %vm4460_vm1, %v15871_v40, %v15868_v28  ;;  %vm4147_vm0 = vcmp.lt.s32.totalorder %v14237_v32, 2  ;;  %v15877_v19 = vld [vmem:[#allocation57_spill] sm:$0xff]  ;;  %v15879_v28 = vld [vmem:[#allocation56_spill] sm:$0xff]  ;;  %vm15881_vm1 = vweird.f32 %v15880_v30  ;;  %15884 = vst [vmem:[#allocation40_spill] sm:$0xff] %v14322_v45 }
 0x364   :  { %v4463_v4 = vsel %vm4456_vm12, %v4459_v5, %v4462_v52  ;;  %v6107_v16 = vsel %vm6105_vm14, %v15876_v8, %v15875_v14  ;;  %v15878_v48 = vxor.u32 2147483648, %v15877_v19  ;;  %9948 = vmatmul.mubr.msk.bf16.vlgmr.msra.gmra.mxu0 %vm7386_vm3, %v14100_v58  ;;  %v15882_v5 = vxor.u32 2147483648, %v15876_v8  ;;  %v14320_v14 = vpop.f32.mrf.mxu0 }
 0x365   :  { %v4464_v12 = vsel %vm15881_vm1, nan, %v4463_v4  ;;  %15883 = vst [vmem:[#allocation41_spill] sm:$0xff] %v14320_v14  ;;  %v15885_v50 = vxor.u32 2147483648, %v15879_v28  ;;  %vm5795_vm14 = vcmp.lt.s32.totalorder %v14255_v1, 2  ;;  %8146 = vmatprep.mubr.bf16.mxu0 %v15590_v9  ;;  %v15886_v4 = vld [vmem:[#allocation68_spill] sm:$0xff] }
 0x366   :  { %v4150_v40 = vsel %vm4148_vm15, %v15879_v28, %v15878_v48  ;;  %v6110_v52 = vsel %vm6108_vm11, %v15882_v5, %v15874_v49  ;;  %v14333_v54 = vand.u32 3, %v15886_v4  ;;  %v15887_v49 = vld [vmem:[#allocation59_spill] sm:$0xff]  ;;  %v15889_v5 = vld [vmem:[#allocation58_spill] sm:$0xff]  ;;  %v14350_v4 = vpop.f32.mrf.mxu1 }
 0x367   :  { %v4153_v48 = vsel %vm4151_vm7, %v15885_v50, %v15877_v19  ;;  %v6111_v30 = vsel %vm6104_vm5, %v6107_v16, %v6110_v52  ;;  %v15888_v8 = vxor.u32 2147483648, %v15887_v49  ;;  %v15890_v28 = vxor.u32 2147483648, %v15889_v5  ;;  %v15891_v19 = vld [vmem:[#allocation52_spill] sm:$0xff]  ;;  %v14348_v52 = vpop.f32.mrf.mxu0  ;;  %15895 = vst [vmem:[#allocation49_spill] sm:$0xff] %v14350_v4  ;;  %v15899_v4 = vld [vmem:[#allocation27_spill] sm:$0xff] }
 0x368   :  { %vm15892_vm15 = vweird.f32 %v15891_v19  ;;  %v4352_v16 = vand.u32 3, %v15893_v31  ;;  %15894 = vst [vmem:[#allocation46_spill] sm:$0xff] %v14348_v52  ;;  %v15897_v19 = vld [vmem:[#allocation23_spill] sm:$0xff]  ;;  %vm15900_vm12 = vweird.f32 %v15899_v4  ;;  %vm4663_vm7 = vcmp.eq.s32.totalorder %v14333_v54, 0 }
 0x369   :  { %v5798_v45 = vsel %vm5796_vm6, %v15889_v5, %v15888_v8  ;;  %v5801_v50 = vsel %vm5799_vm13, %v15890_v28, %v15887_v49  ;;  %v6112_v14 = vsel %vm15892_vm15, nan, %v6111_v30  ;;  %v1650_v8 = vsel %vm1639_vm4, nan, %v1649_v42  ;;  %v14361_v28 = vpop.eup %10275  ;;  %v15901_v42 = vld [vmem:[#allocation77_spill] sm:$0xff]  ;;  %v14373_v47 = vpop.f32.mrf.mxu0 }
 0x36a   :  { %v6733_v5 = vpack.c.bf16 %v14276_v38, %v14272_v6  ;;  %v6740_v21 = vpack.c.bf16 %v6112_v14, %v4464_v12  ;;  %v14359_v49 = vand.u32 3, %v15896_v63  ;;  %v15563_v30 = vxor.u32 2147483648, %v14352_v36  ;;  %v14375_v6 = vpop.f32.mrf.mxu1 }
 0x36b   :  { %vm15898_vm13 = vweird.f32 %v15897_v19  ;;  %v14370_v52 = vsel %vm15900_vm12, nan, %v5905_v56  ;;  %v6000_v35 = vand.u32 3, %v15901_v42  ;;  %v15564_v63 = vxor.u32 2147483648, %v14361_v28  ;;  %v14390_v56 = vpop.f32.mrf.mxu0 }
 0x36c   :  { %v14366_v31 = vsel %vm15898_vm13, nan, %v4257_v61  ;;  %v4154_v38 = vsel %vm4147_vm0, %v4150_v40, %v4153_v48  ;;  %v5802_v12 = vsel %vm5795_vm14, %v5798_v45, %v5801_v50  ;;  %9953 = vmatprep.subr.msk.bf16.mxu0 %vm7393_vm2, %v6740_v21  ;;  %v3312_v61 = vsel %vm3310_vm9, %v15563_v30, %v14361_v28  ;;  %15902 = vst [vmem:[#allocation48_spill] sm:$0xff] %v14390_v56  ;;  %v14392_v32 = vpop.f32.mrf.mxu1  ;;  %v15904_v21 = vld [vmem:[#allocation80_spill] sm:$0xff]  ;;  %v15906_v40 = vld [vmem:[#allocation79_spill] sm:$0xff] }
 0x36d   :  { %vm4666_vm6 = vcmp.eq.s32.totalorder %v14333_v54, 2  ;;  %vm4353_vm11 = vcmp.lt.s32.totalorder %v4352_v16, 2  ;;  %vm4354_vm5 = vcmp.eq.s32.totalorder %v4352_v16, 0  ;;  %15903 = vst [vmem:[#allocation31_spill] sm:$0xff] %v14392_v32  ;;  %v3309_v1 = vsel %vm3307_vm10, %v14352_v36, %v15564_v63  ;;  %9949 = vmatmul.mubr.msk.bf16.gmra.mxu0 %vm7386_vm3, %v14183_v60  ;;  %v14411_v19 = vpop.f32.mrf.mxu0 }
 0x36e   :  { %vm6311_vm0 = vcmp.eq.s32.totalorder %v14359_v49, 0  ;;  %v15905_v45 = vxor.u32 2147483648, %v15904_v21  ;;  %vm4357_vm9 = vcmp.eq.s32.totalorder %v4352_v16, 2  ;;  %v3313_v48 = vsel %vm3306_vm8, %v3309_v1, %v3312_v61  ;;  %15908 = vst [vmem:[#allocation51_spill] sm:$0xff] %v14411_v19  ;;  %v14413_v42 = vpop.f32.mrf.mxu1  ;;  %8242 = vmatprep.mubr.bf16.mxu0 %v15590_v9  ;;  %v15911_v1 = vld [vmem:[#allocation62_spill] sm:$0xff]  ;;  %v15927_v19 = vld [vmem:[#allocation73_spill] sm:$0xff] }
 0x36f   :  { %vm6314_vm1 = vcmp.eq.s32.totalorder %v14359_v49, 2  ;;  %v15907_v50 = vxor.u32 2147483648, %v15906_v40  ;;  %vm6001_vm10 = vcmp.lt.s32.totalorder %v6000_v35, 2  ;;  %15909 = vst [vmem:[#allocation50_spill] sm:$0xff] %v14413_v42  ;;  %vm15910_vm14 = vweird.f32 %v13652_v25  ;;  %v14427_v42 = vpop.f32.mrf.mxu0 }
 0x370   :  { %v4356_v14 = vsel %vm4354_vm5, %v15906_v40, %v15905_v45  ;;  %v3314_v45 = vsel %vm15910_vm14, nan, %v3313_v48  ;;  %vm6002_vm8 = vcmp.eq.s32.totalorder %v6000_v35, 0  ;;  %vm6005_vm15 = vcmp.eq.s32.totalorder %v6000_v35, 2  ;;  %v15913_v40 = vld [vmem:[#allocation82_spill] sm:$0xff]  ;;  %15917 = vst [vmem:[#allocation53_spill] sm:$0xff] %v14427_v42  ;;  %v14429_v16 = vpop.f32.mrf.mxu1 }
 0x371   :  { %v4359_v4 = vsel %vm4357_vm9, %v15907_v50, %v15904_v21  ;;  %v3433_v61 = vpack.c.bf16 %v3314_v45, %v1650_v8  ;;  %vm15912_vm13 = vweird.f32 %v15911_v1  ;;  %v15914_v21 = vxor.u32 2147483648, %v15913_v40  ;;  %v15915_v50 = vld [vmem:[#allocation81_spill] sm:$0xff]  ;;  %15918 = vst [vmem:[#allocation43_spill] sm:$0xff] %v14429_v16  ;;  %v15921_v8 = vld [vmem:[#allocation71_spill] sm:$0xff]  ;;  %v14448_v16 = vpop.f32.mrf.mxu0 }
 0x372   :  { %v4360_v15 = vsel %vm4353_vm11, %v4356_v14, %v4359_v4  ;;  %v15916_v32 = vxor.u32 2147483648, %v15915_v50  ;;  %vm4662_vm12 = vcmp.lt.s32.totalorder %v14333_v54, 2  ;;  %v15919_v14 = vld [vmem:[#allocation72_spill] sm:$0xff]  ;;  %v15922_v45 = vxor.u32 2147483648, %v15921_v8  ;;  %v15940_v54 = vld [vmem:[#allocation93_spill] sm:$0xff] }
 0x373   :  { %v4361_v30 = vsel %vm15912_vm13, nan, %v4360_v15  ;;  %v6004_v63 = vsel %vm6002_vm8, %v15915_v50, %v15914_v21  ;;  %v15920_v48 = vxor.u32 2147483648, %v15919_v14  ;;  %v7437_v1 = vsel %vm7393_vm2, %v3433_v61, 0 }
 0x374   :  { %v6007_v56 = vsel %vm6005_vm15, %v15916_v32, %v15913_v40  ;;  %v4668_v15 = vsel %vm4666_vm6, %v15922_v45, %v15919_v14  ;;  %vm6310_vm11 = vcmp.lt.s32.totalorder %v14359_v49, 2  ;;  %v15923_v40 = vld [vmem:[#allocation67_spill] sm:$0xff]  ;;  %v4867_v50 = vand.u32 3, %v13312_v37  ;;  %7828 = vmatpush1.bf16.msra.mxu1 %v7437_v1  ;;  %v15929_v14 = vld [vmem:[#allocation92_spill] sm:$0xff]  ;;  %v15941_v49 = vld [vmem:[#allocation85_spill] sm:$0xff] }
 0x375   :  { %v4665_v4 = vsel %vm4663_vm7, %v15921_v8, %v15920_v48  ;;  %v6008_v32 = vsel %vm6001_vm10, %v6004_v63, %v6007_v56  ;;  %vm15924_vm5 = vweird.f32 %v15923_v40  ;;  %v14450_v48 = vpop.f32.mrf.mxu1  ;;  %v15925_v8 = vld [vmem:[#allocation74_spill] sm:$0xff]  ;;  %v15928_v63 = vxor.u32 2147483648, %v15927_v19 }
 0x376   :  { %v6009_v21 = vsel %vm15924_vm5, nan, %v6008_v32  ;;  %v15926_v42 = vxor.u32 2147483648, %v15925_v8  ;;  %v6515_v37 = vand.u32 3, %v15929_v14  ;;  %v15930_v45 = vpack.c.bf16 %v14160_v24, %v14155_v33 }
 0x377   :  { %v6316_v56 = vsel %vm6314_vm1, %v15928_v63, %v15925_v8  ;;  %v6739_v61 = vpack.c.bf16 %v6009_v21, %v4361_v30  ;;  %v7957_v32 = vsel %vm7393_vm2, %v6733_v5, 0  ;;  %v6738_v1 = vpack.c.bf16 %v14370_v52, %v14366_v31  ;;  %v14472_v40 = vpop.f32.mrf.mxu1  ;;  %v15935_v30 = vld [vmem:[#allocation44_spill] sm:$0xff]  ;;  %9937 = vmatmul.mubr.msk.bf16.vlgmr.msra.gmra.mxu1 %vm7386_vm3, %v13977_v26  ;;  %v15938_v26 = vld [vmem:[#allocation94_spill] sm:$0xff] }
 0x378   :  { %v6313_v35 = vsel %vm6311_vm0, %v15927_v19, %v15926_v42  ;;  %9944 = vmatprep.subr.msk.bf16.mxu1 %vm7393_vm2, %v15930_v45  ;;  %v14470_v42 = vpop.f32.mrf.mxu0  ;;  %15932 = vst [vmem:[#allocation37_spill] sm:$0xff] %v14472_v40  ;;  %v15933_v19 = vld [vmem:[#allocation38_spill] sm:$0xff]  ;;  %vm15936_vm6 = vweird.f32 %v15935_v30  ;;  %v4669_v33 = vsel %vm4662_vm12, %v4665_v4, %v4668_v15  ;;  %vm4868_vm0 = vcmp.lt.s32.totalorder %v4867_v50, 2  ;;  %7855 = vmatprep.mubr.bf16.mxu1 %v15590_v9  ;;  %v15937_v31 = vld [vmem:[#allocation84_spill] sm:$0xff] }
 0x379   :  { %15931 = vst [vmem:[#allocation42_spill] sm:$0xff] %v14470_v42  ;;  %vm15934_vm7 = vweird.f32 %v15933_v19  ;;  %v5803_v21 = vsel %vm15936_vm6, nan, %v5802_v12  ;;  %v7975_v63 = vsel %vm7393_vm2, %v6739_v61, 0  ;;  %v6317_v24 = vsel %vm6310_vm11, %v6313_v35, %v6316_v56  ;;  %v14487_v5 = vpop.f32.mrf.mxu1  ;;  %8066 = vmatpush1.bf16.msra.mxu1 %v7957_v32  ;;  %v15945_v30 = vld [vmem:[#allocation96_spill] sm:$0xff] }
 0x37a   :  { %v4155_v8 = vsel %vm15934_vm7, nan, %v4154_v38  ;;  %8225 = vmatpush1.bf16.msra.mxu0 %v7975_v63  ;;  %vm4869_vm9 = vcmp.eq.s32.totalorder %v4867_v50, 0  ;;  %v14485_v52 = vpop.f32.mrf.mxu0  ;;  %v14491_v38 = vand.u32 3, %v15937_v31  ;;  %v15939_v12 = vxor.u32 2147483648, %v15938_v26  ;;  %9950 = vmatprep.subr.msk.bf16.mxu1 %vm7393_vm2, %v6738_v1  ;;  %v15943_v1 = vld [vmem:[#allocation97_spill] sm:$0xff] }
 0x37b   :  { %vm4872_vm1 = vcmp.eq.s32.totalorder %v4867_v50, 2  ;;  %vm6516_vm10 = vcmp.lt.s32.totalorder %v6515_v37, 2  ;;  %v14498_v15 = vand.u32 3, %v15941_v49  ;;  %v15942_v35 = vxor.u32 2147483648, %v15940_v54  ;;  %v14505_v14 = vpop.f32.mrf.mxu1 }
 0x37c   :  { %v4871_v4 = vsel %vm4869_vm9, %v15940_v54, %v15939_v12  ;;  %vm6517_vm14 = vcmp.eq.s32.totalorder %v6515_v37, 0  ;;  %vm6520_vm8 = vcmp.eq.s32.totalorder %v6515_v37, 2  ;;  %v14503_v61 = vpop.f32.mrf.mxu0  ;;  %v6737_v45 = vpack.c.bf16 %v5803_v21, %v4155_v8  ;;  %v15947_v12 = vld [vmem:[#allocation55_spill] sm:$0xff]  ;;  %v15949_v8 = vld [vmem:[#allocation78_spill] sm:$0xff] }
 0x37d   :  { %v4874_v56 = vsel %vm4872_vm1, %v15942_v35, %v15938_v26  ;;  %9954 = vmatmul.mubr.msk.bf16.vlgmr.msra.gmra.mxu0 %vm7386_vm3, %v14100_v58  ;;  %v15944_v19 = vxor.u32 2147483648, %v15943_v1  ;;  %v15946_v31 = vxor.u32 2147483648, %v15945_v30  ;;  %vm15948_vm15 = vweird.f32 %v15947_v12  ;;  %v14526_v49 = vpop.f32.mrf.mxu1  ;;  %v15951_v35 = vld [vmem:[#allocation60_spill] sm:$0xff] }
 0x37e   :  { %v4875_v32 = vsel %vm4868_vm0, %v4871_v4, %v4874_v56  ;;  %v14518_v54 = vsel %vm15948_vm15, nan, %v4669_v33  ;;  %8252 = vmatprep.mubr.bf16.mxu0 %v15590_v9  ;;  %vm15950_vm13 = vweird.f32 %v15949_v8  ;;  %v14524_v4 = vpop.f32.mrf.mxu0  ;;  %vm15952_vm12 = vweird.f32 %v15951_v35  ;;  %v15953_v33 = vld [vmem:[#allocation83_spill] sm:$0xff] }
 0x37f   :  { %v6519_v63 = vsel %vm6517_vm14, %v15945_v30, %v15944_v19  ;;  %v6522_v26 = vsel %vm6520_vm8, %v15946_v31, %v15943_v1  ;;  %v4876_v21 = vsel %vm15950_vm13, nan, %v4875_v32  ;;  %v14530_v56 = vsel %vm15952_vm12, nan, %v6317_v24  ;;  %v14540_v30 = vpop.f32.mrf.mxu1  ;;  %9938 = vmatmul.mubr.msk.bf16.gmra.mxu1 %vm7386_vm3, %v14061_v57  ;;  %v15959_v8 = vld [vmem:[#allocation87_spill] sm:$0xff] }
 0x380   :  { %v6523_v50 = vsel %vm6516_vm10, %v6519_v63, %v6522_v26  ;;  %vm4560_vm11 = vcmp.eq.s32.totalorder %v14491_v38, 0  ;;  %vm4563_vm5 = vcmp.eq.s32.totalorder %v14491_v38, 2  ;;  %vm15954_vm7 = vweird.f32 %v15953_v33  ;;  %v14538_v19 = vpop.f32.mrf.mxu0  ;;  %15956 = vst [vmem:[#allocation61_spill] sm:$0xff] %v14540_v30  ;;  %v15957_v26 = vld [vmem:[#allocation88_spill] sm:$0xff]  ;;  %8083 = vmatprep.mubr.bf16.mxu1 %v15590_v9  ;;  %v15965_v33 = vld [vmem:[#allocation89_spill] sm:$0xff] }
 0x381   :  { %v6524_v1 = vsel %vm15954_vm7, nan, %v6523_v50  ;;  %vm6208_vm6 = vcmp.eq.s32.totalorder %v14498_v15, 0  ;;  %v4764_v37 = vand.u32 3, %v13649_v10  ;;  %15955 = vst [vmem:[#allocation54_spill] sm:$0xff] %v14538_v19  ;;  %v7969_v63 = vsel %vm7393_vm2, %v6737_v45, 0  ;;  %v15961_v45 = vld [vmem:[#allocation95_spill] sm:$0xff]  ;;  %v14564_v57 = vpop.f32.mrf.mxu1 }
 0x382   :  { %v6744_v32 = vpack.c.bf16 %v6524_v1, %v4876_v21  ;;  %v6412_v24 = vand.u32 3, %v13724_v46  ;;  %v6742_v31 = vpack.c.bf16 %v14530_v56, %v14518_v54  ;;  %v15958_v12 = vxor.u32 2147483648, %v15957_v26  ;;  %v14562_v35 = vpop.f32.mrf.mxu0  ;;  %15962 = vst [vmem:[#allocation11_spill] sm:$0xff] %v14564_v57  ;;  %v15963_v54 = vld [vmem:[#allocation90_spill] sm:$0xff] }
 0x383   :  { %v15960_v10 = vxor.u32 2147483648, %v15959_v8  ;;  %v14560_v46 = vand.u32 3, %v15961_v45  ;;  %vm4559_vm0 = vcmp.lt.s32.totalorder %v14491_v38, 2  ;;  %vm6207_vm9 = vcmp.lt.s32.totalorder %v14498_v15, 2  ;;  %v14581_v45 = vpop.f32.mrf.mxu1 }
 0x384   :  { %v14551_v21 = vsel %vm4560_vm11, %v15959_v8, %v15958_v12  ;;  %9959 = vmatprep.subr.msk.bf16.mxu0 %vm7393_vm2, %v6744_v32  ;;  %v15964_v56 = vxor.u32 2147483648, %v15963_v54  ;;  %vm4765_vm1 = vcmp.lt.s32.totalorder %v4764_v37, 2  ;;  %vm4766_vm10 = vcmp.eq.s32.totalorder %v4764_v37, 0  ;;  %15967 = vst [vmem:[#allocation16_spill] sm:$0xff] %v14581_v45 }
 0x385   :  { %v14556_v50 = vsel %vm4563_vm5, %v15960_v10, %v15957_v26  ;;  %v4970_v32 = vand.u32 3, %v13886_v17  ;;  %v15966_v26 = vxor.u32 2147483648, %v13759_v0  ;;  %vm4769_vm14 = vcmp.eq.s32.totalorder %v4764_v37, 2  ;;  %v14579_v10 = vpop.f32.mrf.mxu0  ;;  %9955 = vmatmul.mubr.msk.bf16.gmra.mxu0 %vm7386_vm3, %v14183_v60 }
 0x386   :  { %v6210_v1 = vsel %vm6208_vm6, %v15965_v33, %v15964_v56  ;;  %vm6413_vm8 = vcmp.lt.s32.totalorder %v6412_v24, 2  ;;  %v6618_v8 = vand.u32 3, %v14024_v7  ;;  %vm6211_vm15 = vcmp.eq.s32.totalorder %v14498_v15, 2  ;;  %8348 = vmatprep.mubr.bf16.mxu0 %v15590_v9 }
 0x387   :  { %v4768_v12 = vsel %vm4766_vm10, %v13740_v18, %v15966_v26  ;;  %v15968_v17 = vxor.u32 2147483648, %v13740_v18  ;;  %vm6414_vm13 = vcmp.eq.s32.totalorder %v6412_v24, 0  ;;  %vm6417_vm12 = vcmp.eq.s32.totalorder %v6412_v24, 2  ;;  %v15969_v26 = vld [vmem:[#allocation98_spill] sm:$0xff]  ;;  %v14599_v45 = vpop.f32.mrf.mxu0  ;;  %v14601_v18 = vpop.f32.mrf.mxu1  ;;  %9945 = vmatmul.mubr.msk.bf16.vlgmr.msra.gmra.mxu1 %vm7386_vm3, %v14100_v58 }
 0x388   :  { %v14590_v37 = vand.u32 3, %v15969_v26  ;;  %v15970_v7 = vxor.u32 2147483648, %v13877_v20  ;;  %v15971_v19 = vxor.u32 2147483648, %v13867_v34  ;;  %15972 = vst [vmem:[#allocation64_spill] sm:$0xff] %v14601_v18  ;;  %vm15973_vm11 = vweird.f32 %v13332_v53  ;;  %8093 = vmatprep.mubr.bf16.mxu1 %v15590_v9  ;;  %8172 = vmatpush1.bf16.msra.mxu1 %v7969_v63  ;;  %v16005_v18 = vld [vmem:[#allocation34_spill] sm:$0xff] }
 0x389   :  { %v4771_v56 = vsel %vm4769_vm14, %v15968_v17, %v13759_v0  ;;  %vm4971_vm5 = vcmp.lt.s32.totalorder %v4970_v32, 2  ;;  %vm4972_vm7 = vcmp.eq.s32.totalorder %v4970_v32, 0  ;;  %vm15974_vm6 = vweird.f32 %v13443_v59  ;;  %9956 = vmatprep.subr.msk.bf16.mxu1 %vm7393_vm2, %v6742_v31 }
 0x38a   :  { %v4772_v30 = vsel %vm4765_vm1, %v4768_v12, %v4771_v56  ;;  %v6416_v40 = vsel %vm6414_vm13, %v13867_v34, %v15970_v7  ;;  %v6419_v42 = vsel %vm6417_vm12, %v15971_v19, %v13877_v20  ;;  %v15975_v56 = vxor.u32 2147483648, %v14110_v41  ;;  %v14611_v20 = vpop.f32.mrf.mxu0  ;;  %v14613_v19 = vpop.f32.mrf.mxu1 }
 0x38b   :  { %v4773_v0 = vsel %vm15973_vm11, nan, %v4772_v30  ;;  %v6420_v17 = vsel %vm6413_vm8, %v6416_v40, %v6419_v42  ;;  %vm4975_vm1 = vcmp.eq.s32.totalorder %v4970_v32, 2  ;;  %vm6619_vm10 = vcmp.lt.s32.totalorder %v6618_v8, 2  ;;  %15976 = vst [vmem:[#allocation63_spill] sm:$0xff] %v14613_v19  ;;  %v14618_v40 = vpop.permute.xlu0 %7300  ;;  %v16004_v19 = vld [vmem:[#allocation28_spill] sm:$0xff] }
 0x38c   :  { %v6421_v12 = vsel %vm15974_vm6, nan, %v6420_v17  ;;  %v4974_v34 = vsel %vm4972_vm7, %v14103_v43, %v15975_v56  ;;  %v15977_v53 = vxor.u32 2147483648, %v14103_v43  ;;  %vm6620_vm14 = vcmp.eq.s32.totalorder %v6618_v8, 0  ;;  %v14635_v17 = vpop.f32.mrf.mxu1 }
 0x38d   :  { %v6743_v26 = vpack.c.bf16 %v6421_v12, %v4773_v0  ;;  %vm6623_vm8 = vcmp.eq.s32.totalorder %v6618_v8, 2  ;;  %v15978_v59 = vxor.u32 2147483648, %v15965_v33  ;;  %v15979_v32 = vxor.u32 2147483648, %v14361_v28  ;;  %v14633_v0 = vpop.f32.mrf.mxu0  ;;  %15981 = vst [vmem:[#allocation66_spill] sm:$0xff] %v14635_v17  ;;  %v16003_v17 = vld [vmem:[#allocation24_spill] sm:$0xff] }
 0x38e   :  { %v4977_v42 = vsel %vm4975_vm1, %v15977_v53, %v14110_v41  ;;  %v15980_v43 = vxor.u32 2147483648, %v14352_v36  ;;  %vm5075_vm13 = vcmp.eq.s32.totalorder %v14560_v46, 0  ;;  %vm6723_vm12 = vcmp.eq.s32.totalorder %v14590_v37, 0  ;;  %v7541_v63 = vpop.f32.mrf.mxu1 }
 0x38f   :  { %v6213_v30 = vsel %vm6211_vm15, %v15978_v59, %v15963_v54  ;;  %v4978_v24 = vsel %vm4971_vm5, %v4974_v34, %v4977_v42  ;;  %v6622_v7 = vsel %vm6620_vm14, %v14352_v36, %v15979_v32  ;;  %v7987_v54 = vsel %vm7393_vm2, %v6743_v26, 0  ;;  %v14683_v59 = vpop.permute.xlu0 %7305  ;;  %9946 = vmatmul.mubr.msk.bf16.gmra.mxu1 %vm7386_vm3, %v14183_v60 }
 0x390   :  { %v6625_v41 = vsel %vm6623_vm8, %v15980_v43, %v14361_v28  ;;  %v14642_v33 = vsel %vm1639_vm4, nan, %v4978_v24  ;;  %vm5078_vm15 = vcmp.eq.s32.totalorder %v14560_v46, 2  ;;  %vm6726_vm11 = vcmp.eq.s32.totalorder %v14590_v37, 2  ;;  %8331 = vmatpush1.bf16.msra.mxu0 %v7987_v54  ;;  %v7488_v28 = vpop.f32.mrf.mxu0  ;;  %v14669_v26 = vpop.f32.mrf.mxu1  ;;  %v15992_v24 = vld [vmem:[#allocation75_spill] sm:$0xff]  ;;  %8189 = vmatprep.mubr.bf16.mxu1 %v15590_v9 }
 0x391   :  { %v6626_v12 = vsel %vm6619_vm10, %v6622_v7, %v6625_v41  ;;  %vm15982_vm5 = vweird.f32 %v13652_v25  ;;  %v4566_v31 = vsel %vm4559_vm0, %v14551_v21, %v14556_v50  ;;  %v6214_v8 = vsel %vm6207_vm9, %v6210_v1, %v6213_v30  ;;  %15984 = vst [vmem:[#allocation65_spill] sm:$0xff] %v14669_v26  ;;  %v15987_v21 = vld [vmem:[#allocation99_spill] sm:$0xff]  ;;  %v16002_v26 = vld [vmem:[#allocation25_spill] sm:$0xff] }
 0x392   :  { %v14651_v36 = vsel %vm15982_vm5, nan, %v6626_v12  ;;  %vm5074_vm4 = vcmp.lt.s32.totalorder %v14560_v46, 2  ;;  %v15983_v56 = vxor.u32 2147483648, %v13552_v39  ;;  %v14667_v34 = vpop.f32.mrf.mxu0  ;;  %v15985_v53 = vxor.u32 2147483648, %v13528_v29 }
 0x393   :  { %vm6722_vm0 = vcmp.lt.s32.totalorder %v14590_v37, 2  ;;  %v15986_v15 = vxor.u32 2147483648, %v13644_v13  ;;  %v15988_v1 = vxor.u32 2147483648, %v15987_v21  ;;  %9960 = vmatmul.mubr.msk.bf16.vlgmr.msra.gmra.mxu0 %vm7386_vm3, %v14100_v58  ;;  %vm15993_vm7 = vweird.f32 %v15992_v24 }
 0x394   :  { %v5077_v25 = vsel %vm5075_vm13, %v13528_v29, %v15983_v56  ;;  %v5080_v38 = vsel %vm5078_vm15, %v15985_v53, %v13552_v39  ;;  %8358 = vmatprep.mubr.bf16.mxu0 %v15590_v9  ;;  %v14686_v30 = vpop.f32.mrf.mxu0  ;;  %v14688_v39 = vpop.f32.mrf.mxu1  ;;  %v15990_v29 = vld [vmem:[#allocation70_spill] sm:$0xff]  ;;  %v6215_v32 = vsel %vm15993_vm7, nan, %v6214_v8  ;;  %v14711_v46 = vadd.f32 %v14683_v59, %v14375_v6 }
 0x395   :  { %v6725_v50 = vsel %vm6723_vm12, %v15987_v21, %v15986_v15  ;;  %v6728_v42 = vsel %vm6726_vm11, %v15988_v1, %v13644_v13  ;;  %15989 = vst [vmem:[#allocation57_spill] sm:$0xff] %v14688_v39  ;;  %vm15991_vm9 = vweird.f32 %v15990_v29  ;;  %v14696_v13 = vadd.f32 %v14683_v59, %v14215_v2  ;;  %v15994_v53 = vld [vmem:[#allocation86_spill] sm:$0xff]  ;;  %v15996_v15 = vld [vmem:[#allocation91_spill] sm:$0xff]  ;;  %v14707_v21 = vpop.permute.xlu1 %7290 }
 0x396   :  { %v4567_v37 = vsel %vm15991_vm9, nan, %v4566_v31  ;;  %v5081_v7 = vsel %vm5074_vm4, %v5077_v25, %v5080_v38  ;;  %v6729_v43 = vsel %vm6722_vm0, %v6725_v50, %v6728_v42  ;;  %v7582_v41 = vpop.f32.mrf.mxu0  ;;  %v7635_v54 = vpop.f32.mrf.mxu1  ;;  %vm15995_vm6 = vweird.f32 %v15994_v53  ;;  %v16001_v39 = vld [vmem:[#allocation30_spill] sm:$0xff] }
 0x397   :  { %v6741_v12 = vpack.c.bf16 %v6215_v32, %v4567_v37  ;;  %v5082_v8 = vsel %vm15995_vm6, nan, %v5081_v7  ;;  %vm15997_vm1 = vweird.f32 %v15996_v15  ;;  %v14723_v37 = vadd.f32 %v14683_v59, %v14526_v49  ;;  %9951 = vmatmul.mubr.msk.bf16.vlgmr.msra.gmra.mxu1 %vm7386_vm3, %v14100_v58 }
 0x398   :  { %v7584_v31 = vpop.f32.mrf.mxu0  ;;  %v7637_v56 = vpop.f32.mrf.mxu1  ;;  %v6730_v2 = vsel %vm15997_vm1, nan, %v6729_v43  ;;  %8199 = vmatprep.mubr.bf16.mxu1 %v15590_v9  ;;  %v7341_v7 = vadd.f32 %v14618_v40, %v14033_v51  ;;  %v7343_v43 = vadd.f32 %v14618_v40, %v14035_v22  ;;  %v7312_v49 = vadd.f32 %v14707_v21, %v14083_v55 }
 0x399   :  { %v7981_v50 = vsel %vm7393_vm2, %v6741_v12, 0  ;;  %v6746_v1 = vpack.c.bf16 %v6730_v2, %v5082_v8  ;;  %v14728_v32 = vpop.permute.xlu1 %7295  ;;  %v7314_v8 = vadd.f32 %v14707_v21, %v14085_v44  ;;  %v7313_v15 = vadd.f32 %v14707_v21, %v14106_v3 }
 0x39a   :  { %v7586_v25 = vpop.f32.mrf.mxu0  ;;  %v7639_v38 = vpop.f32.mrf.mxu1  ;;  %8278 = vmatpush1.bf16.msra.mxu1 %v7981_v50  ;;  %v7315_v2 = vadd.f32 %v14707_v21, %v14108_v11  ;;  %v7328_v51 = vadd.f32 %v14728_v32, %v14126_v62  ;;  %v7330_v22 = vadd.f32 %v14728_v32, %v14128_v23  ;;  %v15999_v50 = vld [vmem:[#allocation32_spill] sm:$0xff]  ;;  %v14751_v27 = vadd.f32 %v7541_v63, %v7343_v43 }
 0x39b   :  { %9961 = vmatmul.mubr.msk.bf16.gmra.mxu0 %vm7386_vm3, %v14183_v60  ;;  %9962 = vmatprep.subr.msk.bf16.mxu1 %vm7393_vm2, %v6746_v1  ;;  %v7344_v55 = vadd.f32 %v14618_v40, %v15999_v50  ;;  %v14749_v1 = vadd.f32 %v7488_v28, %v7341_v7  ;;  %v7346_v3 = vadd.f32 %v14618_v40, %v16001_v39  ;;  %v16006_v7 = vld [vmem:[#allocation17_spill] sm:$0xff] }
 0x39c   :  { %v14716_v42 = vpop.f32.mrf.mxu0  ;;  %v14718_v29 = vpop.f32.mrf.mxu1  ;;  %8659 = vmatprep.mubr.bf16.mxu0 %v15590_v9  ;;  %16000 = vst [vmem:[#allocation47_spill] sm:$0xff] %v14751_v27  ;;  %v7345_v11 = vadd.f32 %v14618_v40, %v16002_v26  ;;  %v7347_v62 = vadd.f32 %v14618_v40, %v16003_v17  ;;  %v7360_v23 = vadd.f32 %v14683_v59, %v16004_v19 }
 0x39d   :  { %15998 = vst [vmem:[#allocation56_spill] sm:$0xff] %v14718_v29  ;;  %v7316_v28 = vadd.f32 %v14707_v21, %v16005_v18  ;;  %v7318_v63 = vadd.f32 %v14707_v21, %v16006_v7  ;;  %v14765_v43 = vadd.f32 %v7582_v41, %v7312_v49  ;;  %v14767_v50 = vadd.f32 %v7635_v54, %v7314_v8  ;;  %v16009_v18 = vld [vmem:[#allocation36_spill] sm:$0xff] }
 0x39e   :  { %v7592_v6 = vpop.f32.mrf.mxu0  ;;  %v7645_v24 = vpop.f32.mrf.mxu1  ;;  %v14773_v26 = vadd.f32 %v7584_v31, %v7313_v15  ;;  %v14775_v17 = vadd.f32 %v7637_v56, %v7315_v2  ;;  %v14777_v57 = vadd.f32 %v7586_v25, %v7328_v51  ;;  %v14779_v19 = vadd.f32 %v7639_v38, %v7330_v22  ;;  %v16010_v54 = vld [vmem:[#allocation20_spill] sm:$0xff] }
 0x39f   :  { %9952 = vmatmul.mubr.msk.bf16.gmra.mxu1 %vm7386_vm3, %v14183_v60  ;;  %v7317_v41 = vadd.f32 %v14707_v21, %v16009_v18  ;;  %v7319_v49 = vadd.f32 %v14707_v21, %v16010_v54  ;;  %v14787_v8 = vadd.f32 %v7592_v6, %v7344_v55  ;;  %v14789_v7 = vadd.f32 %v7645_v24, %v7346_v3  ;;  %v16015_v55 = vld [vmem:[#allocation45_spill] sm:$0xff] }
 0x3a0   :  { %v7594_v12 = vpop.f32.mrf.mxu0  ;;  %v7647_v53 = vpop.f32.mrf.mxu1  ;;  %16008 = vst [vmem:[#allocation59_spill] sm:$0xff] %v14779_v19  ;;  %8295 = vmatprep.mubr.bf16.mxu1 %v15590_v9  ;;  %v7332_v3 = vadd.f32 %v14728_v32, %v16015_v55  ;;  %v16016_v18 = vld [vmem:[#allocation13_spill] sm:$0xff] }
 0x3a1   :  { %16011 = vst [vmem:[#allocation58_spill] sm:$0xff] %v14789_v7  ;;  %v14792_v25 = vadd.f32 %v7594_v12, %v7345_v11  ;;  %v14794_v38 = vadd.f32 %v7647_v53, %v7347_v62  ;;  %v7334_v12 = vadd.f32 %v14728_v32, %v16016_v18  ;;  %v16035_v7 = vld [vmem:[#allocation9_spill] sm:$0xff] }
 0x3a2   :  { %v7596_v44 = vpop.f32.mrf.mxu0  ;;  %v7649_v29 = vpop.f32.mrf.mxu1 }
 0x3a3   :  { %16012 = vst [vmem:[#allocation52_spill] sm:$0xff] %v14794_v38  ;;  %v14796_v15 = vadd.f32 %v7596_v44, %v7360_v23  ;;  %v14799_v2 = vadd.f32 %v7649_v29, %v14696_v13  ;;  %v16019_v23 = vpack.c.bf16 %v14651_v36, %v14642_v33  ;;  %v16024_v36 = vld [vmem:[#allocation49_spill] sm:$0xff]  ;;  %v16034_v38 = vld [vmem:[#allocation15_spill] sm:$0xff] }
 0x3a4   :  { %v14769_v39 = vpop.f32.mrf.mxu0  ;;  %v14771_v27 = vpop.f32.mrf.mxu1 }
 0x3a5   :  { %16007 = vst [vmem:[#allocation68_spill] sm:$0xff] %v14771_v27  ;;  %16013 = vst [vmem:[#allocation76_spill] sm:$0xff] %v14799_v2 }
 0x3a6   :  { %v7688_v31 = vpop.f32.mrf.mxu0  ;;  %v7741_v56 = vpop.f32.mrf.mxu1 }
 0x3a7   :  { %v14801_v51 = vadd.f32 %v7688_v31, %v7316_v28  ;;  %v14803_v22 = vadd.f32 %v7741_v56, %v7318_v63  ;;  %v7993_v28 = vsel %vm7393_vm2, %v16019_v23, 0  ;;  %v16021_v31 = vld [vmem:[#allocation41_spill] sm:$0xff]  ;;  %9957 = vmatmul.mubr.msk.bf16.vlgmr.msra.gmra.mxu1 %vm7386_vm3, %v14100_v58  ;;  %v7364_v23 = vadd.f32 %v14683_v59, %v14373_v47 }
 0x3a8   :  { %v7690_v6 = vpop.f32.mrf.mxu0  ;;  %v7743_v24 = vpop.f32.mrf.mxu1  ;;  %8305 = vmatprep.mubr.bf16.mxu1 %v15590_v9  ;;  %8384 = vmatpush1.bf16.msra.mxu1 %v7993_v28  ;;  %vm8620_vm2 = vcmask 261120  }
 0x3a9   :  { %16014 = vst [vmem:[#allocation69_spill] sm:$0xff] %v14803_v22  ;;  %v14809_v11 = vadd.f32 %v7690_v6, %v7317_v41  ;;  %v14811_v53 = vadd.f32 %v7743_v24, %v7319_v49  ;;  %v7348_v41 = vadd.f32 %v14618_v40, %v16021_v31  ;;  %v16022_v49 = vld [vmem:[#allocation40_spill] sm:$0xff]  ;;  %v16023_v6 = vld [vmem:[#allocation46_spill] sm:$0xff] }
 0x3aa   :  { %v7692_v44 = vpop.f32.mrf.mxu0  ;;  %v7745_v62 = vpop.f32.mrf.mxu1  ;;  %v7350_v56 = vadd.f32 %v14618_v40, %v16022_v49  ;;  %v7349_v24 = vadd.f32 %v14618_v40, %v16023_v6 }
 0x3ab   :  { %16017 = vst [vmem:[#allocation23_spill] sm:$0xff] %v14811_v53  ;;  %v14813_v13 = vadd.f32 %v7692_v44, %v7332_v3  ;;  %v14815_v29 = vadd.f32 %v7745_v62, %v7334_v12  ;;  %v7351_v3 = vadd.f32 %v14618_v40, %v16024_v36 }
 0x3ac   :  { %v14821_v63 = vpop.f32.mrf.mxu0  ;;  %v14823_v54 = vpop.f32.mrf.mxu1 }
 0x3ad   :  { %16018 = vst [vmem:[#allocation27_spill] sm:$0xff] %v14815_v29  ;;  %16020 = vst [vmem:[#allocation77_spill] sm:$0xff] %v14823_v54 }
 0x3ae   :  { %v7698_v55 = vpop.f32.mrf.mxu0  ;;  %v7751_v33 = vpop.f32.mrf.mxu1 }
 0x3af   :  { %v14836_v18 = vadd.f32 %v7698_v55, %v7348_v41  ;;  %v14838_v12 = vadd.f32 %v7751_v33, %v7350_v56  ;;  %9958 = vmatmul.mubr.msk.bf16.gmra.mxu1 %vm7386_vm3, %v14183_v60  ;;  %v16028_v41 = vld [vmem:[#allocation51_spill] sm:$0xff]  ;;  %v16029_v56 = vld [vmem:[#allocation53_spill] sm:$0xff] }
 0x3b0   :  { %v7700_v44 = vpop.f32.mrf.mxu0  ;;  %v7753_v62 = vpop.f32.mrf.mxu1  ;;  %8401 = vmatprep.mubr.bf16.mxu1 %v15590_v9 }
 0x3b1   :  { %16025 = vst [vmem:[#allocation80_spill] sm:$0xff] %v14838_v12  ;;  %v14842_v31 = vadd.f32 %v7700_v44, %v7349_v24  ;;  %v14844_v49 = vadd.f32 %v7753_v62, %v7351_v3  ;;  %v7321_v24 = vadd.f32 %v14707_v21, %v16029_v56  ;;  %v7352_v62 = vadd.f32 %v14618_v40, %v14485_v52 }
 0x3b2   :  { %v7702_v6 = vpop.f32.mrf.mxu0  ;;  %v7755_v29 = vpop.f32.mrf.mxu1 }
 0x3b3   :  { %16026 = vst [vmem:[#allocation79_spill] sm:$0xff] %v14844_v49  ;;  %v14846_v53 = vadd.f32 %v7702_v6, %v7364_v23  ;;  %v14849_v28 = vadd.f32 %v7755_v29, %v14711_v46  ;;  %v7320_v46 = vadd.f32 %v14707_v21, %v16028_v41  ;;  %v7353_v6 = vadd.f32 %v14618_v40, %v14503_v61 }
 0x3b4   :  { %v14860_v47 = vpop.f32.mrf.mxu0 }
 0x3b5   :  { %16027 = vst [vmem:[#allocation62_spill] sm:$0xff] %v14849_v28  ;;  %v16031_v28 = vld [vmem:[#allocation102_spill] sm:$0xff] }
 0x3b6   :  { %v7309_v61 = vadd.f32 %v14707_v21, %v16031_v28 }
 0x3b7   :  { %9963 = vmatmul.mubr.msk.bf16.vlgmr.msra.gmra.mxu1 %vm7386_vm3, %v14100_v58  ;;  %v7336_v58 = vadd.f32 %v14728_v32, %v14448_v16  ;;  %v7368_v16 = vadd.f32 %v14683_v59, %v14524_v4 }
 0x3b8   :  { %8411 = vmatprep.mubr.bf16.mxu1 %v15590_v9 }
 0x3bf   :  { %9964 = vmatmul.mubr.msk.bf16.gmra.mxu1 %vm7386_vm3, %v14183_v60 }
 0x3c0   :  { %8712 = vmatprep.mubr.bf16.mxu1 %v15590_v9 }
 0x3f7   :  { %v7794_v29 = vpop.f32.mrf.mxu0 }
 0x3f8   :  { %v14866_v55 = vadd.f32 %v7794_v29, %v7320_v46 }
 0x3f9   :  { %v7796_v33 = vpop.f32.mrf.mxu0 }
 0x3fa   :  { %v14870_v36 = vadd.f32 %v7796_v33, %v7321_v24 }
 0x3fb   :  { %v7798_v60 = vpop.f32.mrf.mxu0 }
 0x3fc   :  { %v14872_v3 = vadd.f32 %v7798_v60, %v7336_v58  ;;  %v16030_v58 = vld [vmem:[#allocation100_spill] sm:$0xff] }
 0x3fd   :  { %v14874_v44 = vpop.f32.mrf.mxu0  ;;  %v7308_v52 = vadd.f32 %v14707_v21, %v16030_v58 }
 0x3ff   :  { %v7804_v23 = vpop.f32.mrf.mxu0 }
 0x400   :  { %v14880_v41 = vadd.f32 %v7804_v23, %v7352_v62  ;;  %v7866_v62 = vadd.f32 %v14562_v35, %v7308_v52  ;;  %v16032_v23 = vld [vmem:[#allocation12_spill] sm:$0xff]  ;;  %v7340_v35 = vadd.f32 %v14618_v40, %v16034_v38 }
 0x401   :  { %v7806_v46 = vpop.f32.mrf.mxu0  ;;  %v7324_v49 = vadd.f32 %v14728_v32, %v16032_v23 }
 0x402   :  { %v14884_v29 = vadd.f32 %v7806_v46, %v7353_v6  ;;  %v16033_v6 = vld [vmem:[#allocation19_spill] sm:$0xff] }
 0x403   :  { %v7808_v56 = vpop.f32.mrf.mxu0  ;;  %v7325_v46 = vadd.f32 %v14728_v32, %v16033_v6  ;;  %v7356_v6 = vadd.f32 %v14683_v59, %v16035_v7 }
 0x404   :  { %v14886_v24 = vadd.f32 %v7808_v56, %v7368_v16  ;;  %v7867_v16 = vadd.f32 %v14579_v10, %v7309_v61  ;;  %v7882_v56 = vadd.f32 %v14599_v45, %v7324_v49  ;;  %v7898_v10 = vadd.f32 %v14633_v0, %v7340_v35 }
 0x405   :  { %v14888_v33 = vpop.f32.mrf.mxu0  ;;  %v7883_v58 = vadd.f32 %v14611_v20, %v7325_v46  ;;  %v16036_v20 = vld [vmem:[#allocation10_spill] sm:$0xff] }
 0x407   :  { %v8032_v60 = vpop.f32.mrf.mxu0 }
 0x408   :  { %v8422_v12 = vadd.f32 %v8032_v60, %v7866_v62  ;;  %v7914_v62 = vadd.f32 %v14667_v34, %v7356_v6  ;;  %v16037_v34 = vld [vmem:[#allocation22_spill] sm:$0xff] }
 0x409   :  { %v8034_v4 = vpop.f32.mrf.mxu0 }
 0x40a   :  { %v8423_v22 = vadd.f32 %v8034_v4, %v7867_v16  ;;  %v8486_v52 = vmax.f32 %v8422_v12, 0.0 }
 0x40b   :  { %v8036_v54 = vpop.f32.mrf.mxu0 }
 0x40c   :  { %v8438_v2 = vadd.f32 %v8036_v54, %v7882_v56  ;;  %v8487_v45 = vmax.f32 %v8423_v22, 0.0  ;;  %v7357_v54 = vadd.f32 %v14683_v59, %v16036_v20 }
 0x40d   :  { %v8038_v28 = vpop.f32.mrf.mxu0 }
 0x40e   :  { %v8502_v23 = vmax.f32 %v8438_v2, 0.0  ;;  %v8439_v27 = vadd.f32 %v8038_v28, %v7883_v58  ;;  %v7915_v2 = vadd.f32 %v14686_v30, %v7357_v54 }
 0x40f   :  { %v8042_v19 = vpop.f32.mrf.mxu0 }
 0x410   :  { %v8554_v49 = vpack.c.bf16 %v8502_v23, %v8486_v52  ;;  %v8503_v60 = vmax.f32 %v8439_v27, 0.0  ;;  %v8454_v38 = vadd.f32 %v8042_v19, %v7898_v10  ;;  %v7329_v19 = vadd.f32 %v14728_v32, %v16037_v34 }
 0x411   :  { %v8044_v61 = vpop.f32.mrf.mxu0 }
 0x412   :  { %v8555_v4 = vpack.c.bf16 %v8503_v60, %v8487_v45  ;;  %v8455_v46 = vadd.f32 %v8044_v61, %v14749_v1  ;;  %v8518_v56 = vmax.f32 %v8454_v38, 0.0  ;;  %v7887_v1 = vadd.f32 %v14716_v42, %v7329_v19  ;;  %v14921_v61 = vld [vmem:[%s15301_s6] sm:$0xff]  }
 0x413   :  { %v8046_v12 = vpop.f32.mrf.mxu0 }
 0x414   :  { %v8470_v7 = vadd.f32 %v8046_v12, %v7914_v62  ;;  %v8519_v58 = vmax.f32 %v8455_v46, 0.0 }
 0x415   :  { %v8048_v16 = vpop.f32.mrf.mxu0 }
 0x416   :  { %v8534_v0 = vmax.f32 %v8470_v7, 0.0  ;;  %v8471_v22 = vadd.f32 %v8048_v16, %v7915_v2  ;;  %v14929_v7 = vpop.f32.mrf.mxu1 }
 0x418   :  { %v8570_v27 = vpack.c.bf16 %v8534_v0, %v8518_v56  ;;  %v8535_v28 = vmax.f32 %v8471_v22, 0.0 }
 0x41a   :  { %v8571_v35 = vpack.c.bf16 %v8535_v28, %v8519_v58  ;;  %v14937_v58 = vld [vmem:[%s15301_s6 + $0x8] sm:$0xff]  }
 0x41c   :  { %8639 = vmatprep.subr.bf16.mxu0 %v8571_v35 }
 0x41d   :  { %8640 = vmatpush1.bf16.msra.mxu0 %v8570_v27  ;;  %v16039_v27 = vld [vmem:[#allocation50_spill] sm:$0xff] }
 0x41e   :  { %8641 = vmatprep.subr.bf16.mxu0 %v8555_v4 }
 0x421   :  { %8642 = vmatpush1.bf16.msra.mxu0 %v8554_v49 }
 0x424   :  { %v8138_v52 = vpop.f32.mrf.mxu0  ;;  %9967 = vmatmul.mubr.msk.bf16.vlgmr.msra.gmra.mxu0 %vm8620_vm2, %v14921_v61 }
 0x425   :  { %v8426_v6 = vadd.f32 %v8138_v52, %v14765_v43  ;;  %8669 = vmatprep.mubr.bf16.mxu0 %v15590_v9 }
 0x426   :  { %v8140_v23 = vpop.f32.mrf.mxu0 }
 0x427   :  { %v8427_v10 = vadd.f32 %v8140_v23, %v14773_v26  ;;  %v8490_v20 = vmax.f32 %v8426_v6, 0.0  ;;  %v16040_v23 = vld [vmem:[#allocation43_spill] sm:$0xff] }
 0x428   :  { %v8142_v30 = vpop.f32.mrf.mxu0  ;;  %v7323_v34 = vadd.f32 %v14707_v21, %v16040_v23  ;;  %v16042_v23 = vld [vmem:[#allocation48_spill] sm:$0xff] }
 0x429   :  { %v8442_v45 = vadd.f32 %v8142_v30, %v14777_v57  ;;  %v8491_v38 = vmax.f32 %v8427_v10, 0.0  ;;  %v16038_v57 = vld [vmem:[#allocation26_spill] sm:$0xff] }
 0x42a   :  { %v8144_v60 = vpop.f32.mrf.mxu0  ;;  %v7361_v26 = vadd.f32 %v14683_v59, %v16038_v57 }
 0x42b   :  { %v8506_v54 = vmax.f32 %v8442_v45, 0.0  ;;  %v8443_v62 = vadd.f32 %v8144_v60, %v7887_v1  ;;  %v7338_v1 = vadd.f32 %v14728_v32, %v14450_v48  ;;  %v7354_v48 = vadd.f32 %v14618_v40, %v14487_v5 }
 0x42c   :  { %v7919_v16 = vadd.f32 %v14769_v39, %v7361_v26  ;;  %9968 = vmatmul.mubr.msk.bf16.gmra.mxu0 %vm8620_vm2, %v14937_v58 }
 0x42d   :  { %v8148_v43 = vpop.f32.mrf.mxu0  ;;  %v8558_v4 = vpack.c.bf16 %v8506_v54, %v8490_v20  ;;  %v8507_v12 = vmax.f32 %v8443_v62, 0.0  ;;  %8765 = vmatprep.mubr.bf16.mxu0 %v15590_v9 }
 0x42e   :  { %v8458_v46 = vadd.f32 %v8148_v43, %v14787_v8  ;;  %v7322_v8 = vadd.f32 %v14707_v21, %v16039_v27  ;;  %v16041_v43 = vld [vmem:[#allocation8_spill] sm:$0xff] }
 0x42f   :  { %v8150_v42 = vpop.f32.mrf.mxu0  ;;  %v8559_v2 = vpack.c.bf16 %v8507_v12, %v8491_v38  ;;  %v7333_v38 = vadd.f32 %v14728_v32, %v16041_v43  ;;  %v16045_v43 = vld [vmem:[#allocation11_spill] sm:$0xff] }
 0x430   :  { %v8459_v56 = vadd.f32 %v8150_v42, %v14792_v25  ;;  %v8522_v28 = vmax.f32 %v8458_v46, 0.0 }
 0x431   :  { %v8152_v49 = vpop.f32.mrf.mxu0  ;;  %v7891_v26 = vadd.f32 %v14821_v63, %v7333_v38 }
 0x432   :  { %v8474_v0 = vadd.f32 %v8152_v49, %v14796_v15  ;;  %v8523_v25 = vmax.f32 %v8459_v56, 0.0  ;;  %v7355_v56 = vadd.f32 %v14618_v40, %v14505_v14 }
 0x433   :  { %v8154_v22 = vpop.f32.mrf.mxu0 }
 0x434   :  { %v8538_v35 = vmax.f32 %v8474_v0, 0.0  ;;  %v8475_v52 = vadd.f32 %v8154_v22, %v7919_v16 }
 0x436   :  { %v8574_v15 = vpack.c.bf16 %v8538_v35, %v8522_v28  ;;  %v8539_v6 = vmax.f32 %v8475_v52, 0.0 }
 0x437   :  { %v7847_v39 = vpop.f32.mrf.mxu1 }
 0x438   :  { %v14943_v19 = vadd.f32 %v7847_v39, %v7322_v8  ;;  %v8575_v45 = vpack.c.bf16 %v8539_v6, %v8523_v25 }
 0x439   :  { %v7849_v30 = vpop.f32.mrf.mxu1 }
 0x43a   :  { %v14949_v10 = vadd.f32 %v7849_v30, %v7323_v34  ;;  %8745 = vmatprep.subr.bf16.mxu0 %v8575_v45  ;;  %v7365_v34 = vadd.f32 %v14683_v59, %v16042_v23 }
 0x43b   :  { %v7851_v20 = vpop.f32.mrf.mxu1  ;;  %8746 = vmatpush1.bf16.msra.mxu0 %v8574_v15  ;;  %v16043_v15 = vld [vmem:[#allocation101_spill] sm:$0xff] }
 0x43c   :  { %v14952_v54 = vadd.f32 %v7851_v20, %v7338_v1  ;;  %8747 = vmatprep.subr.bf16.mxu0 %v8559_v2  ;;  %v7310_v6 = vadd.f32 %v14707_v21, %v16043_v15  ;;  %v16044_v20 = vld [vmem:[#allocation103_spill] sm:$0xff] }
 0x43d   :  { %v8244_v60 = vpop.f32.mrf.mxu0  ;;  %v14956_v12 = vpop.f32.mrf.mxu1 }
 0x43e   :  { %v8430_v42 = vadd.f32 %v8244_v60, %v14801_v51  ;;  %v7868_v38 = vadd.f32 %v16045_v43, %v7310_v6 }
 0x43f   :  { %v8246_v62 = vpop.f32.mrf.mxu0  ;;  %v7857_v46 = vpop.f32.mrf.mxu1  ;;  %8748 = vmatpush1.bf16.msra.mxu0 %v8558_v4 }
 0x440   :  { %v8431_v49 = vadd.f32 %v8246_v62, %v14809_v11  ;;  %v14966_v0 = vadd.f32 %v7857_v46, %v7354_v48  ;;  %v8494_v27 = vmax.f32 %v8430_v42, 0.0  ;;  %v7311_v62 = vadd.f32 %v14707_v21, %v16044_v20  ;;  %v16046_v42 = vld [vmem:[#allocation104_spill] sm:$0xff]  ;;  %v16053_v20 = vld [vmem:[#allocation21_spill] sm:$0xff] }
 0x441   :  { %v8248_v57 = vpop.f32.mrf.mxu0  ;;  %v7859_v51 = vpop.f32.mrf.mxu1 }
 0x442   :  { %v8446_v16 = vadd.f32 %v8248_v57, %v14813_v13  ;;  %v14968_v5 = vadd.f32 %v7859_v51, %v7355_v56  ;;  %v8495_v35 = vmax.f32 %v8431_v49, 0.0  ;;  %9971 = vmatmul.mubr.msk.bf16.vlgmr.msra.gmra.mxu0 %vm8620_vm2, %v14921_v61  ;;  %v16048_v56 = vld [vmem:[#allocation16_spill] sm:$0xff] }
 0x443   :  { %v8250_v22 = vpop.f32.mrf.mxu0  ;;  %v7861_v63 = vpop.f32.mrf.mxu1  ;;  %8775 = vmatprep.mubr.bf16.mxu0 %v15590_v9 }
 0x444   :  { %v8510_v8 = vmax.f32 %v8446_v16, 0.0  ;;  %v8447_v28 = vadd.f32 %v8250_v22, %v7891_v26  ;;  %v14973_v13 = vadd.f32 %v7861_v63, %v14723_v37  ;;  %v7923_v37 = vadd.f32 %v14860_v47, %v7365_v34  ;;  %v16047_v16 = vld [vmem:[#allocation18_spill] sm:$0xff]  ;;  %v16049_v22 = vld [vmem:[#allocation64_spill] sm:$0xff] }
 0x445   :  { %v8254_v2 = vpop.f32.mrf.mxu0  ;;  %v14979_v39 = vpop.f32.mrf.mxu1  ;;  %v7327_v47 = vadd.f32 %v14728_v32, %v16047_v16 }
 0x446   :  { %v14970_v52 = vpack.c.bf16 %v8510_v8, %v8494_v27  ;;  %v8511_v11 = vmax.f32 %v8447_v28, 0.0  ;;  %v8462_v25 = vadd.f32 %v8254_v2, %v14836_v18  ;;  %v7326_v18 = vadd.f32 %v14728_v32, %v16046_v42  ;;  %v16050_v2 = vld [vmem:[#allocation63_spill] sm:$0xff]  ;;  %v16054_v42 = vld [vmem:[#allocation66_spill] sm:$0xff] }
 0x447   :  { %v8256_v14 = vpop.f32.mrf.mxu0  ;;  %v8085_v1 = vpop.f32.mrf.mxu1  ;;  %v7885_v63 = vadd.f32 %v16050_v2, %v7327_v47 }
 0x448   :  { %v8563_v4 = vpack.c.bf16 %v8511_v11, %v8495_v35  ;;  %v8463_v45 = vadd.f32 %v8256_v14, %v14842_v31  ;;  %v8526_v26 = vmax.f32 %v8462_v25, 0.0  ;;  %v7869_v31 = vadd.f32 %v16048_v56, %v7311_v62  ;;  %v16051_v25 = vld [vmem:[#allocation14_spill] sm:$0xff]  ;;  %v16055_v56 = vld [vmem:[#allocation29_spill] sm:$0xff] }
 0x449   :  { %v8258_v30 = vpop.f32.mrf.mxu0  ;;  %v8087_v57 = vpop.f32.mrf.mxu1  ;;  %v8424_v51 = vadd.f32 %v8085_v1, %v7868_v38  ;;  %v7342_v15 = vadd.f32 %v14618_v40, %v16051_v25  ;;  %v7358_v62 = vadd.f32 %v14683_v59, %v16053_v20 }
 0x44a   :  { %v8478_v60 = vadd.f32 %v8258_v30, %v14846_v53  ;;  %v7884_v53 = vadd.f32 %v16049_v22, %v7326_v18  ;;  %v8527_v21 = vmax.f32 %v8463_v45, 0.0  ;;  %v8425_v35 = vadd.f32 %v8087_v57, %v7869_v31  ;;  %9972 = vmatmul.mubr.msk.bf16.gmra.mxu0 %vm8620_vm2, %v14937_v58  ;;  %v16052_v45 = vld [vmem:[#allocation42_spill] sm:$0xff]  ;;  %v16056_v31 = vld [vmem:[#allocation65_spill] sm:$0xff] }
 0x44b   :  { %v8260_v48 = vpop.f32.mrf.mxu0  ;;  %v8089_v27 = vpop.f32.mrf.mxu1  ;;  %8871 = vmatprep.mubr.bf16.mxu0 %v15590_v9  ;;  %v8488_v6 = vmax.f32 %v8424_v51, 0.0  ;;  %v7900_v18 = vadd.f32 %v16054_v42, %v7342_v15  ;;  %v7916_v22 = vadd.f32 %v16056_v31, %v7358_v62 }
 0x44c   :  { %v8542_v46 = vmax.f32 %v8478_v60, 0.0  ;;  %v8479_v49 = vadd.f32 %v8260_v48, %v7923_v37  ;;  %v8440_v11 = vadd.f32 %v8089_v27, %v7884_v53  ;;  %v7337_v60 = vadd.f32 %v14728_v32, %v16052_v45 }
 0x44d   :  { %v8091_v23 = vpop.f32.mrf.mxu1  ;;  %v8489_v48 = vmax.f32 %v8425_v35, 0.0  ;;  %v16058_v35 = vld [vmem:[#allocation47_spill] sm:$0xff] }
 0x44e   :  { %v8578_v8 = vpack.c.bf16 %v8542_v46, %v8526_v26  ;;  %v8543_v28 = vmax.f32 %v8479_v49, 0.0  ;;  %v8504_v30 = vmax.f32 %v8440_v11, 0.0  ;;  %v8441_v37 = vadd.f32 %v8091_v23, %v7885_v63  ;;  %v16057_v63 = vld [vmem:[#allocation57_spill] sm:$0xff] }
 0x44f   :  { %v8095_v43 = vpop.f32.mrf.mxu1  ;;  %v7895_v46 = vadd.f32 %v14874_v44, %v7337_v60 }
 0x450   :  { %v8579_v34 = vpack.c.bf16 %v8543_v28, %v8527_v21  ;;  %v15009_v57 = vpack.c.bf16 %v8504_v30, %v8488_v6  ;;  %v8505_v40 = vmax.f32 %v8441_v37, 0.0  ;;  %v8456_v51 = vadd.f32 %v8095_v43, %v7900_v18  ;;  %v16059_v37 = vld [vmem:[#allocation54_spill] sm:$0xff] }
 0x451   :  { %v8097_v49 = vpop.f32.mrf.mxu1 }
 0x452   :  { %8851 = vmatprep.subr.bf16.mxu0 %v8579_v34  ;;  %v8557_v53 = vpack.c.bf16 %v8505_v40, %v8489_v48  ;;  %v8457_v11 = vadd.f32 %v8097_v49, %v16058_v35  ;;  %v8520_v25 = vmax.f32 %v8456_v51, 0.0 }
 0x453   :  { %v8350_v14 = vpop.f32.mrf.mxu0  ;;  %8852 = vmatpush1.bf16.msra.mxu0 %v8578_v8  ;;  %v8099_v21 = vpop.f32.mrf.mxu1 }
 0x454   :  { %v8434_v38 = vadd.f32 %v8350_v14, %v14866_v55  ;;  %8853 = vmatprep.subr.bf16.mxu0 %v8563_v4  ;;  %v7359_v55 = vadd.f32 %v14683_v59, %v16055_v56 }
 0x455   :  { %v8352_v1 = vpop.f32.mrf.mxu0 }
 0x456   :  { %v8435_v16 = vadd.f32 %v8352_v1, %v14870_v36  ;;  %v8498_v28 = vmax.f32 %v8434_v38, 0.0  ;;  %v7917_v44 = vadd.f32 %v16057_v63, %v7359_v55  ;;  %v8472_v36 = vadd.f32 %v8099_v21, %v7916_v22  ;;  %v16061_v22 = vld [vmem:[#allocation56_spill] sm:$0xff] }
 0x457   :  { %v8354_v26 = vpop.f32.mrf.mxu0  ;;  %8854 = vmatpush1.bf16.msra.mxu0 %v14970_v52  ;;  %v7369_v1 = vadd.f32 %v14683_v59, %v16059_v37  ;;  %v8521_v52 = vmax.f32 %v8457_v11, 0.0  ;;  %v16066_v37 = vld [vmem:[#allocation52_spill] sm:$0xff] }
 0x458   :  { %v8450_v47 = vadd.f32 %v8354_v26, %v14872_v3  ;;  %v8101_v3 = vpop.f32.mrf.mxu1  ;;  %v8499_v4 = vmax.f32 %v8435_v16, 0.0  ;;  %v8536_v15 = vmax.f32 %v8472_v36, 0.0  ;;  %v16060_v26 = vld [vmem:[#allocation33_spill] sm:$0xff] }
 0x459   :  { %v8356_v27 = vpop.f32.mrf.mxu0  ;;  %v8473_v6 = vadd.f32 %v8101_v3, %v7917_v44  ;;  %v7927_v42 = vadd.f32 %v14888_v33, %v7369_v1  ;;  %v16063_v3 = vld [vmem:[#allocation35_spill] sm:$0xff] }
 0x45a   :  { %v8514_v2 = vmax.f32 %v8450_v47, 0.0  ;;  %v8451_v8 = vadd.f32 %v8356_v27, %v7895_v46  ;;  %v8191_v45 = vpop.f32.mrf.mxu1  ;;  %9975 = vmatmul.mubr.msk.bf16.vlgmr.msra.gmra.mxu0 %vm8620_vm2, %v14921_v61  ;;  %v8572_v62 = vpack.c.bf16 %v8536_v15, %v8520_v25  ;;  %v7331_v46 = vadd.f32 %v14728_v32, %v16060_v26  ;;  %v16062_v27 = vld [vmem:[#allocation59_spill] sm:$0xff]  ;;  %v16064_v25 = vld [vmem:[#allocation58_spill] sm:$0xff] }
 0x45b   :  { %v8360_v14 = vpop.f32.mrf.mxu0  ;;  %v8537_v43 = vmax.f32 %v8473_v6, 0.0  ;;  %8881 = vmatprep.mubr.bf16.mxu0 %v15590_v9  ;;  %v8428_v49 = vadd.f32 %v8191_v45, %v14767_v50  ;;  %v16065_v6 = vld [vmem:[#allocation68_spill] sm:$0xff] }
 0x45c   :  { %v15020_v23 = vpack.c.bf16 %v8514_v2, %v8498_v28  ;;  %v8515_v34 = vmax.f32 %v8451_v8, 0.0  ;;  %v8466_v20 = vadd.f32 %v8360_v14, %v14880_v41  ;;  %v8193_v18 = vpop.f32.mrf.mxu1  ;;  %v7889_v51 = vadd.f32 %v16061_v22, %v7331_v46  ;;  %v16067_v45 = vld [vmem:[#allocation76_spill] sm:$0xff] }
 0x45d   :  { %v8362_v30 = vpop.f32.mrf.mxu0  ;;  %v8573_v41 = vpack.c.bf16 %v8537_v43, %v8521_v52  ;;  %v8429_v33 = vadd.f32 %v8193_v18, %v14775_v17  ;;  %v8492_v8 = vmax.f32 %v8428_v49, 0.0 }
 0x45e   :  { %v8567_v60 = vpack.c.bf16 %v8515_v34, %v8499_v4  ;;  %v8467_v48 = vadd.f32 %v8362_v30, %v14884_v29  ;;  %v8195_v47 = vpop.f32.mrf.mxu1  ;;  %v8530_v56 = vmax.f32 %v8466_v20, 0.0  ;;  %v7363_v4 = vadd.f32 %v14683_v59, %v16063_v3  ;;  %v16075_v3 = vld [vmem:[#allocation79_spill] sm:$0xff] }
 0x45f   :  { %v8364_v38 = vpop.f32.mrf.mxu0  ;;  %v8444_v21 = vadd.f32 %v8195_v47, %v16062_v27  ;;  %8692 = vmatprep.subr.bf16.mxu1 %v8573_v41  ;;  %v8493_v11 = vmax.f32 %v8429_v33, 0.0  ;;  %v16069_v41 = vld [vmem:[#allocation69_spill] sm:$0xff] }
 0x460   :  { %v8482_v40 = vadd.f32 %v8364_v38, %v14886_v24  ;;  %v8197_v29 = vpop.f32.mrf.mxu1  ;;  %8693 = vmatpush1.bf16.msra.mxu1 %v8572_v62  ;;  %v8531_v24 = vmax.f32 %v8467_v48, 0.0  ;;  %v7921_v30 = vadd.f32 %v16065_v6, %v7363_v4  ;;  %v16070_v47 = vld [vmem:[#allocation77_spill] sm:$0xff] }
 0x461   :  { %v8366_v16 = vpop.f32.mrf.mxu0  ;;  %v8508_v63 = vmax.f32 %v8444_v21, 0.0  ;;  %v8445_v50 = vadd.f32 %v8197_v29, %v7889_v51  ;;  %8694 = vmatprep.subr.bf16.mxu1 %v8557_v53 }
 0x462   :  { %v8546_v55 = vmax.f32 %v8482_v40, 0.0  ;;  %v8483_v31 = vadd.f32 %v8366_v16, %v7927_v42  ;;  %v8201_v44 = vpop.f32.mrf.mxu1  ;;  %9976 = vmatmul.mubr.msk.bf16.gmra.mxu0 %vm8620_vm2, %v14937_v58  ;;  %v16068_v40 = vld [vmem:[#allocation39_spill] sm:$0xff] }
 0x463   :  { %v8560_v36 = vpack.c.bf16 %v8508_v63, %v8492_v8  ;;  %v8509_v17 = vmax.f32 %v8445_v50, 0.0  ;;  %8977 = vmatprep.mubr.bf16.mxu0 %v15590_v9  ;;  %v8460_v53 = vadd.f32 %v8201_v44, %v16064_v25  ;;  %v7335_v26 = vadd.f32 %v14728_v32, %v16068_v40  ;;  %v16073_v63 = vld [vmem:[#allocation31_spill] sm:$0xff] }
 0x464   :  { %v8582_v28 = vpack.c.bf16 %v8546_v55, %v8530_v56  ;;  %v8547_v2 = vmax.f32 %v8483_v31, 0.0  ;;  %v8203_v14 = vpop.f32.mrf.mxu1  ;;  %8695 = vmatpush1.bf16.msra.mxu1 %v15009_v57  ;;  %v16072_v31 = vld [vmem:[#allocation27_spill] sm:$0xff]  ;;  %v7367_v50 = vadd.f32 %v14683_v59, %v16073_v63 }
 0x465   :  { %v8561_v34 = vpack.c.bf16 %v8509_v17, %v8493_v11  ;;  %v8461_v1 = vadd.f32 %v8203_v14, %v16066_v37  ;;  %v8524_v52 = vmax.f32 %v8460_v53, 0.0  ;;  %v7893_v56 = vadd.f32 %v16070_v47, %v7335_v26 }
 0x466   :  { %v8583_v35 = vpack.c.bf16 %v8547_v2, %v8531_v24  ;;  %v8205_v15 = vpop.f32.mrf.mxu1  ;;  %v7925_v14 = vadd.f32 %v14929_v7, %v7367_v50 }
 0x467   :  { %v8476_v20 = vadd.f32 %v8205_v15, %v16067_v45  ;;  %9969 = vmatmul.mubr.msk.bf16.vlgmr.msra.gmra.mxu1 %vm8620_vm2, %v14921_v61  ;;  %v8525_v42 = vmax.f32 %v8461_v1, 0.0 }
 0x468   :  { %8957 = vmatprep.subr.bf16.mxu0 %v8583_v35  ;;  %v8207_v57 = vpop.f32.mrf.mxu1  ;;  %8722 = vmatprep.mubr.bf16.mxu1 %v15590_v9  ;;  %v16074_v35 = vld [vmem:[#allocation80_spill] sm:$0xff] }
 0x469   :  { %8958 = vmatpush1.bf16.msra.mxu0 %v8582_v28  ;;  %v8540_v62 = vmax.f32 %v8476_v20, 0.0  ;;  %v8477_v43 = vadd.f32 %v8207_v57, %v7921_v30  ;;  %v16077_v57 = vld [vmem:[#allocation37_spill] sm:$0xff] }
 0x46a   :  { %8959 = vmatprep.subr.bf16.mxu0 %v8567_v60  ;;  %v8297_v38 = vpop.f32.mrf.mxu1  ;;  %v7339_v7 = vadd.f32 %v14728_v32, %v16077_v57 }
 0x46b   :  { %v8576_v60 = vpack.c.bf16 %v8540_v62, %v8524_v52  ;;  %v8541_v18 = vmax.f32 %v8477_v43, 0.0  ;;  %v8432_v49 = vadd.f32 %v8297_v38, %v16069_v41 }
 0x46c   :  { %v8299_v48 = vpop.f32.mrf.mxu1  ;;  %v7897_v38 = vadd.f32 %v14956_v12, %v7339_v7 }
 0x46d   :  { %8960 = vmatpush1.bf16.msra.mxu0 %v15020_v23  ;;  %v8577_v46 = vpack.c.bf16 %v8541_v18, %v8525_v42  ;;  %v16071_v23 = vld [vmem:[#allocation23_spill] sm:$0xff]  ;;  %v8496_v33 = vmax.f32 %v8432_v49, 0.0 }
 0x46e   :  { %v8301_v16 = vpop.f32.mrf.mxu1  ;;  %v8433_v55 = vadd.f32 %v8299_v48, %v16071_v23 }
 0x46f   :  { %v8448_v22 = vadd.f32 %v8301_v16, %v16072_v31  ;;  %9970 = vmatmul.mubr.msk.bf16.gmra.mxu1 %vm8620_vm2, %v14937_v58  ;;  %8798 = vmatprep.subr.bf16.mxu1 %v8577_v46 }
 0x470   :  { %9979 = vmatmul.mubr.msk.bf16.vlgmr.msra.gmra.mxu0 %vm8620_vm2, %v14921_v61  ;;  %v8303_v51 = vpop.f32.mrf.mxu1  ;;  %8799 = vmatpush1.bf16.msra.mxu1 %v8576_v60  ;;  %v8497_v24 = vmax.f32 %v8433_v55, 0.0 }
 0x471   :  { %8987 = vmatprep.mubr.bf16.mxu0 %v15590_v9  ;;  %8818 = vmatprep.mubr.bf16.mxu1 %v15590_v9  ;;  %v8512_v27 = vmax.f32 %v8448_v22, 0.0  ;;  %v8449_v21 = vadd.f32 %v8303_v51, %v7893_v56 }
 0x472   :  { %8800 = vmatprep.subr.bf16.mxu1 %v8561_v34  ;;  %v8307_v29 = vpop.f32.mrf.mxu1  ;;  %v16076_v34 = vld [vmem:[#allocation62_spill] sm:$0xff] }
 0x473   :  { %v8564_v28 = vpack.c.bf16 %v8512_v27, %v8496_v33  ;;  %v8513_v2 = vmax.f32 %v8449_v21, 0.0  ;;  %v8464_v11 = vadd.f32 %v8307_v29, %v16074_v35  ;;  %v15102_v29 = vpop.permute.xlu1 %8607 }
 0x474   :  { %v8309_v8 = vpop.f32.mrf.mxu1  ;;  %8801 = vmatpush1.bf16.msra.mxu1 %v8560_v36 }
 0x475   :  { %v8565_v44 = vpack.c.bf16 %v8513_v2, %v8497_v24  ;;  %v8465_v4 = vadd.f32 %v8309_v8, %v16075_v3  ;;  %v8528_v53 = vmax.f32 %v8464_v11, 0.0 }
 0x476   :  { %v8311_v17 = vpop.f32.mrf.mxu1 }
 0x477   :  { %v8480_v25 = vadd.f32 %v8311_v17, %v16076_v34  ;;  %9973 = vmatmul.mubr.msk.bf16.vlgmr.msra.gmra.mxu1 %vm8620_vm2, %v14921_v61  ;;  %v8529_v37 = vmax.f32 %v8465_v4, 0.0  ;;  %v15106_v63 = vpop.permute.xlu1 %8597 }
 0x478   :  { %9980 = vmatmul.mubr.msk.bf16.gmra.mxu0 %vm8620_vm2, %v14937_v58  ;;  %v8313_v36 = vpop.f32.mrf.mxu1  ;;  %8828 = vmatprep.mubr.bf16.mxu1 %v15590_v9 }
 0x479   :  { %9189 = vmatprep.mubr.bf16.mxu0 %v15590_v9  ;;  %v8544_v15 = vmax.f32 %v8480_v25, 0.0  ;;  %v8481_v6 = vadd.f32 %v8313_v36, %v7925_v14 }
 0x47a   :  { %v8403_v30 = vpop.f32.mrf.mxu1 }
 0x47b   :  { %v8580_v1 = vpack.c.bf16 %v8544_v15, %v8528_v53  ;;  %v8545_v45 = vmax.f32 %v8481_v6, 0.0  ;;  %v8436_v62 = vadd.f32 %v8403_v30, %v14943_v19 }
 0x47c   :  { %v8405_v20 = vpop.f32.mrf.mxu1 }
 0x47d   :  { %v8581_v52 = vpack.c.bf16 %v8545_v45, %v8529_v37  ;;  %v8437_v42 = vadd.f32 %v8405_v20, %v14949_v10  ;;  %v8500_v48 = vmax.f32 %v8436_v62, 0.0  ;;  %v16078_v10 = vld [vmem:[#allocation61_spill] sm:$0xff] }
 0x47e   :  { %v8407_v43 = vpop.f32.mrf.mxu1 }
 0x47f   :  { %v8452_v60 = vadd.f32 %v8407_v43, %v14952_v54  ;;  %9974 = vmatmul.mubr.msk.bf16.gmra.mxu1 %vm8620_vm2, %v14937_v58  ;;  %8904 = vmatprep.subr.bf16.mxu1 %v8581_v52  ;;  %v8501_v26 = vmax.f32 %v8437_v42, 0.0  ;;  %v7371_v54 = vadd.f32 %v14683_v59, %v16078_v10  ;;  %v15121_v42 = vld [vmem:[%s15303_s8] sm:$0x3]  ;;  %s10404_s8 = smov [#allocation5]  }
 0x480   :  { %v8409_v18 = vpop.f32.mrf.mxu1  ;;  %8905 = vmatpush1.bf16.msra.mxu1 %v8580_v1  ;;  %8924 = vmatprep.mubr.bf16.mxu1 %v15590_v9  ;;  %s9630_s30 = sshll.u32 %s10404_s8, 4  ;;  %s9631_s30 = int_to_ptr.vmem [resolvable:$true] %s9630_s30 }
 0x481   :  { %v8516_v32 = vmax.f32 %v8452_v60, 0.0  ;;  %v8453_v40 = vadd.f32 %v8409_v18, %v7897_v38  ;;  %8906 = vmatprep.subr.bf16.mxu1 %v8565_v44  ;;  %v7929_v56 = vadd.f32 %v14979_v39, %v7371_v54  ;;  %s10369_s11 = scalar_lea.vmem %s9631_s30, 1024  ;;  %p10374_p6 = scmp.lt.s32.totalorder %s9631_s30, %s9631_s30 }
 0x482   :  { %v8413_v19 = vpop.f32.mrf.mxu1  ;;  %p10370_p5 = scmp.ne.s32.totalorder %s9631_s30, %s10369_s11  ;;  %p10375_p7 = scmp.lt.s32.totalorder %s10369_s11, %s10369_s11 }
 0x483   :  { %v8568_v46 = vpack.c.bf16 %v8516_v32, %v8500_v48  ;;  %v8517_v12 = vmax.f32 %v8453_v40, 0.0  ;;  %v8468_v16 = vadd.f32 %v8413_v19, %v14966_v0 }
 0x484   :  { %v8415_v41 = vpop.f32.mrf.mxu1  ;;  %8907 = vmatpush1.bf16.msra.mxu1 %v8564_v28  ;;  %v15104_v28 = vpop.permute.xlu0 %8602  ;;  %p10376_p8 = por %p10375_p7, %p10374_p6 }
 0x485   :  { %v8569_v49 = vpack.c.bf16 %v8517_v12, %v8501_v26  ;;  %v8469_v23 = vadd.f32 %v8415_v41, %v14968_v5  ;;  %v8532_v22 = vmax.f32 %v8468_v16, 0.0 }
 0x486   :  { %v8417_v47 = vpop.f32.mrf.mxu1  ;;  %p10377_p9 = pnand %p10376_p8, %p10370_p5 }
 0x487   :  { %v8484_v55 = vadd.f32 %v8417_v47, %v14973_v13  ;;  %9977 = vmatmul.mubr.msk.bf16.vlgmr.msra.gmra.mxu1 %vm8620_vm2, %v14921_v61  ;;  %v8533_v59 = vmax.f32 %v8469_v23, 0.0 }
 0x488   :  { %v8419_v31 = vpop.f32.mrf.mxu1  ;;  %8934 = vmatprep.mubr.bf16.mxu1 %v15590_v9  ;;  %v15111_v35 = vpop.permute.xlu0 %8592 }
 0x489   :  { %v8548_v51 = vmax.f32 %v8484_v55, 0.0  ;;  %v8485_v33 = vadd.f32 %v8419_v31, %v7929_v56 }
 0x48b   :  { %v8584_v27 = vpack.c.bf16 %v8548_v51, %v8532_v22  ;;  %v8549_v21 = vmax.f32 %v8485_v33, 0.0 }
 0x48d   :  { %v8585_v0 = vpack.c.bf16 %v8549_v21, %v8533_v59 }
 0x48f   :  { %9978 = vmatmul.mubr.msk.bf16.gmra.mxu1 %vm8620_vm2, %v14937_v58  ;;  %9010 = vmatprep.subr.bf16.mxu1 %v8585_v0 }
 0x490   :  { %9011 = vmatpush1.bf16.msra.mxu1 %v8584_v27  ;;  %9030 = vmatprep.mubr.bf16.mxu1 %v15590_v9 }
 0x491   :  { %9012 = vmatprep.subr.bf16.mxu1 %v8569_v49 }
 0x494   :  { %9013 = vmatpush1.bf16.msra.mxu1 %v8568_v46 }
 0x497   :  { %9981 = vmatmul.mubr.msk.bf16.vlgmr.msra.gmra.mxu1 %vm8620_vm2, %v14921_v61 }
 0x498   :  { %9040 = vmatprep.mubr.bf16.mxu1 %v15590_v9 }
 0x49f   :  { %9982 = vmatmul.mubr.msk.bf16.gmra.mxu1 %vm8620_vm2, %v14937_v58 }
 0x4a0   :  { %9230 = vmatprep.mubr.bf16.mxu1 %v15590_v9 }
 0x4e4   :  { %v8661_v5 = vpop.f32.mrf.mxu0 }
 0x4e5   :  { %v8662_v15 = vadd.f32 %v8661_v5, %v15111_v35 }
 0x4e6   :  { %v8663_v13 = vpop.f32.mrf.mxu0 }
 0x4e7   :  { %v8664_v14 = vadd.f32 %v8663_v13, %v15111_v35  ;;  %v9051_v52 = vmax.f32 %v8662_v15, 0.0 }
 0x4e8   :  { %v8665_v39 = vpop.f32.mrf.mxu0 }
 0x4e9   :  { %v8666_v4 = vadd.f32 %v8665_v39, %v15106_v63  ;;  %v9052_v30 = vmax.f32 %v8664_v14, 0.0 }
 0x4ea   :  { %v8667_v24 = vpop.f32.mrf.mxu0 }
 0x4eb   :  { %v8668_v50 = vadd.f32 %v8667_v24, %v15106_v63  ;;  %v9067_v45 = vmax.f32 %v8666_v4, 0.0 }
 0x4ec   :  { %v8671_v2 = vpop.f32.mrf.mxu0 }
 0x4ed   :  { %v8672_v11 = vadd.f32 %v8671_v2, %v15104_v28  ;;  %v9068_v25 = vmax.f32 %v8668_v50, 0.0  ;;  %v9116_v43 = vpack.c.bf16 %v9067_v45, %v9051_v52 }
 0x4ee   :  { %v8673_v8 = vpop.f32.mrf.mxu0 }
 0x4ef   :  { %v8674_v44 = vadd.f32 %v8673_v8, %v15104_v28  ;;  %v9083_v6 = vmax.f32 %v8672_v11, 0.0  ;;  %v9117_v57 = vpack.c.bf16 %v9068_v25, %v9052_v30 }
 0x4f0   :  { %v8675_v61 = vpop.f32.mrf.mxu0 }
 0x4f1   :  { %v8676_v58 = vadd.f32 %v8675_v61, %v15102_v29  ;;  %v9084_v36 = vmax.f32 %v8674_v44, 0.0 }
 0x4f2   :  { %v8677_v17 = vpop.f32.mrf.mxu0 }
 0x4f3   :  { %v8678_v3 = vadd.f32 %v8677_v17, %v15102_v29  ;;  %v9099_v34 = vmax.f32 %v8676_v58, 0.0 }
 0x4f5   :  { %v9100_v53 = vmax.f32 %v8678_v3, 0.0  ;;  %v9132_v20 = vpack.c.bf16 %v9099_v34, %v9083_v6 }
 0x4f7   :  { %v9133_v37 = vpack.c.bf16 %v9100_v53, %v9084_v36 }
 0x4f9   :  { %9169 = vmatprep.subr.bf16.mxu0 %v9133_v37 }
 0x4fa   :  { %9170 = vmatpush1.bf16.msra.mxu0 %v9132_v20 }
 0x4fb   :  { %9171 = vmatprep.subr.bf16.mxu0 %v9117_v57 }
 0x4fe   :  { %9172 = vmatpush1.bf16.msra.mxu0 %v9116_v43 }
 0x501   :  { %9983 = vmatmul.mubr.msk.bf16.vlgmr.msra.gmra.mxu0 %vm8620_vm2, %v15121_v42 }
 0x502   :  { %v8767_v1 = vpop.f32.mrf.mxu0  ;;  %9271 = vmatprep.mubr.bf16.mxu0 %v15590_v9 }
 0x503   :  { %v8768_v56 = vadd.f32 %v8767_v1, %v15111_v35 }
 0x504   :  { %v8769_v7 = vpop.f32.mrf.mxu0 }
 0x505   :  { %v8770_v12 = vadd.f32 %v8769_v7, %v15111_v35  ;;  %v9055_v21 = vmax.f32 %v8768_v56, 0.0 }
 0x506   :  { %v8771_v62 = vpop.f32.mrf.mxu0 }
 0x507   :  { %v8772_v10 = vadd.f32 %v8771_v62, %v15106_v63  ;;  %v9056_v55 = vmax.f32 %v8770_v12, 0.0 }
 0x508   :  { %v8773_v38 = vpop.f32.mrf.mxu0 }
 0x509   :  { %v8774_v32 = vadd.f32 %v8773_v38, %v15106_v63  ;;  %v9071_v51 = vmax.f32 %v8772_v10, 0.0 }
 0x50a   :  { %v8777_v60 = vpop.f32.mrf.mxu0 }
 0x50b   :  { %v8778_v26 = vadd.f32 %v8777_v60, %v15104_v28  ;;  %v9072_v49 = vmax.f32 %v8774_v32, 0.0  ;;  %v9120_v5 = vpack.c.bf16 %v9071_v51, %v9055_v21 }
 0x50c   :  { %v8779_v18 = vpop.f32.mrf.mxu0 }
 0x50d   :  { %v8780_v40 = vadd.f32 %v8779_v18, %v15104_v28  ;;  %v9087_v23 = vmax.f32 %v8778_v26, 0.0  ;;  %v9121_v59 = vpack.c.bf16 %v9072_v49, %v9056_v55 }
 0x50e   :  { %v8781_v48 = vpop.f32.mrf.mxu0 }
 0x50f   :  { %v8782_v19 = vadd.f32 %v8781_v48, %v15102_v29  ;;  %v9088_v16 = vmax.f32 %v8780_v40, 0.0 }
 0x510   :  { %v8783_v46 = vpop.f32.mrf.mxu0 }
 0x511   :  { %v8784_v41 = vadd.f32 %v8783_v46, %v15102_v29  ;;  %v9103_v54 = vmax.f32 %v8782_v19, 0.0 }
 0x513   :  { %v9104_v47 = vmax.f32 %v8784_v41, 0.0  ;;  %v9136_v33 = vpack.c.bf16 %v9103_v54, %v9087_v23 }
 0x515   :  { %v9137_v31 = vpack.c.bf16 %v9104_v47, %v9088_v16 }
 0x517   :  { %9251 = vmatprep.subr.bf16.mxu0 %v9137_v31 }
 0x518   :  { %9252 = vmatpush1.bf16.msra.mxu0 %v9136_v33 }
 0x519   :  { %9253 = vmatprep.subr.bf16.mxu0 %v9121_v59 }
 0x51a   :  { %v8873_v22 = vpop.f32.mrf.mxu0 }
 0x51b   :  { %v8874_v6 = vadd.f32 %v8873_v22, %v15111_v35 }
 0x51c   :  { %v8875_v27 = vpop.f32.mrf.mxu0  ;;  %9254 = vmatpush1.bf16.msra.mxu0 %v9120_v5 }
 0x51d   :  { %v8876_v14 = vadd.f32 %v8875_v27, %v15111_v35  ;;  %v9059_v38 = vmax.f32 %v8874_v6, 0.0 }
 0x51e   :  { %v8877_v0 = vpop.f32.mrf.mxu0 }
 0x51f   :  { %9985 = vmatmul.mubr.msk.bf16.vlgmr.msra.gmra.mxu0 %vm8620_vm2, %v15121_v42  ;;  %v8878_v4 = vadd.f32 %v8877_v0, %v15106_v63  ;;  %v9060_v45 = vmax.f32 %v8876_v14, 0.0 }
 0x520   :  { %v8879_v13 = vpop.f32.mrf.mxu0  ;;  %9353 = vmatprep.mubr.bf16.mxu0 %v15590_v9 }
 0x521   :  { %v8880_v61 = vadd.f32 %v8879_v13, %v15106_v63  ;;  %v9075_v57 = vmax.f32 %v8878_v4, 0.0 }
 0x522   :  { %v8883_v39 = vpop.f32.mrf.mxu0 }
 0x523   :  { %v8884_v58 = vadd.f32 %v8883_v39, %v15104_v28  ;;  %v9076_v36 = vmax.f32 %v8880_v61, 0.0  ;;  %v9124_v48 = vpack.c.bf16 %v9075_v57, %v9059_v38 }
 0x524   :  { %v8885_v24 = vpop.f32.mrf.mxu0 }
 0x525   :  { %v8886_v50 = vadd.f32 %v8885_v24, %v15104_v28  ;;  %v9091_v30 = vmax.f32 %v8884_v58, 0.0  ;;  %v9125_v43 = vpack.c.bf16 %v9076_v36, %v9060_v45 }
 0x526   :  { %v8887_v2 = vpop.f32.mrf.mxu0 }
 0x527   :  { %v8714_v8 = vpop.f32.mrf.mxu1  ;;  %v8888_v44 = vadd.f32 %v8887_v2, %v15102_v29  ;;  %v9092_v53 = vmax.f32 %v8886_v50, 0.0 }
 0x528   :  { %v8889_v11 = vpop.f32.mrf.mxu0  ;;  %v8715_v55 = vadd.f32 %v8714_v8, %v15111_v35 }
 0x529   :  { %v8716_v17 = vpop.f32.mrf.mxu1  ;;  %v8890_v3 = vadd.f32 %v8889_v11, %v15102_v29  ;;  %v9107_v34 = vmax.f32 %v8888_v44, 0.0 }
 0x52a   :  { %v8717_v54 = vadd.f32 %v8716_v17, %v15111_v35 }
 0x52b   :  { %v8718_v25 = vpop.f32.mrf.mxu1  ;;  %v9108_v15 = vmax.f32 %v8890_v3, 0.0  ;;  %v9140_v7 = vpack.c.bf16 %v9107_v34, %v9091_v30  ;;  %v9053_v3 = vmax.f32 %v8715_v55, 0.0 }
 0x52c   :  { %v8719_v47 = vadd.f32 %v8718_v25, %v15106_v63  ;;  %v9054_v13 = vmax.f32 %v8717_v54, 0.0 }
 0x52d   :  { %v8720_v1 = vpop.f32.mrf.mxu1  ;;  %v9141_v20 = vpack.c.bf16 %v9108_v15, %v9092_v53 }
 0x52e   :  { %v8721_v19 = vadd.f32 %v8720_v1, %v15106_v63  ;;  %v9069_v8 = vmax.f32 %v8719_v47, 0.0 }
 0x52f   :  { %v8724_v62 = vpop.f32.mrf.mxu1  ;;  %9333 = vmatprep.subr.bf16.mxu0 %v9141_v20 }
 0x530   :  { %v15145_v37 = vpop.f32.mrf.mxu0  ;;  %9334 = vmatpush1.bf16.msra.mxu0 %v9140_v7  ;;  %v8725_v41 = vadd.f32 %v8724_v62, %v15104_v28  ;;  %v9070_v31 = vmax.f32 %v8721_v19, 0.0  ;;  %v9118_v6 = vpack.c.bf16 %v9069_v8, %v9053_v3 }
 0x531   :  { %v8726_v18 = vpop.f32.mrf.mxu1  ;;  %9335 = vmatprep.subr.bf16.mxu0 %v9125_v43  ;;  %v8980_v53 = vadd.f32 %v15145_v37, %v15111_v35 }
 0x532   :  { %v8981_v52 = vpop.f32.mrf.mxu0  ;;  %v8727_v26 = vadd.f32 %v8726_v18, %v15104_v28  ;;  %v9085_v59 = vmax.f32 %v8725_v41, 0.0  ;;  %v9119_v11 = vpack.c.bf16 %v9070_v31, %v9054_v13 }
 0x533   :  { %v8728_v40 = vpop.f32.mrf.mxu1  ;;  %v8982_v44 = vadd.f32 %v8981_v52, %v15111_v35  ;;  %v9063_v62 = vmax.f32 %v8980_v53, 0.0 }
 0x534   :  { %v8983_v60 = vpop.f32.mrf.mxu0  ;;  %v8729_v46 = vadd.f32 %v8728_v40, %v15102_v29  ;;  %9336 = vmatpush1.bf16.msra.mxu0 %v9124_v48  ;;  %v9086_v22 = vmax.f32 %v8727_v26, 0.0 }
 0x535   :  { %v8730_v10 = vpop.f32.mrf.mxu1  ;;  %v8984_v17 = vadd.f32 %v8983_v60, %v15106_v63  ;;  %v9064_v1 = vmax.f32 %v8982_v44, 0.0 }
 0x536   :  { %v8985_v32 = vpop.f32.mrf.mxu0  ;;  %v8731_v49 = vadd.f32 %v8730_v10, %v15102_v29  ;;  %v9101_v56 = vmax.f32 %v8729_v46, 0.0 }
 0x537   :  { %v15154_v23 = vpop.f32.mrf.mxu1  ;;  %9987 = vmatmul.mubr.msk.bf16.vlgmr.msra.gmra.mxu0 %vm8620_vm2, %v15121_v42  ;;  %v8986_v21 = vadd.f32 %v8985_v32, %v15106_v63  ;;  %v9079_v20 = vmax.f32 %v8984_v17, 0.0 }
 0x538   :  { %v8989_v12 = vpop.f32.mrf.mxu0  ;;  %v9102_v51 = vmax.f32 %v8731_v49, 0.0  ;;  %9435 = vmatprep.mubr.bf16.mxu0 %v15590_v9  ;;  %v9134_v61 = vpack.c.bf16 %v9101_v56, %v9085_v59  ;;  %v8821_v49 = vadd.f32 %v15154_v23, %v15111_v35 }
 0x539   :  { %v8822_v27 = vpop.f32.mrf.mxu1  ;;  %v8990_v24 = vadd.f32 %v8989_v12, %v15104_v28  ;;  %v9080_v34 = vmax.f32 %v8986_v21, 0.0  ;;  %v9128_v18 = vpack.c.bf16 %v9079_v20, %v9063_v62 }
 0x53a   :  { %v8991_v16 = vpop.f32.mrf.mxu0  ;;  %v9135_v39 = vpack.c.bf16 %v9102_v51, %v9086_v22  ;;  %v8823_v40 = vadd.f32 %v8822_v27, %v15111_v35  ;;  %v9057_v59 = vmax.f32 %v8821_v49, 0.0 }
 0x53b   :  { %v8992_v0 = vadd.f32 %v8991_v16, %v15104_v28  ;;  %v8824_v50 = vpop.f32.mrf.mxu1  ;;  %v9095_v15 = vmax.f32 %v8990_v24, 0.0  ;;  %v9129_v52 = vpack.c.bf16 %v9080_v34, %v9064_v1 }
 0x53c   :  { %v8993_v33 = vpop.f32.mrf.mxu0  ;;  %9210 = vmatprep.subr.bf16.mxu1 %v9135_v39  ;;  %v8825_v26 = vadd.f32 %v8824_v50, %v15106_v63  ;;  %v9058_v56 = vmax.f32 %v8823_v40, 0.0 }
 0x53d   :  { %v8994_v5 = vadd.f32 %v8993_v33, %v15102_v29  ;;  %v8826_v4 = vpop.f32.mrf.mxu1  ;;  %9211 = vmatpush1.bf16.msra.mxu1 %v9134_v61  ;;  %v9096_v25 = vmax.f32 %v8992_v0, 0.0 }
 0x53e   :  { %v8995_v2 = vpop.f32.mrf.mxu0  ;;  %9212 = vmatprep.subr.bf16.mxu1 %v9119_v11  ;;  %v8827_v38 = vadd.f32 %v8826_v4, %v15106_v63  ;;  %v9073_v31 = vmax.f32 %v8825_v26, 0.0 }
 0x53f   :  { %v8996_v58 = vadd.f32 %v8995_v2, %v15102_v29  ;;  %v9111_v14 = vmax.f32 %v8994_v5, 0.0  ;;  %v8830_v30 = vpop.f32.mrf.mxu1 }
 0x540   :  { %v8831_v48 = vadd.f32 %v8830_v30, %v15104_v28  ;;  %v9074_v41 = vmax.f32 %v8827_v38, 0.0  ;;  %v9122_v21 = vpack.c.bf16 %v9073_v31, %v9057_v59 }
 0x541   :  { %v9112_v36 = vmax.f32 %v8996_v58, 0.0  ;;  %v9144_v57 = vpack.c.bf16 %v9111_v14, %v9095_v15  ;;  %v8832_v7 = vpop.f32.mrf.mxu1  ;;  %9213 = vmatpush1.bf16.msra.mxu1 %v9118_v6 }
 0x542   :  { %v8833_v60 = vadd.f32 %v8832_v7, %v15104_v28  ;;  %v9089_v16 = vmax.f32 %v8831_v48, 0.0  ;;  %v9123_v33 = vpack.c.bf16 %v9074_v41, %v9058_v56 }
 0x543   :  { %v9145_v45 = vpack.c.bf16 %v9112_v36, %v9096_v25  ;;  %v8834_v43 = vpop.f32.mrf.mxu1 }
 0x544   :  { %v8835_v37 = vadd.f32 %v8834_v43, %v15102_v29  ;;  %9984 = vmatmul.mubr.msk.bf16.vlgmr.msra.gmra.mxu1 %vm8620_vm2, %v15121_v42  ;;  %v9090_v10 = vmax.f32 %v8833_v60, 0.0 }
 0x545   :  { %9415 = vmatprep.subr.bf16.mxu0 %v9145_v45  ;;  %v8836_v32 = vpop.f32.mrf.mxu1  ;;  %9312 = vmatprep.mubr.bf16.mxu1 %v15590_v9 }
 0x546   :  { %9416 = vmatpush1.bf16.msra.mxu0 %v9144_v57  ;;  %v8837_v19 = vadd.f32 %v8836_v32, %v15102_v29  ;;  %v9105_v46 = vmax.f32 %v8835_v37, 0.0 }
 0x547   :  { %9417 = vmatprep.subr.bf16.mxu0 %v9129_v52  ;;  %v8926_v12 = vpop.f32.mrf.mxu1 }
 0x548   :  { %v9106_v54 = vmax.f32 %v8837_v19, 0.0  ;;  %v9138_v22 = vpack.c.bf16 %v9105_v46, %v9089_v16  ;;  %v8927_v4 = vadd.f32 %v8926_v12, %v15111_v35 }
 0x549   :  { %v8928_v47 = vpop.f32.mrf.mxu1 }
 0x54a   :  { %9418 = vmatpush1.bf16.msra.mxu0 %v9128_v18  ;;  %v9139_v55 = vpack.c.bf16 %v9106_v54, %v9090_v10  ;;  %v8929_v61 = vadd.f32 %v8928_v47, %v15111_v35  ;;  %v9061_v45 = vmax.f32 %v8927_v4, 0.0 }
 0x54b   :  { %v8930_v51 = vpop.f32.mrf.mxu1 }
 0x54c   :  { %9292 = vmatprep.subr.bf16.mxu1 %v9139_v55  ;;  %v8931_v44 = vadd.f32 %v8930_v51, %v15106_v63  ;;  %v9062_v36 = vmax.f32 %v8929_v61, 0.0 }
 0x54d   :  { %9989 = vmatmul.mubr.msk.bf16.vlgmr.msra.gmra.mxu0 %vm8620_vm2, %v15121_v42  ;;  %v8932_v27 = vpop.f32.mrf.mxu1  ;;  %9293 = vmatpush1.bf16.msra.mxu1 %v9138_v22 }
 0x54e   :  { %9294 = vmatprep.subr.bf16.mxu1 %v9123_v33  ;;  %v8933_v13 = vadd.f32 %v8932_v27, %v15106_v63  ;;  %v9077_v15 = vmax.f32 %v8931_v44, 0.0 }
 0x54f   :  { %v8936_v0 = vpop.f32.mrf.mxu1 }
 0x550   :  { %v8937_v2 = vadd.f32 %v8936_v0, %v15104_v28  ;;  %v9078_v17 = vmax.f32 %v8933_v13, 0.0  ;;  %v9126_v57 = vpack.c.bf16 %v9077_v15, %v9061_v45 }
 0x551   :  { %v8938_v5 = vpop.f32.mrf.mxu1  ;;  %9295 = vmatpush1.bf16.msra.mxu1 %v9122_v21 }
 0x552   :  { %v8939_v39 = vadd.f32 %v8938_v5, %v15104_v28  ;;  %v9093_v34 = vmax.f32 %v8937_v2, 0.0  ;;  %v9127_v1 = vpack.c.bf16 %v9078_v17, %v9062_v36  ;;  %v9565_v17 = vlaneseq }
 0x553   :  { %v8940_v23 = vpop.f32.mrf.mxu1 }
 0x554   :  { %v8941_v24 = vadd.f32 %v8940_v23, %v15102_v29  ;;  %9986 = vmatmul.mubr.msk.bf16.vlgmr.msra.gmra.mxu1 %vm8620_vm2, %v15121_v42  ;;  %v9094_v14 = vmax.f32 %v8939_v39, 0.0 }
 0x555   :  { %v8942_v8 = vpop.f32.mrf.mxu1  ;;  %9394 = vmatprep.mubr.bf16.mxu1 %v15590_v9 }
 0x556   :  { %v8943_v50 = vadd.f32 %v8942_v8, %v15102_v29  ;;  %v9109_v58 = vmax.f32 %v8941_v24, 0.0 }
 0x557   :  { %v9032_v11 = vpop.f32.mrf.mxu1 }
 0x558   :  { %v9110_v3 = vmax.f32 %v8943_v50, 0.0  ;;  %v9142_v6 = vpack.c.bf16 %v9109_v58, %v9093_v34  ;;  %v9033_v41 = vadd.f32 %v9032_v11, %v15111_v35 }
 0x559   :  { %v9034_v25 = vpop.f32.mrf.mxu1 }
 0x55a   :  { %v9143_v53 = vpack.c.bf16 %v9110_v3, %v9094_v14  ;;  %v9035_v48 = vadd.f32 %v9034_v25, %v15111_v35  ;;  %v15213_v14 = vshrl.u32 %v9565_v17, 7 }
 0x55b   :  { %v9036_v30 = vpop.f32.mrf.mxu1 }
 0x55c   :  { %9374 = vmatprep.subr.bf16.mxu1 %v9143_v53  ;;  %v9037_v40 = vadd.f32 %v9036_v30, %v15106_v63  ;;  %v9066_v54 = vmax.f32 %v9035_v48, 0.0  ;;  %vm9567_vm3 = vcmp.eq.s32.totalorder %v15213_v14, 0 }
 0x55d   :  { %v9038_v20 = vpop.f32.mrf.mxu1  ;;  %9375 = vmatpush1.bf16.msra.mxu1 %v9142_v6 }
 0x55e   :  { %9376 = vmatprep.subr.bf16.mxu1 %v9127_v1  ;;  %v9039_v43 = vadd.f32 %v9038_v20, %v15106_v63  ;;  %v9081_v16 = vmax.f32 %v9037_v40, 0.0 }
 0x55f   :  { %v9042_v7 = vpop.f32.mrf.mxu1 }
 0x560   :  { %v9043_v37 = vadd.f32 %v9042_v7, %v15104_v28  ;;  %v9082_v26 = vmax.f32 %v9039_v43, 0.0 }
 0x561   :  { %v9044_v52 = vpop.f32.mrf.mxu1  ;;  %9377 = vmatpush1.bf16.msra.mxu1 %v9126_v57 }
 0x562   :  { %v9045_v38 = vadd.f32 %v9044_v52, %v15104_v28  ;;  %v9097_v10 = vmax.f32 %v9043_v37, 0.0  ;;  %v9131_v47 = vpack.c.bf16 %v9082_v26, %v9066_v54 }
 0x563   :  { %v9046_v62 = vpop.f32.mrf.mxu1 }
 0x564   :  { %v9047_v60 = vadd.f32 %v9046_v62, %v15102_v29  ;;  %9988 = vmatmul.mubr.msk.bf16.vlgmr.msra.gmra.mxu1 %vm8620_vm2, %v15121_v42  ;;  %v9098_v46 = vmax.f32 %v9045_v38, 0.0 }
 0x565   :  { %v9048_v18 = vpop.f32.mrf.mxu1  ;;  %9476 = vmatprep.mubr.bf16.mxu1 %v15590_v9  ;;  %v9065_v9 = vmax.f32 %v9033_v41, 0.0 }
 0x566   :  { %v9049_v32 = vadd.f32 %v9048_v18, %v15102_v29  ;;  %v9113_v19 = vmax.f32 %v9047_v60, 0.0  ;;  %v15207_v29 = vpop.permute.xlu0 %9151 }
 0x567   :  { %v9130_v56 = vpack.c.bf16 %v9081_v16, %v9065_v9 }
 0x568   :  { %v9114_v12 = vmax.f32 %v9049_v32, 0.0  ;;  %v9146_v28 = vpack.c.bf16 %v9113_v19, %v9097_v10 }
 0x56a   :  { %v9147_v49 = vpack.c.bf16 %v9114_v12, %v9098_v46 }
 0x56c   :  { %9456 = vmatprep.subr.bf16.mxu1 %v9147_v49 }
 0x56d   :  { %9457 = vmatpush1.bf16.msra.mxu1 %v9146_v28 }
 0x56e   :  { %9458 = vmatprep.subr.bf16.mxu1 %v9131_v47 }
 0x571   :  { %9459 = vmatpush1.bf16.msra.mxu1 %v9130_v56 }
 0x574   :  { %9990 = vmatmul.mubr.msk.bf16.vlgmr.msra.gmra.mxu1 %vm8620_vm2, %v15121_v42 }
 0x5c1   :  { %v9191_v63 = vpop.f32.mrf.mxu0 }
 0x5c2   :  { %v9192_v35 = vadd.f32 %v9191_v63, %v15207_v29 }
 0x5c3   :  { %v9193_v55 = vpop.f32.mrf.mxu0 }
 0x5c4   :  { %v9485_v31 = vsub.f32 0.0, %v9192_v35  ;;  %v9194_v22 = vadd.f32 %v9193_v55, %v15207_v29 }
 0x5c5   :  { %v9195_v51 = vpop.f32.mrf.mxu0 }
 0x5c6   :  { %v9501_v33 = vmul.f32 1.442695, %v9485_v31  ;;  %v9486_v59 = vsub.f32 0.0, %v9194_v22 }
 0x5c7   :  { %v9196_v27 = vpop.f32.mrf.mxu0 }
 0x5c8   :  { %10277 = vpow2.f32 %v9501_v33  ;;  %v9503_v21 = vmul.f32 1.442695, %v9486_v59 }
 0x5ca   :  { %10279 = vpow2.f32 %v9503_v21 }
 0x5d5   :  { %v10278_v5 = vpop.eup %10277 }
 0x5d6   :  { %v9533_v23 = vadd.f32 1.0, %v10278_v5 }
 0x5d7   :  { %v10280_v39 = vpop.eup %10279 }
 0x5d8   :  { %10281 = vrcp.f32 %v9533_v23  ;;  %v9534_v8 = vadd.f32 1.0, %v10280_v39 }
 0x5da   :  { %10283 = vrcp.f32 %v9534_v8 }
 0x5df   :  { %v9273_v0 = vpop.f32.mrf.mxu0 }
 0x5e0   :  { %v9274_v42 = vadd.f32 %v9273_v0, %v15207_v29 }
 0x5e1   :  { %v9275_v13 = vpop.f32.mrf.mxu0 }
 0x5e2   :  { %v9489_v24 = vsub.f32 0.0, %v9274_v42  ;;  %v9276_v2 = vadd.f32 %v9275_v13, %v15207_v29 }
 0x5e3   :  { %v9277_v61 = vpop.f32.mrf.mxu0 }
 0x5e4   :  { %v9509_v50 = vmul.f32 1.442695, %v9489_v24  ;;  %v9490_v44 = vsub.f32 0.0, %v9276_v2 }
 0x5e5   :  { %v9278_v58 = vpop.f32.mrf.mxu0  ;;  %v10282_v3 = vpop.eup %10281 }
 0x5e6   :  { %10285 = vpow2.f32 %v9509_v50  ;;  %v9511_v11 = vmul.f32 1.442695, %v9490_v44  ;;  %v9568_v36 = vsel %vm9567_vm3, %v9192_v35, %v10282_v3 }
 0x5e7   :  { %v10284_v4 = vpop.eup %10283 }
 0x5e8   :  { %10287 = vpow2.f32 %v9511_v11  ;;  %v9569_v53 = vsel %vm9567_vm3, %v9194_v22, %v10284_v4 }
 0x5e9   :  { %v9600_v6 = vcombine.low %v9568_v36, %v9569_v53 }
 0x5eb   :  { %9616 = vst [vmem:[#allocation5] sm:$0xff] %v9600_v6 }
 0x5f3   :  { %v10286_v25 = vpop.eup %10285 }
 0x5f4   :  { %v9537_v30 = vadd.f32 1.0, %v10286_v25 }
 0x5f5   :  { %v10288_v45 = vpop.eup %10287 }
 0x5f6   :  { %10289 = vrcp.f32 %v9537_v30  ;;  %v9538_v7 = vadd.f32 1.0, %v10288_v45 }
 0x5f7   :  { %v9355_v34 = vpop.f32.mrf.mxu0 }
 0x5f8   :  { %v15221_v15 = vadd.f32 %v9355_v34, %v15207_v29  ;;  %10291 = vrcp.f32 %v9538_v7 }
 0x5f9   :  { %v9357_v1 = vpop.f32.mrf.mxu0 }
 0x5fa   :  { %v9493_v20 = vsub.f32 0.0, %v15221_v15  ;;  %v15225_v57 = vadd.f32 %v9357_v1, %v15207_v29 }
 0x5fb   :  { %v9359_v52 = vpop.f32.mrf.mxu0 }
 0x5fc   :  { %v9517_v62 = vmul.f32 1.442695, %v9493_v20  ;;  %v9494_v43 = vsub.f32 0.0, %v15225_v57 }
 0x5fd   :  { %v9360_v38 = vpop.f32.mrf.mxu0 }
 0x5fe   :  { %10293 = vpow2.f32 %v9517_v62  ;;  %v9519_v60 = vmul.f32 1.442695, %v9494_v43 }
 0x600   :  { %10295 = vpow2.f32 %v9519_v60 }
 0x603   :  { %v10290_v19 = vpop.eup %10289 }
 0x604   :  { %v9232_v37 = vpop.f32.mrf.mxu1  ;;  %v9572_v47 = vsel %vm9567_vm3, %v9274_v42, %v10290_v19 }
 0x605   :  { %v15229_v18 = vadd.f32 %v9232_v37, %v15207_v29  ;;  %v10292_v10 = vpop.eup %10291 }
 0x606   :  { %v9234_v48 = vpop.f32.mrf.mxu1  ;;  %v9573_v9 = vsel %vm9567_vm3, %v9276_v2, %v10292_v10 }
 0x607   :  { %v9487_v32 = vsub.f32 0.0, %v15229_v18  ;;  %v15233_v40 = vadd.f32 %v9234_v48, %v15207_v29  ;;  %v9602_v63 = vcombine.low %v9572_v47, %v9573_v9 }
 0x608   :  { %v9236_v26 = vpop.f32.mrf.mxu1 }
 0x609   :  { %v9505_v46 = vmul.f32 1.442695, %v9487_v32  ;;  %v9488_v12 = vsub.f32 0.0, %v15233_v40  ;;  %9618 = vst [vmem:[#allocation5 + $0x10] sm:$0xff] %v9602_v63 }
 0x60a   :  { %v9237_v54 = vpop.f32.mrf.mxu1 }
 0x60b   :  { %v10294_v16 = vpop.eup %10293  ;;  %10297 = vpow2.f32 %v9505_v46  ;;  %v9507_v28 = vmul.f32 1.442695, %v9488_v12 }
 0x60c   :  { %v9541_v35 = vadd.f32 1.0, %v10294_v16 }
 0x60d   :  { %v9437_v41 = vpop.f32.mrf.mxu0  ;;  %v10296_v22 = vpop.eup %10295  ;;  %10299 = vpow2.f32 %v9507_v28 }
 0x60e   :  { %v15237_v49 = vadd.f32 %v9437_v41, %v15207_v29  ;;  %10301 = vrcp.f32 %v9541_v35  ;;  %v9542_v33 = vadd.f32 1.0, %v10296_v22 }
 0x60f   :  { %v9439_v56 = vpop.f32.mrf.mxu0 }
 0x610   :  { %v9497_v55 = vsub.f32 0.0, %v15237_v49  ;;  %v15245_v31 = vadd.f32 %v9439_v56, %v15207_v29  ;;  %10303 = vrcp.f32 %v9542_v33 }
 0x611   :  { %v9441_v51 = vpop.f32.mrf.mxu0 }
 0x612   :  { %v9525_v59 = vmul.f32 1.442695, %v9497_v55  ;;  %v9498_v27 = vsub.f32 0.0, %v15245_v31 }
 0x613   :  { %v9442_v21 = vpop.f32.mrf.mxu0 }
 0x614   :  { %v9527_v0 = vmul.f32 1.442695, %v9498_v27  ;;  %10305 = vpow2.f32 %v9525_v59  ;;  %v9314_v5 = vpop.f32.mrf.mxu1 }
 0x615   :  { %v15249_v42 = vadd.f32 %v9314_v5, %v15207_v29 }
 0x616   :  { %10307 = vpow2.f32 %v9527_v0  ;;  %v9316_v23 = vpop.f32.mrf.mxu1 }
 0x617   :  { %v9491_v13 = vsub.f32 0.0, %v15249_v42  ;;  %v15253_v39 = vadd.f32 %v9316_v23, %v15207_v29 }
 0x618   :  { %v10298_v24 = vpop.eup %10297  ;;  %v9318_v2 = vpop.f32.mrf.mxu1 }
 0x619   :  { %v9535_v8 = vadd.f32 1.0, %v10298_v24  ;;  %v9513_v61 = vmul.f32 1.442695, %v9491_v13  ;;  %v9492_v50 = vsub.f32 0.0, %v15253_v39 }
 0x61a   :  { %v10300_v44 = vpop.eup %10299  ;;  %v9319_v58 = vpop.f32.mrf.mxu1 }
 0x61b   :  { %v10302_v11 = vpop.eup %10301  ;;  %10309 = vrcp.f32 %v9535_v8  ;;  %v9536_v17 = vadd.f32 1.0, %v10300_v44  ;;  %v9515_v3 = vmul.f32 1.442695, %v9492_v50 }
 0x61c   :  { %10311 = vpow2.f32 %v9513_v61  ;;  %v9576_v25 = vsel %vm9567_vm3, %v15221_v15, %v10302_v11 }
 0x61d   :  { %v10304_v4 = vpop.eup %10303  ;;  %10313 = vrcp.f32 %v9536_v17 }
 0x61e   :  { %10315 = vpow2.f32 %v9515_v3  ;;  %v9577_v36 = vsel %vm9567_vm3, %v15225_v57, %v10304_v4 }
 0x61f   :  { %v9604_v6 = vcombine.low %v9576_v25, %v9577_v36 }
 0x621   :  { %v10306_v34 = vpop.eup %10305  ;;  %9620 = vst [vmem:[#allocation5 + $0x20] sm:$0xff] %v9604_v6 }
 0x622   :  { %v9545_v30 = vadd.f32 1.0, %v10306_v34 }
 0x623   :  { %v10308_v53 = vpop.eup %10307 }
 0x624   :  { %v9546_v1 = vadd.f32 1.0, %v10308_v53  ;;  %10317 = vrcp.f32 %v9545_v30  ;;  %v9396_v45 = vpop.f32.mrf.mxu1 }
 0x625   :  { %v9397_v20 = vadd.f32 %v9396_v45, %v15207_v29 }
 0x626   :  { %10319 = vrcp.f32 %v9546_v1  ;;  %v9398_v7 = vpop.f32.mrf.mxu1 }
 0x627   :  { %v9495_v52 = vsub.f32 0.0, %v9397_v20  ;;  %v9399_v62 = vadd.f32 %v9398_v7, %v15207_v29 }
 0x628   :  { %v10310_v43 = vpop.eup %10309  ;;  %v9400_v15 = vpop.f32.mrf.mxu1 }
 0x629   :  { %v10312_v38 = vpop.eup %10311  ;;  %v9521_v60 = vmul.f32 1.442695, %v9495_v52  ;;  %v9496_v37 = vsub.f32 0.0, %v9399_v62  ;;  %v9570_v26 = vsel %vm9567_vm3, %v15229_v18, %v10310_v43 }
 0x62a   :  { %v10314_v57 = vpop.eup %10313  ;;  %v9539_v48 = vadd.f32 1.0, %v10312_v38  ;;  %v9401_v32 = vpop.f32.mrf.mxu1 }
 0x62b   :  { %v10316_v19 = vpop.eup %10315  ;;  %v9571_v46 = vsel %vm9567_vm3, %v15233_v40, %v10314_v57  ;;  %10321 = vpow2.f32 %v9521_v60  ;;  %v9523_v12 = vmul.f32 1.442695, %v9496_v37 }
 0x62c   :  { %v9601_v41 = vcombine.low %v9570_v26, %v9571_v46  ;;  %10323 = vrcp.f32 %v9539_v48  ;;  %v9540_v10 = vadd.f32 1.0, %v10316_v19 }
 0x62d   :  { %10325 = vpow2.f32 %v9523_v12 }
 0x62e   :  { %9617 = vst [vmem:[#allocation5 + $0x8] sm:$0xff] %v9601_v41  ;;  %10327 = vrcp.f32 %v9540_v10 }
 0x631   :  { %v10318_v54 = vpop.eup %10317 }
 0x632   :  { %v9580_v28 = vsel %vm9567_vm3, %v15237_v49, %v10318_v54 }
 0x633   :  { %v10320_v16 = vpop.eup %10319 }
 0x634   :  { %v9581_v18 = vsel %vm9567_vm3, %v15245_v31, %v10320_v16  ;;  %v9478_v40 = vpop.f32.mrf.mxu1 }
 0x635   :  { %v9606_v47 = vcombine.low %v9580_v28, %v9581_v18  ;;  %v9479_v9 = vadd.f32 %v9478_v40, %v15207_v29 }
 0x636   :  { %v9480_v56 = vpop.f32.mrf.mxu1 }
 0x637   :  { %9622 = vst [vmem:[#allocation5 + $0x30] sm:$0xff] %v9606_v47  ;;  %v9499_v63 = vsub.f32 0.0, %v9479_v9  ;;  %v9481_v35 = vadd.f32 %v9480_v56, %v15207_v29 }
 0x638   :  { %v10322_v55 = vpop.eup %10321  ;;  %v9482_v22 = vpop.f32.mrf.mxu1 }
 0x639   :  { %v10324_v51 = vpop.eup %10323  ;;  %v9543_v33 = vadd.f32 1.0, %v10322_v55  ;;  %v9529_v59 = vmul.f32 1.442695, %v9499_v63  ;;  %v9500_v27 = vsub.f32 0.0, %v9481_v35 }
 0x63a   :  { %v10326_v49 = vpop.eup %10325  ;;  %v9483_v21 = vpop.f32.mrf.mxu1  ;;  %v9574_v23 = vsel %vm9567_vm3, %v15249_v42, %v10324_v51 }
 0x63b   :  { %v10328_v0 = vpop.eup %10327  ;;  %10329 = vrcp.f32 %v9543_v33  ;;  %v9544_v31 = vadd.f32 1.0, %v10326_v49  ;;  %v9531_v5 = vmul.f32 1.442695, %v9500_v27 }
 0x63c   :  { %v9575_v29 = vsel %vm9567_vm3, %v15253_v39, %v10328_v0  ;;  %10331 = vpow2.f32 %v9529_v59 }
 0x63d   :  { %v9603_v13 = vcombine.low %v9574_v23, %v9575_v29  ;;  %10333 = vrcp.f32 %v9544_v31 }
 0x63e   :  { %10335 = vpow2.f32 %v9531_v5 }
 0x63f   :  { %9619 = vst [vmem:[#allocation5 + $0x18] sm:$0xff] %v9603_v13 }
 0x648   :  { %v10330_v24 = vpop.eup %10329 }
 0x649   :  { %v10332_v2 = vpop.eup %10331  ;;  %v9578_v44 = vsel %vm9567_vm3, %v9397_v20, %v10330_v24 }
 0x64a   :  { %v10334_v8 = vpop.eup %10333  ;;  %v9547_v61 = vadd.f32 1.0, %v10332_v2 }
 0x64b   :  { %v10336_v50 = vpop.eup %10335  ;;  %v9579_v42 = vsel %vm9567_vm3, %v9399_v62, %v10334_v8 }
 0x64c   :  { %v9605_v58 = vcombine.low %v9578_v44, %v9579_v42  ;;  %10337 = vrcp.f32 %v9547_v61  ;;  %v9548_v11 = vadd.f32 1.0, %v10336_v50 }
 0x64e   :  { %9621 = vst [vmem:[#allocation5 + $0x28] sm:$0xff] %v9605_v58  ;;  %10339 = vrcp.f32 %v9548_v11 }
 0x659   :  { %v10338_v39 = vpop.eup %10337 }
 0x65a   :  { %v9582_v3 = vsel %vm9567_vm3, %v9479_v9, %v10338_v39 }
 0x65b   :  { %v10340_v17 = vpop.eup %10339 }
 0x65c   :  { %v9583_v4 = vsel %vm9567_vm3, %v9481_v35, %v10340_v17 }
 0x65d   :  { %v9607_v34 = vcombine.low %v9582_v3, %v9583_v4 }
 0x65f   :  { %9623 = vst [vmem:[#allocation5 + $0x38] sm:$0xff] %v9607_v34 }
 0x660   :  { %10380 = shalt.err (!%p10377_p9)
}
 0x661   :  { %9633 = dma.vmem_to_hbm [thread:$0]  %s9631_s30, 1024, %s15305_s10, [#allocation4]  }
 0x662   :  { %10391 = dma.done.wait [#allocation4], 1024  }
 0x663   :  { %10392 = vsyncadd [#allocation4], 4294966272 }
 0x664   :  { %9637 = vsyncpa [#allocation3], 1 }
 0x665   :  { %9638 = vsyncpa [#allocation4], 1 }

</bundles_post_ra>
